<compile_context>
chip_gen: v7x
topology: tpu7x:2x2x1
jax: 0.10.0
libtpu: 0.0.40
codegen_flags: <defaults>
</compile_context>

<pallas_src>
import jax
import jax.numpy as jnp
import numpy as np
from jax import lax
from jax.experimental import pallas as pl
from jax.experimental.pallas import tpu as pltpu

H_IN, W_IN = 100, 30
H_C, W_C = 96, 26            # after 5x5 valid conv
H_P, W_P = 48, 13            # after 2x2 maxpool
C_OUT = 8
QPC = H_P * W_P              # 624 pooled features per channel
FLAT = C_OUT * QPC           # 4992
HID = 300
NCLS = 6
EPS = 1e-5

XPAD = 3200                  # padded flat image length (>= 3071 + 124), 25*128
PW = 3072                    # conv-output flat width, 24*128
MW = 2944                    # pooled-map width (covers max anchor 2844), 23*128
KEXT = 32                    # conv contraction: 25 taps + 1 bias row + 6 zero pad


def cnn2d_fused_kernel(x_ref, wext_ref, s_ref, w1_ref, fb1_ref, w2_ref, fb2_ref,
                       out_ref, p_ref):
    # ---- build im2col patch matrix (KEXT, PW) in VMEM scratch (lane-dense rows)
    xrow = x_ref[0]                                          # (1, XPAD)
    for di in range(5):
        for dj in range(5):
            off = di * W_IN + dj
            p_ref[pl.ds(di * 5 + dj, 1), :] = xrow[:, off:off + PW]
    # row 25 carries the folded bias (weight column 25 = b_eff); rows 26..31 are
    # padding multiplied by exactly-zero weights (kept finite to avoid 0*garbage).
    p_ref[pl.ds(25, KEXT - 25), :] = jnp.ones((KEXT - 25, PW), jnp.float32)

    # ---- fused Conv1x1 + Conv5x5 + BatchNorm on the MXU, then ReLU
    z = jnp.dot(wext_ref[...], p_ref[...],
                preferred_element_type=jnp.float32)          # (8, PW)
    z = jnp.maximum(z, 0.0)
    # TODO(synk): Dropout2d(0.5) / Dropout(0.5) are identity in eval mode; not modeled.

    # ---- 2x2 max-pool: shift-and-max along the flat (lane) axis; the stride-2
    #      anchor selection / reordering is folded into the constant matrix S.
    m = jnp.maximum(jnp.maximum(z[:, 0:MW], z[:, 1:1 + MW]),
                    jnp.maximum(z[:, W_IN:W_IN + MW],
                                z[:, W_IN + 1:W_IN + 1 + MW]))   # (8, MW)

    # ---- gather pooled anchors into torch (C, Hp, Wp) order on the MXU: (8, QPC)
    compact = jnp.dot(m.astype(jnp.bfloat16), s_ref[...],
                      preferred_element_type=jnp.float32)
    cb = compact.astype(jnp.bfloat16)

    # ---- FC1 (bf16 weights, f32 accumulation) + bias + ReLU
    h = fb1_ref[...]                                         # (1, HID) f32
    for co in range(C_OUT):
        h = h + jnp.dot(cb[co:co + 1, :], w1_ref[co],
                        preferred_element_type=jnp.float32)
    h = jnp.maximum(h, 0.0)

    # ---- FC2
    o = jnp.dot(h, w2_ref[...], preferred_element_type=jnp.float32) + fb2_ref[...]
    out_ref[...] = o[None].astype(out_ref.dtype)


def _fold_conv_bn(p):
    """Fold conv1(1x1) + conv2 bias + eval BatchNorm into one (8, KEXT) weight."""
    bns = p["bn_gamma"] / jnp.sqrt(p["bn_var"] + EPS)                    # (8,)
    bnsh = p["bn_beta"] - p["bn_mean"] * bns
    w1 = p["conv1_w"].reshape(C_OUT)                                     # (8,)
    w2 = p["conv2_w"]                                                    # (8,8,5,5)
    w_eff = (w2 * w1[None, :, None, None]).sum(axis=1) * bns[:, None, None]  # (8,5,5)
    b_eff = bns * (p["conv2_b"]
                   + (w2.sum(axis=(2, 3)) * p["conv1_b"][None, :]).sum(axis=1)) + bnsh
    w_ext = jnp.concatenate(
        [w_eff.reshape(C_OUT, 25), b_eff[:, None],
         jnp.zeros((C_OUT, KEXT - 26), jnp.float32)], axis=1)            # (8, KEXT)
    return w_ext


def _selection_matrix():
    """(MW, QPC) 0/1 matrix: flat conv index (2hp)*30 + 2wp -> pooled index hp*13+wp."""
    s = np.zeros((MW, QPC), np.float32)
    for hp in range(H_P):
        for wp in range(W_P):
            s[(2 * hp) * W_IN + 2 * wp, hp * W_P + wp] = 1.0
    return jnp.asarray(s, jnp.bfloat16)


def cnn2d_forward(x, p):
    n = x.shape[0]
    w_ext = _fold_conv_bn(p)
    sel = _selection_matrix()
    w1r = p["fc1_w"].reshape(C_OUT, QPC, HID).astype(jnp.bfloat16)  # bf16 fc1 weights
    fc1b = p["fc1_b"].reshape(1, HID)
    fc2w = p["fc2_w"]
    fc2b = p["fc2_b"].reshape(1, NCLS)

    xflat = jnp.zeros((n, 1, XPAD), jnp.float32)
    xflat = xflat.at[:, 0, :H_IN * W_IN].set(x.reshape(n, H_IN * W_IN))

    out = pl.pallas_call(
        cnn2d_fused_kernel,
        out_shape=jax.ShapeDtypeStruct((n, 1, NCLS), jnp.float32),
        grid=(n,),
        in_specs=[
            pl.BlockSpec((1, 1, XPAD), lambda b: (b, 0, 0)),        # x (per element)
            pl.BlockSpec((C_OUT, KEXT), lambda b: (0, 0)),          # folded conv wts
            pl.BlockSpec((MW, QPC), lambda b: (0, 0)),              # pooling/select S
            pl.BlockSpec((C_OUT, QPC, HID), lambda b: (0, 0, 0)),   # fc1 w (bf16)
            pl.BlockSpec((1, HID), lambda b: (0, 0)),               # fc1 b
            pl.BlockSpec((HID, NCLS), lambda b: (0, 0)),            # fc2 w
            pl.BlockSpec((1, NCLS), lambda b: (0, 0)),              # fc2 b
        ],
        out_specs=pl.BlockSpec((1, 1, NCLS), lambda b: (b, 0, 0)),
        scratch_shapes=[pltpu.VMEM((KEXT, PW), jnp.float32)],       # im2col patches
        compiler_params=pltpu.CompilerParams(
            dimension_semantics=("parallel",),                      # v7x megacore
            vmem_limit_bytes=48 * 1024 * 1024,                      # < 64 MiB (v7x)
        ),
    )(xflat, w_ext, sel, w1r, fc1b, fc2w, fc2b)
    return out.reshape(n, NCLS)


def init_params(key):
    ks = jax.random.split(key, 8)
    return {
        "conv1_w": jax.random.normal(ks[0], (8, 1, 1, 1), jnp.float32) * 0.2,
        "conv1_b": jax.random.normal(ks[1], (8,), jnp.float32) * 0.1,
        "conv2_w": jax.random.normal(ks[2], (8, 8, 5, 5), jnp.float32) * 0.05,
        "conv2_b": jax.random.normal(ks[3], (8,), jnp.float32) * 0.05,
        "bn_gamma": jnp.ones((8,), jnp.float32),
        "bn_beta": jnp.zeros((8,), jnp.float32),
        "bn_mean": jnp.zeros((8,), jnp.float32),
        "bn_var": jnp.ones((8,), jnp.float32),
        "fc1_w": jax.random.normal(ks[4], (FLAT, HID), jnp.float32) * 0.02,
        "fc1_b": jax.random.normal(ks[5], (HID,), jnp.float32) * 0.02,
        "fc2_w": jax.random.normal(ks[6], (HID, NCLS), jnp.float32) * 0.05,
        "fc2_b": jax.random.normal(ks[7], (NCLS,), jnp.float32) * 0.05,
    }


def reference_forward(x, p):
    dn = ("NCHW", "OIHW", "NCHW")
    y = lax.conv_general_dilated(x, p["conv1_w"], (1, 1), "VALID", dimension_numbers=dn)
    y = y + p["conv1_b"][None, :, None, None]
    y = lax.conv_general_dilated(y, p["conv2_w"], (1, 1), "VALID", dimension_numbers=dn)
    y = y + p["conv2_b"][None, :, None, None]
    y = (y - p["bn_mean"][None, :, None, None]) / jnp.sqrt(
        p["bn_var"][None, :, None, None] + EPS)
    y = y * p["bn_gamma"][None, :, None, None] + p["bn_beta"][None, :, None, None]
    y = jnp.maximum(y, 0.0)
    n = x.shape[0]
    y = y.reshape(n, C_OUT, H_P, 2, W_P, 2).max(axis=(3, 5))
    flat = y.reshape(n, FLAT)
    h = jnp.maximum(flat @ p["fc1_w"] + p["fc1_b"], 0.0)
    return h @ p["fc2_w"] + p["fc2_b"]


if __name__ == "__main__":
    key = jax.random.PRNGKey(0)
    kx, kp = jax.random.split(key)
    x = jax.random.normal(kx, (2, 1, H_IN, W_IN), jnp.float32)
    params = init_params(kp)

    out = cnn2d_forward(x, params)
    out = jax.block_until_ready(out)

    ref = reference_forward(x, params)
    assert out.shape == (2, NCLS), out.shape
    # fc1 weights / pooling-select matrix are bf16 in the kernel (f32 accumulation),
    # so compare against the f32 reference with a slightly relaxed tolerance.
    assert jnp.allclose(out, ref, atol=1e-2, rtol=1e-2), (out, ref)
    print("KERNEL_OK")
</pallas_src>

<mosaic_0001>
module attributes {stable_mosaic.version = 11 : i64} {
  func.func @cnn2d_fused_kernel(%arg0: i32, %arg1: memref<1x1x3200xf32, #tpu.memory_space<vmem>>, %arg2: memref<8x32xf32, #tpu.memory_space<vmem>>, %arg3: memref<2944x624xbf16, #tpu.memory_space<vmem>>, %arg4: memref<8x624x300xbf16, #tpu.memory_space<vmem>>, %arg5: memref<1x300xf32, #tpu.memory_space<vmem>>, %arg6: memref<300x6xf32, #tpu.memory_space<vmem>>, %arg7: memref<1x6xf32, #tpu.memory_space<vmem>>, %arg8: memref<1x1x6xf32, #tpu.memory_space<vmem>>, %arg9: memref<32x3072xf32, #tpu.memory_space<vmem>>) attributes {dimension_semantics = [#tpu.dimension_semantics<parallel>], iteration_bounds = array<i64: 2>, scalar_prefetch = 0 : i64, scratch_operands = 1 : i64, tpu.core_type = #tpu.core_type<tc>, window_params = [{transform_indices = @transform_0, window_bounds = array<i64: 1, 1, 3200>}, {pipeline_mode = #tpu.pipeline_mode<synchronous>, transform_indices = @transform_1, window_bounds = array<i64: 8, 32>}, {pipeline_mode = #tpu.pipeline_mode<synchronous>, transform_indices = @transform_2, window_bounds = array<i64: 2944, 624>}, {pipeline_mode = #tpu.pipeline_mode<synchronous>, transform_indices = @transform_3, window_bounds = array<i64: 8, 624, 300>}, {pipeline_mode = #tpu.pipeline_mode<synchronous>, transform_indices = @transform_4, window_bounds = array<i64: 1, 300>}, {pipeline_mode = #tpu.pipeline_mode<synchronous>, transform_indices = @transform_5, window_bounds = array<i64: 300, 6>}, {pipeline_mode = #tpu.pipeline_mode<synchronous>, transform_indices = @transform_6, window_bounds = array<i64: 1, 6>}, {transform_indices = @transform_7, window_bounds = array<i64: 1, 1, 6>}]} {
    %c0 = arith.constant 0 : index
    %c0_0 = arith.constant 0 : index
    %c0_1 = arith.constant 0 : index
    %0 = vector.load %arg1[%c0, %c0_0, %c0_1] : memref<1x1x3200xf32, #tpu.memory_space<vmem>>, vector<1x1x3200xf32>
    %1 = vector.shape_cast %0 : vector<1x1x3200xf32> to vector<1x3200xf32>
    %2 = vector.extract_strided_slice %1 {offsets = [0, 0], sizes = [1, 3072], strides = [1, 1]} : vector<1x3200xf32> to vector<1x3072xf32>
    %c0_2 = arith.constant 0 : index
    %c0_3 = arith.constant 0 : index
    %3 = vector.load %arg9[%c0_2, %c0_3] : memref<32x3072xf32, #tpu.memory_space<vmem>>, vector<1x3072xf32>
    tpu.vector_store %arg9[%c0_2, %c0_3], %2 {strides = array<i32>} : memref<32x3072xf32, #tpu.memory_space<vmem>>, vector<1x3072xf32>,
    %4 = vector.extract_strided_slice %1 {offsets = [0, 1], sizes = [1, 3072], strides = [1, 1]} : vector<1x3200xf32> to vector<1x3072xf32>
    %c1 = arith.constant 1 : index
    %c0_4 = arith.constant 0 : index
    %5 = vector.load %arg9[%c1, %c0_4] : memref<32x3072xf32, #tpu.memory_space<vmem>>, vector<1x3072xf32>
    tpu.vector_store %arg9[%c1, %c0_4], %4 {strides = array<i32>} : memref<32x3072xf32, #tpu.memory_space<vmem>>, vector<1x3072xf32>,
    %6 = vector.extract_strided_slice %1 {offsets = [0, 2], sizes = [1, 3072], strides = [1, 1]} : vector<1x3200xf32> to vector<1x3072xf32>
    %c2 = arith.constant 2 : index
    %c0_5 = arith.constant 0 : index
    %7 = vector.load %arg9[%c2, %c0_5] : memref<32x3072xf32, #tpu.memory_space<vmem>>, vector<1x3072xf32>
    tpu.vector_store %arg9[%c2, %c0_5], %6 {strides = array<i32>} : memref<32x3072xf32, #tpu.memory_space<vmem>>, vector<1x3072xf32>,
    %8 = vector.extract_strided_slice %1 {offsets = [0, 3], sizes = [1, 3072], strides = [1, 1]} : vector<1x3200xf32> to vector<1x3072xf32>
    %c3 = arith.constant 3 : index
    %c0_6 = arith.constant 0 : index
    %9 = vector.load %arg9[%c3, %c0_6] : memref<32x3072xf32, #tpu.memory_space<vmem>>, vector<1x3072xf32>
    tpu.vector_store %arg9[%c3, %c0_6], %8 {strides = array<i32>} : memref<32x3072xf32, #tpu.memory_space<vmem>>, vector<1x3072xf32>,
    %10 = vector.extract_strided_slice %1 {offsets = [0, 4], sizes = [1, 3072], strides = [1, 1]} : vector<1x3200xf32> to vector<1x3072xf32>
    %c4 = arith.constant 4 : index
    %c0_7 = arith.constant 0 : index
    %11 = vector.load %arg9[%c4, %c0_7] : memref<32x3072xf32, #tpu.memory_space<vmem>>, vector<1x3072xf32>
    tpu.vector_store %arg9[%c4, %c0_7], %10 {strides = array<i32>} : memref<32x3072xf32, #tpu.memory_space<vmem>>, vector<1x3072xf32>,
    %12 = vector.extract_strided_slice %1 {offsets = [0, 30], sizes = [1, 3072], strides = [1, 1]} : vector<1x3200xf32> to vector<1x3072xf32>
    %c5 = arith.constant 5 : index
    %c0_8 = arith.constant 0 : index
    %13 = vector.load %arg9[%c5, %c0_8] : memref<32x3072xf32, #tpu.memory_space<vmem>>, vector<1x3072xf32>
    tpu.vector_store %arg9[%c5, %c0_8], %12 {strides = array<i32>} : memref<32x3072xf32, #tpu.memory_space<vmem>>, vector<1x3072xf32>,
    %14 = vector.extract_strided_slice %1 {offsets = [0, 31], sizes = [1, 3072], strides = [1, 1]} : vector<1x3200xf32> to vector<1x3072xf32>
    %c6 = arith.constant 6 : index
    %c0_9 = arith.constant 0 : index
    %15 = vector.load %arg9[%c6, %c0_9] : memref<32x3072xf32, #tpu.memory_space<vmem>>, vector<1x3072xf32>
    tpu.vector_store %arg9[%c6, %c0_9], %14 {strides = array<i32>} : memref<32x3072xf32, #tpu.memory_space<vmem>>, vector<1x3072xf32>,
    %16 = vector.extract_strided_slice %1 {offsets = [0, 32], sizes = [1, 3072], strides = [1, 1]} : vector<1x3200xf32> to vector<1x3072xf32>
    %c7 = arith.constant 7 : index
    %c0_10 = arith.constant 0 : index
    %17 = vector.load %arg9[%c7, %c0_10] : memref<32x3072xf32, #tpu.memory_space<vmem>>, vector<1x3072xf32>
    tpu.vector_store %arg9[%c7, %c0_10], %16 {strides = array<i32>} : memref<32x3072xf32, #tpu.memory_space<vmem>>, vector<1x3072xf32>,
    %18 = vector.extract_strided_slice %1 {offsets = [0, 33], sizes = [1, 3072], strides = [1, 1]} : vector<1x3200xf32> to vector<1x3072xf32>
    %c8 = arith.constant 8 : index
    %c0_11 = arith.constant 0 : index
    %19 = vector.load %arg9[%c8, %c0_11] : memref<32x3072xf32, #tpu.memory_space<vmem>>, vector<1x3072xf32>
    tpu.vector_store %arg9[%c8, %c0_11], %18 {strides = array<i32>} : memref<32x3072xf32, #tpu.memory_space<vmem>>, vector<1x3072xf32>,
    %20 = vector.extract_strided_slice %1 {offsets = [0, 34], sizes = [1, 3072], strides = [1, 1]} : vector<1x3200xf32> to vector<1x3072xf32>
    %c9 = arith.constant 9 : index
    %c0_12 = arith.constant 0 : index
    %21 = vector.load %arg9[%c9, %c0_12] : memref<32x3072xf32, #tpu.memory_space<vmem>>, vector<1x3072xf32>
    tpu.vector_store %arg9[%c9, %c0_12], %20 {strides = array<i32>} : memref<32x3072xf32, #tpu.memory_space<vmem>>, vector<1x3072xf32>,
    %22 = vector.extract_strided_slice %1 {offsets = [0, 60], sizes = [1, 3072], strides = [1, 1]} : vector<1x3200xf32> to vector<1x3072xf32>
    %c10 = arith.constant 10 : index
    %c0_13 = arith.constant 0 : index
    %23 = vector.load %arg9[%c10, %c0_13] : memref<32x3072xf32, #tpu.memory_space<vmem>>, vector<1x3072xf32>
    tpu.vector_store %arg9[%c10, %c0_13], %22 {strides = array<i32>} : memref<32x3072xf32, #tpu.memory_space<vmem>>, vector<1x3072xf32>,
    %24 = vector.extract_strided_slice %1 {offsets = [0, 61], sizes = [1, 3072], strides = [1, 1]} : vector<1x3200xf32> to vector<1x3072xf32>
    %c11 = arith.constant 11 : index
    %c0_14 = arith.constant 0 : index
    %25 = vector.load %arg9[%c11, %c0_14] : memref<32x3072xf32, #tpu.memory_space<vmem>>, vector<1x3072xf32>
    tpu.vector_store %arg9[%c11, %c0_14], %24 {strides = array<i32>} : memref<32x3072xf32, #tpu.memory_space<vmem>>, vector<1x3072xf32>,
    %26 = vector.extract_strided_slice %1 {offsets = [0, 62], sizes = [1, 3072], strides = [1, 1]} : vector<1x3200xf32> to vector<1x3072xf32>
    %c12 = arith.constant 12 : index
    %c0_15 = arith.constant 0 : index
    %27 = vector.load %arg9[%c12, %c0_15] : memref<32x3072xf32, #tpu.memory_space<vmem>>, vector<1x3072xf32>
    tpu.vector_store %arg9[%c12, %c0_15], %26 {strides = array<i32>} : memref<32x3072xf32, #tpu.memory_space<vmem>>, vector<1x3072xf32>,
    %28 = vector.extract_strided_slice %1 {offsets = [0, 63], sizes = [1, 3072], strides = [1, 1]} : vector<1x3200xf32> to vector<1x3072xf32>
    %c13 = arith.constant 13 : index
    %c0_16 = arith.constant 0 : index
    %29 = vector.load %arg9[%c13, %c0_16] : memref<32x3072xf32, #tpu.memory_space<vmem>>, vector<1x3072xf32>
    tpu.vector_store %arg9[%c13, %c0_16], %28 {strides = array<i32>} : memref<32x3072xf32, #tpu.memory_space<vmem>>, vector<1x3072xf32>,
    %30 = vector.extract_strided_slice %1 {offsets = [0, 64], sizes = [1, 3072], strides = [1, 1]} : vector<1x3200xf32> to vector<1x3072xf32>
    %c14 = arith.constant 14 : index
    %c0_17 = arith.constant 0 : index
    %31 = vector.load %arg9[%c14, %c0_17] : memref<32x3072xf32, #tpu.memory_space<vmem>>, vector<1x3072xf32>
    tpu.vector_store %arg9[%c14, %c0_17], %30 {strides = array<i32>} : memref<32x3072xf32, #tpu.memory_space<vmem>>, vector<1x3072xf32>,
    %32 = vector.extract_strided_slice %1 {offsets = [0, 90], sizes = [1, 3072], strides = [1, 1]} : vector<1x3200xf32> to vector<1x3072xf32>
    %c15 = arith.constant 15 : index
    %c0_18 = arith.constant 0 : index
    %33 = vector.load %arg9[%c15, %c0_18] : memref<32x3072xf32, #tpu.memory_space<vmem>>, vector<1x3072xf32>
    tpu.vector_store %arg9[%c15, %c0_18], %32 {strides = array<i32>} : memref<32x3072xf32, #tpu.memory_space<vmem>>, vector<1x3072xf32>,
    %34 = vector.extract_strided_slice %1 {offsets = [0, 91], sizes = [1, 3072], strides = [1, 1]} : vector<1x3200xf32> to vector<1x3072xf32>
    %c16 = arith.constant 16 : index
    %c0_19 = arith.constant 0 : index
    %35 = vector.load %arg9[%c16, %c0_19] : memref<32x3072xf32, #tpu.memory_space<vmem>>, vector<1x3072xf32>
    tpu.vector_store %arg9[%c16, %c0_19], %34 {strides = array<i32>} : memref<32x3072xf32, #tpu.memory_space<vmem>>, vector<1x3072xf32>,
    %36 = vector.extract_strided_slice %1 {offsets = [0, 92], sizes = [1, 3072], strides = [1, 1]} : vector<1x3200xf32> to vector<1x3072xf32>
    %c17 = arith.constant 17 : index
    %c0_20 = arith.constant 0 : index
    %37 = vector.load %arg9[%c17, %c0_20] : memref<32x3072xf32, #tpu.memory_space<vmem>>, vector<1x3072xf32>
    tpu.vector_store %arg9[%c17, %c0_20], %36 {strides = array<i32>} : memref<32x3072xf32, #tpu.memory_space<vmem>>, vector<1x3072xf32>,
    %38 = vector.extract_strided_slice %1 {offsets = [0, 93], sizes = [1, 3072], strides = [1, 1]} : vector<1x3200xf32> to vector<1x3072xf32>
    %c18 = arith.constant 18 : index
    %c0_21 = arith.constant 0 : index
    %39 = vector.load %arg9[%c18, %c0_21] : memref<32x3072xf32, #tpu.memory_space<vmem>>, vector<1x3072xf32>
    tpu.vector_store %arg9[%c18, %c0_21], %38 {strides = array<i32>} : memref<32x3072xf32, #tpu.memory_space<vmem>>, vector<1x3072xf32>,
    %40 = vector.extract_strided_slice %1 {offsets = [0, 94], sizes = [1, 3072], strides = [1, 1]} : vector<1x3200xf32> to vector<1x3072xf32>
    %c19 = arith.constant 19 : index
    %c0_22 = arith.constant 0 : index
    %41 = vector.load %arg9[%c19, %c0_22] : memref<32x3072xf32, #tpu.memory_space<vmem>>, vector<1x3072xf32>
    tpu.vector_store %arg9[%c19, %c0_22], %40 {strides = array<i32>} : memref<32x3072xf32, #tpu.memory_space<vmem>>, vector<1x3072xf32>,
    %42 = vector.extract_strided_slice %1 {offsets = [0, 120], sizes = [1, 3072], strides = [1, 1]} : vector<1x3200xf32> to vector<1x3072xf32>
    %c20 = arith.constant 20 : index
    %c0_23 = arith.constant 0 : index
    %43 = vector.load %arg9[%c20, %c0_23] : memref<32x3072xf32, #tpu.memory_space<vmem>>, vector<1x3072xf32>
    tpu.vector_store %arg9[%c20, %c0_23], %42 {strides = array<i32>} : memref<32x3072xf32, #tpu.memory_space<vmem>>, vector<1x3072xf32>,
    %44 = vector.extract_strided_slice %1 {offsets = [0, 121], sizes = [1, 3072], strides = [1, 1]} : vector<1x3200xf32> to vector<1x3072xf32>
    %c21 = arith.constant 21 : index
    %c0_24 = arith.constant 0 : index
    %45 = vector.load %arg9[%c21, %c0_24] : memref<32x3072xf32, #tpu.memory_space<vmem>>, vector<1x3072xf32>
    tpu.vector_store %arg9[%c21, %c0_24], %44 {strides = array<i32>} : memref<32x3072xf32, #tpu.memory_space<vmem>>, vector<1x3072xf32>,
    %46 = vector.extract_strided_slice %1 {offsets = [0, 122], sizes = [1, 3072], strides = [1, 1]} : vector<1x3200xf32> to vector<1x3072xf32>
    %c22 = arith.constant 22 : index
    %c0_25 = arith.constant 0 : index
    %47 = vector.load %arg9[%c22, %c0_25] : memref<32x3072xf32, #tpu.memory_space<vmem>>, vector<1x3072xf32>
    tpu.vector_store %arg9[%c22, %c0_25], %46 {strides = array<i32>} : memref<32x3072xf32, #tpu.memory_space<vmem>>, vector<1x3072xf32>,
    %48 = vector.extract_strided_slice %1 {offsets = [0, 123], sizes = [1, 3072], strides = [1, 1]} : vector<1x3200xf32> to vector<1x3072xf32>
    %c23 = arith.constant 23 : index
    %c0_26 = arith.constant 0 : index
    %49 = vector.load %arg9[%c23, %c0_26] : memref<32x3072xf32, #tpu.memory_space<vmem>>, vector<1x3072xf32>
    tpu.vector_store %arg9[%c23, %c0_26], %48 {strides = array<i32>} : memref<32x3072xf32, #tpu.memory_space<vmem>>, vector<1x3072xf32>,
    %50 = vector.extract_strided_slice %1 {offsets = [0, 124], sizes = [1, 3072], strides = [1, 1]} : vector<1x3200xf32> to vector<1x3072xf32>
    %c24 = arith.constant 24 : index
    %c0_27 = arith.constant 0 : index
    %51 = vector.load %arg9[%c24, %c0_27] : memref<32x3072xf32, #tpu.memory_space<vmem>>, vector<1x3072xf32>
    tpu.vector_store %arg9[%c24, %c0_27], %50 {strides = array<i32>} : memref<32x3072xf32, #tpu.memory_space<vmem>>, vector<1x3072xf32>,
    %cst = arith.constant 1.000000e+00 : f32
    %52 = vector.broadcast %cst : f32 to vector<7x3072xf32>
    %c25 = arith.constant 25 : index
    %c0_28 = arith.constant 0 : index
    %53 = vector.load %arg9[%c25, %c0_28] : memref<32x3072xf32, #tpu.memory_space<vmem>>, vector<7x3072xf32>
    tpu.vector_store %arg9[%c25, %c0_28], %52 {strides = array<i32>} : memref<32x3072xf32, #tpu.memory_space<vmem>>, vector<7x3072xf32>,
    %c0_29 = arith.constant 0 : index
    %c0_30 = arith.constant 0 : index
    %54 = vector.load %arg2[%c0_29, %c0_30] : memref<8x32xf32, #tpu.memory_space<vmem>>, vector<8x32xf32>
    %c0_31 = arith.constant 0 : index
    %c0_32 = arith.constant 0 : index
    %55 = vector.load %arg9[%c0_31, %c0_32] : memref<32x3072xf32, #tpu.memory_space<vmem>>, vector<32x3072xf32>
    %cst_33 = arith.constant dense<0.000000e+00> : vector<8x3072xf32>
    %56 = tpu.matmul %54, %55, %cst_33 {dimension_numbers = #tpu.dot_dimension_numbers<[1], [0], [0], [1], [0, 0, 1, 1], [], []>} : vector<8x32xf32>, vector<32x3072xf32>, vector<8x3072xf32> -> vector<8x3072xf32>
    %cst_34 = arith.constant 0.000000e+00 : f32
    %57 = vector.broadcast %cst_34 : f32 to vector<8x3072xf32>
    %58 = arith.maximumf %56, %57 : vector<8x3072xf32>
    %59 = vector.extract_strided_slice %58 {offsets = [0, 0], sizes = [8, 2944], strides = [1, 1]} : vector<8x3072xf32> to vector<8x2944xf32>
    %60 = vector.extract_strided_slice %58 {offsets = [0, 1], sizes = [8, 2944], strides = [1, 1]} : vector<8x3072xf32> to vector<8x2944xf32>
    %61 = arith.maximumf %59, %60 : vector<8x2944xf32>
    %62 = vector.extract_strided_slice %58 {offsets = [0, 30], sizes = [8, 2944], strides = [1, 1]} : vector<8x3072xf32> to vector<8x2944xf32>
    %63 = vector.extract_strided_slice %58 {offsets = [0, 31], sizes = [8, 2944], strides = [1, 1]} : vector<8x3072xf32> to vector<8x2944xf32>
    %64 = arith.maximumf %62, %63 : vector<8x2944xf32>
    %65 = arith.maximumf %61, %64 : vector<8x2944xf32>
    %66 = arith.truncf %65 : vector<8x2944xf32> to vector<8x2944xbf16>
    %c0_35 = arith.constant 0 : index
    %c0_36 = arith.constant 0 : index
    %67 = vector.load %arg3[%c0_35, %c0_36] : memref<2944x624xbf16, #tpu.memory_space<vmem>>, vector<2944x624xbf16>
    %cst_37 = arith.constant dense<0.000000e+00> : vector<8x624xf32>
    %68 = tpu.matmul %66, %67, %cst_37 {dimension_numbers = #tpu.dot_dimension_numbers<[1], [0], [0], [1], [0, 0, 1, 1], [], []>} : vector<8x2944xbf16>, vector<2944x624xbf16>, vector<8x624xf32> -> vector<8x624xf32>
    %69 = arith.truncf %68 : vector<8x624xf32> to vector<8x624xbf16>
    %c0_38 = arith.constant 0 : index
    %c0_39 = arith.constant 0 : index
    %70 = vector.load %arg5[%c0_38, %c0_39] : memref<1x300xf32, #tpu.memory_space<vmem>>, vector<1x300xf32>
    %71 = vector.extract_strided_slice %69 {offsets = [0, 0], sizes = [1, 624], strides = [1, 1]} : vector<8x624xbf16> to vector<1x624xbf16>
    %c0_40 = arith.constant 0 : index
    %c0_41 = arith.constant 0 : index
    %c0_42 = arith.constant 0 : index
    %72 = vector.load %arg4[%c0_40, %c0_41, %c0_42] : memref<8x624x300xbf16, #tpu.memory_space<vmem>>, vector<1x624x300xbf16>
    %73 = vector.shape_cast %72 : vector<1x624x300xbf16> to vector<624x300xbf16>
    %cst_43 = arith.constant dense<0.000000e+00> : vector<1x300xf32>
    %74 = tpu.matmul %71, %73, %cst_43 {dimension_numbers = #tpu.dot_dimension_numbers<[1], [0], [0], [1], [0, 0, 1, 1], [], []>} : vector<1x624xbf16>, vector<624x300xbf16>, vector<1x300xf32> -> vector<1x300xf32>
    %75 = arith.addf %70, %74 : vector<1x300xf32>
    %76 = vector.extract_strided_slice %69 {offsets = [1, 0], sizes = [1, 624], strides = [1, 1]} : vector<8x624xbf16> to vector<1x624xbf16>
    %c1_44 = arith.constant 1 : index
    %c0_45 = arith.constant 0 : index
    %c0_46 = arith.constant 0 : index
    %77 = vector.load %arg4[%c1_44, %c0_45, %c0_46] : memref<8x624x300xbf16, #tpu.memory_space<vmem>>, vector<1x624x300xbf16>
    %78 = vector.shape_cast %77 : vector<1x624x300xbf16> to vector<624x300xbf16>
    %cst_47 = arith.constant dense<0.000000e+00> : vector<1x300xf32>
    %79 = tpu.matmul %76, %78, %cst_47 {dimension_numbers = #tpu.dot_dimension_numbers<[1], [0], [0], [1], [0, 0, 1, 1], [], []>} : vector<1x624xbf16>, vector<624x300xbf16>, vector<1x300xf32> -> vector<1x300xf32>
    %80 = arith.addf %75, %79 : vector<1x300xf32>
    %81 = vector.extract_strided_slice %69 {offsets = [2, 0], sizes = [1, 624], strides = [1, 1]} : vector<8x624xbf16> to vector<1x624xbf16>
    %c2_48 = arith.constant 2 : index
    %c0_49 = arith.constant 0 : index
    %c0_50 = arith.constant 0 : index
    %82 = vector.load %arg4[%c2_48, %c0_49, %c0_50] : memref<8x624x300xbf16, #tpu.memory_space<vmem>>, vector<1x624x300xbf16>
    %83 = vector.shape_cast %82 : vector<1x624x300xbf16> to vector<624x300xbf16>
    %cst_51 = arith.constant dense<0.000000e+00> : vector<1x300xf32>
    %84 = tpu.matmul %81, %83, %cst_51 {dimension_numbers = #tpu.dot_dimension_numbers<[1], [0], [0], [1], [0, 0, 1, 1], [], []>} : vector<1x624xbf16>, vector<624x300xbf16>, vector<1x300xf32> -> vector<1x300xf32>
    %85 = arith.addf %80, %84 : vector<1x300xf32>
    %86 = vector.extract_strided_slice %69 {offsets = [3, 0], sizes = [1, 624], strides = [1, 1]} : vector<8x624xbf16> to vector<1x624xbf16>
    %c3_52 = arith.constant 3 : index
    %c0_53 = arith.constant 0 : index
    %c0_54 = arith.constant 0 : index
    %87 = vector.load %arg4[%c3_52, %c0_53, %c0_54] : memref<8x624x300xbf16, #tpu.memory_space<vmem>>, vector<1x624x300xbf16>
    %88 = vector.shape_cast %87 : vector<1x624x300xbf16> to vector<624x300xbf16>
    %cst_55 = arith.constant dense<0.000000e+00> : vector<1x300xf32>
    %89 = tpu.matmul %86, %88, %cst_55 {dimension_numbers = #tpu.dot_dimension_numbers<[1], [0], [0], [1], [0, 0, 1, 1], [], []>} : vector<1x624xbf16>, vector<624x300xbf16>, vector<1x300xf32> -> vector<1x300xf32>
    %90 = arith.addf %85, %89 : vector<1x300xf32>
    %91 = vector.extract_strided_slice %69 {offsets = [4, 0], sizes = [1, 624], strides = [1, 1]} : vector<8x624xbf16> to vector<1x624xbf16>
    %c4_56 = arith.constant 4 : index
    %c0_57 = arith.constant 0 : index
    %c0_58 = arith.constant 0 : index
    %92 = vector.load %arg4[%c4_56, %c0_57, %c0_58] : memref<8x624x300xbf16, #tpu.memory_space<vmem>>, vector<1x624x300xbf16>
    %93 = vector.shape_cast %92 : vector<1x624x300xbf16> to vector<624x300xbf16>
    %cst_59 = arith.constant dense<0.000000e+00> : vector<1x300xf32>
    %94 = tpu.matmul %91, %93, %cst_59 {dimension_numbers = #tpu.dot_dimension_numbers<[1], [0], [0], [1], [0, 0, 1, 1], [], []>} : vector<1x624xbf16>, vector<624x300xbf16>, vector<1x300xf32> -> vector<1x300xf32>
    %95 = arith.addf %90, %94 : vector<1x300xf32>
    %96 = vector.extract_strided_slice %69 {offsets = [5, 0], sizes = [1, 624], strides = [1, 1]} : vector<8x624xbf16> to vector<1x624xbf16>
    %c5_60 = arith.constant 5 : index
    %c0_61 = arith.constant 0 : index
    %c0_62 = arith.constant 0 : index
    %97 = vector.load %arg4[%c5_60, %c0_61, %c0_62] : memref<8x624x300xbf16, #tpu.memory_space<vmem>>, vector<1x624x300xbf16>
    %98 = vector.shape_cast %97 : vector<1x624x300xbf16> to vector<624x300xbf16>
    %cst_63 = arith.constant dense<0.000000e+00> : vector<1x300xf32>
    %99 = tpu.matmul %96, %98, %cst_63 {dimension_numbers = #tpu.dot_dimension_numbers<[1], [0], [0], [1], [0, 0, 1, 1], [], []>} : vector<1x624xbf16>, vector<624x300xbf16>, vector<1x300xf32> -> vector<1x300xf32>
    %100 = arith.addf %95, %99 : vector<1x300xf32>
    %101 = vector.extract_strided_slice %69 {offsets = [6, 0], sizes = [1, 624], strides = [1, 1]} : vector<8x624xbf16> to vector<1x624xbf16>
    %c6_64 = arith.constant 6 : index
    %c0_65 = arith.constant 0 : index
    %c0_66 = arith.constant 0 : index
    %102 = vector.load %arg4[%c6_64, %c0_65, %c0_66] : memref<8x624x300xbf16, #tpu.memory_space<vmem>>, vector<1x624x300xbf16>
    %103 = vector.shape_cast %102 : vector<1x624x300xbf16> to vector<624x300xbf16>
    %cst_67 = arith.constant dense<0.000000e+00> : vector<1x300xf32>
    %104 = tpu.matmul %101, %103, %cst_67 {dimension_numbers = #tpu.dot_dimension_numbers<[1], [0], [0], [1], [0, 0, 1, 1], [], []>} : vector<1x624xbf16>, vector<624x300xbf16>, vector<1x300xf32> -> vector<1x300xf32>
    %105 = arith.addf %100, %104 : vector<1x300xf32>
    %106 = vector.extract_strided_slice %69 {offsets = [7, 0], sizes = [1, 624], strides = [1, 1]} : vector<8x624xbf16> to vector<1x624xbf16>
    %c7_68 = arith.constant 7 : index
    %c0_69 = arith.constant 0 : index
    %c0_70 = arith.constant 0 : index
    %107 = vector.load %arg4[%c7_68, %c0_69, %c0_70] : memref<8x624x300xbf16, #tpu.memory_space<vmem>>, vector<1x624x300xbf16>
    %108 = vector.shape_cast %107 : vector<1x624x300xbf16> to vector<624x300xbf16>
    %cst_71 = arith.constant dense<0.000000e+00> : vector<1x300xf32>
    %109 = tpu.matmul %106, %108, %cst_71 {dimension_numbers = #tpu.dot_dimension_numbers<[1], [0], [0], [1], [0, 0, 1, 1], [], []>} : vector<1x624xbf16>, vector<624x300xbf16>, vector<1x300xf32> -> vector<1x300xf32>
    %110 = arith.addf %105, %109 : vector<1x300xf32>
    %cst_72 = arith.constant 0.000000e+00 : f32
    %111 = vector.broadcast %cst_72 : f32 to vector<1x300xf32>
    %112 = arith.maximumf %110, %111 : vector<1x300xf32>
    %c0_73 = arith.constant 0 : index
    %c0_74 = arith.constant 0 : index
    %113 = vector.load %arg6[%c0_73, %c0_74] : memref<300x6xf32, #tpu.memory_space<vmem>>, vector<300x6xf32>
    %cst_75 = arith.constant dense<0.000000e+00> : vector<1x6xf32>
    %114 = tpu.matmul %112, %113, %cst_75 {dimension_numbers = #tpu.dot_dimension_numbers<[1], [0], [0], [1], [0, 0, 1, 1], [], []>} : vector<1x300xf32>, vector<300x6xf32>, vector<1x6xf32> -> vector<1x6xf32>
    %c0_76 = arith.constant 0 : index
    %c0_77 = arith.constant 0 : index
    %115 = vector.load %arg7[%c0_76, %c0_77] : memref<1x6xf32, #tpu.memory_space<vmem>>, vector<1x6xf32>
    %116 = arith.addf %114, %115 : vector<1x6xf32>
    %117 = vector.shape_cast %116 : vector<1x6xf32> to vector<1x1x6xf32>
    %c0_78 = arith.constant 0 : index
    %c0_79 = arith.constant 0 : index
    %c0_80 = arith.constant 0 : index
    %118 = vector.load %arg8[%c0_78, %c0_79, %c0_80] : memref<1x1x6xf32, #tpu.memory_space<vmem>>, vector<1x1x6xf32>
    tpu.vector_store %arg8[%c0_78, %c0_79, %c0_80], %117 {strides = array<i32>} : memref<1x1x6xf32, #tpu.memory_space<vmem>>, vector<1x1x6xf32>,
    return
  }
  func.func @transform_0(%arg0: i32) -> (i32, i32, i32) {
    %c0_i32 = arith.constant 0 : i32
    %c0_i32_0 = arith.constant 0 : i32
    %c0_i32_1 = arith.constant 0 : i32
    return %arg0, %c0_i32, %c0_i32_0 : i32, i32, i32
  }
  func.func @transform_1(%arg0: i32) -> (i32, i32) {
    %c0_i32 = arith.constant 0 : i32
    %c0_i32_0 = arith.constant 0 : i32
    %c0_i32_1 = arith.constant 0 : i32
    return %c0_i32, %c0_i32_0 : i32, i32
  }
  func.func @transform_2(%arg0: i32) -> (i32, i32) {
    %c0_i32 = arith.constant 0 : i32
    %c0_i32_0 = arith.constant 0 : i32
    %c0_i32_1 = arith.constant 0 : i32
    return %c0_i32, %c0_i32_0 : i32, i32
  }
  func.func @transform_3(%arg0: i32) -> (i32, i32, i32) {
    %c0_i32 = arith.constant 0 : i32
    %c0_i32_0 = arith.constant 0 : i32
    %c0_i32_1 = arith.constant 0 : i32
    %c0_i32_2 = arith.constant 0 : i32
    return %c0_i32, %c0_i32_0, %c0_i32_1 : i32, i32, i32
  }
  func.func @transform_4(%arg0: i32) -> (i32, i32) {
    %c0_i32 = arith.constant 0 : i32
    %c0_i32_0 = arith.constant 0 : i32
    %c0_i32_1 = arith.constant 0 : i32
    return %c0_i32, %c0_i32_0 : i32, i32
  }
  func.func @transform_5(%arg0: i32) -> (i32, i32) {
    %c0_i32 = arith.constant 0 : i32
    %c0_i32_0 = arith.constant 0 : i32
    %c0_i32_1 = arith.constant 0 : i32
    return %c0_i32, %c0_i32_0 : i32, i32
  }
  func.func @transform_6(%arg0: i32) -> (i32, i32) {
    %c0_i32 = arith.constant 0 : i32
    %c0_i32_0 = arith.constant 0 : i32
    %c0_i32_1 = arith.constant 0 : i32
    return %c0_i32, %c0_i32_0 : i32, i32
  }
  func.func @transform_7(%arg0: i32) -> (i32, i32, i32) {
    %c0_i32 = arith.constant 0 : i32
    %c0_i32_0 = arith.constant 0 : i32
    %c0_i32_1 = arith.constant 0 : i32
    return %arg0, %c0_i32, %c0_i32_0 : i32, i32, i32
  }
}

</mosaic_0001>

<bundles_post_ra>
// kernel: tpu_custom_call.1
= control target key start
LH: loop header
LB: loop body
LE: loop exit
PB: predicated region body
PF: predicated region fallthrough
CT: control target
= control target key end

     0   :  { %s33012_s0 = inlined_call_operand.vmem [shape: f32[2,1,3200], index: 0, kind: input, shape index: {}]   ;;  %s33013_s1 = inlined_call_operand.vmem [shape: f32[8,32], index: 1, kind: input, shape index: {}]   ;;  %s33014_s2 = inlined_call_operand.vmem [shape: bf16[2944,624], index: 2, kind: input, shape index: {}]   ;;  %s33015_s3 = inlined_call_operand.vmem [shape: bf16[8,624,300], index: 3, kind: input, shape index: {}]   ;;  %s33016_s4 = inlined_call_operand.vmem [shape: f32[1,300], index: 4, kind: input, shape index: {}]   ;;  %s33017_s5 = inlined_call_operand.vmem [shape: f32[300,6], index: 5, kind: input, shape index: {}]   ;;  %s33018_s6 = inlined_call_operand.vmem [shape: f32[1,6], index: 6, kind: input, shape index: {}]   ;;  %s33019_s7 = inlined_call_operand.hbm [shape: f32[2,1,6], index: 7, kind: output, shape index: {}]  }
   0x1   :  { %33079 = sst [smem:[#allocation7_spill]] %s33012_s0 }
   0x2   :  { %12 = vsyncpa [#allocation4], 0 }
   0x3   :  { %14 = vsyncpa [#allocation4 + $0x1], 0  ;;  %s25512_s24 = smov 0   ;;  %s25514_s25 = smov 0  }
   0x4   :  { %s25516_s26 = smov 0   ;;  %s25518_s27 = smov 0  }
   0x5 LB: > { %s25533_s28 = sadd.s32 4294967295, %s25438_s27   ;;  %s18490_s29 = sadd.s32 4294967294, %s25438_s27   ;;  %s25438_s27 = sphi %s25518_s27, %s33143_s27   ;;  %s25434_s26 = sphi %s25516_s26, %s33142_s26   ;;  %s25430_s25 = sphi %s25514_s25, %s33141_s25   ;;  %s25426_s24 = sphi %s25512_s24, %s33140_s24  }
   0x6   : > { %s25537_s30 = sadd.s32 1, %s25438_s27   ;;  %s179_s8 = sadd.s32 1, %s25434_s26 }
   0x7   : > { %s176_s9 = ssub.s32 %s25438_s27, %s25537_s30  ;;  %p189_p0 = scmp.ne.s32.totalorder %s25434_s26, %s25430_s25 }
   0x8   : > { %p177_p1 = scmp.eq.s32.totalorder %s176_s9, 0  ;;  %p190_p2 = scmp.eq.s32.totalorder %s25533_s28, 1 }
   0x9   : > { %p195_p3 = scmp.ne.s32.totalorder %s25430_s25, %s25426_s24  ;;  %p196_p4 = scmp.eq.s32.totalorder %s18490_s29, 1 }
   0xa   : > { %s25548_s10 = scalar_select %p177_p1, %s25434_s26, %s179_s8  }
   0xb   : > { %p25550_p5 = por %p190_p2, %p189_p0  ;;  %p25554_p6 = por %p196_p4, %p195_p3 }
   0xc   : > { %33080 = sst [smem:[#allocation6_spill]] %s25548_s10  ;;  %p18493_p7 = scmp.ge.s32.totalorder %s25438_s27, 1 }
   0xd   : > { %p239_p8 = scmp.lt.s32.totalorder %s25438_s27, 3 }
   0xf   : > { %p240_p9 = pnand %p18493_p7, %p239_p8 }
  0x10   : > { %p269_p10 = scmp.lt.s32.totalorder (!%p240_p9), %s25533_s28, 1  ;;  %s33083_s0 = sld [smem:[#allocation7_spill]] (!%p240_p9)  ;;  %v25462_v3 = vmov (!%p240_p9), 1.0   ;;  %v25465_v4 = vmov (!%p240_p9), 0.0   ;;  %vm302_vm0 = vcmask (!%p240_p9), 1046528   ;;  %vm335_vm1 = vcmask (!%p240_p9), 1031168  }
  0x11   : > { %243 = sbr.rel (%p240_p9) target bundleno = 3234 (0xca2), region = 48  ;;  %s33052_s18 = smov (!%p240_p9), 126   ;;  %1036 = vst [vmem:[#allocation2 + $0x248] sm:$0xfe] (!%p240_p9), %v25462_v3  ;;  %1035 = vst [vmem:[#allocation2 + $0x240] sm:$0xfe] (!%p240_p9), %v25462_v3  ;;  %1224 = vmatprep.mubr.f32.mxu1 (!%p240_p9), %v25465_v4  ;;  %1366 = vmatprep.mubr.f32.mxu0 (!%p240_p9), %v25465_v4 }
  0x12   : > { %s33042_s19 = smov (!%p240_p9), 127   ;;  %s33044_s20 = smov (!%p240_p9), 125   ;;  %1037 = vst [vmem:[#allocation2 + $0x250] sm:$0xfe] (!%p240_p9), %v25462_v3  ;;  %1038 = vst [vmem:[#allocation2 + $0x258] sm:$0xfe] (!%p240_p9), %v25462_v3 }
  0x13   : > { %s33051_s21 = smov (!%p240_p9), 124   ;;  %s33049_s22 = smov (!%p240_p9), 98   ;;  %1039 = vst [vmem:[#allocation2 + $0x260] sm:$0xfe] (!%p240_p9), %v25462_v3  ;;  %1040 = vst [vmem:[#allocation2 + $0x268] sm:$0xfe] (!%p240_p9), %v25462_v3 }
  0x14   : > { %s33045_s23 = smov (!%p240_p9), 97   ;;  %s33047_s29 = smov (!%p240_p9), 96   ;;  %1041 = vst [vmem:[#allocation2 + $0x270] sm:$0xfe] (!%p240_p9), %v25462_v3  ;;  %1042 = vst [vmem:[#allocation2 + $0x278] sm:$0xfe] (!%p240_p9), %v25462_v3 }
  0x15   : > { %s33048_s8 = smov (!%p240_p9), 95   ;;  %s33020_s9 = smov (!%p240_p9), 94   ;;  %1043 = vst [vmem:[#allocation2 + $0x280] sm:$0xfe] (!%p240_p9), %v25462_v3  ;;  %1044 = vst [vmem:[#allocation2 + $0x288] sm:$0xfe] (!%p240_p9), %v25462_v3 }
  0x16   : > { %s33024_s15 = smov (!%p240_p9), 66   ;;  %s33026_s16 = smov (!%p240_p9), 65   ;;  %1045 = vst [vmem:[#allocation2 + $0x290] sm:$0xfe] (!%p240_p9), %v25462_v3  ;;  %1046 = vst [vmem:[#allocation2 + $0x298] sm:$0xfe] (!%p240_p9), %v25462_v3 }
  0x17   : > { %1047 = vst [vmem:[#allocation2 + $0x2a0] sm:$0xfe] (!%p240_p9), %v25462_v3  ;;  %1048 = vst [vmem:[#allocation2 + $0x2a8] sm:$0xfe] (!%p240_p9), %v25462_v3  ;;  %vm304_vm2 = vcmask (!%p240_p9), 1039360   ;;  %vm33073_vm3 = vcmask (!%p240_p9), 1022976  }
  0x18   : > { %s270_s13 = scalar_select %p269_p10, %s25533_s28, 1  ;;  %1049 = vst [vmem:[#allocation2 + $0x2b0] sm:$0xfe] %v25462_v3  ;;  %1050 = vst [vmem:[#allocation2 + $0x2b8] sm:$0xfe] %v25462_v3  ;;  %vm397_vm4 = vcmask 1014784  }
  0x19   : > { %1051 = vst [vmem:[#allocation2 + $0x2c0] sm:$0xfe] %v25462_v3  ;;  %1052 = vst [vmem:[#allocation2 + $0x2c8] sm:$0xfe] %v25462_v3  ;;  %vm428_vm5 = vcmask 801792   ;;  %vm459_vm6 = vcmask 793600  }
  0x1a   : > { %s22653_s14 = smul.u32 25, %s270_s13  ;;  %s33046_s13 = smov 68   ;;  %1053 = vst [vmem:[#allocation2 + $0x2d0] sm:$0xfe] %v25462_v3  ;;  %1054 = vst [vmem:[#allocation2 + $0x2d8] sm:$0xfe] %v25462_v3 }
  0x1b   : > { %1055 = vst [vmem:[#allocation2 + $0x2e0] sm:$0xfe] %v25462_v3  ;;  %1056 = vst [vmem:[#allocation2 + $0x2e8] sm:$0xfe] %v25462_v3  ;;  %vm490_vm7 = vcmask 785408   ;;  %vm521_vm8 = vcmask 777216  }
  0x1c   : > { %s25565_s17 = scalar_lea.vmem %s33083_s0, %s22653_s14  ;;  %s33022_s14 = smov 67   ;;  %1057 = vst [vmem:[#allocation2 + $0x2f0] sm:$0xfe] %v25462_v3  ;;  %1058 = vst [vmem:[#allocation2 + $0x2f8] sm:$0xfe] %v25462_v3  ;;  %vm552_vm9 = vcmask 769024  }
  0x1d   : > { %v25568_v0 = vld [vmem:[%s25565_s17] sm:$0xff]  ;;  %v25571_v1 = vld [vmem:[%s25565_s17 + $0x8] sm:$0xff]  ;;  %v25574_v2 = vld [vmem:[%s25565_s17 + $0x10] sm:$0xff]  ;;  %vm583_vm10 = vcmask 556032   ;;  %s33099_s0 = smov 97   ;;  %vm33074_vm11 = vcmask 547840  }
  0x1e   : > { %322 = vrot.lane.b32.xlu1 %v25568_v0, %s33052_s18  ;;  %278 = vst [vmem:[#allocation2] ss:$8 sm:$0xf] %v25568_v0  ;;  %279 = vst [vmem:[#allocation2] ss:$8 sm:$0xf0] %v25568_v0  ;;  %290 = vrot.lane.b32.xlu0 %v25568_v0, %s33042_s19 }
  0x1f   : > { %281 = vst [vmem:[#allocation2 + $0x40] ss:$8 sm:$0xf] %v25571_v1  ;;  %282 = vst [vmem:[#allocation2 + $0x40] ss:$8 sm:$0xf0] %v25571_v1 }
  0x20   : > { %284 = vst [vmem:[#allocation2 + $0x80] ss:$8 sm:$0xf] %v25574_v2  ;;  %285 = vst [vmem:[#allocation2 + $0x80] ss:$8 sm:$0xf0] %v25574_v2 }
  0x21   : > { %v25770_v45 = vld [vmem:[%s25565_s17 + $0x18] sm:$0x1]  ;;  %s33095_s17 = smov 126   ;;  %vm645_vm12 = vcmask 539648   ;;  %s33103_s10 = smov 68   ;;  %vm33057_vm13 = vcmask 531456  }
  0x22   : > { %324 = vrot.lane.b32.xlu1 %v25571_v1, %s33052_s18  ;;  %292 = vrot.lane.b32.xlu0 %v25571_v1, %s33042_s19  ;;  %vm33075_vm14 = vcmask 523264   ;;  %vm33058_vm15 = vcmask 310272  }
  0x26   : > { %355 = vrot.lane.b32.xlu1 %v25571_v1, %s33044_s20  ;;  %353 = vrot.lane.b32.xlu0 %v25568_v0, %s33044_s20 }
  0x2a   : > { %386 = vrot.lane.b32.xlu1 %v25571_v1, %s33051_s21  ;;  %384 = vrot.lane.b32.xlu0 %v25568_v0, %s33051_s21 }
  0x2e   : > { %417 = vrot.lane.b32.xlu1 %v25571_v1, %s33049_s22  ;;  %415 = vrot.lane.b32.xlu0 %v25568_v0, %s33049_s22 }
  0x32   : > { %448 = vrot.lane.b32.xlu1 %v25571_v1, %s33045_s23  ;;  %446 = vrot.lane.b32.xlu0 %v25568_v0, %s33045_s23 }
  0x36   : > { %479 = vrot.lane.b32.xlu1 %v25571_v1, %s33047_s29  ;;  %477 = vrot.lane.b32.xlu0 %v25568_v0, %s33047_s29 }
  0x3a   : > { %510 = vrot.lane.b32.xlu1 %v25571_v1, %s33048_s8  ;;  %508 = vrot.lane.b32.xlu0 %v25568_v0, %s33048_s8 }
  0x3e   : > { %541 = vrot.lane.b32.xlu1 %v25571_v1, %s33020_s9  ;;  %539 = vrot.lane.b32.xlu0 %v25568_v0, %s33020_s9  ;;  %s33028_s9 = smov 64  }
  0x42   : > { %572 = vrot.lane.b32.xlu1 %v25571_v1, %s33046_s13  ;;  %570 = vrot.lane.b32.xlu0 %v25568_v0, %s33046_s13 }
  0x46   : > { %603 = vrot.lane.b32.xlu1 %v25571_v1, %s33022_s14  ;;  %601 = vrot.lane.b32.xlu0 %v25568_v0, %s33022_s14  ;;  %s33030_s14 = smov 38  }
  0x4a   : > { %634 = vrot.lane.b32.xlu1 %v25571_v1, %s33024_s15  ;;  %632 = vrot.lane.b32.xlu0 %v25568_v0, %s33024_s15  ;;  %s33032_s15 = smov 37  }
  0x4e   : > { %665 = vrot.lane.b32.xlu1 %v25571_v1, %s33026_s16  ;;  %663 = vrot.lane.b32.xlu0 %v25568_v0, %s33026_s16  ;;  %s33034_s16 = smov 36  }
  0x52   : > { %696 = vrot.lane.b32.xlu1 %v25571_v1, %s33028_s9  ;;  %694 = vrot.lane.b32.xlu0 %v25568_v0, %s33028_s9  ;;  %s33036_s9 = smov 35  }
  0x56   : > { %727 = vrot.lane.b32.xlu1 %v25571_v1, %s33030_s14  ;;  %725 = vrot.lane.b32.xlu0 %v25568_v0, %s33030_s14  ;;  %s33054_s14 = smov 34  }
  0x5a   : > { %758 = vrot.lane.b32.xlu1 %v25571_v1, %s33032_s15  ;;  %756 = vrot.lane.b32.xlu0 %v25568_v0, %s33032_s15  ;;  %s33053_s15 = smov 8  }
  0x5e   : > { %789 = vrot.lane.b32.xlu1 %v25571_v1, %s33034_s16  ;;  %787 = vrot.lane.b32.xlu0 %v25568_v0, %s33034_s16  ;;  %s33038_s16 = smov 7  }
  0x62   : > { %820 = vrot.lane.b32.xlu1 %v25571_v1, %s33036_s9  ;;  %818 = vrot.lane.b32.xlu0 %v25568_v0, %s33036_s9  ;;  %s33040_s9 = smov 6  }
  0x66   : > { %851 = vrot.lane.b32.xlu1 %v25571_v1, %s33054_s14  ;;  %849 = vrot.lane.b32.xlu0 %v25568_v0, %s33054_s14 }
  0x6a   : > { %882 = vrot.lane.b32.xlu1 %v25571_v1, %s33053_s15  ;;  %880 = vrot.lane.b32.xlu0 %v25568_v0, %s33053_s15 }
  0x6e   : > { %913 = vrot.lane.b32.xlu1 %v25571_v1, %s33038_s16  ;;  %911 = vrot.lane.b32.xlu0 %v25568_v0, %s33038_s16  ;;  %s33056_s16 = smov 5  }
  0x72   : > { %944 = vrot.lane.b32.xlu1 %v25571_v1, %s33040_s9  ;;  %942 = vrot.lane.b32.xlu0 %v25568_v0, %s33040_s9  ;;  %s33055_s9 = smov 4  }
  0x76   : > { %975 = vrot.lane.b32.xlu1 %v25571_v1, %s33056_s16  ;;  %973 = vrot.lane.b32.xlu0 %v25568_v0, %s33056_s16 }
  0x7a   : > { %1006 = vrot.lane.b32.xlu1 %v25571_v1, %s33055_s9  ;;  %1004 = vrot.lane.b32.xlu0 %v25568_v0, %s33055_s9 }
  0x7e   : > { %326 = vrot.lane.b32.xlu1 %v25574_v2, %s33052_s18  ;;  %294 = vrot.lane.b32.xlu0 %v25574_v2, %s33042_s19  ;;  %s33084_s19 = smov 94   ;;  %s33092_s18 = smov 36  }
  0x82   : > { %388 = vrot.lane.b32.xlu1 %v25574_v2, %s33051_s21  ;;  %357 = vrot.lane.b32.xlu0 %v25574_v2, %s33044_s20  ;;  %s33085_s20 = smov 66   ;;  %s33091_s21 = smov 35  }
  0x86   : > { %450 = vrot.lane.b32.xlu1 %v25574_v2, %s33045_s23  ;;  %419 = vrot.lane.b32.xlu0 %v25574_v2, %s33049_s22  ;;  %s33086_s23 = smov 67   ;;  %s33090_s22 = smov 38  }
  0x8a   : > { %512 = vrot.lane.b32.xlu1 %v25574_v2, %s33048_s8  ;;  %481 = vrot.lane.b32.xlu0 %v25574_v2, %s33047_s29  ;;  %s33088_s29 = smov 65   ;;  %s33089_s8 = smov 37  }
  0x8e   : > { %574 = vrot.lane.b32.xlu1 %v25574_v2, %s33046_s13  ;;  %543 = vrot.lane.b32.xlu0 %v25574_v2, %s33084_s19  ;;  %s33087_s13 = smov 64  }
  0x90   : > { %v323_v5 = vpop.permute.xlu1 %322  ;;  %v291_v6 = vpop.permute.xlu0 %290 }
  0x91   : > { %v330_v7 = vrot.slane %v323_v5, 1  ;;  %v298_v10 = vrot.slane %v291_v6, 1 }
  0x92   : > { %636 = vrot.lane.b32.xlu1 %v25574_v2, %s33085_s20  ;;  %605 = vrot.lane.b32.xlu0 %v25574_v2, %s33086_s23 }
  0x94   : > { %v25704_v8 = vpop.permute.xlu1 %324  ;;  %v25706_v9 = vpop.permute.xlu0 %292 }
  0x95   : > { %v331_v11 = vrot.slane %v25704_v8, 1  ;;  %v299_v12 = vrot.slane %v25706_v9, 1 }
  0x96   : > { %698 = vrot.lane.b32.xlu1 %v25574_v2, %s33087_s13  ;;  %667 = vrot.lane.b32.xlu0 %v25574_v2, %s33088_s29 }
  0x97   : > { %v334_v13 = vsel %vm302_vm0, %v330_v7, %v331_v11  ;;  %v303_v14 = vsel %vm302_vm0, %v298_v10, %v299_v12 }
  0x98   : > { %v336_v15 = vsel %vm335_vm1, %v323_v5, %v334_v13  ;;  %v305_v16 = vsel %vm304_vm2, %v291_v6, %v303_v14  ;;  %v25722_v17 = vpop.permute.xlu1 %355  ;;  %v354_v18 = vpop.permute.xlu0 %353 }
  0x99   : > { %345 = vst [vmem:[#allocation2 + $0x2] ss:$8 sm:$0xf] %v336_v15  ;;  %346 = vst [vmem:[#allocation2 + $0x2] ss:$8 sm:$0xf0] %v336_v15 }
  0x9a   : > { %314 = vst [vmem:[#allocation2 + $0x1] ss:$8 sm:$0xf] %v305_v16  ;;  %315 = vst [vmem:[#allocation2 + $0x1] ss:$8 sm:$0xf0] %v305_v16  ;;  %760 = vrot.lane.b32.xlu1 %v25574_v2, %s33089_s8  ;;  %729 = vrot.lane.b32.xlu0 %v25574_v2, %s33090_s22 }
  0x9b   : > { %v362_v19 = vrot.slane %v25722_v17, 1  ;;  %v361_v20 = vrot.slane %v354_v18, 1 }
  0x9c   : > { %v25733_v23 = vpop.permute.xlu1 %386  ;;  %v385_v24 = vpop.permute.xlu0 %384 }
  0x9d   : > { %v365_v21 = vsel %vm302_vm0, %v361_v20, %v362_v19  ;;  %v393_v25 = vrot.slane %v25733_v23, 1  ;;  %v392_v26 = vrot.slane %v385_v24, 1 }
  0x9e   : > { %v367_v22 = vsel %vm33073_vm3, %v354_v18, %v365_v21  ;;  %822 = vrot.lane.b32.xlu1 %v25574_v2, %s33091_s21  ;;  %791 = vrot.lane.b32.xlu0 %v25574_v2, %s33092_s18 }
  0x9f   : > { %376 = vst [vmem:[#allocation2 + $0x3] ss:$8 sm:$0xf] %v367_v22  ;;  %377 = vst [vmem:[#allocation2 + $0x3] ss:$8 sm:$0xf0] %v367_v22  ;;  %v396_v27 = vsel %vm302_vm0, %v392_v26, %v393_v25 }
  0xa0   : > { %v398_v28 = vsel %vm397_vm4, %v385_v24, %v396_v27  ;;  %v25744_v29 = vpop.permute.xlu1 %417  ;;  %v416_v30 = vpop.permute.xlu0 %415 }
  0xa1   : > { %407 = vst [vmem:[#allocation2 + $0x4] ss:$8 sm:$0xf] %v398_v28  ;;  %408 = vst [vmem:[#allocation2 + $0x4] ss:$8 sm:$0xf0] %v398_v28 }
  0xa2   : > { %v424_v31 = vrot.slane %v25744_v29, 1  ;;  %v423_v32 = vrot.slane %v416_v30, 1  ;;  %884 = vrot.lane.b32.xlu1 %v25574_v2, %s33053_s15  ;;  %853 = vrot.lane.b32.xlu0 %v25574_v2, %s33054_s14  ;;  %s33093_s15 = smov 6   ;;  %s33094_s14 = smov 7  }
  0xa4   : > { %v427_v33 = vsel %vm302_vm0, %v423_v32, %v424_v31  ;;  %v25755_v35 = vpop.permute.xlu1 %448  ;;  %v447_v36 = vpop.permute.xlu0 %446 }
  0xa5   : > { %v429_v34 = vsel %vm428_vm5, %v416_v30, %v427_v33  ;;  %v455_v37 = vrot.slane %v25755_v35, 1  ;;  %v454_v38 = vrot.slane %v447_v36, 1 }
  0xa6   : > { %438 = vst [vmem:[#allocation2 + $0x5] ss:$8 sm:$0xf] %v429_v34  ;;  %439 = vst [vmem:[#allocation2 + $0x5] ss:$8 sm:$0xf0] %v429_v34  ;;  %946 = vrot.lane.b32.xlu1 %v25574_v2, %s33093_s15  ;;  %915 = vrot.lane.b32.xlu0 %v25574_v2, %s33094_s14 }
  0xa7   : > { %v458_v39 = vsel %vm302_vm0, %v454_v38, %v455_v37 }
  0xa8   : > { %v460_v40 = vsel %vm459_vm6, %v447_v36, %v458_v39  ;;  %v25766_v41 = vpop.permute.xlu1 %479  ;;  %v478_v42 = vpop.permute.xlu0 %477 }
  0xa9   : > { %469 = vst [vmem:[#allocation2 + $0x6] ss:$8 sm:$0xf] %v460_v40  ;;  %470 = vst [vmem:[#allocation2 + $0x6] ss:$8 sm:$0xf0] %v460_v40 }
  0xaa   : > { %v486_v43 = vrot.slane %v25766_v41, 1  ;;  %v485_v44 = vrot.slane %v478_v42, 1  ;;  %1008 = vrot.lane.b32.xlu1 %v25574_v2, %s33055_s9  ;;  %977 = vrot.lane.b32.xlu0 %v25574_v2, %s33056_s16  ;;  %s33096_s9 = smov 127   ;;  %s33097_s16 = smov 124  }
  0xac   : > { %v489_v46 = vsel %vm302_vm0, %v485_v44, %v486_v43  ;;  %v25780_v48 = vpop.permute.xlu1 %510  ;;  %v509_v49 = vpop.permute.xlu0 %508 }
  0xad   : > { %v491_v47 = vsel %vm490_vm7, %v478_v42, %v489_v46  ;;  %v517_v50 = vrot.slane %v25780_v48, 1  ;;  %v516_v51 = vrot.slane %v509_v49, 1 }
  0xae   : > { %500 = vst [vmem:[#allocation2 + $0x7] ss:$8 sm:$0xf] %v491_v47  ;;  %501 = vst [vmem:[#allocation2 + $0x7] ss:$8 sm:$0xf0] %v491_v47  ;;  %328 = vrot.lane.b32.xlu1 %v25770_v45, %s33095_s17  ;;  %296 = vrot.lane.b32.xlu0 %v25770_v45, %s33096_s9 }
  0xaf   : > { %v520_v52 = vsel %vm302_vm0, %v516_v51, %v517_v50  ;;  %s33098_s17 = smov 125  }
  0xb0   : > { %v522_v53 = vsel %vm521_vm8, %v509_v49, %v520_v52  ;;  %v25791_v54 = vpop.permute.xlu1 %541  ;;  %v540_v55 = vpop.permute.xlu0 %539 }
  0xb1   : > { %531 = vst [vmem:[#allocation2 + $0xc0] ss:$8 sm:$0xf] %v522_v53  ;;  %532 = vst [vmem:[#allocation2 + $0xc0] ss:$8 sm:$0xf0] %v522_v53 }
  0xb2   : > { %v548_v56 = vrot.slane %v25791_v54, 1  ;;  %v547_v57 = vrot.slane %v540_v55, 1  ;;  %390 = vrot.lane.b32.xlu1 %v25770_v45, %s33097_s16  ;;  %359 = vrot.lane.b32.xlu0 %v25770_v45, %s33098_s17  ;;  %s33100_s16 = smov 98   ;;  %s33101_s17 = smov 95  }
  0xb4   : > { %v551_v58 = vsel %vm302_vm0, %v547_v57, %v548_v56  ;;  %v25802_v60 = vpop.permute.xlu1 %572  ;;  %v571_v61 = vpop.permute.xlu0 %570 }
  0xb5   : > { %v553_v59 = vsel %vm552_vm9, %v540_v55, %v551_v58  ;;  %v579_v62 = vrot.slane %v25802_v60, 1  ;;  %v578_v63 = vrot.slane %v571_v61, 1 }
  0xb6   : > { %562 = vst [vmem:[#allocation2 + $0xc1] ss:$8 sm:$0xf] %v553_v59  ;;  %563 = vst [vmem:[#allocation2 + $0xc1] ss:$8 sm:$0xf0] %v553_v59  ;;  %452 = vrot.lane.b32.xlu1 %v25770_v45, %s33099_s0  ;;  %421 = vrot.lane.b32.xlu0 %v25770_v45, %s33100_s16 }
  0xb7   : > { %v582_v0 = vsel %vm302_vm0, %v578_v63, %v579_v62  ;;  %s33102_s0 = smov 96  }
  0xb8   : > { %v584_v1 = vsel %vm583_vm10, %v571_v61, %v582_v0  ;;  %v25813_v2 = vpop.permute.xlu1 %603  ;;  %v602_v3 = vpop.permute.xlu0 %601  ;;  %v1061_v0 = vld [vmem:[#allocation2 + $0x8] sm:$0xff] }
  0xb9   : > { %593 = vst [vmem:[#allocation2 + $0xc2] ss:$8 sm:$0xf] %v584_v1  ;;  %594 = vst [vmem:[#allocation2 + $0xc2] ss:$8 sm:$0xf0] %v584_v1 }
  0xba   : > { %v610_v5 = vrot.slane %v25813_v2, 1  ;;  %v609_v6 = vrot.slane %v602_v3, 1  ;;  %514 = vrot.lane.b32.xlu1 %v25770_v45, %s33101_s17  ;;  %483 = vrot.lane.b32.xlu0 %v25770_v45, %s33102_s0  ;;  %v1065_v1 = vld [vmem:[#allocation2 + $0x28] sm:$0xff] }
  0xbc   : > { %v613_v7 = vsel %vm302_vm0, %v609_v6, %v610_v5  ;;  %v25824_v13 = vpop.permute.xlu1 %634  ;;  %v633_v14 = vpop.permute.xlu0 %632 }
  0xbd   : > { %v615_v10 = vsel %vm33074_vm11, %v602_v3, %v613_v7  ;;  %v641_v15 = vrot.slane %v25824_v13, 1  ;;  %v640_v16 = vrot.slane %v633_v14, 1 }
  0xbe   : > { %624 = vst [vmem:[#allocation2 + $0xc3] ss:$8 sm:$0xf] %v615_v10  ;;  %625 = vst [vmem:[#allocation2 + $0xc3] ss:$8 sm:$0xf0] %v615_v10  ;;  %576 = vrot.lane.b32.xlu1 %v25770_v45, %s33103_s10  ;;  %545 = vrot.lane.b32.xlu0 %v25770_v45, %s33084_s19 }
  0xbf   : > { %v644_v18 = vsel %vm302_vm0, %v640_v16, %v641_v15  ;;  %s33104_s10 = smov 8   ;;  %s33106_s19 = smov 4  }
  0xc0   : > { %v646_v20 = vsel %vm645_vm12, %v633_v14, %v644_v18  ;;  %v25835_v21 = vpop.permute.xlu1 %665  ;;  %v664_v22 = vpop.permute.xlu0 %663 }
  0xc1   : > { %655 = vst [vmem:[#allocation2 + $0xc4] ss:$8 sm:$0xf] %v646_v20  ;;  %656 = vst [vmem:[#allocation2 + $0xc4] ss:$8 sm:$0xf0] %v646_v20 }
  0xc2   : > { %v672_v24 = vrot.slane %v25835_v21, 1  ;;  %v671_v26 = vrot.slane %v664_v22, 1  ;;  %638 = vrot.lane.b32.xlu1 %v25770_v45, %s33085_s20  ;;  %607 = vrot.lane.b32.xlu0 %v25770_v45, %s33086_s23  ;;  %s33107_s20 = smov 5  }
  0xc4   : > { %v675_v27 = vsel %vm302_vm0, %v671_v26, %v672_v24  ;;  %v25846_v30 = vpop.permute.xlu1 %696  ;;  %v695_v32 = vpop.permute.xlu0 %694 }
  0xc5   : > { %v677_v28 = vsel %vm33057_vm13, %v664_v22, %v675_v27  ;;  %v703_v33 = vrot.slane %v25846_v30, 1  ;;  %v702_v34 = vrot.slane %v695_v32, 1  ;;  %vm33059_vm13 = vcmask 302080  }
  0xc6   : > { %686 = vst [vmem:[#allocation2 + $0xc5] ss:$8 sm:$0xf] %v677_v28  ;;  %687 = vst [vmem:[#allocation2 + $0xc5] ss:$8 sm:$0xf0] %v677_v28  ;;  %700 = vrot.lane.b32.xlu1 %v25770_v45, %s33087_s13  ;;  %669 = vrot.lane.b32.xlu0 %v25770_v45, %s33088_s29 }
  0xc7   : > { %v706_v36 = vsel %vm302_vm0, %v702_v34, %v703_v33  ;;  %v1060_v28 = vld [vmem:[#allocation2] sm:$0xff] }
  0xc8   : > { %v708_v38 = vsel %vm33075_vm14, %v695_v32, %v706_v36  ;;  %v25857_v39 = vpop.permute.xlu1 %727  ;;  %v726_v40 = vpop.permute.xlu0 %725  ;;  %v1064_v32 = vld [vmem:[#allocation2 + $0x20] sm:$0xff] }
  0xc9   : > { %717 = vst [vmem:[#allocation2 + $0xc6] ss:$8 sm:$0xf] %v708_v38  ;;  %718 = vst [vmem:[#allocation2 + $0xc6] ss:$8 sm:$0xf0] %v708_v38 }
  0xca   : > { %v734_v42 = vrot.slane %v25857_v39, 1  ;;  %v733_v44 = vrot.slane %v726_v40, 1  ;;  %762 = vrot.lane.b32.xlu1 %v25770_v45, %s33089_s8  ;;  %731 = vrot.lane.b32.xlu0 %v25770_v45, %s33090_s22 }
  0xcc   : > { %v737_v46 = vsel %vm302_vm0, %v733_v44, %v734_v42  ;;  %v25868_v49 = vpop.permute.xlu1 %758  ;;  %v757_v51 = vpop.permute.xlu0 %756 }
  0xcd   : > { %v739_v47 = vsel %vm33058_vm15, %v726_v40, %v737_v46  ;;  %v765_v52 = vrot.slane %v25868_v49, 1  ;;  %v764_v53 = vrot.slane %v757_v51, 1  ;;  %vm33060_vm15 = vcmask 293888  }
  0xce   : > { %748 = vst [vmem:[#allocation2 + $0xc7] ss:$8 sm:$0xf] %v739_v47  ;;  %749 = vst [vmem:[#allocation2 + $0xc7] ss:$8 sm:$0xf0] %v739_v47  ;;  %824 = vrot.lane.b32.xlu1 %v25770_v45, %s33091_s21  ;;  %793 = vrot.lane.b32.xlu0 %v25770_v45, %s33092_s18 }
  0xcf   : > { %v768_v55 = vsel %vm302_vm0, %v764_v53, %v765_v52  ;;  %s33105_s18 = smov 34  }
  0xd0   : > { %v770_v57 = vsel %vm33059_vm13, %v757_v51, %v768_v55  ;;  %v25879_v58 = vpop.permute.xlu1 %789  ;;  %v788_v59 = vpop.permute.xlu0 %787  ;;  %vm33061_vm13 = vcmask 285696  }
  0xd1   : > { %779 = vst [vmem:[#allocation2 + $0x180] ss:$8 sm:$0xf] %v770_v57  ;;  %780 = vst [vmem:[#allocation2 + $0x180] ss:$8 sm:$0xf0] %v770_v57 }
  0xd2   : > { %v796_v61 = vrot.slane %v25879_v58, 1  ;;  %v795_v63 = vrot.slane %v788_v59, 1  ;;  %886 = vrot.lane.b32.xlu1 %v25770_v45, %s33104_s10  ;;  %855 = vrot.lane.b32.xlu0 %v25770_v45, %s33105_s18 }
  0xd4   : > { %v799_v3 = vsel %vm302_vm0, %v795_v63, %v796_v61  ;;  %v25890_v7 = vpop.permute.xlu1 %820  ;;  %v819_v10 = vpop.permute.xlu0 %818 }
  0xd5   : > { %v801_v6 = vsel %vm33060_vm15, %v788_v59, %v799_v3  ;;  %v1085_v14 = vld [vmem:[#allocation2 + $0xc8] sm:$0xff]  ;;  %v1084_v18 = vld [vmem:[#allocation2 + $0xc0] sm:$0xff]  ;;  %v827_v20 = vrot.slane %v25890_v7, 1  ;;  %v826_v22 = vrot.slane %v819_v10, 1  ;;  %vm33062_vm15 = vcmask 277504  }
  0xd6   : > { %v1089_v16 = vld [vmem:[#allocation2 + $0xe8] sm:$0xff]  ;;  %810 = vst [vmem:[#allocation2 + $0x181] ss:$8 sm:$0xf] %v801_v6  ;;  %v22363_v26 = vpack.c.bf16 %v1085_v14, %v1061_v0  ;;  %v1088_v34 = vld [vmem:[#allocation2 + $0xe0] sm:$0xff]  ;;  %v22365_v36 = vpack.c.bf16 %v1084_v18, %v1060_v28  ;;  %948 = vrot.lane.b32.xlu1 %v25770_v45, %s33093_s15  ;;  %917 = vrot.lane.b32.xlu0 %v25770_v45, %s33094_s14 }
  0xd7   : > { %811 = vst [vmem:[#allocation2 + $0x181] ss:$8 sm:$0xf0] %v801_v6  ;;  %v22379_v27 = vpack.c.bf16 %v1089_v16, %v1065_v1  ;;  %v22381_v38 = vpack.c.bf16 %v1088_v34, %v1064_v32  ;;  %v830_v40 = vsel %vm302_vm0, %v826_v22, %v827_v20 }
  0xd8   : > { %22364 = vmatprep.subr.bf16.mxu1 %v22363_v26  ;;  %v832_v44 = vsel %vm33061_vm13, %v819_v10, %v830_v40  ;;  %v25899_v46 = vpop.permute.xlu1 %851  ;;  %v850_v47 = vpop.permute.xlu0 %849  ;;  %vm33063_vm13 = vcmask 64512  }
  0xd9   : > { %22380 = vmatprep.subr.bf16.mxu0 %v22379_v27  ;;  %22366 = vmatpush1.bf16.msra.mxu1 %v22365_v36  ;;  %841 = vst [vmem:[#allocation2 + $0x182] ss:$8 sm:$0xf] %v832_v44  ;;  %842 = vst [vmem:[#allocation2 + $0x182] ss:$8 sm:$0xf0] %v832_v44 }
  0xda   : > { %22382 = vmatpush1.bf16.msra.mxu0 %v22381_v38  ;;  %v858_v51 = vrot.slane %v25899_v46, 1  ;;  %v857_v53 = vrot.slane %v850_v47, 1  ;;  %1010 = vrot.lane.b32.xlu1 %v25770_v45, %s33106_s19  ;;  %s21472_s19 = sshll.u32 %s25533_s28, 4  ;;  %s25471_s28 = smov [#allocation3]  }
  0xdb   : > { %979 = vrot.lane.b32.xlu0 %v25770_v45, %s33107_s20  ;;  %s32970_s23 = scalar_lea.hbm %s33019_s7, %s21472_s19  ;;  %s25380_s13 = sshll.u32 %s25471_s28, 4  ;;  %s25381_s13 = int_to_ptr.vmem [resolvable:$false] %s25380_s13 }
  0xdc   : > { %v861_v55 = vsel %vm302_vm0, %v857_v53, %v858_v51  ;;  %v25910_v59 = vpop.permute.xlu1 %882  ;;  %v881_v63 = vpop.permute.xlu0 %880  ;;  %s25382_s14 = scalar_lea.vmem %s25381_s13, 32 }
  0xdd   : > { %v863_v57 = vsel %vm33062_vm15, %v850_v47, %v861_v55  ;;  %v889_v0 = vrot.slane %v25910_v59, 1  ;;  %v888_v1 = vrot.slane %v881_v63, 1  ;;  %vm33064_vm15 = vcmask 56320  }
  0xde   : > { %872 = vst [vmem:[#allocation2 + $0x183] ss:$8 sm:$0xf] %v863_v57  ;;  %873 = vst [vmem:[#allocation2 + $0x183] ss:$8 sm:$0xf0] %v863_v57 }
  0xdf   : > { %v892_v3 = vsel %vm302_vm0, %v888_v1, %v889_v0 }
  0xe0   : > { %v894_v6 = vsel %vm33063_vm13, %v881_v63, %v892_v3  ;;  %v25919_v10 = vpop.permute.xlu1 %913  ;;  %v912_v14 = vpop.permute.xlu0 %911  ;;  %vm33065_vm13 = vcmask 48128  }
  0xe1   : > { %903 = vst [vmem:[#allocation2 + $0x184] ss:$8 sm:$0xf] %v894_v6  ;;  %904 = vst [vmem:[#allocation2 + $0x184] ss:$8 sm:$0xf0] %v894_v6 }
  0xe2   : > { %v33072_v16 = vrot.slane %v25919_v10, 1  ;;  %v919_v18 = vrot.slane %v912_v14, 1 }
  0xe4   : > { %v923_v22 = vsel %vm302_vm0, %v919_v18, %v33072_v16  ;;  %v25926_v26 = vpop.permute.xlu1 %944  ;;  %v943_v27 = vpop.permute.xlu0 %942  ;;  %v1086_v16 = vld [vmem:[#allocation2 + $0xd0] sm:$0xff] }
  0xe5   : > { %v925_v45 = vsel %vm33064_vm15, %v912_v14, %v923_v22  ;;  %v951_v28 = vrot.slane %v25926_v26, 1  ;;  %v950_v32 = vrot.slane %v943_v27, 1  ;;  %vm986_vm15 = vcmask 39936  }
  0xe6   : > { %934 = vst [vmem:[#allocation2 + $0x185] ss:$8 sm:$0xf] %v925_v45  ;;  %935 = vst [vmem:[#allocation2 + $0x185] ss:$8 sm:$0xf0] %v925_v45 }
  0xe7   : > { %v954_v34 = vsel %vm302_vm0, %v950_v32, %v951_v28 }
  0xe8   : > { %v956_v36 = vsel %vm33065_vm13, %v943_v27, %v954_v34  ;;  %v25933_v38 = vpop.permute.xlu1 %975  ;;  %v974_v40 = vpop.permute.xlu0 %973  ;;  %vm1017_vm13 = vcmask 31744  }
  0xe9   : > { %965 = vst [vmem:[#allocation2 + $0x186] ss:$8 sm:$0xf] %v956_v36  ;;  %966 = vst [vmem:[#allocation2 + $0x186] ss:$8 sm:$0xf0] %v956_v36 }
  0xea   : > { %v33070_v44 = vrot.slane %v25933_v38, 1  ;;  %v981_v47 = vrot.slane %v974_v40, 1 }
  0xec   : > { %v985_v53 = vsel %vm302_vm0, %v981_v47, %v33070_v44  ;;  %v25940_v57 = vpop.permute.xlu1 %1006  ;;  %v1005_v63 = vpop.permute.xlu0 %1004 }
  0xed   : > { %v987_v55 = vsel %vm986_vm15, %v974_v40, %v985_v53  ;;  %v33071_v1 = vrot.slane %v25940_v57, 1  ;;  %v1012_v3 = vrot.slane %v1005_v63, 1 }
  0xee   : > { %996 = vst [vmem:[#allocation2 + $0x187] ss:$8 sm:$0xf] %v987_v55  ;;  %997 = vst [vmem:[#allocation2 + $0x187] ss:$8 sm:$0xf0] %v987_v55 }
  0xef   : > { %v1016_v6 = vsel %vm302_vm0, %v1012_v3, %v33071_v1  ;;  %v1087_v3 = vld [vmem:[#allocation2 + $0xd8] sm:$0xff]  ;;  %v25996_v1 = vld [vmem:[%s33013_s1] sm:$0xff] }
  0xf0   : > { %v1018_v14 = vsel %vm1017_vm13, %v1005_v63, %v1016_v6  ;;  %v25947_v18 = vpop.permute.xlu1 %326  ;;  %v25949_v22 = vpop.permute.xlu0 %294 }
  0xf1   : > { %1027 = vst [vmem:[#allocation2 + $0x240] ss:$8 sm:$0xf] %v1018_v14  ;;  %1028 = vst [vmem:[#allocation2 + $0x240] ss:$8 sm:$0xf0] %v1018_v14 }
  0xf2   : > { %v33069_v45 = vrot.slane %v25947_v18, 1  ;;  %v33066_v27 = vrot.slane %v25949_v22, 1 }
  0xf4   : > { %v337_v32 = vsel %vm302_vm0, %v331_v11, %v33069_v45  ;;  %v306_v34 = vsel %vm302_vm0, %v299_v12, %v33066_v27  ;;  %v25967_v47 = vpop.permute.xlu1 %388  ;;  %v25969_v53 = vpop.permute.xlu0 %357 }
  0xf5   : > { %v338_v36 = vsel %vm335_vm1, %v25704_v8, %v337_v32  ;;  %v307_v40 = vsel %vm304_vm2, %v25706_v9, %v306_v34  ;;  %v33068_v11 = vrot.slane %v25967_v47, 1  ;;  %v33067_v55 = vrot.slane %v25969_v53, 1  ;;  %v1109_v63 = vld [vmem:[#allocation2 + $0x188] sm:$0xff] }
  0xf6   : > { %348 = vst [vmem:[#allocation2 + $0x42] ss:$8 sm:$0xf] %v338_v36  ;;  %349 = vst [vmem:[#allocation2 + $0x42] ss:$8 sm:$0xf0] %v338_v36 }
  0xf7   : > { %317 = vst [vmem:[#allocation2 + $0x41] ss:$8 sm:$0xf] %v307_v40  ;;  %318 = vst [vmem:[#allocation2 + $0x41] ss:$8 sm:$0xf0] %v307_v40  ;;  %v399_v8 = vsel %vm302_vm0, %v393_v25, %v33068_v11  ;;  %v368_v9 = vsel %vm302_vm0, %v362_v19, %v33067_v55 }
  0xf8   : > { %v1113_v12 = vld [vmem:[#allocation2 + $0x1a8] sm:$0xff]  ;;  %v400_v6 = vsel %vm397_vm4, %v25733_v23, %v399_v8  ;;  %v369_v14 = vsel %vm33073_vm3, %v25722_v17, %v368_v9  ;;  %v25987_v32 = vpop.permute.xlu1 %450  ;;  %v25989_v34 = vpop.permute.xlu0 %419  ;;  %v1132_v27 = vld [vmem:[#allocation2 + $0x240] sm:$0xff]  ;;  %v1063_v25 = vld [vmem:[#allocation2 + $0x18] sm:$0xff]  ;;  %vm1156_vm3 = vcmask 261120  }
  0xf9   : > { %v1133_v36 = vld [vmem:[#allocation2 + $0x248] sm:$0xff]  ;;  %410 = vst [vmem:[#allocation2 + $0x44] ss:$8 sm:$0xf] %v400_v6  ;;  %v456_v19 = vrot.slane %v25987_v32, 1  ;;  %v425_v55 = vrot.slane %v25989_v34, 1 }
  0xfa   : > { %v1137_v40 = vld [vmem:[#allocation2 + $0x268] sm:$0xff]  ;;  %411 = vst [vmem:[#allocation2 + $0x44] ss:$8 sm:$0xf0] %v400_v6  ;;  %v22367_v23 = vpack.c.bf16 %v1133_v36, %v1109_v63  ;;  %v1108_v11 = vld [vmem:[#allocation2 + $0x180] sm:$0xff]  ;;  %v1135_v6 = vld [vmem:[#allocation2 + $0x258] sm:$0xff] }
  0xfb   : > { %379 = vst [vmem:[#allocation2 + $0x43] ss:$8 sm:$0xf] %v369_v14  ;;  %380 = vst [vmem:[#allocation2 + $0x43] ss:$8 sm:$0xf0] %v369_v14  ;;  %v22383_v8 = vpack.c.bf16 %v1137_v40, %v1113_v12  ;;  %v22369_v45 = vpack.c.bf16 %v1132_v27, %v1108_v11  ;;  %v461_v14 = vsel %vm302_vm0, %v455_v37, %v456_v19 }
  0xfc   : > { %v1112_v17 = vld [vmem:[#allocation2 + $0x1a0] sm:$0xff]  ;;  %v430_v27 = vsel %vm302_vm0, %v424_v31, %v425_v55  ;;  %22368 = vmatprep.subr.bf16.mxu1 %v22367_v23  ;;  %v22371_v11 = vpack.c.bf16 %v1087_v3, %v1063_v25  ;;  %v1062_v63 = vld [vmem:[#allocation2 + $0x10] sm:$0xff]  ;;  %v462_v12 = vsel %vm459_vm6, %v25755_v35, %v461_v14  ;;  %v26012_v40 = vpop.permute.xlu1 %512  ;;  %v1111_v37 = vld [vmem:[#allocation2 + $0x198] sm:$0xff] }
  0xfd   : > { %v1136_v9 = vld [vmem:[#allocation2 + $0x260] sm:$0xff]  ;;  %22384 = vmatprep.subr.bf16.mxu0 %v22383_v8  ;;  %v431_v36 = vsel %vm428_vm5, %v25744_v29, %v430_v27  ;;  %22370 = vmatpush1.bf16.msra.mxu1 %v22369_v45  ;;  %472 = vst [vmem:[#allocation2 + $0x46] ss:$8 sm:$0xf] %v462_v12  ;;  %v518_v31 = vrot.slane %v26012_v40, 1  ;;  %v1134_v35 = vld [vmem:[#allocation2 + $0x250] sm:$0xff]  ;;  %v22373_v25 = vpack.c.bf16 %v1086_v16, %v1062_v63 }
  0xfe   : > { %v22385_v44 = vpack.c.bf16 %v1136_v9, %v1112_v17  ;;  %v26014_v17 = vpop.permute.xlu0 %481  ;;  %473 = vst [vmem:[#allocation2 + $0x46] ss:$8 sm:$0xf0] %v462_v12  ;;  %441 = vst [vmem:[#allocation2 + $0x45] ss:$8 sm:$0xf] %v431_v36  ;;  %22372 = vmatprep.subr.bf16.mxu1 %v22371_v11  ;;  %v22375_v23 = vpack.c.bf16 %v1135_v6, %v1111_v37 }
  0xff   : > { %442 = vst [vmem:[#allocation2 + $0x45] ss:$8 sm:$0xf0] %v431_v36  ;;  %v487_v3 = vrot.slane %v26014_v17, 1  ;;  %v1091_v29 = vld [vmem:[#allocation2 + $0xf8] sm:$0xff]  ;;  %v1110_v8 = vld [vmem:[#allocation2 + $0x190] sm:$0xff] }
 0x100   : > { %22386 = vmatpush1.bf16.msra.mxu0 %v22385_v44  ;;  %v523_v44 = vsel %vm302_vm0, %v517_v50, %v518_v31  ;;  %18494 = vmatmul.mubr.msk.f32.vlgmr.msra.gmra.mrb[0].mxu1 %vm1156_vm3, %v25996_v1  ;;  %v26036_v9 = vpop.permute.xlu1 %574  ;;  %v1139_v11 = vld [vmem:[#allocation2 + $0x278] sm:$0xff]  ;;  %v1066_v37 = vld [vmem:[#allocation2 + $0x30] sm:$0xff] }
 0x101   : > { %v492_v45 = vsel %vm302_vm0, %v486_v43, %v487_v3  ;;  %v524_v16 = vsel %vm521_vm8, %v25780_v48, %v523_v44  ;;  %22374 = vmatpush1.bf16.msra.mxu1 %v22373_v25  ;;  %v1067_v43 = vld [vmem:[#allocation2 + $0x38] sm:$0xff]  ;;  %1295 = vmatprep.mubr.f32.mxu1 %v25465_v4  ;;  %v580_v6 = vrot.slane %v26036_v9, 1  ;;  %v1090_v48 = vld [vmem:[#allocation2 + $0xf0] sm:$0xff] }
 0x102   : > { %v493_v50 = vsel %vm490_vm7, %v25766_v41, %v492_v45  ;;  %v26038_v14 = vpop.permute.xlu0 %543  ;;  %534 = vst [vmem:[#allocation2 + $0x100] ss:$8 sm:$0xf] %v524_v16  ;;  %535 = vst [vmem:[#allocation2 + $0x100] ss:$8 sm:$0xf0] %v524_v16  ;;  %22376 = vmatprep.subr.bf16.mxu1 %v22375_v23  ;;  %v22377_v41 = vpack.c.bf16 %v1134_v35, %v1110_v8  ;;  %v22387_v36 = vpack.c.bf16 %v1091_v29, %v1067_v43 }
 0x103   : > { %18496 = vmatmul.mubr.msk.f32.vlgmr.msra.gmra.mrb[0].mxu0 %vm1156_vm3, %v25996_v1  ;;  %503 = vst [vmem:[#allocation2 + $0x47] ss:$8 sm:$0xf] %v493_v50  ;;  %504 = vst [vmem:[#allocation2 + $0x47] ss:$8 sm:$0xf0] %v493_v50  ;;  %v585_v63 = vsel %vm302_vm0, %v579_v62, %v580_v6 }
 0x104   : > { %v549_v27 = vrot.slane %v26038_v14, 1  ;;  %1508 = vmatprep.mubr.f32.mxu0 %v25465_v4  ;;  %v586_v25 = vsel %vm583_vm10, %v25802_v60, %v585_v63  ;;  %v26058_v44 = vpop.permute.xlu1 %636  ;;  %v1115_v62 = vld [vmem:[#allocation2 + $0x1b8] sm:$0xff]  ;;  %v1138_v23 = vld [vmem:[#allocation2 + $0x270] sm:$0xff]  ;;  %v22389_v60 = vpack.c.bf16 %v1090_v48, %v1066_v37 }
 0x105   : > { %22378 = vmatpush1.bf16.msra.mxu1 %v22377_v41  ;;  %596 = vst [vmem:[#allocation2 + $0x102] ss:$8 sm:$0xf] %v586_v25  ;;  %597 = vst [vmem:[#allocation2 + $0x102] ss:$8 sm:$0xf0] %v586_v25  ;;  %v22391_v16 = vpack.c.bf16 %v1139_v11, %v1115_v62 }
 0x106   : > { %v554_v12 = vsel %vm302_vm0, %v548_v56, %v549_v27  ;;  %v26060_v45 = vpop.permute.xlu0 %605  ;;  %v642_v56 = vrot.slane %v26058_v44, 1  ;;  %22388 = vmatprep.subr.bf16.mxu1 %v22387_v36 }
 0x107   : > { %v555_v35 = vsel %vm552_vm9, %v25791_v54, %v554_v12  ;;  %v611_v29 = vrot.slane %v26060_v45, 1 }
 0x108   : > { %565 = vst [vmem:[#allocation2 + $0x101] ss:$8 sm:$0xf] %v555_v35  ;;  %566 = vst [vmem:[#allocation2 + $0x101] ss:$8 sm:$0xf0] %v555_v35  ;;  %v647_v54 = vsel %vm302_vm0, %v641_v15, %v642_v56  ;;  %18495 = vmatmul.mubr.msk.f32.vlgmr.msra.gmra.mrb[2].mxu1 %vm1156_vm3, %v25996_v1  ;;  %v26080_v48 = vpop.permute.xlu1 %698 }
 0x109   : > { %v616_v8 = vsel %vm302_vm0, %v610_v5, %v611_v29  ;;  %v648_v50 = vsel %vm645_vm12, %v25824_v13, %v647_v54  ;;  %22390 = vmatpush1.bf16.msra.mxu1 %v22389_v60  ;;  %1437 = vmatprep.mubr.f32.mxu1 %v25465_v4  ;;  %v704_v5 = vrot.slane %v26080_v48, 1  ;;  %v1114_v13 = vld [vmem:[#allocation2 + $0x1b0] sm:$0xff] }
 0x10a   : > { %v617_v43 = vsel %vm33074_vm11, %v25813_v2, %v616_v8  ;;  %v26082_v41 = vpop.permute.xlu0 %667  ;;  %658 = vst [vmem:[#allocation2 + $0x104] ss:$8 sm:$0xf] %v648_v50  ;;  %659 = vst [vmem:[#allocation2 + $0x104] ss:$8 sm:$0xf0] %v648_v50  ;;  %22392 = vmatprep.subr.bf16.mxu1 %v22391_v16  ;;  %v22393_v11 = vpack.c.bf16 %v1138_v23, %v1114_v13 }
 0x10b   : > { %627 = vst [vmem:[#allocation2 + $0x103] ss:$8 sm:$0xf] %v617_v43  ;;  %628 = vst [vmem:[#allocation2 + $0x103] ss:$8 sm:$0xf0] %v617_v43  ;;  %v709_v2 = vsel %vm302_vm0, %v703_v33, %v704_v5 }
 0x10c   : > { %v673_v15 = vrot.slane %v26082_v41, 1  ;;  %v710_v12 = vsel %vm33075_vm14, %v25846_v30, %v709_v2  ;;  %vm33108_vm11 = vcmask 531456   ;;  %v26101_v37 = vpop.permute.xlu1 %760  ;;  %vm33110_vm14 = vcmask 310272   ;;  %v1069_v13 = vld [vmem:[#allocation2 + $0x48] sm:$0xff] }
 0x10d   : > { %22394 = vmatpush1.bf16.msra.mxu1 %v22393_v11  ;;  %720 = vst [vmem:[#allocation2 + $0x106] ss:$8 sm:$0xf] %v710_v12  ;;  %721 = vst [vmem:[#allocation2 + $0x106] ss:$8 sm:$0xf0] %v710_v12 }
 0x10e   : > { %v678_v63 = vsel %vm302_vm0, %v672_v24, %v673_v15  ;;  %v26103_v25 = vpop.permute.xlu0 %729  ;;  %v766_v33 = vrot.slane %v26101_v37, 1 }
 0x10f   : > { %v679_v36 = vsel %vm33108_vm11, %v25835_v21, %v678_v63  ;;  %v735_v35 = vrot.slane %v26103_v25, 1  ;;  %vm33109_vm11 = vcmask 302080  }
 0x110   : > { %689 = vst [vmem:[#allocation2 + $0x105] ss:$8 sm:$0xf] %v679_v36  ;;  %690 = vst [vmem:[#allocation2 + $0x105] ss:$8 sm:$0xf0] %v679_v36  ;;  %v771_v24 = vsel %vm302_vm0, %v765_v52, %v766_v33  ;;  %18497 = vmatmul.mubr.msk.f32.vlgmr.msra.gmra.mrb[4].mxu1 %vm1156_vm3, %v25996_v1  ;;  %v26123_v23 = vpop.permute.xlu1 %822 }
 0x111   : > { %v740_v21 = vsel %vm302_vm0, %v734_v42, %v735_v35  ;;  %v772_v30 = vsel %vm33109_vm11, %v25868_v49, %v771_v24  ;;  %1579 = vmatprep.mubr.f32.mxu1 %v25465_v4  ;;  %v828_v42 = vrot.slane %v26123_v23, 1  ;;  %vm33112_vm11 = vcmask 293888  }
 0x112   : > { %v741_v62 = vsel %vm33110_vm14, %v25857_v39, %v740_v21  ;;  %v26125_v60 = vpop.permute.xlu0 %791  ;;  %782 = vst [vmem:[#allocation2 + $0x1c0] ss:$8 sm:$0xf] %v772_v30  ;;  %783 = vst [vmem:[#allocation2 + $0x1c0] ss:$8 sm:$0xf0] %v772_v30 }
 0x113   : > { %751 = vst [vmem:[#allocation2 + $0x107] ss:$8 sm:$0xf] %v741_v62  ;;  %752 = vst [vmem:[#allocation2 + $0x107] ss:$8 sm:$0xf0] %v741_v62  ;;  %v833_v39 = vsel %vm302_vm0, %v827_v20, %v828_v42 }
 0x114   : > { %v797_v52 = vrot.slane %v26125_v60, 1  ;;  %vm33111_vm14 = vcmask 285696   ;;  %v26144_v16 = vpop.permute.xlu1 %884  ;;  %v1068_v62 = vld [vmem:[#allocation2 + $0x40] sm:$0xff] }
 0x115   : > { %v834_v54 = vsel %vm33111_vm14, %v25890_v7, %v833_v39  ;;  %v890_v20 = vrot.slane %v26144_v16, 1  ;;  %vm33113_vm14 = vcmask 64512   ;;  %v1070_v39 = vld [vmem:[#allocation2 + $0x50] sm:$0xff] }
 0x116   : > { %v802_v49 = vsel %vm302_vm0, %v796_v61, %v797_v52  ;;  %v26146_v50 = vpop.permute.xlu0 %853  ;;  %844 = vst [vmem:[#allocation2 + $0x1c2] ss:$8 sm:$0xf] %v834_v54  ;;  %845 = vst [vmem:[#allocation2 + $0x1c2] ss:$8 sm:$0xf0] %v834_v54 }
 0x117   : > { %v803_v8 = vsel %vm33112_vm11, %v25879_v58, %v802_v49  ;;  %v859_v43 = vrot.slane %v26146_v50, 1  ;;  %v1071_v61 = vld [vmem:[#allocation2 + $0x58] sm:$0xff]  ;;  %v895_v58 = vsel %vm302_vm0, %v889_v0, %v890_v20  ;;  %vm33114_vm11 = vcmask 277504  }
 0x118   : > { %813 = vst [vmem:[#allocation2 + $0x1c1] ss:$8 sm:$0xf] %v803_v8  ;;  %814 = vst [vmem:[#allocation2 + $0x1c1] ss:$8 sm:$0xf0] %v803_v8  ;;  %v896_v11 = vsel %vm33113_vm14, %v25910_v59, %v895_v58  ;;  %v26164_v63 = vpop.permute.xlu1 %946 }
 0x119   : > { %v864_v7 = vsel %vm302_vm0, %v858_v51, %v859_v43  ;;  %906 = vst [vmem:[#allocation2 + $0x1c4] ss:$8 sm:$0xf] %v896_v11  ;;  %907 = vst [vmem:[#allocation2 + $0x1c4] ss:$8 sm:$0xf0] %v896_v11 }
 0x11a   : > { %v865_v2 = vsel %vm33114_vm11, %v25899_v46, %v864_v7  ;;  %v26166_v12 = vpop.permute.xlu0 %915  ;;  %v1093_v36 = vld [vmem:[#allocation2 + $0x108] sm:$0xff]  ;;  %v1095_v24 = vld [vmem:[#allocation2 + $0x118] sm:$0xff]  ;;  %v1092_v21 = vld [vmem:[#allocation2 + $0x100] sm:$0xff]  ;;  %v952_v0 = vrot.slane %v26164_v63, 1  ;;  %v33115_v58 = vrot.slane %v25919_v10, 1  ;;  %vm33116_vm14 = vcmask 48128  }
 0x11b   : > { %875 = vst [vmem:[#allocation2 + $0x1c3] ss:$8 sm:$0xf] %v865_v2  ;;  %876 = vst [vmem:[#allocation2 + $0x1c3] ss:$8 sm:$0xf0] %v865_v2  ;;  %v22395_v30 = vpack.c.bf16 %v1093_v36, %v1069_v13  ;;  %v22403_v59 = vpack.c.bf16 %v1095_v24, %v1071_v61  ;;  %v22397_v49 = vpack.c.bf16 %v1092_v21, %v1068_v62 }
 0x11c   : > { %v33078_v51 = vrot.slane %v26166_v12, 1  ;;  %v1094_v46 = vld [vmem:[#allocation2 + $0x110] sm:$0xff]  ;;  %v957_v8 = vsel %vm302_vm0, %v951_v28, %v952_v0  ;;  %vm33117_vm11 = vcmask 56320   ;;  %v26184_v11 = vpop.permute.xlu1 %1008  ;;  %v33119_v24 = vrot.slane %v25933_v38, 1 }
 0x11d   : > { %v22405_v54 = vpack.c.bf16 %v1094_v46, %v1070_v39  ;;  %22396 = vmatprep.subr.bf16.mxu0 %v22395_v30  ;;  %22404 = vmatprep.subr.bf16.mxu1 %v22403_v59  ;;  %v958_v13 = vsel %vm33116_vm14, %v25926_v26, %v957_v8  ;;  %v33077_v28 = vrot.slane %v26184_v11, 1  ;;  %v33118_v26 = vrot.slane %v25940_v57, 1 }
 0x11e   : > { %v926_v7 = vsel %vm302_vm0, %v33115_v58, %v33078_v51  ;;  %v26186_v2 = vpop.permute.xlu0 %977  ;;  %22398 = vmatpush1.bf16.msra.mxu0 %v22397_v49  ;;  %968 = vst [vmem:[#allocation2 + $0x1c6] ss:$8 sm:$0xf] %v958_v13  ;;  %969 = vst [vmem:[#allocation2 + $0x1c6] ss:$8 sm:$0xf0] %v958_v13 }
 0x11f   : > { %v927_v61 = vsel %vm33117_vm11, %v25919_v10, %v926_v7  ;;  %22406 = vmatpush1.bf16.msra.mxu1 %v22405_v54  ;;  %v33076_v36 = vrot.slane %v26186_v2, 1  ;;  %v1019_v10 = vsel %vm302_vm0, %v33118_v26, %v33077_v28  ;;  %v33120_v54 = vrot.slane %v25947_v18, 1  ;;  %v1096_v51 = vld [vmem:[#allocation2 + $0x120] sm:$0xff] }
 0x120   : > { %937 = vst [vmem:[#allocation2 + $0x1c5] ss:$8 sm:$0xf] %v927_v61  ;;  %938 = vst [vmem:[#allocation2 + $0x1c5] ss:$8 sm:$0xf0] %v927_v61  ;;  %v1020_v30 = vsel %vm1017_vm13, %v25940_v57, %v1019_v10  ;;  %v329_v62 = vpop.permute.xlu1 %328 }
 0x121   : > { %v988_v21 = vsel %vm302_vm0, %v33119_v24, %v33076_v36  ;;  %1030 = vst [vmem:[#allocation2 + $0x280] ss:$8 sm:$0xf] %v1020_v30  ;;  %1031 = vst [vmem:[#allocation2 + $0x280] ss:$8 sm:$0xf0] %v1020_v30 }
 0x122   : > { %v989_v59 = vsel %vm986_vm15, %v25933_v38, %v988_v21  ;;  %v297_v39 = vpop.permute.xlu0 %296  ;;  %v333_v46 = vrot.slane %v329_v62, 1  ;;  %v33121_v58 = vrot.slane %v25949_v22, 1  ;;  %v1097_v24 = vld [vmem:[#allocation2 + $0x128] sm:$0xff]  ;;  %v1099_v21 = vld [vmem:[#allocation2 + $0x138] sm:$0xff]  ;;  %v33122_v30 = vrot.slane %v25967_v47, 1 }
 0x123   : > { %999 = vst [vmem:[#allocation2 + $0x1c7] ss:$8 sm:$0xf] %v989_v59  ;;  %1000 = vst [vmem:[#allocation2 + $0x1c7] ss:$8 sm:$0xf0] %v989_v59 }
 0x124   : > { %v301_v49 = vrot.slane %v297_v39, 1  ;;  %v339_v8 = vsel %vm302_vm0, %v33120_v54, %v333_v46  ;;  %v391_v13 = vpop.permute.xlu1 %390  ;;  %v33123_v62 = vrot.slane %v25969_v53, 1  ;;  %vm33132_vm14 = vcmask 64512  }
 0x125   : > { %v340_v57 = vsel %vm335_vm1, %v25947_v18, %v339_v8  ;;  %v395_v26 = vrot.slane %v391_v13, 1  ;;  %vm33124_vm1 = vcmask 1022976   ;;  %vm33133_vm11 = vcmask 277504  }
 0x126   : > { %v308_v7 = vsel %vm302_vm0, %v33121_v58, %v301_v49  ;;  %v360_v61 = vpop.permute.xlu0 %359  ;;  %351 = vst [vmem:[#allocation2 + $0x82] ss:$8 sm:$0xf] %v340_v57  ;;  %352 = vst [vmem:[#allocation2 + $0x82] ss:$8 sm:$0xf0] %v340_v57 }
 0x127   : > { %v309_v38 = vsel %vm304_vm2, %v25949_v22, %v308_v7  ;;  %v364_v10 = vrot.slane %v360_v61, 1  ;;  %v401_v59 = vsel %vm302_vm0, %v33122_v30, %v395_v26  ;;  %v1073_v49 = vld [vmem:[#allocation2 + $0x68] sm:$0xff] }
 0x128   : > { %320 = vst [vmem:[#allocation2 + $0x81] ss:$8 sm:$0xf] %v309_v38  ;;  %321 = vst [vmem:[#allocation2 + $0x81] ss:$8 sm:$0xf0] %v309_v38  ;;  %v402_v54 = vsel %vm397_vm4, %v25967_v47, %v401_v59  ;;  %v453_v58 = vpop.permute.xlu1 %452 }
 0x129   : > { %v370_v18 = vsel %vm302_vm0, %v33123_v62, %v364_v10  ;;  %v1141_v22 = vld [vmem:[#allocation2 + $0x288] sm:$0xff]  ;;  %v1143_v38 = vld [vmem:[#allocation2 + $0x298] sm:$0xff]  ;;  %v1140_v61 = vld [vmem:[#allocation2 + $0x280] sm:$0xff]  ;;  %413 = vst [vmem:[#allocation2 + $0x84] ss:$8 sm:$0xf] %v402_v54 }
 0x12a   : > { %v1117_v39 = vld [vmem:[#allocation2 + $0x1c8] sm:$0xff]  ;;  %v1119_v46 = vld [vmem:[#allocation2 + $0x1d8] sm:$0xff]  ;;  %v371_v8 = vsel %vm33124_vm1, %v25969_v53, %v370_v18  ;;  %v422_v7 = vpop.permute.xlu0 %421  ;;  %v1116_v13 = vld [vmem:[#allocation2 + $0x1c0] sm:$0xff]  ;;  %414 = vst [vmem:[#allocation2 + $0x84] ss:$8 sm:$0xf0] %v402_v54  ;;  %v22411_v53 = vpack.c.bf16 %v1097_v24, %v1073_v49 }
 0x12b   : > { %v22399_v57 = vpack.c.bf16 %v1141_v22, %v1117_v39  ;;  %382 = vst [vmem:[#allocation2 + $0x83] ss:$8 sm:$0xf] %v371_v8  ;;  %383 = vst [vmem:[#allocation2 + $0x83] ss:$8 sm:$0xf0] %v371_v8  ;;  %v22407_v30 = vpack.c.bf16 %v1143_v38, %v1119_v46  ;;  %v22401_v62 = vpack.c.bf16 %v1140_v61, %v1116_v13 }
 0x12c   : > { %v457_v26 = vrot.slane %v453_v58, 1  ;;  %v426_v10 = vrot.slane %v422_v7, 1  ;;  %v1118_v36 = vld [vmem:[#allocation2 + $0x1d0] sm:$0xff]  ;;  %v1075_v47 = vld [vmem:[#allocation2 + $0x78] sm:$0xff]  ;;  %v1072_v18 = vld [vmem:[#allocation2 + $0x60] sm:$0xff]  ;;  %v515_v24 = vpop.permute.xlu1 %514  ;;  %vm33125_vm4 = vcmask 547840  }
 0x12d   : > { %v1142_v28 = vld [vmem:[#allocation2 + $0x290] sm:$0xff]  ;;  %22400 = vmatprep.subr.bf16.mxu0 %v22399_v57  ;;  %v1121_v22 = vld [vmem:[#allocation2 + $0x1e8] sm:$0xff]  ;;  %22408 = vmatprep.subr.bf16.mxu1 %v22407_v30  ;;  %v22419_v46 = vpack.c.bf16 %v1099_v21, %v1075_v47  ;;  %v1123_v57 = vld [vmem:[#allocation2 + $0x1f8] sm:$0xff]  ;;  %v519_v13 = vrot.slane %v515_v24, 1  ;;  %v22413_v61 = vpack.c.bf16 %v1096_v51, %v1072_v18  ;;  %vm33134_vm1 = vcmask 48128  }
 0x12e   : > { %v22409_v59 = vpack.c.bf16 %v1142_v28, %v1118_v36  ;;  %v1098_v39 = vld [vmem:[#allocation2 + $0x130] sm:$0xff]  ;;  %v463_v54 = vsel %vm302_vm0, %v456_v19, %v457_v26  ;;  %v432_v8 = vsel %vm302_vm0, %v425_v55, %v426_v10  ;;  %22402 = vmatpush1.bf16.msra.mxu0 %v22401_v62  ;;  %v1145_v7 = vld [vmem:[#allocation2 + $0x2a8] sm:$0xff]  ;;  %v1147_v28 = vld [vmem:[#allocation2 + $0x2b8] sm:$0xff]  ;;  %v484_v49 = vpop.permute.xlu0 %483 }
 0x12f   : > { %v1074_v58 = vld [vmem:[#allocation2 + $0x70] sm:$0xff]  ;;  %v464_v36 = vsel %vm459_vm6, %v25987_v32, %v463_v54  ;;  %22412 = vmatprep.subr.bf16.mxu0 %v22411_v53  ;;  %v1120_v38 = vld [vmem:[#allocation2 + $0x1e0] sm:$0xff]  ;;  %v433_v55 = vsel %vm428_vm5, %v25989_v34, %v432_v8  ;;  %v488_v21 = vrot.slane %v484_v49, 1  ;;  %v22415_v30 = vpack.c.bf16 %v1145_v7, %v1121_v22 }
 0x130   : > { %22410 = vmatpush1.bf16.msra.mxu1 %v22409_v59  ;;  %v1144_v19 = vld [vmem:[#allocation2 + $0x2a0] sm:$0xff]  ;;  %475 = vst [vmem:[#allocation2 + $0x86] ss:$8 sm:$0xf] %v464_v36  ;;  %v1122_v26 = vld [vmem:[#allocation2 + $0x1f0] sm:$0xff]  ;;  %v22421_v32 = vpack.c.bf16 %v1098_v39, %v1074_v58  ;;  %v525_v62 = vsel %vm302_vm0, %v518_v31, %v519_v13  ;;  %v22423_v51 = vpack.c.bf16 %v1147_v28, %v1123_v57  ;;  %v577_v53 = vpop.permute.xlu1 %576  ;;  %vm33126_vm6 = vcmask 523264  }
 0x131   : > { %476 = vst [vmem:[#allocation2 + $0x86] ss:$8 sm:$0xf0] %v464_v36  ;;  %22420 = vmatprep.subr.bf16.mxu1 %v22419_v46  ;;  %v1146_v10 = vld [vmem:[#allocation2 + $0x2b0] sm:$0xff]  ;;  %18498 = vmatmul.mubr.msk.f32.vlgmr.msra.gmra.mrb[2].mxu0 %vm1156_vm3, %v25996_v1  ;;  %v494_v34 = vsel %vm302_vm0, %v487_v3, %v488_v21  ;;  %v526_v47 = vsel %vm521_vm8, %v26012_v40, %v525_v62  ;;  %v581_v31 = vrot.slane %v577_v53, 1  ;;  %vm33128_vm8 = vcmask 302080  }
 0x132   : > { %444 = vst [vmem:[#allocation2 + $0x85] ss:$8 sm:$0xf] %v433_v55  ;;  %445 = vst [vmem:[#allocation2 + $0x85] ss:$8 sm:$0xf0] %v433_v55  ;;  %22414 = vmatpush1.bf16.msra.mxu0 %v22413_v61  ;;  %v495_v59 = vsel %vm490_vm7, %v26014_v17, %v494_v34  ;;  %v546_v18 = vpop.permute.xlu0 %545  ;;  %v22417_v39 = vpack.c.bf16 %v1144_v19, %v1120_v38  ;;  %1650 = vmatprep.mubr.f32.mxu0 %v25465_v4 }
 0x133   : > { %18499 = vmatmul.mubr.msk.f32.vlgmr.msra.gmra.mrb[6].mxu1 %vm1156_vm3, %v25996_v1  ;;  %22416 = vmatprep.subr.bf16.mxu0 %v22415_v30  ;;  %537 = vst [vmem:[#allocation2 + $0x140] ss:$8 sm:$0xf] %v526_v47  ;;  %538 = vst [vmem:[#allocation2 + $0x140] ss:$8 sm:$0xf0] %v526_v47  ;;  %v22425_v22 = vpack.c.bf16 %v1146_v10, %v1122_v26  ;;  %v587_v40 = vsel %vm302_vm0, %v580_v6, %v581_v31 }
 0x134   : > { %22422 = vmatpush1.bf16.msra.mxu1 %v22421_v32  ;;  %506 = vst [vmem:[#allocation2 + $0x87] ss:$8 sm:$0xf] %v495_v59  ;;  %507 = vst [vmem:[#allocation2 + $0x87] ss:$8 sm:$0xf0] %v495_v59  ;;  %1721 = vmatprep.mubr.f32.mxu1 %v25465_v4  ;;  %v588_v54 = vsel %vm583_vm10, %v26036_v9, %v587_v40  ;;  %v639_v46 = vpop.permute.xlu1 %638 }
 0x135   : > { %v550_v3 = vrot.slane %v546_v18, 1  ;;  %22424 = vmatprep.subr.bf16.mxu1 %v22423_v51  ;;  %599 = vst [vmem:[#allocation2 + $0x142] ss:$8 sm:$0xf] %v588_v54  ;;  %v643_v7 = vrot.slane %v639_v46, 1  ;;  %vm33127_vm7 = vcmask 531456  }
 0x136   : > { %22418 = vmatpush1.bf16.msra.mxu0 %v22417_v39  ;;  %v608_v58 = vpop.permute.xlu0 %607  ;;  %600 = vst [vmem:[#allocation2 + $0x142] ss:$8 sm:$0xf0] %v588_v54  ;;  %vm33130_vm10 = vcmask 285696  }
 0x137   : > { %v556_v17 = vsel %vm302_vm0, %v549_v27, %v550_v3  ;;  %v612_v6 = vrot.slane %v608_v58, 1  ;;  %v649_v27 = vsel %vm302_vm0, %v642_v56, %v643_v7  ;;  %v33135_v7 = vrot.slane %v26166_v12, 1 }
 0x138   : > { %v557_v8 = vsel %vm552_vm9, %v26038_v14, %v556_v17  ;;  %22426 = vmatpush1.bf16.msra.mxu1 %v22425_v22  ;;  %v650_v14 = vsel %vm645_vm12, %v26058_v44, %v649_v27  ;;  %v701_v28 = vpop.permute.xlu1 %700  ;;  %vm33129_vm9 = vcmask 310272   ;;  %vm33131_vm12 = vcmask 293888  }
 0x139   : > { %568 = vst [vmem:[#allocation2 + $0x141] ss:$8 sm:$0xf] %v557_v8  ;;  %569 = vst [vmem:[#allocation2 + $0x141] ss:$8 sm:$0xf0] %v557_v8  ;;  %18500 = vmatmul.mubr.msk.f32.vlgmr.msra.gmra.mrb[4].mxu0 %vm1156_vm3, %v25996_v1  ;;  %v618_v9 = vsel %vm302_vm0, %v611_v29, %v612_v6 }
 0x13a   : > { %v619_v57 = vsel %vm33125_vm4, %v26060_v45, %v618_v9  ;;  %v670_v36 = vpop.permute.xlu0 %669  ;;  %1792 = vmatprep.mubr.f32.mxu0 %v25465_v4  ;;  %661 = vst [vmem:[#allocation2 + $0x144] ss:$8 sm:$0xf] %v650_v14  ;;  %662 = vst [vmem:[#allocation2 + $0x144] ss:$8 sm:$0xf0] %v650_v14 }
 0x13b   : > { %18501 = vmatmul.mubr.msk.f32.vlgmr.msra.gmra.mrb[8].mxu1 %vm1156_vm3, %v25996_v1  ;;  %630 = vst [vmem:[#allocation2 + $0x143] ss:$8 sm:$0xf] %v619_v57  ;;  %631 = vst [vmem:[#allocation2 + $0x143] ss:$8 sm:$0xf0] %v619_v57 }
 0x13c   : > { %v705_v56 = vrot.slane %v701_v28, 1  ;;  %v674_v24 = vrot.slane %v670_v36, 1  ;;  %1863 = vmatprep.mubr.f32.mxu1 %v25465_v4  ;;  %v763_v49 = vpop.permute.xlu1 %762  ;;  %v1077_v30 = vld [vmem:[#allocation2 + $0x88] sm:$0xff]  ;;  %v1079_v62 = vld [vmem:[#allocation2 + $0x98] sm:$0xff]  ;;  %v1076_v34 = vld [vmem:[#allocation2 + $0x80] sm:$0xff]  ;;  %vm33136_vm4 = vcmask 56320  }
 0x13d   : > { %v767_v19 = vrot.slane %v763_v49, 1  ;;  %v1078_v47 = vld [vmem:[#allocation2 + $0x90] sm:$0xff]  ;;  %v33137_v27 = vrot.slane %v26184_v11, 1  ;;  %v33138_v28 = vrot.slane %v26186_v2, 1 }
 0x13e   : > { %v711_v1 = vsel %vm302_vm0, %v704_v5, %v705_v56  ;;  %v680_v44 = vsel %vm302_vm0, %v673_v15, %v674_v24  ;;  %v732_v38 = vpop.permute.xlu0 %731  ;;  %v1081_v56 = vld [vmem:[#allocation2 + $0xa8] sm:$0xff] }
 0x13f   : > { %v712_v45 = vsel %vm33126_vm6, %v26080_v48, %v711_v1  ;;  %v681_v29 = vsel %vm33127_vm7, %v26082_v41, %v680_v44  ;;  %v736_v55 = vrot.slane %v732_v38, 1  ;;  %v773_v5 = vsel %vm302_vm0, %v766_v33, %v767_v19  ;;  %v1083_v1 = vld [vmem:[#allocation2 + $0xb8] sm:$0xff]  ;;  %v1080_v38 = vld [vmem:[#allocation2 + $0xa0] sm:$0xff] }
 0x140   : > { %723 = vst [vmem:[#allocation2 + $0x146] ss:$8 sm:$0xf] %v712_v45  ;;  %724 = vst [vmem:[#allocation2 + $0x146] ss:$8 sm:$0xf0] %v712_v45  ;;  %v774_v48 = vsel %vm33128_vm8, %v26101_v37, %v773_v5  ;;  %v825_v13 = vpop.permute.xlu1 %824 }
 0x141   : > { %692 = vst [vmem:[#allocation2 + $0x145] ss:$8 sm:$0xf] %v681_v29  ;;  %693 = vst [vmem:[#allocation2 + $0x145] ss:$8 sm:$0xf0] %v681_v29  ;;  %v742_v15 = vsel %vm302_vm0, %v735_v35, %v736_v55 }
 0x142   : > { %v743_v41 = vsel %vm33129_vm9, %v26103_v25, %v742_v15  ;;  %v794_v21 = vpop.permute.xlu0 %793  ;;  %785 = vst [vmem:[#allocation2 + $0x200] ss:$8 sm:$0xf] %v774_v48  ;;  %786 = vst [vmem:[#allocation2 + $0x200] ss:$8 sm:$0xf0] %v774_v48 }
 0x143   : > { %754 = vst [vmem:[#allocation2 + $0x147] ss:$8 sm:$0xf] %v743_v41  ;;  %755 = vst [vmem:[#allocation2 + $0x147] ss:$8 sm:$0xf0] %v743_v41 }
 0x144   : > { %v829_v61 = vrot.slane %v825_v13, 1  ;;  %v798_v26 = vrot.slane %v794_v21, 1  ;;  %v887_v10 = vpop.permute.xlu1 %886  ;;  %vm18420_vm6 = vcmask 40960  }
 0x146   : > { %v835_v33 = vsel %vm302_vm0, %v828_v42, %v829_v61  ;;  %v804_v35 = vsel %vm302_vm0, %v797_v52, %v798_v26  ;;  %v856_v32 = vpop.permute.xlu0 %855  ;;  %v891_v42 = vrot.slane %v887_v10, 1  ;;  %v1082_v26 = vld [vmem:[#allocation2 + $0xb0] sm:$0xff] }
 0x147   : > { %v836_v37 = vsel %vm33130_vm10, %v26123_v23, %v835_v33  ;;  %v805_v25 = vsel %vm33131_vm12, %v26125_v60, %v804_v35  ;;  %v860_v51 = vrot.slane %v856_v32, 1 }
 0x148   : > { %847 = vst [vmem:[#allocation2 + $0x202] ss:$8 sm:$0xf] %v836_v37  ;;  %848 = vst [vmem:[#allocation2 + $0x202] ss:$8 sm:$0xf0] %v836_v37  ;;  %v897_v52 = vsel %vm302_vm0, %v890_v20, %v891_v42  ;;  %v949_v53 = vpop.permute.xlu1 %948 }
 0x149   : > { %816 = vst [vmem:[#allocation2 + $0x201] ss:$8 sm:$0xf] %v805_v25  ;;  %817 = vst [vmem:[#allocation2 + $0x201] ss:$8 sm:$0xf0] %v805_v25  ;;  %v866_v23 = vsel %vm302_vm0, %v859_v43, %v860_v51  ;;  %v898_v60 = vsel %vm33132_vm14, %v26144_v16, %v897_v52 }
 0x14a   : > { %v867_v59 = vsel %vm33133_vm11, %v26146_v50, %v866_v23  ;;  %v1101_v18 = vld [vmem:[#allocation2 + $0x148] sm:$0xff]  ;;  %v1103_v31 = vld [vmem:[#allocation2 + $0x158] sm:$0xff]  ;;  %v1100_v3 = vld [vmem:[#allocation2 + $0x140] sm:$0xff]  ;;  %909 = vst [vmem:[#allocation2 + $0x204] ss:$8 sm:$0xf] %v898_v60  ;;  %v918_v54 = vpop.permute.xlu0 %917 }
 0x14b   : > { %910 = vst [vmem:[#allocation2 + $0x204] ss:$8 sm:$0xf0] %v898_v60  ;;  %878 = vst [vmem:[#allocation2 + $0x203] ss:$8 sm:$0xf] %v867_v59  ;;  %v22427_v20 = vpack.c.bf16 %v1101_v18, %v1077_v30  ;;  %v22435_v22 = vpack.c.bf16 %v1103_v31, %v1079_v62  ;;  %v22429_v40 = vpack.c.bf16 %v1100_v3, %v1076_v34 }
 0x14c   : > { %879 = vst [vmem:[#allocation2 + $0x203] ss:$8 sm:$0xf0] %v867_v59  ;;  %v953_v39 = vrot.slane %v949_v53, 1  ;;  %v1102_v17 = vld [vmem:[#allocation2 + $0x150] sm:$0xff]  ;;  %v922_v8 = vrot.slane %v918_v54, 1  ;;  %v1011_v46 = vpop.permute.xlu1 %1010 }
 0x14d   : > { %v22437_v43 = vpack.c.bf16 %v1102_v17, %v1078_v47  ;;  %22428 = vmatprep.subr.bf16.mxu0 %v22427_v20  ;;  %22436 = vmatprep.subr.bf16.mxu1 %v22435_v22  ;;  %v1015_v58 = vrot.slane %v1011_v46, 1  ;;  %v1105_v24 = vld [vmem:[#allocation2 + $0x168] sm:$0xff]  ;;  %v1107_v44 = vld [vmem:[#allocation2 + $0x178] sm:$0xff]  ;;  %v1104_v19 = vld [vmem:[#allocation2 + $0x160] sm:$0xff] }
 0x14e   : > { %v959_v16 = vsel %vm302_vm0, %v952_v0, %v953_v39  ;;  %22430 = vmatpush1.bf16.msra.mxu0 %v22429_v40  ;;  %v928_v6 = vsel %vm302_vm0, %v33135_v7, %v922_v8  ;;  %v980_v14 = vpop.permute.xlu0 %979  ;;  %v22443_v48 = vpack.c.bf16 %v1105_v24, %v1081_v56  ;;  %v22451_v61 = vpack.c.bf16 %v1107_v44, %v1083_v1  ;;  %v1106_v33 = vld [vmem:[#allocation2 + $0x170] sm:$0xff]  ;;  %v25375_v60 = vld [vmem:[%s33013_s1] sm:$0xff]  ;;  %v22857_v1 = vld [vmem:[%s33014_s2 + $0x78] ss:$20 sps:$4 sm:$0xff]  }
 0x14f   : > { %v960_v50 = vsel %vm33134_vm1, %v26164_v63, %v959_v16  ;;  %22438 = vmatpush1.bf16.msra.mxu1 %v22437_v43  ;;  %v929_v0 = vsel %vm33136_vm4, %v26166_v12, %v928_v6  ;;  %v1021_v9 = vsel %vm302_vm0, %v33137_v27, %v1015_v58  ;;  %v984_v57 = vrot.slane %v980_v14, 1  ;;  %v22839_v58 = vld [vmem:[%s33014_s2] ss:$20 sps:$4 sm:$0xff]   ;;  %v22841_v7 = vld [vmem:[%s33014_s2 + $0x4] ss:$20 sps:$4 sm:$0xff]  }
 0x150   : > { %971 = vst [vmem:[#allocation2 + $0x206] ss:$8 sm:$0xf] %v960_v50  ;;  %972 = vst [vmem:[#allocation2 + $0x206] ss:$8 sm:$0xf0] %v960_v50  ;;  %v1022_v63 = vsel %vm1017_vm13, %v26184_v11, %v1021_v9  ;;  %v22445_v42 = vpack.c.bf16 %v1104_v19, %v1080_v38  ;;  %v22453_v51 = vpack.c.bf16 %v1106_v33, %v1082_v26 }
 0x151   : > { %940 = vst [vmem:[#allocation2 + $0x205] ss:$8 sm:$0xf] %v929_v0  ;;  %941 = vst [vmem:[#allocation2 + $0x205] ss:$8 sm:$0xf0] %v929_v0  ;;  %v990_v36 = vsel %vm302_vm0, %v33138_v28, %v984_v57 }
 0x152   : > { %1033 = vst [vmem:[#allocation2 + $0x2c0] ss:$8 sm:$0xf] %v1022_v63  ;;  %1034 = vst [vmem:[#allocation2 + $0x2c0] ss:$8 sm:$0xf0] %v1022_v63  ;;  %v991_v12 = vsel %vm986_vm15, %v26186_v2, %v990_v36 }
 0x153   : > { %1002 = vst [vmem:[#allocation2 + $0x207] ss:$8 sm:$0xf] %v991_v12  ;;  %1003 = vst [vmem:[#allocation2 + $0x207] ss:$8 sm:$0xf0] %v991_v12 }
 0x154   : > { %v22842_v6 = vld [vmem:[%s33014_s2 + $0x8] ss:$20 sps:$4 sm:$0xff]   ;;  %v22844_v0 = vld [vmem:[%s33014_s2 + $0xc] ss:$20 sps:$4 sm:$0xff]   ;;  %v22848_v63 = vld [vmem:[%s33014_s2 + $0x30] ss:$20 sps:$4 sm:$0xff]  }
 0x155   : > { %v22847_v27 = vld [vmem:[%s33014_s2 + $0x2c] ss:$20 sps:$4 sm:$0xff]   ;;  %v22850_v9 = vld [vmem:[%s33014_s2 + $0x34] ss:$20 sps:$4 sm:$0xff]   ;;  %v22856_v28 = vld [vmem:[%s33014_s2 + $0x5c] ss:$20 sps:$4 sm:$0xff]  }
 0x156   : > { %v22845_v14 = vld [vmem:[%s33014_s2 + $0x28] ss:$20 sps:$4 sm:$0xff]   ;;  %v22851_v36 = vld [vmem:[%s33014_s2 + $0x50] ss:$20 sps:$4 sm:$0xff]   ;;  %v22854_v12 = vld [vmem:[%s33014_s2 + $0x58] ss:$20 sps:$4 sm:$0xff]  }
 0x157   : > { %v22853_v57 = vld [vmem:[%s33014_s2 + $0x54] ss:$20 sps:$4 sm:$0xff]   ;;  %v22859_v56 = vld [vmem:[%s33014_s2 + $0x7c] ss:$20 sps:$4 sm:$0xff]   ;;  %v22862_v24 = vld [vmem:[%s33014_s2 + $0x84] ss:$20 sps:$4 sm:$0xff]  }
 0x158   : > { %v22860_v44 = vld [vmem:[%s33014_s2 + $0x80] ss:$20 sps:$4 sm:$0xff]   ;;  %v22866_v38 = vld [vmem:[%s33014_s2 + $0xa8] ss:$20 sps:$4 sm:$0xff]   ;;  %v22878_v26 = vld [vmem:[%s33014_s2 + $0xf8] ss:$20 sps:$4 sm:$0xff]  }
 0x159   : > { %v1149_v45 = vld [vmem:[#allocation2 + $0x2c8] sm:$0xff]  ;;  %v1151_v29 = vld [vmem:[#allocation2 + $0x2d8] sm:$0xff]  ;;  %v1148_v49 = vld [vmem:[#allocation2 + $0x2c0] sm:$0xff]  ;;  %vm25467_vm0 = vmmov 0   ;;  %vm18273_vm15 = vcmask 359424  }
 0x15a   : > { %v1150_v11 = vld [vmem:[#allocation2 + $0x2d0] sm:$0xff]  ;;  %v1125_v55 = vld [vmem:[#allocation2 + $0x208] sm:$0xff]  ;;  %v1127_v5 = vld [vmem:[#allocation2 + $0x218] sm:$0xff] }
 0x15b   : > { %v1124_v15 = vld [vmem:[#allocation2 + $0x200] sm:$0xff]  ;;  %v22431_v41 = vpack.c.bf16 %v1149_v45, %v1125_v55  ;;  %v22439_v13 = vpack.c.bf16 %v1151_v29, %v1127_v5  ;;  %v1126_v2 = vld [vmem:[#allocation2 + $0x210] sm:$0xff]  ;;  %v1129_v37 = vld [vmem:[#allocation2 + $0x228] sm:$0xff] }
 0x15c   : > { %v22433_v21 = vpack.c.bf16 %v1148_v49, %v1124_v15  ;;  %v22441_v35 = vpack.c.bf16 %v1150_v11, %v1126_v2  ;;  %v1153_v25 = vld [vmem:[#allocation2 + $0x2e8] sm:$0xff]  ;;  %v1128_v10 = vld [vmem:[#allocation2 + $0x220] sm:$0xff]  ;;  %v1131_v30 = vld [vmem:[#allocation2 + $0x238] sm:$0xff] }
 0x15d   : > { %22432 = vmatprep.subr.bf16.mxu0 %v22431_v41  ;;  %22440 = vmatprep.subr.bf16.mxu1 %v22439_v13  ;;  %v1152_v32 = vld [vmem:[#allocation2 + $0x2e0] sm:$0xff]  ;;  %v1155_v62 = vld [vmem:[#allocation2 + $0x2f8] sm:$0xff]  ;;  %v1130_v34 = vld [vmem:[#allocation2 + $0x230] sm:$0xff]  ;;  %v22447_v52 = vpack.c.bf16 %v1153_v25, %v1129_v37 }
 0x15e   : > { %22434 = vmatpush1.bf16.msra.mxu0 %v22433_v21  ;;  %22442 = vmatpush1.bf16.msra.mxu1 %v22441_v35  ;;  %v1154_v47 = vld [vmem:[#allocation2 + $0x2f0] sm:$0xff]  ;;  %v22455_v23 = vpack.c.bf16 %v1155_v62, %v1131_v30  ;;  %v22449_v59 = vpack.c.bf16 %v1152_v32, %v1128_v10  ;;  %v22865_v45 = vld [vmem:[%s33014_s2 + $0xa4] ss:$20 sps:$4 sm:$0xff]   ;;  %v22868_v49 = vld [vmem:[%s33014_s2 + $0xac] ss:$20 sps:$4 sm:$0xff]  }
 0x15f   : > { %22444 = vmatprep.subr.bf16.mxu0 %v22443_v48  ;;  %22452 = vmatprep.subr.bf16.mxu1 %v22451_v61  ;;  %v22457_v53 = vpack.c.bf16 %v1154_v47, %v1130_v34  ;;  %v22863_v29 = vld [vmem:[%s33014_s2 + $0xa0] ss:$20 sps:$4 sm:$0xff]   ;;  %v22869_v41 = vld [vmem:[%s33014_s2 + $0xc8] ss:$20 sps:$4 sm:$0xff]   ;;  %v22872_v13 = vld [vmem:[%s33014_s2 + $0xd0] ss:$20 sps:$4 sm:$0xff]  }
 0x160   : > { %v22871_v19 = vld [vmem:[%s33014_s2 + $0xcc] ss:$20 sps:$4 sm:$0xff]   ;;  %v22874_v15 = vld [vmem:[%s33014_s2 + $0xd4] ss:$20 sps:$4 sm:$0xff]   ;;  %v22880_v2 = vld [vmem:[%s33014_s2 + $0xfc] ss:$20 sps:$4 sm:$0xff]  }
 0x161   : > { %18502 = vmatmul.mubr.msk.f32.vlgmr.msra.gmra.mrb[6].mxu0 %vm1156_vm3, %v25375_v60  ;;  %18503 = vmatmul.mubr.msk.f32.vlgmr.msra.gmra.mrb[10].mxu1 %vm1156_vm3, %v25375_v60  ;;  %v22877_v21 = vld [vmem:[%s33014_s2 + $0xf4] ss:$20 sps:$4 sm:$0xff]   ;;  %v22875_v61 = vld [vmem:[%s33014_s2 + $0xf0] ss:$20 sps:$4 sm:$0xff]   ;;  %v22881_v32 = vld [vmem:[%s33014_s2 + $0x118] ss:$20 sps:$4 sm:$0xff]  }
 0x162   : > { %22446 = vmatpush1.bf16.msra.mxu0 %v22445_v42  ;;  %22454 = vmatpush1.bf16.msra.mxu1 %v22453_v51  ;;  %v22883_v33 = vld [vmem:[%s33014_s2 + $0x11c] ss:$20 sps:$4 sm:$0xff]   ;;  %v22886_v35 = vld [vmem:[%s33014_s2 + $0x124] ss:$20 sps:$4 sm:$0xff]   ;;  %v22884_v62 = vld [vmem:[%s33014_s2 + $0x120] ss:$20 sps:$4 sm:$0xff]  }
 0x163   : > { %22448 = vmatprep.subr.bf16.mxu0 %v22447_v52  ;;  %1934 = vmatprep.mubr.f32.mxu0 %v25465_v4  ;;  %v22889_v34 = vld [vmem:[%s33014_s2 + $0x144] ss:$20 sps:$4 sm:$0xff]   ;;  %v22892_v42 = vld [vmem:[%s33014_s2 + $0x14c] ss:$20 sps:$4 sm:$0xff]   ;;  %v22890_v47 = vld [vmem:[%s33014_s2 + $0x148] ss:$20 sps:$4 sm:$0xff]  }
 0x164   : > { %22456 = vmatprep.subr.bf16.mxu1 %v22455_v23  ;;  %2005 = vmatprep.mubr.f32.mxu1 %v25465_v4  ;;  %v22887_v51 = vld [vmem:[%s33014_s2 + $0x140] ss:$20 sps:$4 sm:$0xff]  }
 0x165   : > { %v22895_v52 = vld [vmem:[%s33014_s2 + $0x16c] ss:$20 sps:$4 sm:$0xff]   ;;  %v22898_v23 = vld [vmem:[%s33014_s2 + $0x174] ss:$20 sps:$4 sm:$0xff]  }
 0x166   : > { %22450 = vmatpush1.bf16.msra.mxu0 %v22449_v59  ;;  %22458 = vmatpush1.bf16.msra.mxu1 %v22457_v53  ;;  %v22896_v59 = vld [vmem:[%s33014_s2 + $0x170] ss:$20 sps:$4 sm:$0xff]   ;;  %v22901_v53 = vld [vmem:[%s33014_s2 + $0x194] ss:$20 sps:$4 sm:$0xff]  }
 0x167   : > { %8231 = vmatprep.subr.bf16.mxu0 %v22841_v7  ;;  %8723 = vmatprep.subr.bf16.mxu1 %v22844_v0  ;;  %v22907_v7 = vld [vmem:[%s33014_s2 + $0x1bc] ss:$20 sps:$4 sm:$0xff]   ;;  %v22905_v0 = vld [vmem:[%s33014_s2 + $0x1b8] ss:$20 sps:$4 sm:$0xff]  }
 0x169   : > { %18504 = vmatmul.mubr.msk.f32.vlgmr.msra.gmra.mrb[8].mxu0 %vm1156_vm3, %v25375_v60  ;;  %18505 = vmatmul.mubr.msk.f32.vlgmr.msra.gmra.mrb[12].mxu1 %vm1156_vm3, %v25375_v60  ;;  %v22893_v60 = vld [vmem:[%s33014_s2 + $0x168] ss:$20 sps:$4 sm:$0xff]   ;;  %vm18276_vm3 = vcmask 1043456  }
 0x16a   : > { %8232 = vmatpush1.bf16.msra.mxu0 %v22839_v58  ;;  %8724 = vmatpush1.bf16.msra.mxu1 %v22842_v6  ;;  %v22902_v58 = vld [vmem:[%s33014_s2 + $0x198] ss:$20 sps:$4 sm:$0xff]  }
 0x16b   : > { %8233 = vmatprep.subr.bf16.mxu0 %v22847_v27  ;;  %8725 = vmatprep.subr.bf16.mxu1 %v22850_v9  ;;  %v22910_v6 = vld [vmem:[%s33014_s2 + $0x1c4] ss:$20 sps:$4 sm:$0xff]   ;;  %v22908_v27 = vld [vmem:[%s33014_s2 + $0x1c0] ss:$20 sps:$4 sm:$0xff]  }
 0x16c   : > { %v22913_v9 = vld [vmem:[%s33014_s2 + $0x1e4] ss:$20 sps:$4 sm:$0xff]  }
 0x16e   : > { %8234 = vmatpush1.bf16.msra.mxu0 %v22845_v14  ;;  %8726 = vmatpush1.bf16.msra.mxu1 %v22848_v63  ;;  %v22916_v14 = vld [vmem:[%s33014_s2 + $0x1ec] ss:$20 sps:$4 sm:$0xff]  }
 0x16f   : > { %8235 = vmatprep.subr.bf16.mxu0 %v22853_v57  ;;  %8727 = vmatprep.subr.bf16.mxu1 %v22856_v28  ;;  %v22911_v63 = vld [vmem:[%s33014_s2 + $0x1e0] ss:$20 sps:$4 sm:$0xff]   ;;  %v22914_v57 = vld [vmem:[%s33014_s2 + $0x1e8] ss:$20 sps:$4 sm:$0xff]  }
 0x170   : > { %v22919_v28 = vld [vmem:[%s33014_s2 + $0x20c] ss:$20 sps:$4 sm:$0xff]  }
 0x172   : > { %8236 = vmatpush1.bf16.msra.mxu0 %v22851_v36  ;;  %8728 = vmatpush1.bf16.msra.mxu1 %v22854_v12  ;;  %v22922_v36 = vld [vmem:[%s33014_s2 + $0x214] ss:$20 sps:$4 sm:$0xff]  }
 0x173   : > { %8237 = vmatprep.subr.bf16.mxu0 %v22859_v56  ;;  %8729 = vmatprep.subr.bf16.mxu1 %v22862_v24  ;;  %v22917_v12 = vld [vmem:[%s33014_s2 + $0x208] ss:$20 sps:$4 sm:$0xff]   ;;  %v22920_v56 = vld [vmem:[%s33014_s2 + $0x210] ss:$20 sps:$4 sm:$0xff]  }
 0x176   : > { %8238 = vmatpush1.bf16.msra.mxu0 %v22857_v1  ;;  %8730 = vmatpush1.bf16.msra.mxu1 %v22860_v44 }
 0x177   : > { %8239 = vmatprep.subr.bf16.mxu0 %v22865_v45  ;;  %8731 = vmatprep.subr.bf16.mxu1 %v22868_v49 }
 0x17a   : > { %8240 = vmatpush1.bf16.msra.mxu0 %v22863_v29  ;;  %8732 = vmatpush1.bf16.msra.mxu1 %v22866_v38 }
 0x17b   : > { %8241 = vmatprep.subr.bf16.mxu0 %v22871_v19  ;;  %8733 = vmatprep.subr.bf16.mxu1 %v22874_v15  ;;  %v22923_v15 = vld [vmem:[%s33014_s2 + $0x230] ss:$20 sps:$4 sm:$0xff]  }
 0x17e   : > { %8242 = vmatpush1.bf16.msra.mxu0 %v22869_v41  ;;  %8734 = vmatpush1.bf16.msra.mxu1 %v22872_v13  ;;  %v22925_v41 = vld [vmem:[%s33014_s2 + $0x234] ss:$20 sps:$4 sm:$0xff]   ;;  %v22926_v13 = vld [vmem:[%s33014_s2 + $0x238] ss:$20 sps:$4 sm:$0xff]  }
 0x17f   : > { %8243 = vmatprep.subr.bf16.mxu0 %v22877_v21  ;;  %8735 = vmatprep.subr.bf16.mxu1 %v22880_v2  ;;  %v22928_v2 = vld [vmem:[%s33014_s2 + $0x23c] ss:$20 sps:$4 sm:$0xff]  }
 0x182   : > { %8244 = vmatpush1.bf16.msra.mxu0 %v22875_v61  ;;  %8736 = vmatpush1.bf16.msra.mxu1 %v22878_v26 }
 0x183   : > { %8245 = vmatprep.subr.bf16.mxu0 %v22883_v33  ;;  %8737 = vmatprep.subr.bf16.mxu1 %v22886_v35 }
 0x186   : > { %8246 = vmatpush1.bf16.msra.mxu0 %v22881_v32  ;;  %8738 = vmatpush1.bf16.msra.mxu1 %v22884_v62 }
 0x187   : > { %8247 = vmatprep.subr.bf16.mxu0 %v22889_v34  ;;  %8739 = vmatprep.subr.bf16.mxu1 %v22892_v42  ;;  %v22929_v42 = vld [vmem:[%s33014_s2 + $0x258] ss:$20 sps:$4 sm:$0xff]  }
 0x18a   : > { %8248 = vmatpush1.bf16.msra.mxu0 %v22887_v51  ;;  %8740 = vmatpush1.bf16.msra.mxu1 %v22890_v47  ;;  %v22931_v51 = vld [vmem:[%s33014_s2 + $0x25c] ss:$20 sps:$4 sm:$0xff]   ;;  %v22932_v47 = vld [vmem:[%s33014_s2 + $0x260] ss:$20 sps:$4 sm:$0xff]  }
 0x18b   : > { %8249 = vmatprep.subr.bf16.mxu0 %v22895_v52  ;;  %8741 = vmatprep.subr.bf16.mxu1 %v22898_v23 }
 0x18e   : > { %8250 = vmatpush1.bf16.msra.mxu0 %v22893_v60  ;;  %8742 = vmatpush1.bf16.msra.mxu1 %v22896_v59  ;;  %v22934_v59 = vld [vmem:[%s33014_s2 + $0x264] ss:$20 sps:$4 sm:$0xff]  }
 0x18f   : > { %8251 = vmatprep.subr.bf16.mxu0 %v22901_v53 }
 0x1d3   : > { %v26345_v18 = vpop.f32.mrb[0].mxu1 }
 0x1d4   : > { %v26347_v31 = vpop.f32.mrb[1].mxu1  ;;  %v2012_v43 = vmax.f32 %v26345_v18, 0.0 }
 0x1d5   : > { %v2013_v22 = vmax.f32 %v26347_v31, 0.0 }
 0x1d6   : > { %v26349_v3 = vpop.f32.mrb[0].mxu0 }
 0x1d7   : > { %v26351_v39 = vpop.f32.mrb[1].mxu0  ;;  %v2016_v62 = vmax.f32 %v26349_v3, 0.0  ;;  %v22941_v3 = vld [vmem:[%s33014_s2 + $0x2a8] ss:$20 sps:$4 sm:$0xff]  }
 0x1d8   : > { %v2017_v31 = vmax.f32 %v26351_v39, 0.0  ;;  %v22947_v39 = vld [vmem:[%s33014_s2 + $0x2d0] ss:$20 sps:$4 sm:$0xff]  }
 0x1da   : > { %v22739_v18 = vpack.i.bf16 %v2017_v31, %v2016_v62 }
 0x1db   : > { %v26353_v20 = vpop.f32.mrb[2].mxu1 }
 0x1dc   : > { %v2014_v40 = vmax.f32 %v26353_v20, 0.0  ;;  %v26357_v17 = vpop.f32.mrb[3].mxu1 }
 0x1dd   : > { %v2015_v16 = vmax.f32 %v26357_v17, 0.0 }
 0x1de   : > { %v22724_v54 = vpack.i.bf16 %v2014_v40, %v2013_v22 }
 0x1df   : > { %v22729_v50 = vpack.i.bf16 %v2012_v43, %v2015_v16 }
 0x1e0   : > { %22725 = vrot.lane.b32.xlu0 %v22724_v54, %s33096_s9  ;;  %v22904_v54 = vld [vmem:[%s33014_s2 + $0x19c] ss:$20 sps:$4 sm:$0xff]  }
 0x1e1   : > { %22730 = vrot.lane.b32.xlu1 %v22729_v50, %s33096_s9  ;;  %v22899_v50 = vld [vmem:[%s33014_s2 + $0x190] ss:$20 sps:$4 sm:$0xff]   ;;  %8743 = vmatprep.subr.bf16.mxu1 %v22904_v54 }
 0x1e2   : > { %8252 = vmatpush1.bf16.msra.mxu0 %v22899_v50  ;;  %8744 = vmatpush1.bf16.msra.mxu1 %v22902_v58 }
 0x1e3   : > { %v26371_v8 = vpop.f32.mrb[4].mxu1  ;;  %8253 = vmatprep.subr.bf16.mxu0 %v22907_v7  ;;  %8745 = vmatprep.subr.bf16.mxu1 %v22910_v6 }
 0x1e4   : > { %v26373_v46 = vpop.f32.mrb[5].mxu1  ;;  %v2018_v50 = vmax.f32 %v26371_v8, 0.0  ;;  %v22950_v8 = vld [vmem:[%s33014_s2 + $0x2d8] ss:$20 sps:$4 sm:$0xff]  }
 0x1e5   : > { %v2019_v20 = vmax.f32 %v26373_v46, 0.0  ;;  %v22953_v46 = vld [vmem:[%s33014_s2 + $0x2f8] ss:$20 sps:$4 sm:$0xff]  }
 0x1e6   : > { %8254 = vmatpush1.bf16.msra.mxu0 %v22905_v0  ;;  %8746 = vmatpush1.bf16.msra.mxu1 %v22908_v27 }
 0x1e7   : > { %8255 = vmatprep.subr.bf16.mxu0 %v22913_v9  ;;  %8747 = vmatprep.subr.bf16.mxu1 %v22916_v14 }
 0x1ea   : > { %8256 = vmatpush1.bf16.msra.mxu0 %v22911_v63  ;;  %8748 = vmatpush1.bf16.msra.mxu1 %v22914_v57 }
 0x1eb   : > { %8257 = vmatprep.subr.bf16.mxu0 %v22919_v28  ;;  %8749 = vmatprep.subr.bf16.mxu1 %v22922_v36  ;;  %v22937_v36 = vld [vmem:[%s33014_s2 + $0x284] ss:$20 sps:$4 sm:$0xff]  }
 0x1ee   : > { %8258 = vmatpush1.bf16.msra.mxu0 %v22917_v12  ;;  %8750 = vmatpush1.bf16.msra.mxu1 %v22920_v56  ;;  %v22940_v12 = vld [vmem:[%s33014_s2 + $0x28c] ss:$20 sps:$4 sm:$0xff]  }
 0x1ef   : > { %8259 = vmatprep.subr.bf16.mxu0 %v22925_v41  ;;  %8751 = vmatprep.subr.bf16.mxu1 %v22928_v2 }
 0x1f2   : > { %8260 = vmatpush1.bf16.msra.mxu0 %v22923_v15  ;;  %8752 = vmatpush1.bf16.msra.mxu1 %v22926_v13 }
 0x1f3   : > { %8261 = vmatprep.subr.bf16.mxu0 %v22931_v51  ;;  %8753 = vmatprep.subr.bf16.mxu1 %v22934_v59 }
 0x1f6   : > { %8262 = vmatpush1.bf16.msra.mxu0 %v22929_v42  ;;  %8754 = vmatpush1.bf16.msra.mxu1 %v22932_v47 }
 0x1f7   : > { %8272 = vmatprep.subr.bf16.mxu0 %v22937_v36  ;;  %8764 = vmatprep.subr.bf16.mxu1 %v22940_v12 }
 0x204   : > { %v26432_v11 = vpop.f32.mrb[2].mxu0 }
 0x205   : > { %v26440_v55 = vpop.f32.mrb[3].mxu0 }
 0x206   : > { %v26442_v5 = vpop.f32.mrb[6].mxu1  ;;  %v2021_v58 = vmax.f32 %v26440_v55, 0.0  ;;  %v22959_v55 = vld [vmem:[%s33014_s2 + $0x320] ss:$20 sps:$4 sm:$0xff]  }
 0x207   : > { %v26447_v48 = vpop.f32.mrb[7].mxu1  ;;  %v2022_v7 = vmax.f32 %v26442_v5, 0.0  ;;  %v22962_v5 = vld [vmem:[%s33014_s2 + $0x328] ss:$20 sps:$4 sm:$0xff]  }
 0x208   : > { %v2023_v0 = vmax.f32 %v26447_v48, 0.0  ;;  %v22973_v48 = vld [vmem:[%s33014_s2 + $0x374] ss:$20 sps:$4 sm:$0xff]  }
 0x20a   : > { %v22769_v9 = vpack.i.bf16 %v2023_v0, %v2022_v7 }
 0x20c   : > { %v26473_v37 = vpop.f32.mrb[4].mxu0 }
 0x20d   : > { %v26475_v25 = vpop.f32.mrb[5].mxu0  ;;  %v2024_v27 = vmax.f32 %v26473_v37, 0.0  ;;  %v22976_v37 = vld [vmem:[%s33014_s2 + $0x37c] ss:$20 sps:$4 sm:$0xff]  }
 0x20e   : > { %v26477_v10 = vpop.f32.mrb[8].mxu1  ;;  %v2025_v14 = vmax.f32 %v26475_v25, 0.0  ;;  %v22979_v25 = vld [vmem:[%s33014_s2 + $0x39c] ss:$20 sps:$4 sm:$0xff]  }
 0x20f   : > { %v26482_v30 = vpop.f32.mrb[9].mxu1  ;;  %v2026_v63 = vmax.f32 %v26477_v10, 0.0  ;;  %v22982_v10 = vld [vmem:[%s33014_s2 + $0x3a4] ss:$20 sps:$4 sm:$0xff]  }
 0x210   : > { %v22779_v57 = vpack.i.bf16 %v2025_v14, %v2024_v27  ;;  %v2027_v28 = vmax.f32 %v26482_v30, 0.0  ;;  %v22985_v30 = vld [vmem:[%s33014_s2 + $0x3c4] ss:$20 sps:$4 sm:$0xff]  }
 0x212   : > { %v22789_v56 = vpack.i.bf16 %v2027_v28, %v2026_v63 }
 0x234   : > { %v26559_v24 = vpop.f32.mrb[6].mxu0  ;;  %v26561_v1 = vpop.f32.mrb[10].mxu1 }
 0x235   : > { %v26563_v44 = vpop.f32.mrb[7].mxu0  ;;  %v26565_v45 = vpop.f32.mrb[11].mxu1  ;;  %v2028_v15 = vmax.f32 %v26559_v24, 0.0  ;;  %v22988_v24 = vld [vmem:[%s33014_s2 + $0x3cc] ss:$20 sps:$4 sm:$0xff]  }
 0x236   : > { %v2029_v41 = vmax.f32 %v26563_v44, 0.0  ;;  %v2031_v2 = vmax.f32 %v26565_v45, 0.0  ;;  %v22991_v44 = vld [vmem:[%s33014_s2 + $0x3ec] ss:$20 sps:$4 sm:$0xff]   ;;  %v22997_v45 = vld [vmem:[%s33014_s2 + $0x414] ss:$20 sps:$4 sm:$0xff]  }
 0x238   : > { %v22799_v13 = vpack.i.bf16 %v2029_v41, %v2028_v15 }
 0x23c   : > { %v26567_v29 = vpop.f32.mrb[8].mxu0  ;;  %v26569_v49 = vpop.f32.mrb[12].mxu1 }
 0x23d   : > { %v26571_v38 = vpop.f32.mrb[9].mxu0  ;;  %v26573_v19 = vpop.f32.mrb[13].mxu1  ;;  %v2034_v42 = vmax.f32 %v26569_v49, 0.0  ;;  %v23006_v49 = vld [vmem:[%s33014_s2 + $0x444] ss:$20 sps:$4 sm:$0xff]  }
 0x23e   : > { %v2035_v51 = vmax.f32 %v26573_v19, 0.0  ;;  %v22995_v19 = vld [vmem:[%s33014_s2 + $0x410] ss:$20 sps:$4 sm:$0xff]  }
 0x240   : > { %v22829_v47 = vpack.i.bf16 %v2035_v51, %v2034_v42 }
 0x252   : > { %v22726_v21 = vpop.permute.xlu0 %22725 }
 0x253   : > { %v22728_v61 = vunpack.i.h.bf16 %v22726_v21  ;;  %v22727_v26 = vunpack.i.l.bf16 %v22726_v21  ;;  %v26587_v33 = vpop.permute.xlu1 %22730  ;;  %v2030_v21 = vmax.f32 %v26561_v1, 0.0  ;;  %v22994_v1 = vld [vmem:[%s33014_s2 + $0x3f4] ss:$20 sps:$4 sm:$0xff]  }
 0x254   : > { %v22733_v35 = vunpack.i.h.bf16 %v26587_v33  ;;  %v22732_v32 = vunpack.i.l.bf16 %v26587_v33 }
 0x255   : > { %v2109_v34 = vsel %vm304_vm2, %v22727_v26, %v22728_v61 }
 0x256   : > { %v26604_v52 = vmax.f32 %v2013_v22, %v2109_v34  ;;  %v2108_v23 = vsel %vm304_vm2, %v22733_v35, %v22727_v26  ;;  %v2110_v60 = vsel %vm304_vm2, %v22728_v61, %v22732_v32  ;;  %v2032_v61 = vmax.f32 %v26567_v29, 0.0  ;;  %v23000_v29 = vld [vmem:[%s33014_s2 + $0x41c] ss:$20 sps:$4 sm:$0xff]  }
 0x257   : > { %v2154_v53 = vmax.f32 %v2012_v43, %v2108_v23  ;;  %v26617_v54 = vmax.f32 %v2014_v40, %v2110_v60  ;;  %v2020_v40 = vmax.f32 %v26432_v11, 0.0  ;;  %v22749_v43 = vpack.i.bf16 %v2019_v20, %v2018_v50  ;;  %v22956_v11 = vld [vmem:[%s33014_s2 + $0x300] ss:$20 sps:$4 sm:$0xff]  }
 0x258   : > { %v2033_v26 = vmax.f32 %v26571_v38, 0.0  ;;  %v22809_v35 = vpack.i.bf16 %v2031_v2, %v2030_v21  ;;  %v23003_v38 = vld [vmem:[%s33014_s2 + $0x43c] ss:$20 sps:$4 sm:$0xff]  }
 0x259   : > { %2203 = vrot.lane.b32.xlu1 %v2154_v53, %s33100_s16  ;;  %v22734_v22 = vpack.i.bf16 %v26617_v54, %v26604_v52  ;;  %v22759_v6 = vpack.i.bf16 %v2021_v58, %v2020_v40 }
 0x25a   : > { %v22819_v34 = vpack.i.bf16 %v2033_v26, %v2032_v61 }
 0x25b   : > { %22735 = vrot.lane.b32.xlu0 %v22734_v22, %s33100_s16 }
 0x25f   : > { %22740 = vrot.lane.b32.xlu0 %v22739_v18, %s33096_s9 }
 0x263   : > { %22750 = vrot.lane.b32.xlu0 %v22749_v43, %s33096_s9 }
 0x267   : > { %22760 = vrot.lane.b32.xlu0 %v22759_v6, %s33096_s9 }
 0x26b   : > { %22770 = vrot.lane.b32.xlu0 %v22769_v9, %s33096_s9 }
 0x26f   : > { %22780 = vrot.lane.b32.xlu0 %v22779_v57, %s33096_s9 }
 0x273   : > { %22790 = vrot.lane.b32.xlu0 %v22789_v56, %s33096_s9 }
 0x277   : > { %22800 = vrot.lane.b32.xlu0 %v22799_v13, %s33096_s9 }
 0x27b   : > { %22810 = vrot.lane.b32.xlu0 %v22809_v35, %s33096_s9  ;;  %v22935_v35 = vld [vmem:[%s33014_s2 + $0x280] ss:$20 sps:$4 sm:$0xff]  }
 0x27f   : > { %22820 = vrot.lane.b32.xlu0 %v22819_v34, %s33096_s9  ;;  %v22938_v34 = vld [vmem:[%s33014_s2 + $0x288] ss:$20 sps:$4 sm:$0xff]  }
 0x283   : > { %22830 = vrot.lane.b32.xlu0 %v22829_v47, %s33096_s9  ;;  %s267_s9 = sand.u32 1, %s25430_s25  }
 0x284   : > { %s268_s20 = scalar_lea.vmem [#allocation3], %s267_s9  ;;  %s18423_s29 = scalar_lea.sflag [#allocation4], %s267_s9 }
 0x285   : > { %s18435_s21 = sshll.u32 %s268_s20, 4  ;;  %s32972_s21 = int_to_ptr.vmem [resolvable:$true] %s18435_s21 }
 0x286   : > { %s25376_s8 = scalar_lea.vmem %s32972_s21, 16  ;;  %p25383_p0 = scmp.lt.s32.totalorder %s32972_s21, %s25381_s13 }
 0x287   : > { %p25377_p11 = scmp.ne.s32.totalorder %s32972_s21, %s25376_s8  ;;  %p25384_p1 = scmp.lt.s32.totalorder %s25382_s14, %s25376_s8 }
 0x289   : > { %p25378_p12 = pnand %p25377_p11, %p25550_p5  ;;  %p25385_p2 = por %p25384_p1, %p25383_p0 }
 0x28b   : > { %p25379_p13 = pneg %p25378_p12 }
 0x28d   : > { %p25386_p3 = pnand %p25385_p2, %p25379_p13 }
 0x2cb   : > { %v2204_v22 = vpop.permute.xlu1 %2203 }
 0x2cd   : > { %v26698_v23 = vpop.permute.xlu0 %22735 }
 0x2ce   : > { %v22738_v60 = vunpack.i.h.bf16 %v26698_v23  ;;  %v22737_v59 = vunpack.i.l.bf16 %v26698_v23  ;;  %v23034_v23 = vld [vmem:[%s33014_s2 + $0x508] ss:$20 sps:$4 sm:$0xff]  }
 0x2d0   : > { %v2251_v18 = vsel %vm428_vm5, %v2204_v22, %v22737_v59  ;;  %v2252_v43 = vsel %vm428_vm5, %v22737_v59, %v22738_v60  ;;  %v22946_v59 = vld [vmem:[%s33014_s2 + $0x2b4] ss:$20 sps:$4 sm:$0xff]  }
 0x2d1   : > { %v2297_v6 = vmax.f32 %v2154_v53, %v2251_v18  ;;  %v22741_v9 = vpop.permute.xlu0 %22740  ;;  %v2298_v57 = vmax.f32 %v26604_v52, %v2252_v43  ;;  %v22943_v53 = vld [vmem:[%s33014_s2 + $0x2ac] ss:$20 sps:$4 sm:$0xff]  }
 0x2d2   : > { %v22743_v36 = vunpack.i.h.bf16 %v22741_v9  ;;  %v22742_v12 = vunpack.i.l.bf16 %v22741_v9 }
 0x2d3   : > { %v26707_v56 = vpack.c.bf16 %v2298_v57, %v2298_v57  ;;  %v26709_v13 = vpack.c.bf16 %v2297_v6, %v2297_v6  ;;  %v22952_v57 = vld [vmem:[%s33014_s2 + $0x2dc] ss:$20 sps:$4 sm:$0xff]  }
 0x2d4   : > { %v2111_v52 = vsel %vm304_vm2, %v22732_v32, %v22742_v12  ;;  %v2112_v47 = vsel %vm304_vm2, %v22742_v12, %v22743_v36 }
 0x2d5   : > { %v26729_v22 = vmax.f32 %v2015_v16, %v2111_v52  ;;  %v26733_v18 = vmax.f32 %v2016_v62, %v2112_v47  ;;  %8263 = vmatprep.mubr.bf16.mxu0 %v26707_v56  ;;  %8755 = vmatprep.mubr.bf16.mxu1 %v26707_v56  ;;  %v22751_v33 = vpop.permute.xlu0 %22750  ;;  %v22944_v16 = vld [vmem:[%s33014_s2 + $0x2b0] ss:$20 sps:$4 sm:$0xff]   ;;  %v22949_v62 = vld [vmem:[%s33014_s2 + $0x2d4] ss:$20 sps:$4 sm:$0xff]  }
 0x2d6   : > { %v22753_v32 = vunpack.i.h.bf16 %v22751_v33  ;;  %v22752_v43 = vunpack.i.l.bf16 %v22751_v33  ;;  %8264 = vmatmul.mubr.bf16.vlgmr.msra.gmra.mrb[12].mxu0 %v26709_v13  ;;  %8756 = vmatmul.mubr.bf16.vlgmr.msra.gmra.mrb[16].mxu1 %v26709_v13 }
 0x2d7   : > { %v22744_v17 = vpack.i.bf16 %v26733_v18, %v26729_v22  ;;  %8273 = vmatpush1.bf16.msra.mxu0 %v22935_v35  ;;  %8765 = vmatpush1.bf16.msra.mxu1 %v22938_v34 }
 0x2d8   : > { %v2113_v6 = vsel %vm304_vm2, %v22743_v36, %v22752_v43  ;;  %v2114_v9 = vsel %vm304_vm2, %v22752_v43, %v22753_v32  ;;  %8274 = vmatprep.subr.bf16.mxu0 %v22943_v53  ;;  %8766 = vmatprep.subr.bf16.mxu1 %v22946_v59  ;;  %v22958_v59 = vld [vmem:[%s33014_s2 + $0x304] ss:$20 sps:$4 sm:$0xff]  }
 0x2d9   : > { %v26757_v12 = vmax.f32 %v2017_v31, %v2113_v6  ;;  %v26761_v35 = vmax.f32 %v2018_v50, %v2114_v9  ;;  %22745 = vrot.lane.b32.xlu1 %v22744_v17, %s33100_s16  ;;  %v22761_v34 = vpop.permute.xlu0 %22760  ;;  %v22955_v31 = vld [vmem:[%s33014_s2 + $0x2fc] ss:$20 sps:$4 sm:$0xff]   ;;  %v22964_v6 = vld [vmem:[%s33014_s2 + $0x32c] ss:$20 sps:$4 sm:$0xff]  }
 0x2da   : > { %v22763_v36 = vunpack.i.h.bf16 %v22761_v34  ;;  %v22762_v52 = vunpack.i.l.bf16 %v22761_v34 }
 0x2db   : > { %v22754_v53 = vpack.i.bf16 %v26761_v35, %v26757_v12  ;;  %8275 = vmatpush1.bf16.msra.mxu0 %v22941_v3  ;;  %8767 = vmatpush1.bf16.msra.mxu1 %v22944_v16 }
 0x2dc   : > { %v2115_v50 = vsel %vm304_vm2, %v22753_v32, %v22762_v52  ;;  %v2116_v47 = vsel %vm304_vm2, %v22762_v52, %v22763_v36  ;;  %8276 = vmatprep.subr.bf16.mxu0 %v22949_v62  ;;  %8768 = vmatprep.subr.bf16.mxu1 %v22952_v57 }
 0x2dd   : > { %v26782_v33 = vmax.f32 %v2019_v20, %v2115_v50  ;;  %v26786_v43 = vmax.f32 %v2020_v40, %v2116_v47  ;;  %22755 = vrot.lane.b32.xlu1 %v22754_v53, %s33100_s16  ;;  %v22771_v17 = vpop.permute.xlu0 %22770  ;;  %v22961_v20 = vld [vmem:[%s33014_s2 + $0x324] ss:$20 sps:$4 sm:$0xff]  }
 0x2de   : > { %v22773_v32 = vunpack.i.h.bf16 %v22771_v17  ;;  %v22772_v3 = vunpack.i.l.bf16 %v22771_v17  ;;  %v22968_v17 = vld [vmem:[%s33014_s2 + $0x350] ss:$20 sps:$4 sm:$0xff]  }
 0x2df   : > { %v22764_v16 = vpack.i.bf16 %v26786_v43, %v26782_v33  ;;  %8277 = vmatpush1.bf16.msra.mxu0 %v22947_v39  ;;  %8769 = vmatpush1.bf16.msra.mxu1 %v22950_v8  ;;  %v22970_v8 = vld [vmem:[%s33014_s2 + $0x354] ss:$20 sps:$4 sm:$0xff]  }
 0x2e0   : > { %v2117_v40 = vsel %vm304_vm2, %v22763_v36, %v22772_v3  ;;  %v2118_v62 = vsel %vm304_vm2, %v22772_v3, %v22773_v32  ;;  %8278 = vmatprep.subr.bf16.mxu0 %v22955_v31  ;;  %8770 = vmatprep.subr.bf16.mxu1 %v22958_v59  ;;  %v22965_v59 = vld [vmem:[%s33014_s2 + $0x348] ss:$20 sps:$4 sm:$0xff]  }
 0x2e1   : > { %v26807_v9 = vmax.f32 %v2021_v58, %v2117_v40  ;;  %v26811_v57 = vmax.f32 %v2022_v7, %v2118_v62  ;;  %22765 = vrot.lane.b32.xlu1 %v22764_v16, %s33100_s16  ;;  %v22781_v34 = vpop.permute.xlu0 %22780  ;;  %v22967_v58 = vld [vmem:[%s33014_s2 + $0x34c] ss:$20 sps:$4 sm:$0xff]   ;;  %v22971_v40 = vld [vmem:[%s33014_s2 + $0x370] ss:$20 sps:$4 sm:$0xff]  }
 0x2e2   : > { %v22783_v36 = vunpack.i.h.bf16 %v22781_v34  ;;  %v22782_v52 = vunpack.i.l.bf16 %v22781_v34  ;;  %v22974_v62 = vld [vmem:[%s33014_s2 + $0x378] ss:$20 sps:$4 sm:$0xff]  }
 0x2e3   : > { %v22774_v53 = vpack.i.bf16 %v26811_v57, %v26807_v9  ;;  %8279 = vmatpush1.bf16.msra.mxu0 %v22953_v46  ;;  %8771 = vmatpush1.bf16.msra.mxu1 %v22956_v11 }
 0x2e4   : > { %v2119_v7 = vsel %vm304_vm2, %v22773_v32, %v22782_v52  ;;  %v2120_v39 = vsel %vm304_vm2, %v22782_v52, %v22783_v36  ;;  %8280 = vmatprep.subr.bf16.mxu0 %v22961_v20  ;;  %8772 = vmatprep.subr.bf16.mxu1 %v22964_v6 }
 0x2e5   : > { %v26832_v31 = vmax.f32 %v2023_v0, %v2119_v7  ;;  %v26836_v50 = vmax.f32 %v2024_v27, %v2120_v39  ;;  %22775 = vrot.lane.b32.xlu1 %v22774_v53, %s33100_s16  ;;  %v22791_v47 = vpop.permute.xlu0 %22790 }
 0x2e6   : > { %v22793_v32 = vunpack.i.h.bf16 %v22791_v47  ;;  %v22792_v3 = vunpack.i.l.bf16 %v22791_v47 }
 0x2e7   : > { %v22784_v0 = vpack.i.bf16 %v26836_v50, %v26832_v31  ;;  %8281 = vmatpush1.bf16.msra.mxu0 %v22959_v55  ;;  %8773 = vmatpush1.bf16.msra.mxu1 %v22962_v5  ;;  %v22977_v5 = vld [vmem:[%s33014_s2 + $0x398] ss:$20 sps:$4 sm:$0xff]  }
 0x2e8   : > { %v2121_v27 = vsel %vm304_vm2, %v22783_v36, %v22792_v3  ;;  %v2122_v16 = vsel %vm304_vm2, %v22792_v3, %v22793_v32  ;;  %8282 = vmatprep.subr.bf16.mxu0 %v22967_v58  ;;  %8774 = vmatprep.subr.bf16.mxu1 %v22970_v8  ;;  %v22980_v58 = vld [vmem:[%s33014_s2 + $0x3a0] ss:$20 sps:$4 sm:$0xff]   ;;  %v22986_v3 = vld [vmem:[%s33014_s2 + $0x3c8] ss:$20 sps:$4 sm:$0xff]  }
 0x2e9   : > { %v26857_v46 = vmax.f32 %v2025_v14, %v2121_v27  ;;  %v26861_v11 = vmax.f32 %v2026_v63, %v2122_v16  ;;  %22785 = vrot.lane.b32.xlu1 %v22784_v0, %s33100_s16  ;;  %v22801_v20 = vpop.permute.xlu0 %22800 }
 0x2ea   : > { %v22803_v6 = vunpack.i.h.bf16 %v22801_v20  ;;  %v22802_v34 = vunpack.i.l.bf16 %v22801_v20 }
 0x2eb   : > { %v22794_v14 = vpack.i.bf16 %v26861_v11, %v26857_v46  ;;  %8283 = vmatpush1.bf16.msra.mxu0 %v22965_v59  ;;  %8775 = vmatpush1.bf16.msra.mxu1 %v22968_v17 }
 0x2ec   : > { %v2123_v63 = vsel %vm304_vm2, %v22793_v32, %v22802_v34  ;;  %v2124_v36 = vsel %vm304_vm2, %v22802_v34, %v22803_v6  ;;  %8284 = vmatprep.subr.bf16.mxu0 %v22973_v48  ;;  %8776 = vmatprep.subr.bf16.mxu1 %v22976_v37  ;;  %v22983_v32 = vld [vmem:[%s33014_s2 + $0x3c0] ss:$20 sps:$4 sm:$0xff]  }
 0x2ed   : > { %22795 = vrot.lane.b32.xlu1 %v22794_v14, %s33100_s16  ;;  %v26883_v52 = vmax.f32 %v2027_v28, %v2123_v63  ;;  %v26887_v53 = vmax.f32 %v2028_v15, %v2124_v36  ;;  %v22811_v55 = vpop.permute.xlu0 %22810  ;;  %v23004_v36 = vld [vmem:[%s33014_s2 + $0x440] ss:$20 sps:$4 sm:$0xff]  }
 0x2ee   : > { %v22813_v7 = vunpack.i.h.bf16 %v22811_v55  ;;  %v22812_v39 = vunpack.i.l.bf16 %v22811_v55  ;;  %v23009_v55 = vld [vmem:[%s33014_s2 + $0x464] ss:$20 sps:$4 sm:$0xff]  }
 0x2ef   : > { %v22804_v28 = vpack.i.bf16 %v26887_v53, %v26883_v52  ;;  %8285 = vmatpush1.bf16.msra.mxu0 %v22971_v40  ;;  %8777 = vmatpush1.bf16.msra.mxu1 %v22974_v62  ;;  %v22989_v40 = vld [vmem:[%s33014_s2 + $0x3e8] ss:$20 sps:$4 sm:$0xff]   ;;  %v22992_v62 = vld [vmem:[%s33014_s2 + $0x3f0] ss:$20 sps:$4 sm:$0xff]  }
 0x2f0   : > { %v2125_v15 = vsel %vm304_vm2, %v22803_v6, %v22812_v39  ;;  %v2126_v8 = vsel %vm304_vm2, %v22812_v39, %v22813_v7  ;;  %8286 = vmatprep.subr.bf16.mxu0 %v22979_v25  ;;  %8778 = vmatprep.subr.bf16.mxu1 %v22982_v10  ;;  %v23015_v39 = vld [vmem:[%s33014_s2 + $0x48c] ss:$20 sps:$4 sm:$0xff]  }
 0x2f1   : > { %v26907_v47 = vmax.f32 %v2029_v41, %v2125_v15  ;;  %v26911_v59 = vmax.f32 %v2030_v21, %v2126_v8  ;;  %22805 = vrot.lane.b32.xlu1 %v22804_v28, %s33100_s16  ;;  %v22821_v17 = vpop.permute.xlu0 %22820  ;;  %v23016_v28 = vld [vmem:[%s33014_s2 + $0x490] ss:$20 sps:$4 sm:$0xff]   ;;  %v23021_v15 = vld [vmem:[%s33014_s2 + $0x4b4] ss:$20 sps:$4 sm:$0xff]  }
 0x2f2   : > { %v22823_v48 = vunpack.i.h.bf16 %v22821_v17  ;;  %v22822_v37 = vunpack.i.l.bf16 %v22821_v17  ;;  %v23024_v8 = vld [vmem:[%s33014_s2 + $0x4bc] ss:$20 sps:$4 sm:$0xff]  }
 0x2f3   : > { %v22814_v41 = vpack.i.bf16 %v26911_v59, %v26907_v47  ;;  %8287 = vmatpush1.bf16.msra.mxu0 %v22977_v5  ;;  %8779 = vmatpush1.bf16.msra.mxu1 %v22980_v58  ;;  %v23012_v5 = vld [vmem:[%s33014_s2 + $0x46c] ss:$20 sps:$4 sm:$0xff]   ;;  %v23019_v17 = vld [vmem:[%s33014_s2 + $0x4b0] ss:$20 sps:$4 sm:$0xff]  }
 0x2f4   : > { %v2127_v21 = vsel %vm304_vm2, %v22813_v7, %v22822_v37  ;;  %v2128_v0 = vsel %vm304_vm2, %v22822_v37, %v22823_v48  ;;  %8288 = vmatprep.subr.bf16.mxu0 %v22985_v30  ;;  %8780 = vmatprep.subr.bf16.mxu1 %v22988_v24  ;;  %v23007_v58 = vld [vmem:[%s33014_s2 + $0x460] ss:$20 sps:$4 sm:$0xff]   ;;  %v23010_v7 = vld [vmem:[%s33014_s2 + $0x468] ss:$20 sps:$4 sm:$0xff]   ;;  %v23025_v37 = vld [vmem:[%s33014_s2 + $0x4d8] ss:$20 sps:$4 sm:$0xff]  }
 0x2f5   : > { %v26932_v27 = vmax.f32 %v2031_v2, %v2127_v21  ;;  %v26936_v16 = vmax.f32 %v2032_v61, %v2128_v0  ;;  %22815 = vrot.lane.b32.xlu1 %v22814_v41, %s33100_s16  ;;  %v22831_v20 = vpop.permute.xlu0 %22830  ;;  %v23018_v30 = vld [vmem:[%s33014_s2 + $0x494] ss:$20 sps:$4 sm:$0xff]   ;;  %v23036_v41 = vld [vmem:[%s33014_s2 + $0x50c] ss:$20 sps:$4 sm:$0xff]  }
 0x2f6   : > { %v22833_v6 = vunpack.i.h.bf16 %v22831_v20  ;;  %v22832_v34 = vunpack.i.l.bf16 %v22831_v20  ;;  %v23013_v24 = vld [vmem:[%s33014_s2 + $0x488] ss:$20 sps:$4 sm:$0xff]  }
 0x2f7   : > { %v22824_v2 = vpack.i.bf16 %v26936_v16, %v26932_v27  ;;  %8289 = vmatpush1.bf16.msra.mxu0 %v22983_v32  ;;  %8781 = vmatpush1.bf16.msra.mxu1 %v22986_v3  ;;  %v23022_v32 = vld [vmem:[%s33014_s2 + $0x4b8] ss:$20 sps:$4 sm:$0xff]   ;;  %v23027_v3 = vld [vmem:[%s33014_s2 + $0x4dc] ss:$20 sps:$4 sm:$0xff]  }
 0x2f8   : > { %v2178_v61 = vmax.f32 %v2035_v51, %v22833_v6  ;;  %v2129_v25 = vsel %vm304_vm2, %v22823_v48, %v22832_v34  ;;  %v2130_v10 = vsel %vm304_vm2, %v22832_v34, %v22833_v6  ;;  %8290 = vmatprep.subr.bf16.mxu0 %v22991_v44  ;;  %8782 = vmatprep.subr.bf16.mxu1 %v22994_v1  ;;  %v22998_v51 = vld [vmem:[%s33014_s2 + $0x418] ss:$20 sps:$4 sm:$0xff]   ;;  %v23028_v44 = vld [vmem:[%s33014_s2 + $0x4e0] ss:$20 sps:$4 sm:$0xff]   ;;  %vm10481_vm2 = vcmask 916480  }
 0x2f9   : > { %v26959_v14 = vmax.f32 %v2033_v26, %v2129_v25  ;;  %v26963_v63 = vmax.f32 %v2034_v42, %v2130_v10  ;;  %22825 = vrot.lane.b32.xlu1 %v22824_v2, %s33100_s16  ;;  %v23001_v42 = vld [vmem:[%s33014_s2 + $0x438] ss:$20 sps:$4 sm:$0xff]  }
 0x2fa   : > { %2249 = vrot.lane.b32.xlu0 %v2178_v61, %s33100_s16  ;;  %v23030_v48 = vld [vmem:[%s33014_s2 + $0x4e4] ss:$20 sps:$4 sm:$0xff]  }
 0x2fb   : > { %v22834_v26 = vpack.i.bf16 %v26963_v63, %v26959_v14  ;;  %8291 = vmatpush1.bf16.msra.mxu0 %v22989_v40  ;;  %8783 = vmatpush1.bf16.msra.mxu1 %v22992_v62  ;;  %v23033_v1 = vld [vmem:[%s33014_s2 + $0x504] ss:$20 sps:$4 sm:$0xff]  }
 0x2fc   : > { %8292 = vmatprep.subr.bf16.mxu0 %v22997_v45  ;;  %8784 = vmatprep.subr.bf16.mxu1 %v23000_v29  ;;  %v23031_v29 = vld [vmem:[%s33014_s2 + $0x500] ss:$20 sps:$4 sm:$0xff]  }
 0x2fd   : > { %22835 = vrot.lane.b32.xlu1 %v22834_v26, %s33100_s16  ;;  %v23040_v26 = vld [vmem:[%s33014_s2 + $0x530] ss:$20 sps:$4 sm:$0xff]  }
 0x2ff   : > { %8293 = vmatpush1.bf16.msra.mxu0 %v22995_v19  ;;  %8785 = vmatpush1.bf16.msra.mxu1 %v22998_v51 }
 0x300   : > { %8294 = vmatprep.subr.bf16.mxu0 %v23003_v38  ;;  %8786 = vmatprep.subr.bf16.mxu1 %v23006_v49  ;;  %v23037_v49 = vld [vmem:[%s33014_s2 + $0x528] ss:$20 sps:$4 sm:$0xff]  }
 0x303   : > { %8295 = vmatpush1.bf16.msra.mxu0 %v23001_v42  ;;  %8787 = vmatpush1.bf16.msra.mxu1 %v23004_v36  ;;  %v23048_v36 = vld [vmem:[%s33014_s2 + $0x55c] ss:$20 sps:$4 sm:$0xff]  }
 0x304   : > { %8296 = vmatprep.subr.bf16.mxu0 %v23009_v55  ;;  %8788 = vmatprep.subr.bf16.mxu1 %v23012_v5  ;;  %v23043_v5 = vld [vmem:[%s33014_s2 + $0x550] ss:$20 sps:$4 sm:$0xff]  }
 0x307   : > { %8297 = vmatpush1.bf16.msra.mxu0 %v23007_v58  ;;  %8789 = vmatpush1.bf16.msra.mxu1 %v23010_v7  ;;  %v23046_v58 = vld [vmem:[%s33014_s2 + $0x558] ss:$20 sps:$4 sm:$0xff]   ;;  %v23051_v7 = vld [vmem:[%s33014_s2 + $0x57c] ss:$20 sps:$4 sm:$0xff]  }
 0x308   : > { %8298 = vmatprep.subr.bf16.mxu0 %v23015_v39  ;;  %8790 = vmatprep.subr.bf16.mxu1 %v23018_v30  ;;  %v23054_v39 = vld [vmem:[%s33014_s2 + $0x584] ss:$20 sps:$4 sm:$0xff]  }
 0x309   : > { %v23049_v30 = vld [vmem:[%s33014_s2 + $0x578] ss:$20 sps:$4 sm:$0xff]  }
 0x30b   : > { %8299 = vmatpush1.bf16.msra.mxu0 %v23013_v24  ;;  %8791 = vmatpush1.bf16.msra.mxu1 %v23016_v28  ;;  %v23052_v24 = vld [vmem:[%s33014_s2 + $0x580] ss:$20 sps:$4 sm:$0xff]   ;;  %v23057_v28 = vld [vmem:[%s33014_s2 + $0x5a4] ss:$20 sps:$4 sm:$0xff]  }
 0x30c   : > { %8300 = vmatprep.subr.bf16.mxu0 %v23021_v15  ;;  %8792 = vmatprep.subr.bf16.mxu1 %v23024_v8  ;;  %v23060_v15 = vld [vmem:[%s33014_s2 + $0x5ac] ss:$20 sps:$4 sm:$0xff]  }
 0x30d   : > { %v23055_v8 = vld [vmem:[%s33014_s2 + $0x5a0] ss:$20 sps:$4 sm:$0xff]  }
 0x30f   : > { %8301 = vmatpush1.bf16.msra.mxu0 %v23019_v17  ;;  %8793 = vmatpush1.bf16.msra.mxu1 %v23022_v32  ;;  %v23058_v17 = vld [vmem:[%s33014_s2 + $0x5a8] ss:$20 sps:$4 sm:$0xff]   ;;  %v23063_v32 = vld [vmem:[%s33014_s2 + $0x5cc] ss:$20 sps:$4 sm:$0xff]  }
 0x310   : > { %8302 = vmatprep.subr.bf16.mxu0 %v23027_v3  ;;  %8794 = vmatprep.subr.bf16.mxu1 %v23030_v48  ;;  %v23066_v3 = vld [vmem:[%s33014_s2 + $0x5d4] ss:$20 sps:$4 sm:$0xff]  }
 0x311   : > { %v23061_v48 = vld [vmem:[%s33014_s2 + $0x5c8] ss:$20 sps:$4 sm:$0xff]  }
 0x313   : > { %8303 = vmatpush1.bf16.msra.mxu0 %v23025_v37  ;;  %8795 = vmatpush1.bf16.msra.mxu1 %v23028_v44  ;;  %v23064_v37 = vld [vmem:[%s33014_s2 + $0x5d0] ss:$20 sps:$4 sm:$0xff]   ;;  %v23069_v44 = vld [vmem:[%s33014_s2 + $0x5f4] ss:$20 sps:$4 sm:$0xff]  }
 0x314   : > { %8313 = vmatprep.subr.bf16.mxu0 %v23033_v1  ;;  %8805 = vmatprep.subr.bf16.mxu1 %v23036_v41  ;;  %v23072_v1 = vld [vmem:[%s33014_s2 + $0x5fc] ss:$20 sps:$4 sm:$0xff]  }
 0x315   : > { %v23067_v41 = vld [vmem:[%s33014_s2 + $0x5f0] ss:$20 sps:$4 sm:$0xff]  }
 0x34b   : > { %v27042_v21 = vpop.permute.xlu1 %22745 }
 0x34c   : > { %v22748_v0 = vunpack.i.h.bf16 %v27042_v21  ;;  %v22747_v20 = vunpack.i.l.bf16 %v27042_v21 }
 0x34e   : > { %v2253_v40 = vsel %vm428_vm5, %v22738_v60, %v22747_v20  ;;  %v2254_v62 = vsel %vm428_vm5, %v22747_v20, %v22748_v0  ;;  %v23070_v20 = vld [vmem:[%s33014_s2 + $0x5f8] ss:$20 sps:$4 sm:$0xff]  }
 0x34f   : > { %v2299_v6 = vmax.f32 %v26617_v54, %v2253_v40  ;;  %v27053_v34 = vpop.permute.xlu1 %22755  ;;  %v2300_v45 = vmax.f32 %v26729_v22, %v2254_v62  ;;  %v23039_v54 = vld [vmem:[%s33014_s2 + $0x52c] ss:$20 sps:$4 sm:$0xff]   ;;  %v23042_v22 = vld [vmem:[%s33014_s2 + $0x534] ss:$20 sps:$4 sm:$0xff]   ;;  %v23075_v40 = vld [vmem:[%s33014_s2 + $0x61c] ss:$20 sps:$4 sm:$0xff]  }
 0x350   : > { %v22758_v60 = vunpack.i.h.bf16 %v27053_v34  ;;  %v22757_v2 = vunpack.i.l.bf16 %v27053_v34  ;;  %v23078_v62 = vld [vmem:[%s33014_s2 + $0x624] ss:$20 sps:$4 sm:$0xff]   ;;  %v23132_v34 = vld [vmem:[%s33014_s2 + $0x78c] ss:$20 sps:$4 sm:$0xff]  }
 0x351   : > { %v27070_v61 = vpack.c.bf16 %v2300_v45, %v2300_v45  ;;  %v27072_v25 = vpack.c.bf16 %v2299_v6, %v2299_v6  ;;  %v23073_v6 = vld [vmem:[%s33014_s2 + $0x618] ss:$20 sps:$4 sm:$0xff]   ;;  %v23076_v45 = vld [vmem:[%s33014_s2 + $0x620] ss:$20 sps:$4 sm:$0xff]  }
 0x352   : > { %v2256_v10 = vsel %vm428_vm5, %v22757_v2, %v22758_v60 }
 0x353   : > { %8304 = vmatprep.mubr.bf16.mxu0 %v27070_v61  ;;  %8796 = vmatprep.mubr.bf16.mxu1 %v27070_v61  ;;  %v27079_v19 = vpop.permute.xlu1 %22765  ;;  %v2302_v51 = vmax.f32 %v26757_v12, %v2256_v10  ;;  %v23045_v12 = vld [vmem:[%s33014_s2 + $0x554] ss:$20 sps:$4 sm:$0xff]  }
 0x354   : > { %v22767_v38 = vunpack.i.l.bf16 %v27079_v19  ;;  %8305 = vmatmul.mubr.bf16.vlgmr.msra.gmra.mrb[12].mxu0 %v27072_v25  ;;  %8797 = vmatmul.mubr.bf16.vlgmr.msra.gmra.mrb[16].mxu1 %v27072_v25  ;;  %v23090_v10 = vld [vmem:[%s33014_s2 + $0x674] ss:$20 sps:$4 sm:$0xff]  }
 0x355   : > { %8314 = vmatpush1.bf16.msra.mxu0 %v23031_v29  ;;  %8806 = vmatpush1.bf16.msra.mxu1 %v23034_v23  ;;  %v27091_v42 = vpack.c.bf16 %v2302_v51, %v2302_v51  ;;  %v23081_v29 = vld [vmem:[%s33014_s2 + $0x644] ss:$20 sps:$4 sm:$0xff]   ;;  %v23084_v23 = vld [vmem:[%s33014_s2 + $0x64c] ss:$20 sps:$4 sm:$0xff]   ;;  %v23085_v51 = vld [vmem:[%s33014_s2 + $0x668] ss:$20 sps:$4 sm:$0xff]  }
 0x356   : > { %v27102_v55 = vsel %vm428_vm5, %v22758_v60, %v22767_v38  ;;  %8315 = vmatprep.subr.bf16.mxu0 %v23039_v54  ;;  %8807 = vmatprep.subr.bf16.mxu1 %v23042_v22  ;;  %v23079_v60 = vld [vmem:[%s33014_s2 + $0x640] ss:$20 sps:$4 sm:$0xff]   ;;  %v23082_v54 = vld [vmem:[%s33014_s2 + $0x648] ss:$20 sps:$4 sm:$0xff]  }
 0x357   : > { %8345 = vmatprep.mubr.bf16.mxu0 %v27091_v42  ;;  %8837 = vmatprep.mubr.bf16.mxu1 %v27091_v42  ;;  %v23087_v22 = vld [vmem:[%s33014_s2 + $0x66c] ss:$20 sps:$4 sm:$0xff]  }
 0x359   : > { %8316 = vmatpush1.bf16.msra.mxu0 %v23037_v49  ;;  %8808 = vmatpush1.bf16.msra.mxu1 %v23040_v26  ;;  %v23088_v49 = vld [vmem:[%s33014_s2 + $0x670] ss:$20 sps:$4 sm:$0xff]   ;;  %v23093_v26 = vld [vmem:[%s33014_s2 + $0x694] ss:$20 sps:$4 sm:$0xff]  }
 0x35a   : > { %8317 = vmatprep.subr.bf16.mxu0 %v23045_v12  ;;  %8809 = vmatprep.subr.bf16.mxu1 %v23048_v36  ;;  %v23096_v12 = vld [vmem:[%s33014_s2 + $0x69c] ss:$20 sps:$4 sm:$0xff]  }
 0x35b   : > { %v23091_v36 = vld [vmem:[%s33014_s2 + $0x690] ss:$20 sps:$4 sm:$0xff]  }
 0x35d   : > { %8318 = vmatpush1.bf16.msra.mxu0 %v23043_v5  ;;  %8810 = vmatpush1.bf16.msra.mxu1 %v23046_v58  ;;  %v23094_v5 = vld [vmem:[%s33014_s2 + $0x698] ss:$20 sps:$4 sm:$0xff]   ;;  %v23099_v58 = vld [vmem:[%s33014_s2 + $0x6bc] ss:$20 sps:$4 sm:$0xff]  }
 0x35e   : > { %8319 = vmatprep.subr.bf16.mxu0 %v23051_v7  ;;  %8811 = vmatprep.subr.bf16.mxu1 %v23054_v39  ;;  %v23102_v7 = vld [vmem:[%s33014_s2 + $0x6c4] ss:$20 sps:$4 sm:$0xff]  }
 0x35f   : > { %v23097_v39 = vld [vmem:[%s33014_s2 + $0x6b8] ss:$20 sps:$4 sm:$0xff]  }
 0x361   : > { %8320 = vmatpush1.bf16.msra.mxu0 %v23049_v30  ;;  %8812 = vmatpush1.bf16.msra.mxu1 %v23052_v24  ;;  %v23100_v30 = vld [vmem:[%s33014_s2 + $0x6c0] ss:$20 sps:$4 sm:$0xff]   ;;  %v23105_v24 = vld [vmem:[%s33014_s2 + $0x6e4] ss:$20 sps:$4 sm:$0xff]  }
 0x362   : > { %8321 = vmatprep.subr.bf16.mxu0 %v23057_v28  ;;  %8813 = vmatprep.subr.bf16.mxu1 %v23060_v15  ;;  %v23108_v28 = vld [vmem:[%s33014_s2 + $0x6ec] ss:$20 sps:$4 sm:$0xff]  }
 0x363   : > { %v23103_v15 = vld [vmem:[%s33014_s2 + $0x6e0] ss:$20 sps:$4 sm:$0xff]  }
 0x365   : > { %8322 = vmatpush1.bf16.msra.mxu0 %v23055_v8  ;;  %8814 = vmatpush1.bf16.msra.mxu1 %v23058_v17  ;;  %v23106_v8 = vld [vmem:[%s33014_s2 + $0x6e8] ss:$20 sps:$4 sm:$0xff]   ;;  %v23111_v17 = vld [vmem:[%s33014_s2 + $0x70c] ss:$20 sps:$4 sm:$0xff]  }
 0x366   : > { %8323 = vmatprep.subr.bf16.mxu0 %v23063_v32  ;;  %8815 = vmatprep.subr.bf16.mxu1 %v23066_v3  ;;  %v23114_v32 = vld [vmem:[%s33014_s2 + $0x714] ss:$20 sps:$4 sm:$0xff]  }
 0x367   : > { %v23109_v3 = vld [vmem:[%s33014_s2 + $0x708] ss:$20 sps:$4 sm:$0xff]  }
 0x369   : > { %8324 = vmatpush1.bf16.msra.mxu0 %v23061_v48  ;;  %8816 = vmatpush1.bf16.msra.mxu1 %v23064_v37  ;;  %v23112_v48 = vld [vmem:[%s33014_s2 + $0x710] ss:$20 sps:$4 sm:$0xff]   ;;  %v23117_v37 = vld [vmem:[%s33014_s2 + $0x734] ss:$20 sps:$4 sm:$0xff]  }
 0x36a   : > { %8325 = vmatprep.subr.bf16.mxu0 %v23069_v44  ;;  %8817 = vmatprep.subr.bf16.mxu1 %v23072_v1  ;;  %v23120_v44 = vld [vmem:[%s33014_s2 + $0x73c] ss:$20 sps:$4 sm:$0xff]  }
 0x36b   : > { %v23115_v1 = vld [vmem:[%s33014_s2 + $0x730] ss:$20 sps:$4 sm:$0xff]  }
 0x36d   : > { %8326 = vmatpush1.bf16.msra.mxu0 %v23067_v41  ;;  %8818 = vmatpush1.bf16.msra.mxu1 %v23070_v20  ;;  %v23118_v41 = vld [vmem:[%s33014_s2 + $0x738] ss:$20 sps:$4 sm:$0xff]   ;;  %v22768_v20 = vunpack.i.h.bf16 %v27079_v19 }
 0x36e   : > { %8327 = vmatprep.subr.bf16.mxu0 %v23075_v40  ;;  %8819 = vmatprep.subr.bf16.mxu1 %v23078_v62  ;;  %v23123_v40 = vld [vmem:[%s33014_s2 + $0x75c] ss:$20 sps:$4 sm:$0xff]   ;;  %v23126_v62 = vld [vmem:[%s33014_s2 + $0x764] ss:$20 sps:$4 sm:$0xff]  }
 0x371   : > { %8328 = vmatpush1.bf16.msra.mxu0 %v23073_v6  ;;  %8820 = vmatpush1.bf16.msra.mxu1 %v23076_v45  ;;  %v2255_v6 = vsel %vm428_vm5, %v22748_v0, %v22757_v2  ;;  %v23121_v45 = vld [vmem:[%s33014_s2 + $0x758] ss:$20 sps:$4 sm:$0xff]   ;;  %v23127_v2 = vld [vmem:[%s33014_s2 + $0x780] ss:$20 sps:$4 sm:$0xff]  }
 0x372   : > { %8329 = vmatprep.subr.bf16.mxu0 %v23081_v29  ;;  %8821 = vmatprep.subr.bf16.mxu1 %v23084_v23  ;;  %v23124_v29 = vld [vmem:[%s33014_s2 + $0x760] ss:$20 sps:$4 sm:$0xff]   ;;  %v2258_v23 = vsel %vm428_vm5, %v22767_v38, %v22768_v20  ;;  %v2301_v21 = vmax.f32 %v26733_v18, %v2255_v6  ;;  %v23129_v0 = vld [vmem:[%s33014_s2 + $0x784] ss:$20 sps:$4 sm:$0xff]   ;;  %v23130_v18 = vld [vmem:[%s33014_s2 + $0x788] ss:$20 sps:$4 sm:$0xff]  }
 0x373   : > { %v2304_v38 = vmax.f32 %v26782_v33, %v2258_v23  ;;  %v23133_v33 = vld [vmem:[%s33014_s2 + $0x7a8] ss:$20 sps:$4 sm:$0xff]   ;;  %v23172_v6 = vld [vmem:[%s33014_s2 + $0x8a0] ss:$20 sps:$4 sm:$0xff]  }
 0x374   : > { %v23180_v23 = vld [vmem:[%s33014_s2 + $0x8cc] ss:$20 sps:$4 sm:$0xff]  }
 0x375   : > { %8330 = vmatpush1.bf16.msra.mxu0 %v23079_v60  ;;  %8822 = vmatpush1.bf16.msra.mxu1 %v23082_v54  ;;  %v23135_v60 = vld [vmem:[%s33014_s2 + $0x7ac] ss:$20 sps:$4 sm:$0xff]   ;;  %v23138_v54 = vld [vmem:[%s33014_s2 + $0x7b4] ss:$20 sps:$4 sm:$0xff]  }
 0x376   : > { %8331 = vmatprep.subr.bf16.mxu0 %v23087_v22  ;;  %8823 = vmatprep.subr.bf16.mxu1 %v23090_v10  ;;  %v27299_v22 = vpack.c.bf16 %v2301_v21, %v2301_v21  ;;  %v27301_v10 = vpack.c.bf16 %v2304_v38, %v2304_v38  ;;  %v23178_v21 = vld [vmem:[%s33014_s2 + $0x8c8] ss:$20 sps:$4 sm:$0xff]   ;;  %v23184_v38 = vld [vmem:[%s33014_s2 + $0x8f0] ss:$20 sps:$4 sm:$0xff]  }
 0x379   : > { %8332 = vmatpush1.bf16.msra.mxu0 %v23085_v51  ;;  %8824 = vmatpush1.bf16.msra.mxu1 %v23088_v49  ;;  %v23136_v51 = vld [vmem:[%s33014_s2 + $0x7b0] ss:$20 sps:$4 sm:$0xff]   ;;  %v23141_v49 = vld [vmem:[%s33014_s2 + $0x7d4] ss:$20 sps:$4 sm:$0xff]  }
 0x37a   : > { %8333 = vmatprep.subr.bf16.mxu0 %v23093_v26  ;;  %8825 = vmatprep.subr.bf16.mxu1 %v23096_v12  ;;  %v23144_v26 = vld [vmem:[%s33014_s2 + $0x7dc] ss:$20 sps:$4 sm:$0xff]  }
 0x37b   : > { %v23139_v12 = vld [vmem:[%s33014_s2 + $0x7d0] ss:$20 sps:$4 sm:$0xff]  }
 0x37d   : > { %8334 = vmatpush1.bf16.msra.mxu0 %v23091_v36  ;;  %8826 = vmatpush1.bf16.msra.mxu1 %v23094_v5  ;;  %v23142_v36 = vld [vmem:[%s33014_s2 + $0x7d8] ss:$20 sps:$4 sm:$0xff]   ;;  %v23147_v5 = vld [vmem:[%s33014_s2 + $0x7fc] ss:$20 sps:$4 sm:$0xff]  }
 0x37e   : > { %8335 = vmatprep.subr.bf16.mxu0 %v23099_v58  ;;  %8827 = vmatprep.subr.bf16.mxu1 %v23102_v7  ;;  %v23145_v58 = vld [vmem:[%s33014_s2 + $0x7f8] ss:$20 sps:$4 sm:$0xff]  }
 0x37f   : > { %v23150_v7 = vld [vmem:[%s33014_s2 + $0x804] ss:$20 sps:$4 sm:$0xff]  }
 0x381   : > { %8336 = vmatpush1.bf16.msra.mxu0 %v23097_v39  ;;  %8828 = vmatpush1.bf16.msra.mxu1 %v23100_v30  ;;  %v23148_v39 = vld [vmem:[%s33014_s2 + $0x800] ss:$20 sps:$4 sm:$0xff]   ;;  %v23153_v30 = vld [vmem:[%s33014_s2 + $0x824] ss:$20 sps:$4 sm:$0xff]  }
 0x382   : > { %8337 = vmatprep.subr.bf16.mxu0 %v23105_v24  ;;  %8829 = vmatprep.subr.bf16.mxu1 %v23108_v28  ;;  %v23151_v24 = vld [vmem:[%s33014_s2 + $0x820] ss:$20 sps:$4 sm:$0xff]  }
 0x383   : > { %v23156_v28 = vld [vmem:[%s33014_s2 + $0x82c] ss:$20 sps:$4 sm:$0xff]  }
 0x385   : > { %8338 = vmatpush1.bf16.msra.mxu0 %v23103_v15  ;;  %8830 = vmatpush1.bf16.msra.mxu1 %v23106_v8  ;;  %v23154_v15 = vld [vmem:[%s33014_s2 + $0x828] ss:$20 sps:$4 sm:$0xff]   ;;  %v23159_v8 = vld [vmem:[%s33014_s2 + $0x84c] ss:$20 sps:$4 sm:$0xff]  }
 0x386   : > { %8339 = vmatprep.subr.bf16.mxu0 %v23111_v17  ;;  %8831 = vmatprep.subr.bf16.mxu1 %v23114_v32  ;;  %v23157_v17 = vld [vmem:[%s33014_s2 + $0x848] ss:$20 sps:$4 sm:$0xff]  }
 0x387   : > { %v23162_v32 = vld [vmem:[%s33014_s2 + $0x854] ss:$20 sps:$4 sm:$0xff]  }
 0x389   : > { %8340 = vmatpush1.bf16.msra.mxu0 %v23109_v3  ;;  %8832 = vmatpush1.bf16.msra.mxu1 %v23112_v48  ;;  %v23160_v3 = vld [vmem:[%s33014_s2 + $0x850] ss:$20 sps:$4 sm:$0xff]   ;;  %v23165_v48 = vld [vmem:[%s33014_s2 + $0x874] ss:$20 sps:$4 sm:$0xff]  }
 0x38a   : > { %8341 = vmatprep.subr.bf16.mxu0 %v23117_v37  ;;  %8833 = vmatprep.subr.bf16.mxu1 %v23120_v44  ;;  %v23163_v37 = vld [vmem:[%s33014_s2 + $0x870] ss:$20 sps:$4 sm:$0xff]  }
 0x38b   : > { %v23168_v44 = vld [vmem:[%s33014_s2 + $0x87c] ss:$20 sps:$4 sm:$0xff]  }
 0x38d   : > { %8342 = vmatpush1.bf16.msra.mxu0 %v23115_v1  ;;  %8834 = vmatpush1.bf16.msra.mxu1 %v23118_v41  ;;  %v23166_v1 = vld [vmem:[%s33014_s2 + $0x878] ss:$20 sps:$4 sm:$0xff]   ;;  %v23171_v41 = vld [vmem:[%s33014_s2 + $0x89c] ss:$20 sps:$4 sm:$0xff]  }
 0x38e   : > { %8343 = vmatprep.subr.bf16.mxu0 %v23123_v40  ;;  %8835 = vmatprep.subr.bf16.mxu1 %v23126_v62  ;;  %v23169_v40 = vld [vmem:[%s33014_s2 + $0x898] ss:$20 sps:$4 sm:$0xff]  }
 0x38f   : > { %v23174_v62 = vld [vmem:[%s33014_s2 + $0x8a4] ss:$20 sps:$4 sm:$0xff]  }
 0x391   : > { %8344 = vmatpush1.bf16.msra.mxu0 %v23121_v45  ;;  %8836 = vmatpush1.bf16.msra.mxu1 %v23124_v29  ;;  %v23177_v45 = vld [vmem:[%s33014_s2 + $0x8c4] ss:$20 sps:$4 sm:$0xff]   ;;  %v23175_v29 = vld [vmem:[%s33014_s2 + $0x8c0] ss:$20 sps:$4 sm:$0xff]  }
 0x392   : > { %8354 = vmatprep.subr.bf16.mxu0 %v23129_v0  ;;  %8846 = vmatprep.subr.bf16.mxu1 %v23132_v34  ;;  %v23183_v0 = vld [vmem:[%s33014_s2 + $0x8ec] ss:$20 sps:$4 sm:$0xff]   ;;  %v23181_v34 = vld [vmem:[%s33014_s2 + $0x8e8] ss:$20 sps:$4 sm:$0xff]  }
 0x394   : > { %8346 = vmatmul.mubr.bf16.vlgmr.msra.gmra.mrb[12].mxu0 %v27299_v22  ;;  %8838 = vmatmul.mubr.bf16.vlgmr.msra.gmra.mrb[16].mxu1 %v27299_v22 }
 0x395   : > { %8355 = vmatpush1.bf16.msra.mxu0 %v23127_v2  ;;  %8386 = vmatprep.mubr.bf16.mxu0 %v27301_v10  ;;  %v23186_v2 = vld [vmem:[%s33014_s2 + $0x8f4] ss:$20 sps:$4 sm:$0xff]  }
 0x396   : > { %8847 = vmatpush1.bf16.msra.mxu1 %v23130_v18  ;;  %8878 = vmatprep.mubr.bf16.mxu1 %v27301_v10  ;;  %v23189_v18 = vld [vmem:[%s33014_s2 + $0x914] ss:$20 sps:$4 sm:$0xff]  }
 0x397   : > { %8356 = vmatprep.subr.bf16.mxu0 %v23135_v60  ;;  %8848 = vmatprep.subr.bf16.mxu1 %v23138_v54  ;;  %v23187_v60 = vld [vmem:[%s33014_s2 + $0x910] ss:$20 sps:$4 sm:$0xff]  }
 0x398   : > { %v23192_v54 = vld [vmem:[%s33014_s2 + $0x91c] ss:$20 sps:$4 sm:$0xff]  }
 0x399   : > { %8357 = vmatpush1.bf16.msra.mxu0 %v23133_v33  ;;  %v23190_v33 = vld [vmem:[%s33014_s2 + $0x918] ss:$20 sps:$4 sm:$0xff]  }
 0x39a   : > { %8849 = vmatpush1.bf16.msra.mxu1 %v23136_v51  ;;  %8358 = vmatprep.subr.bf16.mxu0 %v23141_v49  ;;  %v23195_v51 = vld [vmem:[%s33014_s2 + $0x93c] ss:$20 sps:$4 sm:$0xff]   ;;  %v23193_v49 = vld [vmem:[%s33014_s2 + $0x938] ss:$20 sps:$4 sm:$0xff]  }
 0x39b   : > { %8850 = vmatprep.subr.bf16.mxu1 %v23144_v26  ;;  %v23198_v26 = vld [vmem:[%s33014_s2 + $0x944] ss:$20 sps:$4 sm:$0xff]  }
 0x39d   : > { %8359 = vmatpush1.bf16.msra.mxu0 %v23139_v12  ;;  %v23196_v12 = vld [vmem:[%s33014_s2 + $0x940] ss:$20 sps:$4 sm:$0xff]  }
 0x39e   : > { %8851 = vmatpush1.bf16.msra.mxu1 %v23142_v36  ;;  %8360 = vmatprep.subr.bf16.mxu0 %v23147_v5  ;;  %v23201_v36 = vld [vmem:[%s33014_s2 + $0x964] ss:$20 sps:$4 sm:$0xff]   ;;  %v23199_v5 = vld [vmem:[%s33014_s2 + $0x960] ss:$20 sps:$4 sm:$0xff]  }
 0x39f   : > { %8852 = vmatprep.subr.bf16.mxu1 %v23150_v7  ;;  %v23202_v7 = vld [vmem:[%s33014_s2 + $0x968] ss:$20 sps:$4 sm:$0xff]  }
 0x3a1   : > { %8361 = vmatpush1.bf16.msra.mxu0 %v23145_v58  ;;  %v23204_v58 = vld [vmem:[%s33014_s2 + $0x96c] ss:$20 sps:$4 sm:$0xff]  }
 0x3a2   : > { %8853 = vmatpush1.bf16.msra.mxu1 %v23148_v39  ;;  %8362 = vmatprep.subr.bf16.mxu0 %v23153_v30  ;;  %v23207_v39 = vld [vmem:[%s33014_s2 + $0x98c] ss:$20 sps:$4 sm:$0xff]   ;;  %v23205_v30 = vld [vmem:[%s33014_s2 + $0x988] ss:$20 sps:$4 sm:$0xff]  }
 0x3a3   : > { %8854 = vmatprep.subr.bf16.mxu1 %v23156_v28  ;;  %v27454_v28 = vpop.permute.xlu1 %22775 }
 0x3a5   : > { %8363 = vmatpush1.bf16.msra.mxu0 %v23151_v24  ;;  %v23210_v24 = vld [vmem:[%s33014_s2 + $0x994] ss:$20 sps:$4 sm:$0xff]  }
 0x3a6   : > { %8855 = vmatpush1.bf16.msra.mxu1 %v23154_v15  ;;  %8364 = vmatprep.subr.bf16.mxu0 %v23159_v8  ;;  %v23208_v15 = vld [vmem:[%s33014_s2 + $0x990] ss:$20 sps:$4 sm:$0xff]   ;;  %v23213_v8 = vld [vmem:[%s33014_s2 + $0x9b4] ss:$20 sps:$4 sm:$0xff]  }
 0x3a7   : > { %8856 = vmatprep.subr.bf16.mxu1 %v23162_v32  ;;  %v23216_v32 = vld [vmem:[%s33014_s2 + $0x9bc] ss:$20 sps:$4 sm:$0xff]  }
 0x3a9   : > { %8365 = vmatpush1.bf16.msra.mxu0 %v23157_v17  ;;  %v23211_v17 = vld [vmem:[%s33014_s2 + $0x9b0] ss:$20 sps:$4 sm:$0xff]  }
 0x3aa   : > { %8857 = vmatpush1.bf16.msra.mxu1 %v23160_v3  ;;  %8366 = vmatprep.subr.bf16.mxu0 %v23165_v48  ;;  %v22778_v3 = vunpack.i.h.bf16 %v27454_v28  ;;  %v22777_v48 = vunpack.i.l.bf16 %v27454_v28 }
 0x3ab   : > { %8858 = vmatprep.subr.bf16.mxu1 %v23168_v44  ;;  %v23219_v44 = vld [vmem:[%s33014_s2 + $0x9dc] ss:$20 sps:$4 sm:$0xff]  }
 0x3ad   : > { %8367 = vmatpush1.bf16.msra.mxu0 %v23163_v37  ;;  %v23214_v37 = vld [vmem:[%s33014_s2 + $0x9b8] ss:$20 sps:$4 sm:$0xff]  }
 0x3ae   : > { %8859 = vmatpush1.bf16.msra.mxu1 %v23166_v1  ;;  %8368 = vmatprep.subr.bf16.mxu0 %v23171_v41  ;;  %v23217_v1 = vld [vmem:[%s33014_s2 + $0x9d8] ss:$20 sps:$4 sm:$0xff]  }
 0x3af   : > { %8860 = vmatprep.subr.bf16.mxu1 %v23174_v62  ;;  %v23222_v41 = vld [vmem:[%s33014_s2 + $0x9e4] ss:$20 sps:$4 sm:$0xff]   ;;  %v2303_v62 = vmax.f32 %v26761_v35, %v27102_v55  ;;  %v23226_v35 = vld [vmem:[%s33014_s2 + $0xa08] ss:$20 sps:$4 sm:$0xff]  }
 0x3b1   : > { %8369 = vmatpush1.bf16.msra.mxu0 %v23169_v40  ;;  %v2260_v40 = vsel %vm428_vm5, %v22777_v48, %v22778_v3 }
 0x3b2   : > { %8861 = vmatpush1.bf16.msra.mxu1 %v23172_v6  ;;  %8370 = vmatprep.subr.bf16.mxu0 %v23177_v45  ;;  %v23220_v6 = vld [vmem:[%s33014_s2 + $0x9e0] ss:$20 sps:$4 sm:$0xff]   ;;  %v23225_v45 = vld [vmem:[%s33014_s2 + $0xa04] ss:$20 sps:$4 sm:$0xff]   ;;  %v2306_v55 = vmax.f32 %v26807_v9, %v2260_v40 }
 0x3b3   : > { %8862 = vmatprep.subr.bf16.mxu1 %v23180_v23  ;;  %v23228_v23 = vld [vmem:[%s33014_s2 + $0xa0c] ss:$20 sps:$4 sm:$0xff]   ;;  %v23234_v9 = vld [vmem:[%s33014_s2 + $0xa34] ss:$20 sps:$4 sm:$0xff]  }
 0x3b4   : > { %v23268_v40 = vld [vmem:[%s33014_s2 + $0xb20] ss:$20 sps:$4 sm:$0xff]  }
 0x3b5   : > { %8371 = vmatpush1.bf16.msra.mxu0 %v23175_v29  ;;  %v23223_v29 = vld [vmem:[%s33014_s2 + $0xa00] ss:$20 sps:$4 sm:$0xff]  }
 0x3b6   : > { %8863 = vmatpush1.bf16.msra.mxu1 %v23178_v21  ;;  %8372 = vmatprep.subr.bf16.mxu0 %v23183_v0  ;;  %v23231_v21 = vld [vmem:[%s33014_s2 + $0xa2c] ss:$20 sps:$4 sm:$0xff]   ;;  %v27508_v0 = vpack.c.bf16 %v2303_v62, %v2303_v62  ;;  %v23273_v62 = vld [vmem:[%s33014_s2 + $0xb44] ss:$20 sps:$4 sm:$0xff]  }
 0x3b7   : > { %8864 = vmatprep.subr.bf16.mxu1 %v23186_v2  ;;  %v23229_v2 = vld [vmem:[%s33014_s2 + $0xa28] ss:$20 sps:$4 sm:$0xff]  }
 0x3b9   : > { %8373 = vmatpush1.bf16.msra.mxu0 %v23181_v34  ;;  %v27511_v34 = vpack.c.bf16 %v2306_v55, %v2306_v55  ;;  %v23277_v55 = vld [vmem:[%s33014_s2 + $0xb68] ss:$20 sps:$4 sm:$0xff]  }
 0x3ba   : > { %8865 = vmatpush1.bf16.msra.mxu1 %v23184_v38  ;;  %8374 = vmatprep.subr.bf16.mxu0 %v23189_v18  ;;  %v23232_v38 = vld [vmem:[%s33014_s2 + $0xa30] ss:$20 sps:$4 sm:$0xff]   ;;  %v23237_v18 = vld [vmem:[%s33014_s2 + $0xa54] ss:$20 sps:$4 sm:$0xff]  }
 0x3bb   : > { %8866 = vmatprep.subr.bf16.mxu1 %v23192_v54  ;;  %v23235_v54 = vld [vmem:[%s33014_s2 + $0xa50] ss:$20 sps:$4 sm:$0xff]  }
 0x3bd   : > { %8375 = vmatpush1.bf16.msra.mxu0 %v23187_v60  ;;  %v23240_v60 = vld [vmem:[%s33014_s2 + $0xa5c] ss:$20 sps:$4 sm:$0xff]  }
 0x3be   : > { %8867 = vmatpush1.bf16.msra.mxu1 %v23190_v33  ;;  %8376 = vmatprep.subr.bf16.mxu0 %v23195_v51  ;;  %v23238_v33 = vld [vmem:[%s33014_s2 + $0xa58] ss:$20 sps:$4 sm:$0xff]   ;;  %v23243_v51 = vld [vmem:[%s33014_s2 + $0xa7c] ss:$20 sps:$4 sm:$0xff]  }
 0x3bf   : > { %8868 = vmatprep.subr.bf16.mxu1 %v23198_v26  ;;  %v23246_v26 = vld [vmem:[%s33014_s2 + $0xa84] ss:$20 sps:$4 sm:$0xff]  }
 0x3c1   : > { %8377 = vmatpush1.bf16.msra.mxu0 %v23193_v49  ;;  %v23241_v49 = vld [vmem:[%s33014_s2 + $0xa78] ss:$20 sps:$4 sm:$0xff]  }
 0x3c2   : > { %8869 = vmatpush1.bf16.msra.mxu1 %v23196_v12  ;;  %8378 = vmatprep.subr.bf16.mxu0 %v23201_v36  ;;  %v23244_v12 = vld [vmem:[%s33014_s2 + $0xa80] ss:$20 sps:$4 sm:$0xff]   ;;  %v23249_v36 = vld [vmem:[%s33014_s2 + $0xaa4] ss:$20 sps:$4 sm:$0xff]  }
 0x3c3   : > { %8870 = vmatprep.subr.bf16.mxu1 %v23204_v58  ;;  %v23247_v58 = vld [vmem:[%s33014_s2 + $0xaa0] ss:$20 sps:$4 sm:$0xff]  }
 0x3c5   : > { %8379 = vmatpush1.bf16.msra.mxu0 %v23199_v5  ;;  %v23252_v5 = vld [vmem:[%s33014_s2 + $0xaac] ss:$20 sps:$4 sm:$0xff]  }
 0x3c6   : > { %8871 = vmatpush1.bf16.msra.mxu1 %v23202_v7  ;;  %8380 = vmatprep.subr.bf16.mxu0 %v23207_v39  ;;  %v23250_v7 = vld [vmem:[%s33014_s2 + $0xaa8] ss:$20 sps:$4 sm:$0xff]   ;;  %v23255_v39 = vld [vmem:[%s33014_s2 + $0xacc] ss:$20 sps:$4 sm:$0xff]  }
 0x3c7   : > { %8872 = vmatprep.subr.bf16.mxu1 %v23210_v24  ;;  %v23253_v24 = vld [vmem:[%s33014_s2 + $0xac8] ss:$20 sps:$4 sm:$0xff]  }
 0x3c9   : > { %8381 = vmatpush1.bf16.msra.mxu0 %v23205_v30  ;;  %v23258_v30 = vld [vmem:[%s33014_s2 + $0xad4] ss:$20 sps:$4 sm:$0xff]  }
 0x3ca   : > { %8873 = vmatpush1.bf16.msra.mxu1 %v23208_v15  ;;  %8382 = vmatprep.subr.bf16.mxu0 %v23213_v8  ;;  %v23256_v15 = vld [vmem:[%s33014_s2 + $0xad0] ss:$20 sps:$4 sm:$0xff]   ;;  %v23261_v8 = vld [vmem:[%s33014_s2 + $0xaf4] ss:$20 sps:$4 sm:$0xff]  }
 0x3cb   : > { %8874 = vmatprep.subr.bf16.mxu1 %v23216_v32  ;;  %v23259_v32 = vld [vmem:[%s33014_s2 + $0xaf0] ss:$20 sps:$4 sm:$0xff]  }
 0x3cd   : > { %8383 = vmatpush1.bf16.msra.mxu0 %v23211_v17  ;;  %v23264_v17 = vld [vmem:[%s33014_s2 + $0xafc] ss:$20 sps:$4 sm:$0xff]  }
 0x3ce   : > { %8875 = vmatpush1.bf16.msra.mxu1 %v23214_v37  ;;  %8384 = vmatprep.subr.bf16.mxu0 %v23219_v44  ;;  %v23262_v37 = vld [vmem:[%s33014_s2 + $0xaf8] ss:$20 sps:$4 sm:$0xff]   ;;  %v23267_v44 = vld [vmem:[%s33014_s2 + $0xb1c] ss:$20 sps:$4 sm:$0xff]  }
 0x3cf   : > { %8876 = vmatprep.subr.bf16.mxu1 %v23222_v41  ;;  %v23265_v41 = vld [vmem:[%s33014_s2 + $0xb18] ss:$20 sps:$4 sm:$0xff]  }
 0x3d1   : > { %8385 = vmatpush1.bf16.msra.mxu0 %v23217_v1  ;;  %v23270_v1 = vld [vmem:[%s33014_s2 + $0xb24] ss:$20 sps:$4 sm:$0xff]  }
 0x3d2   : > { %8877 = vmatpush1.bf16.msra.mxu1 %v23220_v6  ;;  %8395 = vmatprep.subr.bf16.mxu0 %v23225_v45  ;;  %v23276_v6 = vld [vmem:[%s33014_s2 + $0xb4c] ss:$20 sps:$4 sm:$0xff]  }
 0x3d3   : > { %8887 = vmatprep.subr.bf16.mxu1 %v23228_v23  ;;  %v23271_v45 = vld [vmem:[%s33014_s2 + $0xb40] ss:$20 sps:$4 sm:$0xff]  }
 0x3d4   : > { %8387 = vmatmul.mubr.bf16.vlgmr.msra.gmra.mrb[12].mxu0 %v27508_v0  ;;  %v23279_v23 = vld [vmem:[%s33014_s2 + $0xb6c] ss:$20 sps:$4 sm:$0xff]  }
 0x3d5   : > { %8879 = vmatmul.mubr.bf16.vlgmr.msra.gmra.mrb[16].mxu1 %v27508_v0  ;;  %8396 = vmatpush1.bf16.msra.mxu0 %v23223_v29  ;;  %v23274_v29 = vld [vmem:[%s33014_s2 + $0xb48] ss:$20 sps:$4 sm:$0xff]  }
 0x3d6   : > { %8427 = vmatprep.mubr.bf16.mxu0 %v27511_v34  ;;  %8888 = vmatpush1.bf16.msra.mxu1 %v23226_v35  ;;  %v23282_v35 = vld [vmem:[%s33014_s2 + $0xb74] ss:$20 sps:$4 sm:$0xff]  }
 0x3d7   : > { %8919 = vmatprep.mubr.bf16.mxu1 %v27511_v34  ;;  %8397 = vmatprep.subr.bf16.mxu0 %v23231_v21  ;;  %v23280_v21 = vld [vmem:[%s33014_s2 + $0xb70] ss:$20 sps:$4 sm:$0xff]  }
 0x3d8   : > { %8889 = vmatprep.subr.bf16.mxu1 %v23234_v9  ;;  %v23288_v9 = vld [vmem:[%s33014_s2 + $0xb9c] ss:$20 sps:$4 sm:$0xff]  }
 0x3d9   : > { %8398 = vmatpush1.bf16.msra.mxu0 %v23229_v2  ;;  %v23285_v2 = vld [vmem:[%s33014_s2 + $0xb94] ss:$20 sps:$4 sm:$0xff]  }
 0x3da   : > { %8890 = vmatpush1.bf16.msra.mxu1 %v23232_v38  ;;  %8399 = vmatprep.subr.bf16.mxu0 %v23237_v18  ;;  %v23283_v38 = vld [vmem:[%s33014_s2 + $0xb90] ss:$20 sps:$4 sm:$0xff]   ;;  %v23286_v18 = vld [vmem:[%s33014_s2 + $0xb98] ss:$20 sps:$4 sm:$0xff]  }
 0x3db   : > { %8891 = vmatprep.subr.bf16.mxu1 %v23240_v60  ;;  %v23291_v60 = vld [vmem:[%s33014_s2 + $0xbbc] ss:$20 sps:$4 sm:$0xff]  }
 0x3dd   : > { %8400 = vmatpush1.bf16.msra.mxu0 %v23235_v54  ;;  %v23294_v54 = vld [vmem:[%s33014_s2 + $0xbc4] ss:$20 sps:$4 sm:$0xff]  }
 0x3de   : > { %8892 = vmatpush1.bf16.msra.mxu1 %v23238_v33  ;;  %8401 = vmatprep.subr.bf16.mxu0 %v23243_v51  ;;  %v23289_v33 = vld [vmem:[%s33014_s2 + $0xbb8] ss:$20 sps:$4 sm:$0xff]   ;;  %v23292_v51 = vld [vmem:[%s33014_s2 + $0xbc0] ss:$20 sps:$4 sm:$0xff]  }
 0x3df   : > { %8893 = vmatprep.subr.bf16.mxu1 %v23246_v26  ;;  %v23300_v26 = vld [vmem:[%s33014_s2 + $0xbec] ss:$20 sps:$4 sm:$0xff]  }
 0x3e1   : > { %8402 = vmatpush1.bf16.msra.mxu0 %v23241_v49  ;;  %v23297_v49 = vld [vmem:[%s33014_s2 + $0xbe4] ss:$20 sps:$4 sm:$0xff]  }
 0x3e2   : > { %8894 = vmatpush1.bf16.msra.mxu1 %v23244_v12  ;;  %8403 = vmatprep.subr.bf16.mxu0 %v23249_v36  ;;  %v23295_v12 = vld [vmem:[%s33014_s2 + $0xbe0] ss:$20 sps:$4 sm:$0xff]   ;;  %v23298_v36 = vld [vmem:[%s33014_s2 + $0xbe8] ss:$20 sps:$4 sm:$0xff]  }
 0x3e3   : > { %8895 = vmatprep.subr.bf16.mxu1 %v23252_v5  ;;  %v23303_v5 = vld [vmem:[%s33014_s2 + $0xc0c] ss:$20 sps:$4 sm:$0xff]  }
 0x3e5   : > { %8404 = vmatpush1.bf16.msra.mxu0 %v23247_v58  ;;  %v23306_v58 = vld [vmem:[%s33014_s2 + $0xc14] ss:$20 sps:$4 sm:$0xff]  }
 0x3e6   : > { %8896 = vmatpush1.bf16.msra.mxu1 %v23250_v7  ;;  %8405 = vmatprep.subr.bf16.mxu0 %v23255_v39  ;;  %v23301_v7 = vld [vmem:[%s33014_s2 + $0xc08] ss:$20 sps:$4 sm:$0xff]   ;;  %v27666_v39 = vpop.permute.xlu1 %22785 }
 0x3e7   : > { %8897 = vmatprep.subr.bf16.mxu1 %v23258_v30  ;;  %v23304_v30 = vld [vmem:[%s33014_s2 + $0xc10] ss:$20 sps:$4 sm:$0xff]  }
 0x3e9   : > { %8406 = vmatpush1.bf16.msra.mxu0 %v23253_v24  ;;  %v23309_v24 = vld [vmem:[%s33014_s2 + $0xc34] ss:$20 sps:$4 sm:$0xff]  }
 0x3ea   : > { %8898 = vmatpush1.bf16.msra.mxu1 %v23256_v15  ;;  %8407 = vmatprep.subr.bf16.mxu0 %v23261_v8  ;;  %v23312_v15 = vld [vmem:[%s33014_s2 + $0xc3c] ss:$20 sps:$4 sm:$0xff]   ;;  %v22788_v8 = vunpack.i.h.bf16 %v27666_v39 }
 0x3eb   : > { %8899 = vmatprep.subr.bf16.mxu1 %v23264_v17  ;;  %v22787_v17 = vunpack.i.l.bf16 %v27666_v39 }
 0x3ed   : > { %8408 = vmatpush1.bf16.msra.mxu0 %v23259_v32  ;;  %v23307_v32 = vld [vmem:[%s33014_s2 + $0xc30] ss:$20 sps:$4 sm:$0xff]  }
 0x3ee   : > { %8900 = vmatpush1.bf16.msra.mxu1 %v23262_v37  ;;  %8409 = vmatprep.subr.bf16.mxu0 %v23267_v44  ;;  %v23310_v37 = vld [vmem:[%s33014_s2 + $0xc38] ss:$20 sps:$4 sm:$0xff]   ;;  %v23315_v44 = vld [vmem:[%s33014_s2 + $0xc5c] ss:$20 sps:$4 sm:$0xff]  }
 0x3ef   : > { %8901 = vmatprep.subr.bf16.mxu1 %v23270_v1  ;;  %v2259_v1 = vsel %vm428_vm5, %v22768_v20, %v22777_v48  ;;  %v23316_v20 = vld [vmem:[%s33014_s2 + $0xc60] ss:$20 sps:$4 sm:$0xff]   ;;  %v23321_v48 = vld [vmem:[%s33014_s2 + $0xc84] ss:$20 sps:$4 sm:$0xff]  }
 0x3f0   : > { %v2305_v19 = vmax.f32 %v26786_v43, %v2259_v1  ;;  %v23319_v43 = vld [vmem:[%s33014_s2 + $0xc80] ss:$20 sps:$4 sm:$0xff]   ;;  %v23363_v1 = vld [vmem:[%s33014_s2 + $0xd9c] ss:$20 sps:$4 sm:$0xff]  }
 0x3f1   : > { %8410 = vmatpush1.bf16.msra.mxu0 %v23265_v41  ;;  %v23318_v41 = vld [vmem:[%s33014_s2 + $0xc64] ss:$20 sps:$4 sm:$0xff]  }
 0x3f2   : > { %8902 = vmatpush1.bf16.msra.mxu1 %v23268_v40  ;;  %8411 = vmatprep.subr.bf16.mxu0 %v23273_v62  ;;  %v23313_v40 = vld [vmem:[%s33014_s2 + $0xc58] ss:$20 sps:$4 sm:$0xff]   ;;  %v2262_v62 = vsel %vm428_vm5, %v22787_v17, %v22788_v8 }
 0x3f3   : > { %8903 = vmatprep.subr.bf16.mxu1 %v23276_v6  ;;  %v23324_v6 = vld [vmem:[%s33014_s2 + $0xc8c] ss:$20 sps:$4 sm:$0xff]  }
 0x3f5   : > { %8412 = vmatpush1.bf16.msra.mxu0 %v23271_v45  ;;  %v2308_v45 = vmax.f32 %v26832_v31, %v2262_v62  ;;  %v23364_v62 = vld [vmem:[%s33014_s2 + $0xda0] ss:$20 sps:$4 sm:$0xff]  }
 0x3f6   : > { %8904 = vmatpush1.bf16.msra.mxu1 %v23274_v29  ;;  %8413 = vmatprep.subr.bf16.mxu0 %v23279_v23  ;;  %v27718_v29 = vpack.c.bf16 %v2305_v19, %v2305_v19  ;;  %v23322_v23 = vld [vmem:[%s33014_s2 + $0xc88] ss:$20 sps:$4 sm:$0xff]   ;;  %v23369_v19 = vld [vmem:[%s33014_s2 + $0xdc4] ss:$20 sps:$4 sm:$0xff]  }
 0x3f7   : > { %8905 = vmatprep.subr.bf16.mxu1 %v23282_v35  ;;  %v23327_v35 = vld [vmem:[%s33014_s2 + $0xcac] ss:$20 sps:$4 sm:$0xff]   ;;  %v27727_v31 = vpack.c.bf16 %v2308_v45, %v2308_v45 }
 0x3f8   : > { %v23375_v45 = vld [vmem:[%s33014_s2 + $0xdec] ss:$20 sps:$4 sm:$0xff]  }
 0x3f9   : > { %8414 = vmatpush1.bf16.msra.mxu0 %v23277_v55  ;;  %v23330_v55 = vld [vmem:[%s33014_s2 + $0xcb4] ss:$20 sps:$4 sm:$0xff]  }
 0x3fa   : > { %8906 = vmatpush1.bf16.msra.mxu1 %v23280_v21  ;;  %8415 = vmatprep.subr.bf16.mxu0 %v23285_v2  ;;  %v23325_v21 = vld [vmem:[%s33014_s2 + $0xca8] ss:$20 sps:$4 sm:$0xff]   ;;  %v23328_v2 = vld [vmem:[%s33014_s2 + $0xcb0] ss:$20 sps:$4 sm:$0xff]  }
 0x3fb   : > { %8907 = vmatprep.subr.bf16.mxu1 %v23288_v9  ;;  %v23333_v9 = vld [vmem:[%s33014_s2 + $0xcd4] ss:$20 sps:$4 sm:$0xff]  }
 0x3fd   : > { %8416 = vmatpush1.bf16.msra.mxu0 %v23283_v38  ;;  %v23336_v38 = vld [vmem:[%s33014_s2 + $0xcdc] ss:$20 sps:$4 sm:$0xff]  }
 0x3fe   : > { %8908 = vmatpush1.bf16.msra.mxu1 %v23286_v18  ;;  %8417 = vmatprep.subr.bf16.mxu0 %v23291_v60  ;;  %v23331_v18 = vld [vmem:[%s33014_s2 + $0xcd0] ss:$20 sps:$4 sm:$0xff]   ;;  %v23334_v60 = vld [vmem:[%s33014_s2 + $0xcd8] ss:$20 sps:$4 sm:$0xff]  }
 0x3ff   : > { %8909 = vmatprep.subr.bf16.mxu1 %v23294_v54  ;;  %v23339_v54 = vld [vmem:[%s33014_s2 + $0xcfc] ss:$20 sps:$4 sm:$0xff]  }
 0x401   : > { %8418 = vmatpush1.bf16.msra.mxu0 %v23289_v33  ;;  %v23342_v33 = vld [vmem:[%s33014_s2 + $0xd04] ss:$20 sps:$4 sm:$0xff]  }
 0x402   : > { %8910 = vmatpush1.bf16.msra.mxu1 %v23292_v51  ;;  %8419 = vmatprep.subr.bf16.mxu0 %v23297_v49  ;;  %v23337_v51 = vld [vmem:[%s33014_s2 + $0xcf8] ss:$20 sps:$4 sm:$0xff]   ;;  %v23340_v49 = vld [vmem:[%s33014_s2 + $0xd00] ss:$20 sps:$4 sm:$0xff]  }
 0x403   : > { %8911 = vmatprep.subr.bf16.mxu1 %v23300_v26  ;;  %v23345_v26 = vld [vmem:[%s33014_s2 + $0xd24] ss:$20 sps:$4 sm:$0xff]  }
 0x405   : > { %8420 = vmatpush1.bf16.msra.mxu0 %v23295_v12  ;;  %v23348_v12 = vld [vmem:[%s33014_s2 + $0xd2c] ss:$20 sps:$4 sm:$0xff]  }
 0x406   : > { %8912 = vmatpush1.bf16.msra.mxu1 %v23298_v36  ;;  %8421 = vmatprep.subr.bf16.mxu0 %v23303_v5  ;;  %v23343_v36 = vld [vmem:[%s33014_s2 + $0xd20] ss:$20 sps:$4 sm:$0xff]   ;;  %v23346_v5 = vld [vmem:[%s33014_s2 + $0xd28] ss:$20 sps:$4 sm:$0xff]  }
 0x407   : > { %8913 = vmatprep.subr.bf16.mxu1 %v23306_v58  ;;  %v23351_v58 = vld [vmem:[%s33014_s2 + $0xd4c] ss:$20 sps:$4 sm:$0xff]  }
 0x409   : > { %8422 = vmatpush1.bf16.msra.mxu0 %v23301_v7  ;;  %v23354_v7 = vld [vmem:[%s33014_s2 + $0xd54] ss:$20 sps:$4 sm:$0xff]  }
 0x40a   : > { %8914 = vmatpush1.bf16.msra.mxu1 %v23304_v30  ;;  %8423 = vmatprep.subr.bf16.mxu0 %v23309_v24  ;;  %v23349_v30 = vld [vmem:[%s33014_s2 + $0xd48] ss:$20 sps:$4 sm:$0xff]   ;;  %v23352_v24 = vld [vmem:[%s33014_s2 + $0xd50] ss:$20 sps:$4 sm:$0xff]  }
 0x40b   : > { %8915 = vmatprep.subr.bf16.mxu1 %v23312_v15  ;;  %v23357_v15 = vld [vmem:[%s33014_s2 + $0xd74] ss:$20 sps:$4 sm:$0xff]  }
 0x40d   : > { %8424 = vmatpush1.bf16.msra.mxu0 %v23307_v32  ;;  %v23360_v32 = vld [vmem:[%s33014_s2 + $0xd7c] ss:$20 sps:$4 sm:$0xff]  }
 0x40e   : > { %8916 = vmatpush1.bf16.msra.mxu1 %v23310_v37  ;;  %8425 = vmatprep.subr.bf16.mxu0 %v23315_v44  ;;  %v23355_v37 = vld [vmem:[%s33014_s2 + $0xd70] ss:$20 sps:$4 sm:$0xff]   ;;  %v23358_v44 = vld [vmem:[%s33014_s2 + $0xd78] ss:$20 sps:$4 sm:$0xff]  }
 0x40f   : > { %8917 = vmatprep.subr.bf16.mxu1 %v23318_v41  ;;  %v23366_v41 = vld [vmem:[%s33014_s2 + $0xda4] ss:$20 sps:$4 sm:$0xff]  }
 0x411   : > { %8426 = vmatpush1.bf16.msra.mxu0 %v23313_v40  ;;  %v23361_v40 = vld [vmem:[%s33014_s2 + $0xd98] ss:$20 sps:$4 sm:$0xff]  }
 0x412   : > { %8918 = vmatpush1.bf16.msra.mxu1 %v23316_v20  ;;  %8436 = vmatprep.subr.bf16.mxu0 %v23321_v48  ;;  %v23372_v20 = vld [vmem:[%s33014_s2 + $0xdcc] ss:$20 sps:$4 sm:$0xff]  }
 0x413   : > { %8928 = vmatprep.subr.bf16.mxu1 %v23324_v6  ;;  %v23367_v48 = vld [vmem:[%s33014_s2 + $0xdc0] ss:$20 sps:$4 sm:$0xff]   ;;  %v23370_v6 = vld [vmem:[%s33014_s2 + $0xdc8] ss:$20 sps:$4 sm:$0xff]  }
 0x414   : > { %8428 = vmatmul.mubr.bf16.vlgmr.msra.gmra.mrb[12].mxu0 %v27718_v29 }
 0x415   : > { %8920 = vmatmul.mubr.bf16.vlgmr.msra.gmra.mrb[16].mxu1 %v27718_v29  ;;  %8437 = vmatpush1.bf16.msra.mxu0 %v23319_v43  ;;  %v23378_v43 = vld [vmem:[%s33014_s2 + $0xdf4] ss:$20 sps:$4 sm:$0xff]  }
 0x416   : > { %8468 = vmatprep.mubr.bf16.mxu0 %v27727_v31  ;;  %8929 = vmatpush1.bf16.msra.mxu1 %v23322_v23  ;;  %v23373_v23 = vld [vmem:[%s33014_s2 + $0xde8] ss:$20 sps:$4 sm:$0xff]  }
 0x417   : > { %8960 = vmatprep.mubr.bf16.mxu1 %v27727_v31  ;;  %8438 = vmatprep.subr.bf16.mxu0 %v23327_v35  ;;  %v23376_v35 = vld [vmem:[%s33014_s2 + $0xdf0] ss:$20 sps:$4 sm:$0xff]  }
 0x418   : > { %8930 = vmatprep.subr.bf16.mxu1 %v23330_v55  ;;  %v23381_v55 = vld [vmem:[%s33014_s2 + $0xe14] ss:$20 sps:$4 sm:$0xff]  }
 0x419   : > { %8439 = vmatpush1.bf16.msra.mxu0 %v23325_v21  ;;  %v23384_v21 = vld [vmem:[%s33014_s2 + $0xe1c] ss:$20 sps:$4 sm:$0xff]  }
 0x41a   : > { %8931 = vmatpush1.bf16.msra.mxu1 %v23328_v2  ;;  %8440 = vmatprep.subr.bf16.mxu0 %v23333_v9  ;;  %v23379_v2 = vld [vmem:[%s33014_s2 + $0xe10] ss:$20 sps:$4 sm:$0xff]   ;;  %v23382_v9 = vld [vmem:[%s33014_s2 + $0xe18] ss:$20 sps:$4 sm:$0xff]  }
 0x41b   : > { %8932 = vmatprep.subr.bf16.mxu1 %v23336_v38  ;;  %v23387_v38 = vld [vmem:[%s33014_s2 + $0xe3c] ss:$20 sps:$4 sm:$0xff]  }
 0x41d   : > { %8441 = vmatpush1.bf16.msra.mxu0 %v23331_v18  ;;  %v23390_v18 = vld [vmem:[%s33014_s2 + $0xe44] ss:$20 sps:$4 sm:$0xff]  }
 0x41e   : > { %8933 = vmatpush1.bf16.msra.mxu1 %v23334_v60  ;;  %8442 = vmatprep.subr.bf16.mxu0 %v23339_v54  ;;  %v23385_v60 = vld [vmem:[%s33014_s2 + $0xe38] ss:$20 sps:$4 sm:$0xff]   ;;  %v23388_v54 = vld [vmem:[%s33014_s2 + $0xe40] ss:$20 sps:$4 sm:$0xff]  }
 0x41f   : > { %8934 = vmatprep.subr.bf16.mxu1 %v23342_v33  ;;  %v23393_v33 = vld [vmem:[%s33014_s2 + $0xe64] ss:$20 sps:$4 sm:$0xff]  }
 0x421   : > { %8443 = vmatpush1.bf16.msra.mxu0 %v23337_v51  ;;  %v23396_v51 = vld [vmem:[%s33014_s2 + $0xe6c] ss:$20 sps:$4 sm:$0xff]  }
 0x422   : > { %8935 = vmatpush1.bf16.msra.mxu1 %v23340_v49  ;;  %8444 = vmatprep.subr.bf16.mxu0 %v23345_v26  ;;  %v23391_v49 = vld [vmem:[%s33014_s2 + $0xe60] ss:$20 sps:$4 sm:$0xff]   ;;  %v23394_v26 = vld [vmem:[%s33014_s2 + $0xe68] ss:$20 sps:$4 sm:$0xff]  }
 0x423   : > { %8936 = vmatprep.subr.bf16.mxu1 %v23348_v12  ;;  %v23399_v12 = vld [vmem:[%s33014_s2 + $0xe8c] ss:$20 sps:$4 sm:$0xff]  }
 0x425   : > { %8445 = vmatpush1.bf16.msra.mxu0 %v23343_v36  ;;  %v23402_v36 = vld [vmem:[%s33014_s2 + $0xe94] ss:$20 sps:$4 sm:$0xff]  }
 0x426   : > { %8937 = vmatpush1.bf16.msra.mxu1 %v23346_v5  ;;  %8446 = vmatprep.subr.bf16.mxu0 %v23351_v58  ;;  %v23397_v5 = vld [vmem:[%s33014_s2 + $0xe88] ss:$20 sps:$4 sm:$0xff]   ;;  %v27882_v58 = vpop.permute.xlu1 %22795 }
 0x427   : > { %8938 = vmatprep.subr.bf16.mxu1 %v23354_v7  ;;  %v23400_v7 = vld [vmem:[%s33014_s2 + $0xe90] ss:$20 sps:$4 sm:$0xff]  }
 0x429   : > { %8447 = vmatpush1.bf16.msra.mxu0 %v23349_v30  ;;  %v23405_v30 = vld [vmem:[%s33014_s2 + $0xeb4] ss:$20 sps:$4 sm:$0xff]  }
 0x42a   : > { %8939 = vmatpush1.bf16.msra.mxu1 %v23352_v24  ;;  %8448 = vmatprep.subr.bf16.mxu0 %v23357_v15  ;;  %v23408_v24 = vld [vmem:[%s33014_s2 + $0xebc] ss:$20 sps:$4 sm:$0xff]   ;;  %v22798_v15 = vunpack.i.h.bf16 %v27882_v58 }
 0x42b   : > { %8940 = vmatprep.subr.bf16.mxu1 %v23360_v32  ;;  %v22797_v32 = vunpack.i.l.bf16 %v27882_v58 }
 0x42d   : > { %8449 = vmatpush1.bf16.msra.mxu0 %v23355_v37  ;;  %v23403_v37 = vld [vmem:[%s33014_s2 + $0xeb0] ss:$20 sps:$4 sm:$0xff]  }
 0x42e   : > { %8941 = vmatpush1.bf16.msra.mxu1 %v23358_v44  ;;  %8450 = vmatprep.subr.bf16.mxu0 %v23363_v1  ;;  %v23406_v44 = vld [vmem:[%s33014_s2 + $0xeb8] ss:$20 sps:$4 sm:$0xff]   ;;  %v23411_v1 = vld [vmem:[%s33014_s2 + $0xedc] ss:$20 sps:$4 sm:$0xff]  }
 0x42f   : > { %8942 = vmatprep.subr.bf16.mxu1 %v23366_v41  ;;  %v2261_v41 = vsel %vm428_vm5, %v22778_v3, %v22787_v17  ;;  %v23412_v3 = vld [vmem:[%s33014_s2 + $0xee0] ss:$20 sps:$4 sm:$0xff]   ;;  %v23417_v17 = vld [vmem:[%s33014_s2 + $0xf04] ss:$20 sps:$4 sm:$0xff]  }
 0x430   : > { %v2307_v28 = vmax.f32 %v26811_v57, %v2261_v41  ;;  %v23415_v57 = vld [vmem:[%s33014_s2 + $0xf00] ss:$20 sps:$4 sm:$0xff]   ;;  %v23459_v41 = vld [vmem:[%s33014_s2 + $0x101c] ss:$20 sps:$4 sm:$0xff]  }
 0x431   : > { %8451 = vmatpush1.bf16.msra.mxu0 %v23361_v40  ;;  %v23414_v40 = vld [vmem:[%s33014_s2 + $0xee4] ss:$20 sps:$4 sm:$0xff]  }
 0x432   : > { %8943 = vmatpush1.bf16.msra.mxu1 %v23364_v62  ;;  %8452 = vmatprep.subr.bf16.mxu0 %v23369_v19  ;;  %v23409_v62 = vld [vmem:[%s33014_s2 + $0xed8] ss:$20 sps:$4 sm:$0xff]   ;;  %v2264_v19 = vsel %vm428_vm5, %v22797_v32, %v22798_v15 }
 0x433   : > { %8944 = vmatprep.subr.bf16.mxu1 %v23372_v20  ;;  %v23420_v20 = vld [vmem:[%s33014_s2 + $0xf0c] ss:$20 sps:$4 sm:$0xff]  }
 0x435   : > { %8453 = vmatpush1.bf16.msra.mxu0 %v23367_v48  ;;  %v2310_v48 = vmax.f32 %v26857_v46, %v2264_v19  ;;  %v23460_v19 = vld [vmem:[%s33014_s2 + $0x1020] ss:$20 sps:$4 sm:$0xff]  }
 0x436   : > { %8945 = vmatpush1.bf16.msra.mxu1 %v23370_v6  ;;  %8454 = vmatprep.subr.bf16.mxu0 %v23375_v45  ;;  %v27934_v6 = vpack.c.bf16 %v2307_v28, %v2307_v28  ;;  %v23418_v45 = vld [vmem:[%s33014_s2 + $0xf08] ss:$20 sps:$4 sm:$0xff]   ;;  %v23465_v28 = vld [vmem:[%s33014_s2 + $0x1044] ss:$20 sps:$4 sm:$0xff]  }
 0x437   : > { %8946 = vmatprep.subr.bf16.mxu1 %v23378_v43  ;;  %v23423_v43 = vld [vmem:[%s33014_s2 + $0xf2c] ss:$20 sps:$4 sm:$0xff]   ;;  %v27943_v46 = vpack.c.bf16 %v2310_v48, %v2310_v48 }
 0x438   : > { %v23471_v48 = vld [vmem:[%s33014_s2 + $0x106c] ss:$20 sps:$4 sm:$0xff]  }
 0x439   : > { %8455 = vmatpush1.bf16.msra.mxu0 %v23373_v23  ;;  %v23426_v23 = vld [vmem:[%s33014_s2 + $0xf34] ss:$20 sps:$4 sm:$0xff]  }
 0x43a   : > { %8947 = vmatpush1.bf16.msra.mxu1 %v23376_v35  ;;  %8456 = vmatprep.subr.bf16.mxu0 %v23381_v55  ;;  %v23421_v35 = vld [vmem:[%s33014_s2 + $0xf28] ss:$20 sps:$4 sm:$0xff]   ;;  %v23424_v55 = vld [vmem:[%s33014_s2 + $0xf30] ss:$20 sps:$4 sm:$0xff]  }
 0x43b   : > { %8948 = vmatprep.subr.bf16.mxu1 %v23384_v21  ;;  %v23429_v21 = vld [vmem:[%s33014_s2 + $0xf54] ss:$20 sps:$4 sm:$0xff]  }
 0x43d   : > { %8457 = vmatpush1.bf16.msra.mxu0 %v23379_v2  ;;  %v23432_v2 = vld [vmem:[%s33014_s2 + $0xf5c] ss:$20 sps:$4 sm:$0xff]  }
 0x43e   : > { %8949 = vmatpush1.bf16.msra.mxu1 %v23382_v9  ;;  %8458 = vmatprep.subr.bf16.mxu0 %v23387_v38  ;;  %v23427_v9 = vld [vmem:[%s33014_s2 + $0xf50] ss:$20 sps:$4 sm:$0xff]   ;;  %v23430_v38 = vld [vmem:[%s33014_s2 + $0xf58] ss:$20 sps:$4 sm:$0xff]  }
 0x43f   : > { %8950 = vmatprep.subr.bf16.mxu1 %v23390_v18  ;;  %v23435_v18 = vld [vmem:[%s33014_s2 + $0xf7c] ss:$20 sps:$4 sm:$0xff]  }
 0x441   : > { %8459 = vmatpush1.bf16.msra.mxu0 %v23385_v60  ;;  %v23438_v60 = vld [vmem:[%s33014_s2 + $0xf84] ss:$20 sps:$4 sm:$0xff]  }
 0x442   : > { %8951 = vmatpush1.bf16.msra.mxu1 %v23388_v54  ;;  %8460 = vmatprep.subr.bf16.mxu0 %v23393_v33  ;;  %v23433_v54 = vld [vmem:[%s33014_s2 + $0xf78] ss:$20 sps:$4 sm:$0xff]   ;;  %v23436_v33 = vld [vmem:[%s33014_s2 + $0xf80] ss:$20 sps:$4 sm:$0xff]  }
 0x443   : > { %8952 = vmatprep.subr.bf16.mxu1 %v23396_v51  ;;  %v23441_v51 = vld [vmem:[%s33014_s2 + $0xfa4] ss:$20 sps:$4 sm:$0xff]  }
 0x445   : > { %8461 = vmatpush1.bf16.msra.mxu0 %v23391_v49  ;;  %v23444_v49 = vld [vmem:[%s33014_s2 + $0xfac] ss:$20 sps:$4 sm:$0xff]  }
 0x446   : > { %8953 = vmatpush1.bf16.msra.mxu1 %v23394_v26  ;;  %8462 = vmatprep.subr.bf16.mxu0 %v23399_v12  ;;  %v23439_v26 = vld [vmem:[%s33014_s2 + $0xfa0] ss:$20 sps:$4 sm:$0xff]   ;;  %v23442_v12 = vld [vmem:[%s33014_s2 + $0xfa8] ss:$20 sps:$4 sm:$0xff]  }
 0x447   : > { %8954 = vmatprep.subr.bf16.mxu1 %v23402_v36  ;;  %v23447_v36 = vld [vmem:[%s33014_s2 + $0xfcc] ss:$20 sps:$4 sm:$0xff]  }
 0x449   : > { %8463 = vmatpush1.bf16.msra.mxu0 %v23397_v5  ;;  %v23450_v5 = vld [vmem:[%s33014_s2 + $0xfd4] ss:$20 sps:$4 sm:$0xff]  }
 0x44a   : > { %8955 = vmatpush1.bf16.msra.mxu1 %v23400_v7  ;;  %8464 = vmatprep.subr.bf16.mxu0 %v23405_v30  ;;  %v23445_v7 = vld [vmem:[%s33014_s2 + $0xfc8] ss:$20 sps:$4 sm:$0xff]   ;;  %v23448_v30 = vld [vmem:[%s33014_s2 + $0xfd0] ss:$20 sps:$4 sm:$0xff]  }
 0x44b   : > { %8956 = vmatprep.subr.bf16.mxu1 %v23408_v24  ;;  %v23453_v24 = vld [vmem:[%s33014_s2 + $0xff4] ss:$20 sps:$4 sm:$0xff]  }
 0x44d   : > { %8465 = vmatpush1.bf16.msra.mxu0 %v23403_v37  ;;  %v23456_v37 = vld [vmem:[%s33014_s2 + $0xffc] ss:$20 sps:$4 sm:$0xff]  }
 0x44e   : > { %8957 = vmatpush1.bf16.msra.mxu1 %v23406_v44  ;;  %8466 = vmatprep.subr.bf16.mxu0 %v23411_v1  ;;  %v23451_v44 = vld [vmem:[%s33014_s2 + $0xff0] ss:$20 sps:$4 sm:$0xff]   ;;  %v23454_v1 = vld [vmem:[%s33014_s2 + $0xff8] ss:$20 sps:$4 sm:$0xff]  }
 0x44f   : > { %8958 = vmatprep.subr.bf16.mxu1 %v23414_v40  ;;  %v23462_v40 = vld [vmem:[%s33014_s2 + $0x1024] ss:$20 sps:$4 sm:$0xff]  }
 0x451   : > { %8467 = vmatpush1.bf16.msra.mxu0 %v23409_v62  ;;  %v23457_v62 = vld [vmem:[%s33014_s2 + $0x1018] ss:$20 sps:$4 sm:$0xff]  }
 0x452   : > { %8959 = vmatpush1.bf16.msra.mxu1 %v23412_v3  ;;  %8477 = vmatprep.subr.bf16.mxu0 %v23417_v17  ;;  %v23468_v3 = vld [vmem:[%s33014_s2 + $0x104c] ss:$20 sps:$4 sm:$0xff]  }
 0x453   : > { %8969 = vmatprep.subr.bf16.mxu1 %v23420_v20  ;;  %v23463_v17 = vld [vmem:[%s33014_s2 + $0x1040] ss:$20 sps:$4 sm:$0xff]   ;;  %v23466_v20 = vld [vmem:[%s33014_s2 + $0x1048] ss:$20 sps:$4 sm:$0xff]  }
 0x454   : > { %8469 = vmatmul.mubr.bf16.vlgmr.msra.gmra.mrb[12].mxu0 %v27934_v6 }
 0x455   : > { %8961 = vmatmul.mubr.bf16.vlgmr.msra.gmra.mrb[16].mxu1 %v27934_v6  ;;  %8478 = vmatpush1.bf16.msra.mxu0 %v23415_v57  ;;  %v23474_v57 = vld [vmem:[%s33014_s2 + $0x1074] ss:$20 sps:$4 sm:$0xff]  }
 0x456   : > { %8509 = vmatprep.mubr.bf16.mxu0 %v27943_v46  ;;  %8970 = vmatpush1.bf16.msra.mxu1 %v23418_v45  ;;  %v23469_v45 = vld [vmem:[%s33014_s2 + $0x1068] ss:$20 sps:$4 sm:$0xff]  }
 0x457   : > { %9001 = vmatprep.mubr.bf16.mxu1 %v27943_v46  ;;  %8479 = vmatprep.subr.bf16.mxu0 %v23423_v43  ;;  %v23472_v43 = vld [vmem:[%s33014_s2 + $0x1070] ss:$20 sps:$4 sm:$0xff]  }
 0x458   : > { %8971 = vmatprep.subr.bf16.mxu1 %v23426_v23  ;;  %v23477_v23 = vld [vmem:[%s33014_s2 + $0x1094] ss:$20 sps:$4 sm:$0xff]  }
 0x459   : > { %8480 = vmatpush1.bf16.msra.mxu0 %v23421_v35  ;;  %v23480_v35 = vld [vmem:[%s33014_s2 + $0x109c] ss:$20 sps:$4 sm:$0xff]  }
 0x45a   : > { %8972 = vmatpush1.bf16.msra.mxu1 %v23424_v55  ;;  %8481 = vmatprep.subr.bf16.mxu0 %v23429_v21  ;;  %v23475_v55 = vld [vmem:[%s33014_s2 + $0x1090] ss:$20 sps:$4 sm:$0xff]   ;;  %v23478_v21 = vld [vmem:[%s33014_s2 + $0x1098] ss:$20 sps:$4 sm:$0xff]  }
 0x45b   : > { %8973 = vmatprep.subr.bf16.mxu1 %v23432_v2  ;;  %v23483_v2 = vld [vmem:[%s33014_s2 + $0x10bc] ss:$20 sps:$4 sm:$0xff]  }
 0x45d   : > { %8482 = vmatpush1.bf16.msra.mxu0 %v23427_v9  ;;  %v23486_v9 = vld [vmem:[%s33014_s2 + $0x10c4] ss:$20 sps:$4 sm:$0xff]  }
 0x45e   : > { %8974 = vmatpush1.bf16.msra.mxu1 %v23430_v38  ;;  %8483 = vmatprep.subr.bf16.mxu0 %v23435_v18  ;;  %v23481_v38 = vld [vmem:[%s33014_s2 + $0x10b8] ss:$20 sps:$4 sm:$0xff]   ;;  %v23484_v18 = vld [vmem:[%s33014_s2 + $0x10c0] ss:$20 sps:$4 sm:$0xff]  }
 0x45f   : > { %8975 = vmatprep.subr.bf16.mxu1 %v23438_v60  ;;  %v23489_v60 = vld [vmem:[%s33014_s2 + $0x10e4] ss:$20 sps:$4 sm:$0xff]  }
 0x461   : > { %8484 = vmatpush1.bf16.msra.mxu0 %v23433_v54  ;;  %v23492_v54 = vld [vmem:[%s33014_s2 + $0x10ec] ss:$20 sps:$4 sm:$0xff]  }
 0x462   : > { %8976 = vmatpush1.bf16.msra.mxu1 %v23436_v33  ;;  %8485 = vmatprep.subr.bf16.mxu0 %v23441_v51  ;;  %v23487_v33 = vld [vmem:[%s33014_s2 + $0x10e0] ss:$20 sps:$4 sm:$0xff]   ;;  %v23490_v51 = vld [vmem:[%s33014_s2 + $0x10e8] ss:$20 sps:$4 sm:$0xff]  }
 0x463   : > { %8977 = vmatprep.subr.bf16.mxu1 %v23444_v49  ;;  %v23495_v49 = vld [vmem:[%s33014_s2 + $0x110c] ss:$20 sps:$4 sm:$0xff]  }
 0x465   : > { %8486 = vmatpush1.bf16.msra.mxu0 %v23439_v26  ;;  %v23498_v26 = vld [vmem:[%s33014_s2 + $0x1114] ss:$20 sps:$4 sm:$0xff]  }
 0x466   : > { %8978 = vmatpush1.bf16.msra.mxu1 %v23442_v12  ;;  %8487 = vmatprep.subr.bf16.mxu0 %v23447_v36  ;;  %v23493_v12 = vld [vmem:[%s33014_s2 + $0x1108] ss:$20 sps:$4 sm:$0xff]   ;;  %v28098_v36 = vpop.permute.xlu1 %22805 }
 0x467   : > { %8979 = vmatprep.subr.bf16.mxu1 %v23450_v5  ;;  %v23496_v5 = vld [vmem:[%s33014_s2 + $0x1110] ss:$20 sps:$4 sm:$0xff]  }
 0x469   : > { %8488 = vmatpush1.bf16.msra.mxu0 %v23445_v7  ;;  %v23501_v7 = vld [vmem:[%s33014_s2 + $0x1134] ss:$20 sps:$4 sm:$0xff]  }
 0x46a   : > { %8980 = vmatpush1.bf16.msra.mxu1 %v23448_v30  ;;  %8489 = vmatprep.subr.bf16.mxu0 %v23453_v24  ;;  %v23504_v30 = vld [vmem:[%s33014_s2 + $0x113c] ss:$20 sps:$4 sm:$0xff]   ;;  %v22808_v24 = vunpack.i.h.bf16 %v28098_v36 }
 0x46b   : > { %8981 = vmatprep.subr.bf16.mxu1 %v23456_v37  ;;  %v22807_v37 = vunpack.i.l.bf16 %v28098_v36 }
 0x46d   : > { %8490 = vmatpush1.bf16.msra.mxu0 %v23451_v44  ;;  %v23499_v44 = vld [vmem:[%s33014_s2 + $0x1130] ss:$20 sps:$4 sm:$0xff]  }
 0x46e   : > { %8982 = vmatpush1.bf16.msra.mxu1 %v23454_v1  ;;  %8491 = vmatprep.subr.bf16.mxu0 %v23459_v41  ;;  %v23502_v1 = vld [vmem:[%s33014_s2 + $0x1138] ss:$20 sps:$4 sm:$0xff]   ;;  %v23507_v41 = vld [vmem:[%s33014_s2 + $0x115c] ss:$20 sps:$4 sm:$0xff]  }
 0x46f   : > { %8983 = vmatprep.subr.bf16.mxu1 %v23462_v40  ;;  %v2263_v40 = vsel %vm428_vm5, %v22788_v8, %v22797_v32  ;;  %v23508_v8 = vld [vmem:[%s33014_s2 + $0x1160] ss:$20 sps:$4 sm:$0xff]   ;;  %v23513_v32 = vld [vmem:[%s33014_s2 + $0x1184] ss:$20 sps:$4 sm:$0xff]  }
 0x470   : > { %v2309_v39 = vmax.f32 %v26836_v50, %v2263_v40  ;;  %v23511_v50 = vld [vmem:[%s33014_s2 + $0x1180] ss:$20 sps:$4 sm:$0xff]   ;;  %v23555_v40 = vld [vmem:[%s33014_s2 + $0x129c] ss:$20 sps:$4 sm:$0xff]  }
 0x471   : > { %8492 = vmatpush1.bf16.msra.mxu0 %v23457_v62  ;;  %v23510_v62 = vld [vmem:[%s33014_s2 + $0x1164] ss:$20 sps:$4 sm:$0xff]  }
 0x472   : > { %8984 = vmatpush1.bf16.msra.mxu1 %v23460_v19  ;;  %8493 = vmatprep.subr.bf16.mxu0 %v23465_v28  ;;  %v23505_v19 = vld [vmem:[%s33014_s2 + $0x1158] ss:$20 sps:$4 sm:$0xff]   ;;  %v2266_v28 = vsel %vm428_vm5, %v22807_v37, %v22808_v24 }
 0x473   : > { %8985 = vmatprep.subr.bf16.mxu1 %v23468_v3  ;;  %v23516_v3 = vld [vmem:[%s33014_s2 + $0x118c] ss:$20 sps:$4 sm:$0xff]  }
 0x475   : > { %8494 = vmatpush1.bf16.msra.mxu0 %v23463_v17  ;;  %v2312_v17 = vmax.f32 %v26883_v52, %v2266_v28  ;;  %v23556_v28 = vld [vmem:[%s33014_s2 + $0x12a0] ss:$20 sps:$4 sm:$0xff]  }
 0x476   : > { %8986 = vmatpush1.bf16.msra.mxu1 %v23466_v20  ;;  %8495 = vmatprep.subr.bf16.mxu0 %v23471_v48  ;;  %v28150_v20 = vpack.c.bf16 %v2309_v39, %v2309_v39  ;;  %v23514_v48 = vld [vmem:[%s33014_s2 + $0x1188] ss:$20 sps:$4 sm:$0xff]   ;;  %v23561_v39 = vld [vmem:[%s33014_s2 + $0x12c4] ss:$20 sps:$4 sm:$0xff]  }
 0x477   : > { %8987 = vmatprep.subr.bf16.mxu1 %v23474_v57  ;;  %v23519_v57 = vld [vmem:[%s33014_s2 + $0x11ac] ss:$20 sps:$4 sm:$0xff]   ;;  %v28159_v52 = vpack.c.bf16 %v2312_v17, %v2312_v17 }
 0x478   : > { %v23567_v17 = vld [vmem:[%s33014_s2 + $0x12ec] ss:$20 sps:$4 sm:$0xff]  }
 0x479   : > { %8496 = vmatpush1.bf16.msra.mxu0 %v23469_v45  ;;  %v23522_v45 = vld [vmem:[%s33014_s2 + $0x11b4] ss:$20 sps:$4 sm:$0xff]  }
 0x47a   : > { %8988 = vmatpush1.bf16.msra.mxu1 %v23472_v43  ;;  %8497 = vmatprep.subr.bf16.mxu0 %v23477_v23  ;;  %v23517_v43 = vld [vmem:[%s33014_s2 + $0x11a8] ss:$20 sps:$4 sm:$0xff]   ;;  %v23520_v23 = vld [vmem:[%s33014_s2 + $0x11b0] ss:$20 sps:$4 sm:$0xff]  }
 0x47b   : > { %8989 = vmatprep.subr.bf16.mxu1 %v23480_v35  ;;  %v23525_v35 = vld [vmem:[%s33014_s2 + $0x11d4] ss:$20 sps:$4 sm:$0xff]  }
 0x47d   : > { %8498 = vmatpush1.bf16.msra.mxu0 %v23475_v55  ;;  %v23528_v55 = vld [vmem:[%s33014_s2 + $0x11dc] ss:$20 sps:$4 sm:$0xff]  }
 0x47e   : > { %8990 = vmatpush1.bf16.msra.mxu1 %v23478_v21  ;;  %8499 = vmatprep.subr.bf16.mxu0 %v23483_v2  ;;  %v23523_v21 = vld [vmem:[%s33014_s2 + $0x11d0] ss:$20 sps:$4 sm:$0xff]   ;;  %v23526_v2 = vld [vmem:[%s33014_s2 + $0x11d8] ss:$20 sps:$4 sm:$0xff]  }
 0x47f   : > { %8991 = vmatprep.subr.bf16.mxu1 %v23486_v9  ;;  %v23531_v9 = vld [vmem:[%s33014_s2 + $0x11fc] ss:$20 sps:$4 sm:$0xff]  }
 0x481   : > { %8500 = vmatpush1.bf16.msra.mxu0 %v23481_v38  ;;  %v23534_v38 = vld [vmem:[%s33014_s2 + $0x1204] ss:$20 sps:$4 sm:$0xff]  }
 0x482   : > { %8992 = vmatpush1.bf16.msra.mxu1 %v23484_v18  ;;  %8501 = vmatprep.subr.bf16.mxu0 %v23489_v60  ;;  %v23529_v18 = vld [vmem:[%s33014_s2 + $0x11f8] ss:$20 sps:$4 sm:$0xff]   ;;  %v23532_v60 = vld [vmem:[%s33014_s2 + $0x1200] ss:$20 sps:$4 sm:$0xff]  }
 0x483   : > { %8993 = vmatprep.subr.bf16.mxu1 %v23492_v54  ;;  %v23537_v54 = vld [vmem:[%s33014_s2 + $0x1224] ss:$20 sps:$4 sm:$0xff]  }
 0x485   : > { %8502 = vmatpush1.bf16.msra.mxu0 %v23487_v33  ;;  %v23540_v33 = vld [vmem:[%s33014_s2 + $0x122c] ss:$20 sps:$4 sm:$0xff]  }
 0x486   : > { %8994 = vmatpush1.bf16.msra.mxu1 %v23490_v51  ;;  %8503 = vmatprep.subr.bf16.mxu0 %v23495_v49  ;;  %v23535_v51 = vld [vmem:[%s33014_s2 + $0x1220] ss:$20 sps:$4 sm:$0xff]   ;;  %v23538_v49 = vld [vmem:[%s33014_s2 + $0x1228] ss:$20 sps:$4 sm:$0xff]  }
 0x487   : > { %8995 = vmatprep.subr.bf16.mxu1 %v23498_v26  ;;  %v23543_v26 = vld [vmem:[%s33014_s2 + $0x124c] ss:$20 sps:$4 sm:$0xff]  }
 0x489   : > { %8504 = vmatpush1.bf16.msra.mxu0 %v23493_v12  ;;  %v23546_v12 = vld [vmem:[%s33014_s2 + $0x1254] ss:$20 sps:$4 sm:$0xff]  }
 0x48a   : > { %8996 = vmatpush1.bf16.msra.mxu1 %v23496_v5  ;;  %8505 = vmatprep.subr.bf16.mxu0 %v23501_v7  ;;  %v23541_v5 = vld [vmem:[%s33014_s2 + $0x1248] ss:$20 sps:$4 sm:$0xff]   ;;  %v23544_v7 = vld [vmem:[%s33014_s2 + $0x1250] ss:$20 sps:$4 sm:$0xff]  }
 0x48b   : > { %8997 = vmatprep.subr.bf16.mxu1 %v23504_v30  ;;  %v23549_v30 = vld [vmem:[%s33014_s2 + $0x1274] ss:$20 sps:$4 sm:$0xff]  }
 0x48d   : > { %8506 = vmatpush1.bf16.msra.mxu0 %v23499_v44  ;;  %v23552_v44 = vld [vmem:[%s33014_s2 + $0x127c] ss:$20 sps:$4 sm:$0xff]  }
 0x48e   : > { %8998 = vmatpush1.bf16.msra.mxu1 %v23502_v1  ;;  %8507 = vmatprep.subr.bf16.mxu0 %v23507_v41  ;;  %v23547_v1 = vld [vmem:[%s33014_s2 + $0x1270] ss:$20 sps:$4 sm:$0xff]   ;;  %v23550_v41 = vld [vmem:[%s33014_s2 + $0x1278] ss:$20 sps:$4 sm:$0xff]  }
 0x48f   : > { %8999 = vmatprep.subr.bf16.mxu1 %v23510_v62  ;;  %v23558_v62 = vld [vmem:[%s33014_s2 + $0x12a4] ss:$20 sps:$4 sm:$0xff]  }
 0x491   : > { %8508 = vmatpush1.bf16.msra.mxu0 %v23505_v19  ;;  %v23553_v19 = vld [vmem:[%s33014_s2 + $0x1298] ss:$20 sps:$4 sm:$0xff]  }
 0x492   : > { %9000 = vmatpush1.bf16.msra.mxu1 %v23508_v8  ;;  %8518 = vmatprep.subr.bf16.mxu0 %v23513_v32  ;;  %v23564_v8 = vld [vmem:[%s33014_s2 + $0x12cc] ss:$20 sps:$4 sm:$0xff]  }
 0x493   : > { %9010 = vmatprep.subr.bf16.mxu1 %v23516_v3  ;;  %v23559_v32 = vld [vmem:[%s33014_s2 + $0x12c0] ss:$20 sps:$4 sm:$0xff]   ;;  %v23562_v3 = vld [vmem:[%s33014_s2 + $0x12c8] ss:$20 sps:$4 sm:$0xff]  }
 0x494   : > { %8510 = vmatmul.mubr.bf16.vlgmr.msra.gmra.mrb[12].mxu0 %v28150_v20 }
 0x495   : > { %9002 = vmatmul.mubr.bf16.vlgmr.msra.gmra.mrb[16].mxu1 %v28150_v20  ;;  %8519 = vmatpush1.bf16.msra.mxu0 %v23511_v50  ;;  %v23570_v50 = vld [vmem:[%s33014_s2 + $0x12f4] ss:$20 sps:$4 sm:$0xff]  }
 0x496   : > { %8550 = vmatprep.mubr.bf16.mxu0 %v28159_v52  ;;  %9011 = vmatpush1.bf16.msra.mxu1 %v23514_v48  ;;  %v23565_v48 = vld [vmem:[%s33014_s2 + $0x12e8] ss:$20 sps:$4 sm:$0xff]  }
 0x497   : > { %9042 = vmatprep.mubr.bf16.mxu1 %v28159_v52  ;;  %8520 = vmatprep.subr.bf16.mxu0 %v23519_v57  ;;  %v23568_v57 = vld [vmem:[%s33014_s2 + $0x12f0] ss:$20 sps:$4 sm:$0xff]  }
 0x498   : > { %9012 = vmatprep.subr.bf16.mxu1 %v23522_v45  ;;  %v23573_v45 = vld [vmem:[%s33014_s2 + $0x1314] ss:$20 sps:$4 sm:$0xff]  }
 0x499   : > { %8521 = vmatpush1.bf16.msra.mxu0 %v23517_v43  ;;  %v23576_v43 = vld [vmem:[%s33014_s2 + $0x131c] ss:$20 sps:$4 sm:$0xff]  }
 0x49a   : > { %9013 = vmatpush1.bf16.msra.mxu1 %v23520_v23  ;;  %8522 = vmatprep.subr.bf16.mxu0 %v23525_v35  ;;  %v23571_v23 = vld [vmem:[%s33014_s2 + $0x1310] ss:$20 sps:$4 sm:$0xff]   ;;  %v23574_v35 = vld [vmem:[%s33014_s2 + $0x1318] ss:$20 sps:$4 sm:$0xff]  }
 0x49b   : > { %9014 = vmatprep.subr.bf16.mxu1 %v23528_v55  ;;  %v23579_v55 = vld [vmem:[%s33014_s2 + $0x133c] ss:$20 sps:$4 sm:$0xff]  }
 0x49d   : > { %8523 = vmatpush1.bf16.msra.mxu0 %v23523_v21  ;;  %v23582_v21 = vld [vmem:[%s33014_s2 + $0x1344] ss:$20 sps:$4 sm:$0xff]  }
 0x49e   : > { %9015 = vmatpush1.bf16.msra.mxu1 %v23526_v2  ;;  %8524 = vmatprep.subr.bf16.mxu0 %v23531_v9  ;;  %v23577_v2 = vld [vmem:[%s33014_s2 + $0x1338] ss:$20 sps:$4 sm:$0xff]   ;;  %v23580_v9 = vld [vmem:[%s33014_s2 + $0x1340] ss:$20 sps:$4 sm:$0xff]  }
 0x49f   : > { %9016 = vmatprep.subr.bf16.mxu1 %v23534_v38  ;;  %v23585_v38 = vld [vmem:[%s33014_s2 + $0x1364] ss:$20 sps:$4 sm:$0xff]  }
 0x4a1   : > { %8525 = vmatpush1.bf16.msra.mxu0 %v23529_v18  ;;  %v23588_v18 = vld [vmem:[%s33014_s2 + $0x136c] ss:$20 sps:$4 sm:$0xff]  }
 0x4a2   : > { %9017 = vmatpush1.bf16.msra.mxu1 %v23532_v60  ;;  %8526 = vmatprep.subr.bf16.mxu0 %v23537_v54  ;;  %v23583_v60 = vld [vmem:[%s33014_s2 + $0x1360] ss:$20 sps:$4 sm:$0xff]   ;;  %v23586_v54 = vld [vmem:[%s33014_s2 + $0x1368] ss:$20 sps:$4 sm:$0xff]  }
 0x4a3   : > { %9018 = vmatprep.subr.bf16.mxu1 %v23540_v33  ;;  %v23591_v33 = vld [vmem:[%s33014_s2 + $0x138c] ss:$20 sps:$4 sm:$0xff]  }
 0x4a5   : > { %8527 = vmatpush1.bf16.msra.mxu0 %v23535_v51  ;;  %v23594_v51 = vld [vmem:[%s33014_s2 + $0x1394] ss:$20 sps:$4 sm:$0xff]  }
 0x4a6   : > { %9019 = vmatpush1.bf16.msra.mxu1 %v23538_v49  ;;  %8528 = vmatprep.subr.bf16.mxu0 %v23543_v26  ;;  %v23589_v49 = vld [vmem:[%s33014_s2 + $0x1388] ss:$20 sps:$4 sm:$0xff]   ;;  %v28314_v26 = vpop.permute.xlu1 %22815 }
 0x4a7   : > { %9020 = vmatprep.subr.bf16.mxu1 %v23546_v12  ;;  %v23592_v12 = vld [vmem:[%s33014_s2 + $0x1390] ss:$20 sps:$4 sm:$0xff]  }
 0x4a9   : > { %8529 = vmatpush1.bf16.msra.mxu0 %v23541_v5  ;;  %v23597_v5 = vld [vmem:[%s33014_s2 + $0x13b4] ss:$20 sps:$4 sm:$0xff]  }
 0x4aa   : > { %9021 = vmatpush1.bf16.msra.mxu1 %v23544_v7  ;;  %8530 = vmatprep.subr.bf16.mxu0 %v23549_v30  ;;  %v23600_v7 = vld [vmem:[%s33014_s2 + $0x13bc] ss:$20 sps:$4 sm:$0xff]   ;;  %v22818_v30 = vunpack.i.h.bf16 %v28314_v26 }
 0x4ab   : > { %9022 = vmatprep.subr.bf16.mxu1 %v23552_v44  ;;  %v22817_v44 = vunpack.i.l.bf16 %v28314_v26 }
 0x4ad   : > { %8531 = vmatpush1.bf16.msra.mxu0 %v23547_v1  ;;  %v23595_v1 = vld [vmem:[%s33014_s2 + $0x13b0] ss:$20 sps:$4 sm:$0xff]  }
 0x4ae   : > { %9023 = vmatpush1.bf16.msra.mxu1 %v23550_v41  ;;  %8532 = vmatprep.subr.bf16.mxu0 %v23555_v40  ;;  %v23598_v41 = vld [vmem:[%s33014_s2 + $0x13b8] ss:$20 sps:$4 sm:$0xff]   ;;  %v23603_v40 = vld [vmem:[%s33014_s2 + $0x13dc] ss:$20 sps:$4 sm:$0xff]  }
 0x4af   : > { %9024 = vmatprep.subr.bf16.mxu1 %v23558_v62  ;;  %v2265_v62 = vsel %vm428_vm5, %v22798_v15, %v22807_v37  ;;  %v23604_v15 = vld [vmem:[%s33014_s2 + $0x13e0] ss:$20 sps:$4 sm:$0xff]   ;;  %v23609_v37 = vld [vmem:[%s33014_s2 + $0x1404] ss:$20 sps:$4 sm:$0xff]  }
 0x4b0   : > { %v2311_v58 = vmax.f32 %v26861_v11, %v2265_v62  ;;  %v23607_v11 = vld [vmem:[%s33014_s2 + $0x1400] ss:$20 sps:$4 sm:$0xff]   ;;  %v23651_v62 = vld [vmem:[%s33014_s2 + $0x151c] ss:$20 sps:$4 sm:$0xff]  }
 0x4b1   : > { %8533 = vmatpush1.bf16.msra.mxu0 %v23553_v19  ;;  %v23606_v19 = vld [vmem:[%s33014_s2 + $0x13e4] ss:$20 sps:$4 sm:$0xff]  }
 0x4b2   : > { %9025 = vmatpush1.bf16.msra.mxu1 %v23556_v28  ;;  %8534 = vmatprep.subr.bf16.mxu0 %v23561_v39  ;;  %v23601_v28 = vld [vmem:[%s33014_s2 + $0x13d8] ss:$20 sps:$4 sm:$0xff]   ;;  %v2268_v39 = vsel %vm428_vm5, %v22817_v44, %v22818_v30 }
 0x4b3   : > { %9026 = vmatprep.subr.bf16.mxu1 %v23564_v8  ;;  %v23612_v8 = vld [vmem:[%s33014_s2 + $0x140c] ss:$20 sps:$4 sm:$0xff]  }
 0x4b5   : > { %8535 = vmatpush1.bf16.msra.mxu0 %v23559_v32  ;;  %v2314_v32 = vmax.f32 %v26907_v47, %v2268_v39  ;;  %v23652_v39 = vld [vmem:[%s33014_s2 + $0x1520] ss:$20 sps:$4 sm:$0xff]  }
 0x4b6   : > { %9027 = vmatpush1.bf16.msra.mxu1 %v23562_v3  ;;  %8536 = vmatprep.subr.bf16.mxu0 %v23567_v17  ;;  %v28366_v3 = vpack.c.bf16 %v2311_v58, %v2311_v58  ;;  %v23610_v17 = vld [vmem:[%s33014_s2 + $0x1408] ss:$20 sps:$4 sm:$0xff]   ;;  %v23657_v58 = vld [vmem:[%s33014_s2 + $0x1544] ss:$20 sps:$4 sm:$0xff]  }
 0x4b7   : > { %9028 = vmatprep.subr.bf16.mxu1 %v23570_v50  ;;  %v23615_v50 = vld [vmem:[%s33014_s2 + $0x142c] ss:$20 sps:$4 sm:$0xff]   ;;  %v28375_v47 = vpack.c.bf16 %v2314_v32, %v2314_v32 }
 0x4b8   : > { %v23663_v32 = vld [vmem:[%s33014_s2 + $0x156c] ss:$20 sps:$4 sm:$0xff]  }
 0x4b9   : > { %8537 = vmatpush1.bf16.msra.mxu0 %v23565_v48  ;;  %v23618_v48 = vld [vmem:[%s33014_s2 + $0x1434] ss:$20 sps:$4 sm:$0xff]  }
 0x4ba   : > { %9029 = vmatpush1.bf16.msra.mxu1 %v23568_v57  ;;  %8538 = vmatprep.subr.bf16.mxu0 %v23573_v45  ;;  %v23613_v57 = vld [vmem:[%s33014_s2 + $0x1428] ss:$20 sps:$4 sm:$0xff]   ;;  %v23616_v45 = vld [vmem:[%s33014_s2 + $0x1430] ss:$20 sps:$4 sm:$0xff]  }
 0x4bb   : > { %9030 = vmatprep.subr.bf16.mxu1 %v23576_v43  ;;  %v23621_v43 = vld [vmem:[%s33014_s2 + $0x1454] ss:$20 sps:$4 sm:$0xff]  }
 0x4bd   : > { %8539 = vmatpush1.bf16.msra.mxu0 %v23571_v23  ;;  %v23624_v23 = vld [vmem:[%s33014_s2 + $0x145c] ss:$20 sps:$4 sm:$0xff]  }
 0x4be   : > { %9031 = vmatpush1.bf16.msra.mxu1 %v23574_v35  ;;  %8540 = vmatprep.subr.bf16.mxu0 %v23579_v55  ;;  %v23619_v35 = vld [vmem:[%s33014_s2 + $0x1450] ss:$20 sps:$4 sm:$0xff]   ;;  %v23622_v55 = vld [vmem:[%s33014_s2 + $0x1458] ss:$20 sps:$4 sm:$0xff]  }
 0x4bf   : > { %9032 = vmatprep.subr.bf16.mxu1 %v23582_v21  ;;  %v23627_v21 = vld [vmem:[%s33014_s2 + $0x147c] ss:$20 sps:$4 sm:$0xff]  }
 0x4c1   : > { %8541 = vmatpush1.bf16.msra.mxu0 %v23577_v2  ;;  %v23630_v2 = vld [vmem:[%s33014_s2 + $0x1484] ss:$20 sps:$4 sm:$0xff]  }
 0x4c2   : > { %9033 = vmatpush1.bf16.msra.mxu1 %v23580_v9  ;;  %8542 = vmatprep.subr.bf16.mxu0 %v23585_v38  ;;  %v23625_v9 = vld [vmem:[%s33014_s2 + $0x1478] ss:$20 sps:$4 sm:$0xff]   ;;  %v23628_v38 = vld [vmem:[%s33014_s2 + $0x1480] ss:$20 sps:$4 sm:$0xff]  }
 0x4c3   : > { %9034 = vmatprep.subr.bf16.mxu1 %v23588_v18  ;;  %v23633_v18 = vld [vmem:[%s33014_s2 + $0x14a4] ss:$20 sps:$4 sm:$0xff]  }
 0x4c5   : > { %8543 = vmatpush1.bf16.msra.mxu0 %v23583_v60  ;;  %v23636_v60 = vld [vmem:[%s33014_s2 + $0x14ac] ss:$20 sps:$4 sm:$0xff]  }
 0x4c6   : > { %9035 = vmatpush1.bf16.msra.mxu1 %v23586_v54  ;;  %8544 = vmatprep.subr.bf16.mxu0 %v23591_v33  ;;  %v23631_v54 = vld [vmem:[%s33014_s2 + $0x14a0] ss:$20 sps:$4 sm:$0xff]   ;;  %v23634_v33 = vld [vmem:[%s33014_s2 + $0x14a8] ss:$20 sps:$4 sm:$0xff]  }
 0x4c7   : > { %9036 = vmatprep.subr.bf16.mxu1 %v23594_v51  ;;  %v23639_v51 = vld [vmem:[%s33014_s2 + $0x14cc] ss:$20 sps:$4 sm:$0xff]  }
 0x4c9   : > { %8545 = vmatpush1.bf16.msra.mxu0 %v23589_v49  ;;  %v23642_v49 = vld [vmem:[%s33014_s2 + $0x14d4] ss:$20 sps:$4 sm:$0xff]  }
 0x4ca   : > { %9037 = vmatpush1.bf16.msra.mxu1 %v23592_v12  ;;  %8546 = vmatprep.subr.bf16.mxu0 %v23597_v5  ;;  %v23637_v12 = vld [vmem:[%s33014_s2 + $0x14c8] ss:$20 sps:$4 sm:$0xff]   ;;  %v23640_v5 = vld [vmem:[%s33014_s2 + $0x14d0] ss:$20 sps:$4 sm:$0xff]  }
 0x4cb   : > { %9038 = vmatprep.subr.bf16.mxu1 %v23600_v7  ;;  %v23645_v7 = vld [vmem:[%s33014_s2 + $0x14f4] ss:$20 sps:$4 sm:$0xff]  }
 0x4cd   : > { %8547 = vmatpush1.bf16.msra.mxu0 %v23595_v1  ;;  %v23648_v1 = vld [vmem:[%s33014_s2 + $0x14fc] ss:$20 sps:$4 sm:$0xff]  }
 0x4ce   : > { %9039 = vmatpush1.bf16.msra.mxu1 %v23598_v41  ;;  %8548 = vmatprep.subr.bf16.mxu0 %v23603_v40  ;;  %v23643_v41 = vld [vmem:[%s33014_s2 + $0x14f0] ss:$20 sps:$4 sm:$0xff]   ;;  %v23646_v40 = vld [vmem:[%s33014_s2 + $0x14f8] ss:$20 sps:$4 sm:$0xff]  }
 0x4cf   : > { %9040 = vmatprep.subr.bf16.mxu1 %v23606_v19  ;;  %v23654_v19 = vld [vmem:[%s33014_s2 + $0x1524] ss:$20 sps:$4 sm:$0xff]  }
 0x4d1   : > { %8549 = vmatpush1.bf16.msra.mxu0 %v23601_v28  ;;  %v23649_v28 = vld [vmem:[%s33014_s2 + $0x1518] ss:$20 sps:$4 sm:$0xff]  }
 0x4d2   : > { %9041 = vmatpush1.bf16.msra.mxu1 %v23604_v15  ;;  %8559 = vmatprep.subr.bf16.mxu0 %v23609_v37  ;;  %v23660_v15 = vld [vmem:[%s33014_s2 + $0x154c] ss:$20 sps:$4 sm:$0xff]  }
 0x4d3   : > { %9051 = vmatprep.subr.bf16.mxu1 %v23612_v8  ;;  %v23655_v37 = vld [vmem:[%s33014_s2 + $0x1540] ss:$20 sps:$4 sm:$0xff]   ;;  %v23658_v8 = vld [vmem:[%s33014_s2 + $0x1548] ss:$20 sps:$4 sm:$0xff]  }
 0x4d4   : > { %8551 = vmatmul.mubr.bf16.vlgmr.msra.gmra.mrb[12].mxu0 %v28366_v3 }
 0x4d5   : > { %9043 = vmatmul.mubr.bf16.vlgmr.msra.gmra.mrb[16].mxu1 %v28366_v3  ;;  %8560 = vmatpush1.bf16.msra.mxu0 %v23607_v11  ;;  %v23666_v11 = vld [vmem:[%s33014_s2 + $0x1574] ss:$20 sps:$4 sm:$0xff]  }
 0x4d6   : > { %8591 = vmatprep.mubr.bf16.mxu0 %v28375_v47  ;;  %9052 = vmatpush1.bf16.msra.mxu1 %v23610_v17  ;;  %v23661_v17 = vld [vmem:[%s33014_s2 + $0x1568] ss:$20 sps:$4 sm:$0xff]  }
 0x4d7   : > { %9083 = vmatprep.mubr.bf16.mxu1 %v28375_v47  ;;  %8561 = vmatprep.subr.bf16.mxu0 %v23615_v50  ;;  %v23664_v50 = vld [vmem:[%s33014_s2 + $0x1570] ss:$20 sps:$4 sm:$0xff]  }
 0x4d8   : > { %9053 = vmatprep.subr.bf16.mxu1 %v23618_v48  ;;  %v23669_v48 = vld [vmem:[%s33014_s2 + $0x1594] ss:$20 sps:$4 sm:$0xff]  }
 0x4d9   : > { %8562 = vmatpush1.bf16.msra.mxu0 %v23613_v57  ;;  %v23672_v57 = vld [vmem:[%s33014_s2 + $0x159c] ss:$20 sps:$4 sm:$0xff]  }
 0x4da   : > { %9054 = vmatpush1.bf16.msra.mxu1 %v23616_v45  ;;  %8563 = vmatprep.subr.bf16.mxu0 %v23621_v43  ;;  %v23667_v45 = vld [vmem:[%s33014_s2 + $0x1590] ss:$20 sps:$4 sm:$0xff]   ;;  %v23670_v43 = vld [vmem:[%s33014_s2 + $0x1598] ss:$20 sps:$4 sm:$0xff]  }
 0x4db   : > { %9055 = vmatprep.subr.bf16.mxu1 %v23624_v23  ;;  %v23675_v23 = vld [vmem:[%s33014_s2 + $0x15bc] ss:$20 sps:$4 sm:$0xff]  }
 0x4dd   : > { %8564 = vmatpush1.bf16.msra.mxu0 %v23619_v35  ;;  %v23678_v35 = vld [vmem:[%s33014_s2 + $0x15c4] ss:$20 sps:$4 sm:$0xff]  }
 0x4de   : > { %9056 = vmatpush1.bf16.msra.mxu1 %v23622_v55  ;;  %8565 = vmatprep.subr.bf16.mxu0 %v23627_v21  ;;  %v23673_v55 = vld [vmem:[%s33014_s2 + $0x15b8] ss:$20 sps:$4 sm:$0xff]   ;;  %v23676_v21 = vld [vmem:[%s33014_s2 + $0x15c0] ss:$20 sps:$4 sm:$0xff]  }
 0x4df   : > { %9057 = vmatprep.subr.bf16.mxu1 %v23630_v2  ;;  %v23681_v2 = vld [vmem:[%s33014_s2 + $0x15e4] ss:$20 sps:$4 sm:$0xff]  }
 0x4e1   : > { %8566 = vmatpush1.bf16.msra.mxu0 %v23625_v9  ;;  %v23684_v9 = vld [vmem:[%s33014_s2 + $0x15ec] ss:$20 sps:$4 sm:$0xff]  }
 0x4e2   : > { %9058 = vmatpush1.bf16.msra.mxu1 %v23628_v38  ;;  %8567 = vmatprep.subr.bf16.mxu0 %v23633_v18  ;;  %v23679_v38 = vld [vmem:[%s33014_s2 + $0x15e0] ss:$20 sps:$4 sm:$0xff]   ;;  %v23682_v18 = vld [vmem:[%s33014_s2 + $0x15e8] ss:$20 sps:$4 sm:$0xff]  }
 0x4e3   : > { %9059 = vmatprep.subr.bf16.mxu1 %v23636_v60  ;;  %v23687_v60 = vld [vmem:[%s33014_s2 + $0x160c] ss:$20 sps:$4 sm:$0xff]  }
 0x4e5   : > { %8568 = vmatpush1.bf16.msra.mxu0 %v23631_v54  ;;  %v23690_v54 = vld [vmem:[%s33014_s2 + $0x1614] ss:$20 sps:$4 sm:$0xff]  }
 0x4e6   : > { %9060 = vmatpush1.bf16.msra.mxu1 %v23634_v33  ;;  %8569 = vmatprep.subr.bf16.mxu0 %v23639_v51  ;;  %v23685_v33 = vld [vmem:[%s33014_s2 + $0x1608] ss:$20 sps:$4 sm:$0xff]   ;;  %v28530_v51 = vpop.permute.xlu1 %22825 }
 0x4e7   : > { %9061 = vmatprep.subr.bf16.mxu1 %v23642_v49  ;;  %v23688_v49 = vld [vmem:[%s33014_s2 + $0x1610] ss:$20 sps:$4 sm:$0xff]  }
 0x4e9   : > { %8570 = vmatpush1.bf16.msra.mxu0 %v23637_v12  ;;  %v23693_v12 = vld [vmem:[%s33014_s2 + $0x1634] ss:$20 sps:$4 sm:$0xff]  }
 0x4ea   : > { %9062 = vmatpush1.bf16.msra.mxu1 %v23640_v5  ;;  %8571 = vmatprep.subr.bf16.mxu0 %v23645_v7  ;;  %v23696_v5 = vld [vmem:[%s33014_s2 + $0x163c] ss:$20 sps:$4 sm:$0xff]   ;;  %v22828_v7 = vunpack.i.h.bf16 %v28530_v51 }
 0x4eb   : > { %9063 = vmatprep.subr.bf16.mxu1 %v23648_v1  ;;  %v22827_v1 = vunpack.i.l.bf16 %v28530_v51  ;;  %v23892_v51 = vld [vmem:[%s33014_s2 + $0x1b60] ss:$20 sps:$4 sm:$0xff]  }
 0x4ed   : > { %8572 = vmatpush1.bf16.msra.mxu0 %v23643_v41  ;;  %v23691_v41 = vld [vmem:[%s33014_s2 + $0x1630] ss:$20 sps:$4 sm:$0xff]  }
 0x4ee   : > { %9064 = vmatpush1.bf16.msra.mxu1 %v23646_v40  ;;  %8573 = vmatprep.subr.bf16.mxu0 %v23651_v62  ;;  %v23694_v40 = vld [vmem:[%s33014_s2 + $0x1638] ss:$20 sps:$4 sm:$0xff]   ;;  %v23699_v62 = vld [vmem:[%s33014_s2 + $0x165c] ss:$20 sps:$4 sm:$0xff]  }
 0x4ef   : > { %9065 = vmatprep.subr.bf16.mxu1 %v23654_v19  ;;  %v2267_v19 = vsel %vm428_vm5, %v22808_v24, %v22817_v44  ;;  %v23700_v24 = vld [vmem:[%s33014_s2 + $0x1660] ss:$20 sps:$4 sm:$0xff]   ;;  %v23705_v44 = vld [vmem:[%s33014_s2 + $0x1684] ss:$20 sps:$4 sm:$0xff]  }
 0x4f0   : > { %v2313_v36 = vmax.f32 %v26887_v53, %v2267_v19  ;;  %v23703_v53 = vld [vmem:[%s33014_s2 + $0x1680] ss:$20 sps:$4 sm:$0xff]   ;;  %v23747_v19 = vld [vmem:[%s33014_s2 + $0x179c] ss:$20 sps:$4 sm:$0xff]  }
 0x4f1   : > { %8574 = vmatpush1.bf16.msra.mxu0 %v23649_v28  ;;  %v23702_v28 = vld [vmem:[%s33014_s2 + $0x1664] ss:$20 sps:$4 sm:$0xff]  }
 0x4f2   : > { %9066 = vmatpush1.bf16.msra.mxu1 %v23652_v39  ;;  %8575 = vmatprep.subr.bf16.mxu0 %v23657_v58  ;;  %v23697_v39 = vld [vmem:[%s33014_s2 + $0x1658] ss:$20 sps:$4 sm:$0xff]   ;;  %v2270_v58 = vsel %vm428_vm5, %v22827_v1, %v22828_v7 }
 0x4f3   : > { %9067 = vmatprep.subr.bf16.mxu1 %v23660_v15  ;;  %v23708_v15 = vld [vmem:[%s33014_s2 + $0x168c] ss:$20 sps:$4 sm:$0xff]  }
 0x4f5   : > { %8576 = vmatpush1.bf16.msra.mxu0 %v23655_v37  ;;  %v2316_v37 = vmax.f32 %v26932_v27, %v2270_v58  ;;  %v23748_v58 = vld [vmem:[%s33014_s2 + $0x17a0] ss:$20 sps:$4 sm:$0xff]  }
 0x4f6   : > { %9068 = vmatpush1.bf16.msra.mxu1 %v23658_v8  ;;  %8577 = vmatprep.subr.bf16.mxu0 %v23663_v32  ;;  %v28582_v8 = vpack.c.bf16 %v2313_v36, %v2313_v36  ;;  %v23706_v32 = vld [vmem:[%s33014_s2 + $0x1688] ss:$20 sps:$4 sm:$0xff]   ;;  %v23753_v36 = vld [vmem:[%s33014_s2 + $0x17c4] ss:$20 sps:$4 sm:$0xff]  }
 0x4f7   : > { %9069 = vmatprep.subr.bf16.mxu1 %v23666_v11  ;;  %v23711_v11 = vld [vmem:[%s33014_s2 + $0x16ac] ss:$20 sps:$4 sm:$0xff]   ;;  %v28591_v27 = vpack.c.bf16 %v2316_v37, %v2316_v37 }
 0x4f8   : > { %v23759_v37 = vld [vmem:[%s33014_s2 + $0x17ec] ss:$20 sps:$4 sm:$0xff]  }
 0x4f9   : > { %8578 = vmatpush1.bf16.msra.mxu0 %v23661_v17  ;;  %v23714_v17 = vld [vmem:[%s33014_s2 + $0x16b4] ss:$20 sps:$4 sm:$0xff]  }
 0x4fa   : > { %9070 = vmatpush1.bf16.msra.mxu1 %v23664_v50  ;;  %8579 = vmatprep.subr.bf16.mxu0 %v23669_v48  ;;  %v23709_v50 = vld [vmem:[%s33014_s2 + $0x16a8] ss:$20 sps:$4 sm:$0xff]   ;;  %v23712_v48 = vld [vmem:[%s33014_s2 + $0x16b0] ss:$20 sps:$4 sm:$0xff]  }
 0x4fb   : > { %9071 = vmatprep.subr.bf16.mxu1 %v23672_v57  ;;  %v23717_v57 = vld [vmem:[%s33014_s2 + $0x16d4] ss:$20 sps:$4 sm:$0xff]  }
 0x4fd   : > { %8580 = vmatpush1.bf16.msra.mxu0 %v23667_v45  ;;  %v23720_v45 = vld [vmem:[%s33014_s2 + $0x16dc] ss:$20 sps:$4 sm:$0xff]  }
 0x4fe   : > { %9072 = vmatpush1.bf16.msra.mxu1 %v23670_v43  ;;  %8581 = vmatprep.subr.bf16.mxu0 %v23675_v23  ;;  %v23715_v43 = vld [vmem:[%s33014_s2 + $0x16d0] ss:$20 sps:$4 sm:$0xff]   ;;  %v23718_v23 = vld [vmem:[%s33014_s2 + $0x16d8] ss:$20 sps:$4 sm:$0xff]  }
 0x4ff   : > { %9073 = vmatprep.subr.bf16.mxu1 %v23678_v35  ;;  %v23723_v35 = vld [vmem:[%s33014_s2 + $0x16fc] ss:$20 sps:$4 sm:$0xff]  }
 0x501   : > { %8582 = vmatpush1.bf16.msra.mxu0 %v23673_v55  ;;  %v23726_v55 = vld [vmem:[%s33014_s2 + $0x1704] ss:$20 sps:$4 sm:$0xff]  }
 0x502   : > { %9074 = vmatpush1.bf16.msra.mxu1 %v23676_v21  ;;  %8583 = vmatprep.subr.bf16.mxu0 %v23681_v2  ;;  %v23721_v21 = vld [vmem:[%s33014_s2 + $0x16f8] ss:$20 sps:$4 sm:$0xff]   ;;  %v23724_v2 = vld [vmem:[%s33014_s2 + $0x1700] ss:$20 sps:$4 sm:$0xff]  }
 0x503   : > { %9075 = vmatprep.subr.bf16.mxu1 %v23684_v9  ;;  %v23729_v9 = vld [vmem:[%s33014_s2 + $0x1724] ss:$20 sps:$4 sm:$0xff]  }
 0x505   : > { %8584 = vmatpush1.bf16.msra.mxu0 %v23679_v38  ;;  %v23732_v38 = vld [vmem:[%s33014_s2 + $0x172c] ss:$20 sps:$4 sm:$0xff]  }
 0x506   : > { %9076 = vmatpush1.bf16.msra.mxu1 %v23682_v18  ;;  %8585 = vmatprep.subr.bf16.mxu0 %v23687_v60  ;;  %v23727_v18 = vld [vmem:[%s33014_s2 + $0x1720] ss:$20 sps:$4 sm:$0xff]   ;;  %v23730_v60 = vld [vmem:[%s33014_s2 + $0x1728] ss:$20 sps:$4 sm:$0xff]  }
 0x507   : > { %9077 = vmatprep.subr.bf16.mxu1 %v23690_v54  ;;  %v23735_v54 = vld [vmem:[%s33014_s2 + $0x174c] ss:$20 sps:$4 sm:$0xff]  }
 0x509   : > { %8586 = vmatpush1.bf16.msra.mxu0 %v23685_v33  ;;  %v23738_v33 = vld [vmem:[%s33014_s2 + $0x1754] ss:$20 sps:$4 sm:$0xff]  }
 0x50a   : > { %9078 = vmatpush1.bf16.msra.mxu1 %v23688_v49  ;;  %8587 = vmatprep.subr.bf16.mxu0 %v23693_v12  ;;  %v23733_v49 = vld [vmem:[%s33014_s2 + $0x1748] ss:$20 sps:$4 sm:$0xff]   ;;  %v23736_v12 = vld [vmem:[%s33014_s2 + $0x1750] ss:$20 sps:$4 sm:$0xff]  }
 0x50b   : > { %9079 = vmatprep.subr.bf16.mxu1 %v23696_v5  ;;  %v23741_v5 = vld [vmem:[%s33014_s2 + $0x1774] ss:$20 sps:$4 sm:$0xff]  }
 0x50d   : > { %8588 = vmatpush1.bf16.msra.mxu0 %v23691_v41  ;;  %v23744_v41 = vld [vmem:[%s33014_s2 + $0x177c] ss:$20 sps:$4 sm:$0xff]  }
 0x50e   : > { %9080 = vmatpush1.bf16.msra.mxu1 %v23694_v40  ;;  %8589 = vmatprep.subr.bf16.mxu0 %v23699_v62  ;;  %v23739_v40 = vld [vmem:[%s33014_s2 + $0x1770] ss:$20 sps:$4 sm:$0xff]   ;;  %v23742_v62 = vld [vmem:[%s33014_s2 + $0x1778] ss:$20 sps:$4 sm:$0xff]  }
 0x50f   : > { %9081 = vmatprep.subr.bf16.mxu1 %v23702_v28  ;;  %v23750_v28 = vld [vmem:[%s33014_s2 + $0x17a4] ss:$20 sps:$4 sm:$0xff]  }
 0x511   : > { %8590 = vmatpush1.bf16.msra.mxu0 %v23697_v39  ;;  %v23745_v39 = vld [vmem:[%s33014_s2 + $0x1798] ss:$20 sps:$4 sm:$0xff]  }
 0x512   : > { %9082 = vmatpush1.bf16.msra.mxu1 %v23700_v24  ;;  %8600 = vmatprep.subr.bf16.mxu0 %v23705_v44  ;;  %v23756_v24 = vld [vmem:[%s33014_s2 + $0x17cc] ss:$20 sps:$4 sm:$0xff]  }
 0x513   : > { %9092 = vmatprep.subr.bf16.mxu1 %v23708_v15  ;;  %v23751_v44 = vld [vmem:[%s33014_s2 + $0x17c0] ss:$20 sps:$4 sm:$0xff]   ;;  %v23754_v15 = vld [vmem:[%s33014_s2 + $0x17c8] ss:$20 sps:$4 sm:$0xff]  }
 0x514   : > { %8592 = vmatmul.mubr.bf16.vlgmr.msra.gmra.mrb[12].mxu0 %v28582_v8 }
 0x515   : > { %9084 = vmatmul.mubr.bf16.vlgmr.msra.gmra.mrb[16].mxu1 %v28582_v8  ;;  %8601 = vmatpush1.bf16.msra.mxu0 %v23703_v53  ;;  %v23762_v53 = vld [vmem:[%s33014_s2 + $0x17f4] ss:$20 sps:$4 sm:$0xff]  }
 0x516   : > { %8632 = vmatprep.mubr.bf16.mxu0 %v28591_v27  ;;  %9093 = vmatpush1.bf16.msra.mxu1 %v23706_v32  ;;  %v23757_v32 = vld [vmem:[%s33014_s2 + $0x17e8] ss:$20 sps:$4 sm:$0xff]  }
 0x517   : > { %9124 = vmatprep.mubr.bf16.mxu1 %v28591_v27  ;;  %8602 = vmatprep.subr.bf16.mxu0 %v23711_v11  ;;  %v23760_v11 = vld [vmem:[%s33014_s2 + $0x17f0] ss:$20 sps:$4 sm:$0xff]  }
 0x518   : > { %9094 = vmatprep.subr.bf16.mxu1 %v23714_v17  ;;  %v23765_v17 = vld [vmem:[%s33014_s2 + $0x1814] ss:$20 sps:$4 sm:$0xff]  }
 0x519   : > { %8603 = vmatpush1.bf16.msra.mxu0 %v23709_v50  ;;  %v23768_v50 = vld [vmem:[%s33014_s2 + $0x181c] ss:$20 sps:$4 sm:$0xff]  }
 0x51a   : > { %9095 = vmatpush1.bf16.msra.mxu1 %v23712_v48  ;;  %8604 = vmatprep.subr.bf16.mxu0 %v23717_v57  ;;  %v23763_v48 = vld [vmem:[%s33014_s2 + $0x1810] ss:$20 sps:$4 sm:$0xff]   ;;  %v23766_v57 = vld [vmem:[%s33014_s2 + $0x1818] ss:$20 sps:$4 sm:$0xff]  }
 0x51b   : > { %9096 = vmatprep.subr.bf16.mxu1 %v23720_v45  ;;  %v23771_v45 = vld [vmem:[%s33014_s2 + $0x183c] ss:$20 sps:$4 sm:$0xff]  }
 0x51d   : > { %8605 = vmatpush1.bf16.msra.mxu0 %v23715_v43  ;;  %v23774_v43 = vld [vmem:[%s33014_s2 + $0x1844] ss:$20 sps:$4 sm:$0xff]  }
 0x51e   : > { %9097 = vmatpush1.bf16.msra.mxu1 %v23718_v23  ;;  %8606 = vmatprep.subr.bf16.mxu0 %v23723_v35  ;;  %v23769_v23 = vld [vmem:[%s33014_s2 + $0x1838] ss:$20 sps:$4 sm:$0xff]   ;;  %v23772_v35 = vld [vmem:[%s33014_s2 + $0x1840] ss:$20 sps:$4 sm:$0xff]  }
 0x51f   : > { %9098 = vmatprep.subr.bf16.mxu1 %v23726_v55  ;;  %v23777_v55 = vld [vmem:[%s33014_s2 + $0x1864] ss:$20 sps:$4 sm:$0xff]  }
 0x521   : > { %8607 = vmatpush1.bf16.msra.mxu0 %v23721_v21  ;;  %v23780_v21 = vld [vmem:[%s33014_s2 + $0x186c] ss:$20 sps:$4 sm:$0xff]  }
 0x522   : > { %9099 = vmatpush1.bf16.msra.mxu1 %v23724_v2  ;;  %8608 = vmatprep.subr.bf16.mxu0 %v23729_v9  ;;  %v23775_v2 = vld [vmem:[%s33014_s2 + $0x1860] ss:$20 sps:$4 sm:$0xff]   ;;  %v23778_v9 = vld [vmem:[%s33014_s2 + $0x1868] ss:$20 sps:$4 sm:$0xff]  }
 0x523   : > { %9100 = vmatprep.subr.bf16.mxu1 %v23732_v38  ;;  %v23783_v38 = vld [vmem:[%s33014_s2 + $0x188c] ss:$20 sps:$4 sm:$0xff]  }
 0x525   : > { %8609 = vmatpush1.bf16.msra.mxu0 %v23727_v18  ;;  %v23786_v18 = vld [vmem:[%s33014_s2 + $0x1894] ss:$20 sps:$4 sm:$0xff]  }
 0x526   : > { %9101 = vmatpush1.bf16.msra.mxu1 %v23730_v60  ;;  %8610 = vmatprep.subr.bf16.mxu0 %v23735_v54  ;;  %v23781_v60 = vld [vmem:[%s33014_s2 + $0x1888] ss:$20 sps:$4 sm:$0xff]   ;;  %v28746_v54 = vpop.permute.xlu1 %22835 }
 0x527   : > { %9102 = vmatprep.subr.bf16.mxu1 %v23738_v33  ;;  %v23784_v33 = vld [vmem:[%s33014_s2 + $0x1890] ss:$20 sps:$4 sm:$0xff]  }
 0x529   : > { %8611 = vmatpush1.bf16.msra.mxu0 %v23733_v49  ;;  %v23789_v49 = vld [vmem:[%s33014_s2 + $0x18b4] ss:$20 sps:$4 sm:$0xff]  }
 0x52a   : > { %9103 = vmatpush1.bf16.msra.mxu1 %v23736_v12  ;;  %8612 = vmatprep.subr.bf16.mxu0 %v23741_v5  ;;  %v23792_v12 = vld [vmem:[%s33014_s2 + $0x18bc] ss:$20 sps:$4 sm:$0xff]   ;;  %v22838_v5 = vunpack.i.h.bf16 %v28746_v54 }
 0x52b   : > { %9104 = vmatprep.subr.bf16.mxu1 %v23744_v41  ;;  %v22837_v41 = vunpack.i.l.bf16 %v28746_v54  ;;  %v23940_v54 = vld [vmem:[%s33014_s2 + $0x1ca0] ss:$20 sps:$4 sm:$0xff]  }
 0x52d   : > { %8613 = vmatpush1.bf16.msra.mxu0 %v23739_v40  ;;  %v23787_v40 = vld [vmem:[%s33014_s2 + $0x18b0] ss:$20 sps:$4 sm:$0xff]  }
 0x52e   : > { %9105 = vmatpush1.bf16.msra.mxu1 %v23742_v62  ;;  %8614 = vmatprep.subr.bf16.mxu0 %v23747_v19  ;;  %v23790_v62 = vld [vmem:[%s33014_s2 + $0x18b8] ss:$20 sps:$4 sm:$0xff]   ;;  %v23795_v19 = vld [vmem:[%s33014_s2 + $0x18dc] ss:$20 sps:$4 sm:$0xff]  }
 0x52f   : > { %9106 = vmatprep.subr.bf16.mxu1 %v23750_v28  ;;  %v2269_v28 = vsel %vm428_vm5, %v22818_v30, %v22827_v1  ;;  %v23796_v30 = vld [vmem:[%s33014_s2 + $0x18e0] ss:$20 sps:$4 sm:$0xff]   ;;  %v23801_v1 = vld [vmem:[%s33014_s2 + $0x1904] ss:$20 sps:$4 sm:$0xff]  }
 0x530   : > { %v2315_v26 = vmax.f32 %v26911_v59, %v2269_v28  ;;  %v23799_v59 = vld [vmem:[%s33014_s2 + $0x1900] ss:$20 sps:$4 sm:$0xff]   ;;  %v23843_v28 = vld [vmem:[%s33014_s2 + $0x1a1c] ss:$20 sps:$4 sm:$0xff]  }
 0x531   : > { %8615 = vmatpush1.bf16.msra.mxu0 %v23745_v39  ;;  %v23798_v39 = vld [vmem:[%s33014_s2 + $0x18e4] ss:$20 sps:$4 sm:$0xff]  }
 0x532   : > { %9107 = vmatpush1.bf16.msra.mxu1 %v23748_v58  ;;  %8616 = vmatprep.subr.bf16.mxu0 %v23753_v36  ;;  %v2272_v58 = vsel %vm428_vm5, %v22837_v41, %v22838_v5  ;;  %v23793_v36 = vld [vmem:[%s33014_s2 + $0x18d8] ss:$20 sps:$4 sm:$0xff]  }
 0x533   : > { %9108 = vmatprep.subr.bf16.mxu1 %v23756_v24  ;;  %v23804_v24 = vld [vmem:[%s33014_s2 + $0x190c] ss:$20 sps:$4 sm:$0xff]  }
 0x535   : > { %8617 = vmatpush1.bf16.msra.mxu0 %v23751_v44  ;;  %v2318_v44 = vmax.f32 %v26959_v14, %v2272_v58  ;;  %v23841_v58 = vld [vmem:[%s33014_s2 + $0x1a18] ss:$20 sps:$4 sm:$0xff]  }
 0x536   : > { %9109 = vmatpush1.bf16.msra.mxu1 %v23754_v15  ;;  %8618 = vmatprep.subr.bf16.mxu0 %v23759_v37  ;;  %v28798_v15 = vpack.c.bf16 %v2315_v26, %v2315_v26  ;;  %v23802_v37 = vld [vmem:[%s33014_s2 + $0x1908] ss:$20 sps:$4 sm:$0xff]   ;;  %v23849_v26 = vld [vmem:[%s33014_s2 + $0x1a44] ss:$20 sps:$4 sm:$0xff]  }
 0x537   : > { %9110 = vmatprep.subr.bf16.mxu1 %v23762_v53  ;;  %v23807_v53 = vld [vmem:[%s33014_s2 + $0x192c] ss:$20 sps:$4 sm:$0xff]   ;;  %v28807_v14 = vpack.c.bf16 %v2318_v44, %v2318_v44 }
 0x538   : > { %v23855_v44 = vld [vmem:[%s33014_s2 + $0x1a6c] ss:$20 sps:$4 sm:$0xff]  }
 0x539   : > { %8619 = vmatpush1.bf16.msra.mxu0 %v23757_v32  ;;  %v23810_v32 = vld [vmem:[%s33014_s2 + $0x1934] ss:$20 sps:$4 sm:$0xff]  }
 0x53a   : > { %9111 = vmatpush1.bf16.msra.mxu1 %v23760_v11  ;;  %8620 = vmatprep.subr.bf16.mxu0 %v23765_v17  ;;  %v23805_v11 = vld [vmem:[%s33014_s2 + $0x1928] ss:$20 sps:$4 sm:$0xff]   ;;  %v23808_v17 = vld [vmem:[%s33014_s2 + $0x1930] ss:$20 sps:$4 sm:$0xff]  }
 0x53b   : > { %9112 = vmatprep.subr.bf16.mxu1 %v23768_v50  ;;  %v23813_v50 = vld [vmem:[%s33014_s2 + $0x1954] ss:$20 sps:$4 sm:$0xff]  }
 0x53d   : > { %8621 = vmatpush1.bf16.msra.mxu0 %v23763_v48  ;;  %v23816_v48 = vld [vmem:[%s33014_s2 + $0x195c] ss:$20 sps:$4 sm:$0xff]  }
 0x53e   : > { %9113 = vmatpush1.bf16.msra.mxu1 %v23766_v57  ;;  %8622 = vmatprep.subr.bf16.mxu0 %v23771_v45  ;;  %v23811_v57 = vld [vmem:[%s33014_s2 + $0x1950] ss:$20 sps:$4 sm:$0xff]   ;;  %v23814_v45 = vld [vmem:[%s33014_s2 + $0x1958] ss:$20 sps:$4 sm:$0xff]  }
 0x53f   : > { %9114 = vmatprep.subr.bf16.mxu1 %v23774_v43  ;;  %v23819_v43 = vld [vmem:[%s33014_s2 + $0x197c] ss:$20 sps:$4 sm:$0xff]  }
 0x541   : > { %8623 = vmatpush1.bf16.msra.mxu0 %v23769_v23  ;;  %v23822_v23 = vld [vmem:[%s33014_s2 + $0x1984] ss:$20 sps:$4 sm:$0xff]  }
 0x542   : > { %9115 = vmatpush1.bf16.msra.mxu1 %v23772_v35  ;;  %8624 = vmatprep.subr.bf16.mxu0 %v23777_v55  ;;  %v23817_v35 = vld [vmem:[%s33014_s2 + $0x1978] ss:$20 sps:$4 sm:$0xff]   ;;  %v23820_v55 = vld [vmem:[%s33014_s2 + $0x1980] ss:$20 sps:$4 sm:$0xff]  }
 0x543   : > { %9116 = vmatprep.subr.bf16.mxu1 %v23780_v21  ;;  %v23825_v21 = vld [vmem:[%s33014_s2 + $0x19a4] ss:$20 sps:$4 sm:$0xff]  }
 0x545   : > { %8625 = vmatpush1.bf16.msra.mxu0 %v23775_v2  ;;  %v23828_v2 = vld [vmem:[%s33014_s2 + $0x19ac] ss:$20 sps:$4 sm:$0xff]  }
 0x546   : > { %9117 = vmatpush1.bf16.msra.mxu1 %v23778_v9  ;;  %8626 = vmatprep.subr.bf16.mxu0 %v23783_v38  ;;  %v23823_v9 = vld [vmem:[%s33014_s2 + $0x19a0] ss:$20 sps:$4 sm:$0xff]   ;;  %v23826_v38 = vld [vmem:[%s33014_s2 + $0x19a8] ss:$20 sps:$4 sm:$0xff]  }
 0x547   : > { %9118 = vmatprep.subr.bf16.mxu1 %v23786_v18  ;;  %v23831_v18 = vld [vmem:[%s33014_s2 + $0x19cc] ss:$20 sps:$4 sm:$0xff]  }
 0x549   : > { %8627 = vmatpush1.bf16.msra.mxu0 %v23781_v60  ;;  %v23834_v60 = vld [vmem:[%s33014_s2 + $0x19d4] ss:$20 sps:$4 sm:$0xff]  }
 0x54a   : > { %9119 = vmatpush1.bf16.msra.mxu1 %v23784_v33  ;;  %8628 = vmatprep.subr.bf16.mxu0 %v23789_v49  ;;  %v23829_v33 = vld [vmem:[%s33014_s2 + $0x19c8] ss:$20 sps:$4 sm:$0xff]   ;;  %v23832_v49 = vld [vmem:[%s33014_s2 + $0x19d0] ss:$20 sps:$4 sm:$0xff]  }
 0x54b   : > { %9120 = vmatprep.subr.bf16.mxu1 %v23792_v12  ;;  %v23837_v12 = vld [vmem:[%s33014_s2 + $0x19f4] ss:$20 sps:$4 sm:$0xff]  }
 0x54d   : > { %8629 = vmatpush1.bf16.msra.mxu0 %v23787_v40  ;;  %v23840_v40 = vld [vmem:[%s33014_s2 + $0x19fc] ss:$20 sps:$4 sm:$0xff]  }
 0x54e   : > { %9121 = vmatpush1.bf16.msra.mxu1 %v23790_v62  ;;  %8630 = vmatprep.subr.bf16.mxu0 %v23795_v19  ;;  %v23835_v62 = vld [vmem:[%s33014_s2 + $0x19f0] ss:$20 sps:$4 sm:$0xff]   ;;  %v23838_v19 = vld [vmem:[%s33014_s2 + $0x19f8] ss:$20 sps:$4 sm:$0xff]  }
 0x54f   : > { %9122 = vmatprep.subr.bf16.mxu1 %v23798_v39  ;;  %v23846_v39 = vld [vmem:[%s33014_s2 + $0x1a24] ss:$20 sps:$4 sm:$0xff]  }
 0x551   : > { %8631 = vmatpush1.bf16.msra.mxu0 %v23793_v36  ;;  %v23844_v36 = vld [vmem:[%s33014_s2 + $0x1a20] ss:$20 sps:$4 sm:$0xff]  }
 0x552   : > { %9123 = vmatpush1.bf16.msra.mxu1 %v23796_v30  ;;  %8641 = vmatprep.subr.bf16.mxu0 %v23801_v1  ;;  %v23852_v30 = vld [vmem:[%s33014_s2 + $0x1a4c] ss:$20 sps:$4 sm:$0xff]  }
 0x553   : > { %9133 = vmatprep.subr.bf16.mxu1 %v23804_v24  ;;  %v23847_v1 = vld [vmem:[%s33014_s2 + $0x1a40] ss:$20 sps:$4 sm:$0xff]   ;;  %v23850_v24 = vld [vmem:[%s33014_s2 + $0x1a48] ss:$20 sps:$4 sm:$0xff]  }
 0x554   : > { %8633 = vmatmul.mubr.bf16.vlgmr.msra.gmra.mrb[12].mxu0 %v28798_v15 }
 0x555   : > { %9125 = vmatmul.mubr.bf16.vlgmr.msra.gmra.mrb[16].mxu1 %v28798_v15  ;;  %8642 = vmatpush1.bf16.msra.mxu0 %v23799_v59  ;;  %v23858_v59 = vld [vmem:[%s33014_s2 + $0x1a74] ss:$20 sps:$4 sm:$0xff]  }
 0x556   : > { %8673 = vmatprep.mubr.bf16.mxu0 %v28807_v14  ;;  %9134 = vmatpush1.bf16.msra.mxu1 %v23802_v37  ;;  %v23853_v37 = vld [vmem:[%s33014_s2 + $0x1a68] ss:$20 sps:$4 sm:$0xff]  }
 0x557   : > { %9165 = vmatprep.mubr.bf16.mxu1 %v28807_v14  ;;  %8643 = vmatprep.subr.bf16.mxu0 %v23807_v53  ;;  %v23856_v53 = vld [vmem:[%s33014_s2 + $0x1a70] ss:$20 sps:$4 sm:$0xff]  }
 0x558   : > { %9135 = vmatprep.subr.bf16.mxu1 %v23810_v32  ;;  %v23861_v32 = vld [vmem:[%s33014_s2 + $0x1a94] ss:$20 sps:$4 sm:$0xff]  }
 0x559   : > { %8644 = vmatpush1.bf16.msra.mxu0 %v23805_v11  ;;  %v23864_v11 = vld [vmem:[%s33014_s2 + $0x1a9c] ss:$20 sps:$4 sm:$0xff]  }
 0x55a   : > { %9136 = vmatpush1.bf16.msra.mxu1 %v23808_v17  ;;  %8645 = vmatprep.subr.bf16.mxu0 %v23813_v50  ;;  %v23859_v17 = vld [vmem:[%s33014_s2 + $0x1a90] ss:$20 sps:$4 sm:$0xff]   ;;  %v23862_v50 = vld [vmem:[%s33014_s2 + $0x1a98] ss:$20 sps:$4 sm:$0xff]  }
 0x55b   : > { %9137 = vmatprep.subr.bf16.mxu1 %v23816_v48  ;;  %v23867_v48 = vld [vmem:[%s33014_s2 + $0x1abc] ss:$20 sps:$4 sm:$0xff]  }
 0x55d   : > { %8646 = vmatpush1.bf16.msra.mxu0 %v23811_v57  ;;  %v23870_v57 = vld [vmem:[%s33014_s2 + $0x1ac4] ss:$20 sps:$4 sm:$0xff]  }
 0x55e   : > { %9138 = vmatpush1.bf16.msra.mxu1 %v23814_v45  ;;  %8647 = vmatprep.subr.bf16.mxu0 %v23819_v43  ;;  %v23865_v45 = vld [vmem:[%s33014_s2 + $0x1ab8] ss:$20 sps:$4 sm:$0xff]   ;;  %v23868_v43 = vld [vmem:[%s33014_s2 + $0x1ac0] ss:$20 sps:$4 sm:$0xff]  }
 0x55f   : > { %9139 = vmatprep.subr.bf16.mxu1 %v23822_v23  ;;  %v23873_v23 = vld [vmem:[%s33014_s2 + $0x1ae4] ss:$20 sps:$4 sm:$0xff]  }
 0x561   : > { %8648 = vmatpush1.bf16.msra.mxu0 %v23817_v35  ;;  %v23876_v35 = vld [vmem:[%s33014_s2 + $0x1aec] ss:$20 sps:$4 sm:$0xff]  }
 0x562   : > { %9140 = vmatpush1.bf16.msra.mxu1 %v23820_v55  ;;  %8649 = vmatprep.subr.bf16.mxu0 %v23825_v21  ;;  %v23871_v55 = vld [vmem:[%s33014_s2 + $0x1ae0] ss:$20 sps:$4 sm:$0xff]   ;;  %v23874_v21 = vld [vmem:[%s33014_s2 + $0x1ae8] ss:$20 sps:$4 sm:$0xff]  }
 0x563   : > { %9141 = vmatprep.subr.bf16.mxu1 %v23828_v2  ;;  %v23879_v2 = vld [vmem:[%s33014_s2 + $0x1b0c] ss:$20 sps:$4 sm:$0xff]  }
 0x565   : > { %8650 = vmatpush1.bf16.msra.mxu0 %v23823_v9  ;;  %v23882_v9 = vld [vmem:[%s33014_s2 + $0x1b14] ss:$20 sps:$4 sm:$0xff]  }
 0x566   : > { %9142 = vmatpush1.bf16.msra.mxu1 %v23826_v38  ;;  %8651 = vmatprep.subr.bf16.mxu0 %v23831_v18  ;;  %v23877_v38 = vld [vmem:[%s33014_s2 + $0x1b08] ss:$20 sps:$4 sm:$0xff]   ;;  %v23880_v18 = vld [vmem:[%s33014_s2 + $0x1b10] ss:$20 sps:$4 sm:$0xff]  }
 0x567   : > { %9143 = vmatprep.subr.bf16.mxu1 %v23834_v60  ;;  %v23885_v60 = vld [vmem:[%s33014_s2 + $0x1b34] ss:$20 sps:$4 sm:$0xff]  }
 0x569   : > { %8652 = vmatpush1.bf16.msra.mxu0 %v23829_v33  ;;  %v23888_v33 = vld [vmem:[%s33014_s2 + $0x1b3c] ss:$20 sps:$4 sm:$0xff]  }
 0x56a   : > { %9144 = vmatpush1.bf16.msra.mxu1 %v23832_v49  ;;  %8653 = vmatprep.subr.bf16.mxu0 %v23837_v12  ;;  %v23883_v49 = vld [vmem:[%s33014_s2 + $0x1b30] ss:$20 sps:$4 sm:$0xff]   ;;  %v23886_v12 = vld [vmem:[%s33014_s2 + $0x1b38] ss:$20 sps:$4 sm:$0xff]  }
 0x56b   : > { %9145 = vmatprep.subr.bf16.mxu1 %v23840_v40  ;;  %v23891_v40 = vld [vmem:[%s33014_s2 + $0x1b5c] ss:$20 sps:$4 sm:$0xff]  }
 0x56d   : > { %8654 = vmatpush1.bf16.msra.mxu0 %v23835_v62  ;;  %v2271_v62 = vsel %vm428_vm5, %v22828_v7, %v22837_v41  ;;  %v23897_v7 = vld [vmem:[%s33014_s2 + $0x1b84] ss:$20 sps:$4 sm:$0xff]   ;;  %v23900_v41 = vld [vmem:[%s33014_s2 + $0x1b8c] ss:$20 sps:$4 sm:$0xff]  }
 0x56e   : > { %9146 = vmatpush1.bf16.msra.mxu1 %v23838_v19  ;;  %8655 = vmatprep.subr.bf16.mxu0 %v23843_v28  ;;  %v23894_v19 = vld [vmem:[%s33014_s2 + $0x1b64] ss:$20 sps:$4 sm:$0xff]  }
 0x56f   : > { %9147 = vmatprep.subr.bf16.mxu1 %v23846_v39  ;;  %v23889_v28 = vld [vmem:[%s33014_s2 + $0x1b58] ss:$20 sps:$4 sm:$0xff]   ;;  %v2317_v39 = vmax.f32 %v26936_v16, %v2271_v62  ;;  %v23895_v16 = vld [vmem:[%s33014_s2 + $0x1b80] ss:$20 sps:$4 sm:$0xff]  }
 0x570   : > { %v23937_v62 = vld [vmem:[%s33014_s2 + $0x1c98] ss:$20 sps:$4 sm:$0xff]  }
 0x571   : > { %8656 = vmatpush1.bf16.msra.mxu0 %v23841_v58  ;;  %v29004_v58 = vpack.c.bf16 %v2317_v39, %v2317_v39 }
 0x572   : > { %9148 = vmatpush1.bf16.msra.mxu1 %v23844_v36  ;;  %8657 = vmatprep.subr.bf16.mxu0 %v23849_v26  ;;  %v23898_v36 = vld [vmem:[%s33014_s2 + $0x1b88] ss:$20 sps:$4 sm:$0xff]   ;;  %v23903_v26 = vld [vmem:[%s33014_s2 + $0x1bac] ss:$20 sps:$4 sm:$0xff]  }
 0x573   : > { %9149 = vmatprep.subr.bf16.mxu1 %v23852_v30  ;;  %v23906_v30 = vld [vmem:[%s33014_s2 + $0x1bb4] ss:$20 sps:$4 sm:$0xff]  }
 0x575   : > { %8658 = vmatpush1.bf16.msra.mxu0 %v23847_v1  ;;  %v23901_v1 = vld [vmem:[%s33014_s2 + $0x1ba8] ss:$20 sps:$4 sm:$0xff]  }
 0x576   : > { %9150 = vmatpush1.bf16.msra.mxu1 %v23850_v24  ;;  %8659 = vmatprep.subr.bf16.mxu0 %v23855_v44  ;;  %v23904_v24 = vld [vmem:[%s33014_s2 + $0x1bb0] ss:$20 sps:$4 sm:$0xff]   ;;  %v23909_v44 = vld [vmem:[%s33014_s2 + $0x1bd4] ss:$20 sps:$4 sm:$0xff]  }
 0x577   : > { %9151 = vmatprep.subr.bf16.mxu1 %v23858_v59  ;;  %v23912_v59 = vld [vmem:[%s33014_s2 + $0x1bdc] ss:$20 sps:$4 sm:$0xff]  }
 0x579   : > { %8660 = vmatpush1.bf16.msra.mxu0 %v23853_v37  ;;  %v25466_v37 = vmov 0  }
 0x57a   : > { %9152 = vmatpush1.bf16.msra.mxu1 %v23856_v53  ;;  %8661 = vmatprep.subr.bf16.mxu0 %v23861_v32  ;;  %v23907_v53 = vld [vmem:[%s33014_s2 + $0x1bd0] ss:$20 sps:$4 sm:$0xff]   ;;  %v23910_v32 = vld [vmem:[%s33014_s2 + $0x1bd8] ss:$20 sps:$4 sm:$0xff]  }
 0x57b   : > { %9153 = vmatprep.subr.bf16.mxu1 %v23864_v11  ;;  %v23915_v11 = vld [vmem:[%s33014_s2 + $0x1bfc] ss:$20 sps:$4 sm:$0xff]  }
 0x57d   : > { %8662 = vmatpush1.bf16.msra.mxu0 %v23859_v17  ;;  %v23918_v17 = vld [vmem:[%s33014_s2 + $0x1c04] ss:$20 sps:$4 sm:$0xff]  }
 0x57e   : > { %9154 = vmatpush1.bf16.msra.mxu1 %v23862_v50  ;;  %8663 = vmatprep.subr.bf16.mxu0 %v23867_v48  ;;  %v23913_v50 = vld [vmem:[%s33014_s2 + $0x1bf8] ss:$20 sps:$4 sm:$0xff]   ;;  %v23916_v48 = vld [vmem:[%s33014_s2 + $0x1c00] ss:$20 sps:$4 sm:$0xff]  }
 0x57f   : > { %9155 = vmatprep.subr.bf16.mxu1 %v23870_v57  ;;  %v23921_v57 = vld [vmem:[%s33014_s2 + $0x1c24] ss:$20 sps:$4 sm:$0xff]  }
 0x581   : > { %8664 = vmatpush1.bf16.msra.mxu0 %v23865_v45  ;;  %v23924_v45 = vld [vmem:[%s33014_s2 + $0x1c2c] ss:$20 sps:$4 sm:$0xff]  }
 0x582   : > { %9156 = vmatpush1.bf16.msra.mxu1 %v23868_v43  ;;  %8665 = vmatprep.subr.bf16.mxu0 %v23873_v23  ;;  %v23919_v43 = vld [vmem:[%s33014_s2 + $0x1c20] ss:$20 sps:$4 sm:$0xff]   ;;  %v23922_v23 = vld [vmem:[%s33014_s2 + $0x1c28] ss:$20 sps:$4 sm:$0xff]  }
 0x583   : > { %9157 = vmatprep.subr.bf16.mxu1 %v23876_v35  ;;  %v23927_v35 = vld [vmem:[%s33014_s2 + $0x1c4c] ss:$20 sps:$4 sm:$0xff]  }
 0x585   : > { %8666 = vmatpush1.bf16.msra.mxu0 %v23871_v55  ;;  %v23930_v55 = vld [vmem:[%s33014_s2 + $0x1c54] ss:$20 sps:$4 sm:$0xff]  }
 0x586   : > { %9158 = vmatpush1.bf16.msra.mxu1 %v23874_v21  ;;  %8667 = vmatprep.subr.bf16.mxu0 %v23879_v2  ;;  %v23925_v21 = vld [vmem:[%s33014_s2 + $0x1c48] ss:$20 sps:$4 sm:$0xff]   ;;  %v23928_v2 = vld [vmem:[%s33014_s2 + $0x1c50] ss:$20 sps:$4 sm:$0xff]  }
 0x587   : > { %9159 = vmatprep.subr.bf16.mxu1 %v23882_v9  ;;  %v23933_v9 = vld [vmem:[%s33014_s2 + $0x1c74] ss:$20 sps:$4 sm:$0xff]  }
 0x589   : > { %8668 = vmatpush1.bf16.msra.mxu0 %v23877_v38  ;;  %v23936_v38 = vld [vmem:[%s33014_s2 + $0x1c7c] ss:$20 sps:$4 sm:$0xff]  }
 0x58a   : > { %9160 = vmatpush1.bf16.msra.mxu1 %v23880_v18  ;;  %8669 = vmatprep.subr.bf16.mxu0 %v23885_v60  ;;  %v2250_v18 = vpop.permute.xlu0 %2249  ;;  %v23931_v60 = vld [vmem:[%s33014_s2 + $0x1c70] ss:$20 sps:$4 sm:$0xff]  }
 0x58b   : > { %9161 = vmatprep.subr.bf16.mxu1 %v23888_v33  ;;  %v23934_v33 = vld [vmem:[%s33014_s2 + $0x1c78] ss:$20 sps:$4 sm:$0xff]  }
 0x58d   : > { %8670 = vmatpush1.bf16.msra.mxu0 %v23883_v49  ;;  %v23939_v49 = vld [vmem:[%s33014_s2 + $0x1c9c] ss:$20 sps:$4 sm:$0xff]  }
 0x58e   : > { %9162 = vmatpush1.bf16.msra.mxu1 %v23886_v12  ;;  %8671 = vmatprep.subr.bf16.mxu0 %v23891_v40  ;;  %v2273_v12 = vsel %vm428_vm5, %v22838_v5, %v2250_v18  ;;  %v23942_v40 = vld [vmem:[%s33014_s2 + $0x1ca4] ss:$20 sps:$4 sm:$0xff]   ;;  %vm25470_vm5 = vmmov 1  }
 0x58f   : > { %9163 = vmatprep.subr.bf16.mxu1 %v23894_v19  ;;  %v2319_v19 = vmax.f32 %v26963_v63, %v2273_v12  ;;  %v23943_v5 = vld [vmem:[%s33014_s2 + $0x150] ss:$20 sps:$4 sm:$0xff]   ;;  %v23979_v12 = vld [vmem:[%s33014_s2 + $0x678] ss:$20 sps:$4 sm:$0xff]   ;;  %vm22499_vm13 = vmpackc.low %vm18276_vm3, %vm25470_vm5 }
 0x590   : > { %v23945_v63 = vld [vmem:[%s33014_s2 + $0x10] ss:$20 sps:$4 sm:$0xff]  }
 0x591   : > { %8672 = vmatpush1.bf16.msra.mxu0 %v23889_v28  ;;  %v23944_v28 = vld [vmem:[%s33014_s2 + $0x3d0] ss:$20 sps:$4 sm:$0xff]   ;;  %v29110_v39 = vpack.c.bf16 %v2319_v19, %v2319_v19  ;;  %v23982_v19 = vld [vmem:[%s33014_s2 + $0x7b8] ss:$20 sps:$4 sm:$0xff]  }
 0x592   : > { %9164 = vmatpush1.bf16.msra.mxu1 %v23892_v51  ;;  %8682 = vmatprep.subr.bf16.mxu0 %v23897_v7  ;;  %v23946_v51 = vld [vmem:[%s33014_s2 + $0x290] ss:$20 sps:$4 sm:$0xff]   ;;  %v23947_v7 = vld [vmem:[%s33014_s2 + $0x178] ss:$20 sps:$4 sm:$0xff]  }
 0x593   : > { %9174 = vmatprep.subr.bf16.mxu1 %v23900_v41  ;;  %v23948_v41 = vld [vmem:[%s33014_s2 + $0x3f8] ss:$20 sps:$4 sm:$0xff]   ;;  %v23975_v18 = vld [vmem:[%s33014_s2 + $0x650] ss:$20 sps:$4 sm:$0xff]  }
 0x594   : > { %8674 = vmatmul.mubr.bf16.vlgmr.msra.gmra.mrb[12].mxu0 %v29004_v58 }
 0x595   : > { %9166 = vmatmul.mubr.bf16.vlgmr.msra.gmra.mrb[16].mxu1 %v29004_v58  ;;  %8683 = vmatpush1.bf16.msra.mxu0 %v23895_v16  ;;  %v23949_v16 = vld [vmem:[%s33014_s2 + $0x38] ss:$20 sps:$4 sm:$0xff]  }
 0x596   : > { %9175 = vmatpush1.bf16.msra.mxu1 %v23898_v36  ;;  %8684 = vmatprep.subr.bf16.mxu0 %v23903_v26  ;;  %v23950_v36 = vld [vmem:[%s33014_s2 + $0x2b8] ss:$20 sps:$4 sm:$0xff]   ;;  %v23951_v26 = vld [vmem:[%s33014_s2 + $0x1a0] ss:$20 sps:$4 sm:$0xff]  }
 0x597   : > { %9176 = vmatprep.subr.bf16.mxu1 %v23906_v30  ;;  %8714 = vmatprep.mubr.bf16.mxu0 %v25466_v37  ;;  %v23952_v30 = vld [vmem:[%s33014_s2 + $0x420] ss:$20 sps:$4 sm:$0xff]  }
 0x598   : > { %9206 = vmatprep.mubr.bf16.mxu1 %v25466_v37 }
 0x599   : > { %8685 = vmatpush1.bf16.msra.mxu0 %v23901_v1  ;;  %v23954_v1 = vld [vmem:[%s33014_s2 + $0x2e0] ss:$20 sps:$4 sm:$0xff]  }
 0x59a   : > { %9177 = vmatpush1.bf16.msra.mxu1 %v23904_v24  ;;  %8686 = vmatprep.subr.bf16.mxu0 %v23909_v44  ;;  %v23956_v24 = vld [vmem:[%s33014_s2 + $0x448] ss:$20 sps:$4 sm:$0xff]  }
 0x59b   : > { %9178 = vmatprep.subr.bf16.mxu1 %v23912_v59  ;;  %v23957_v44 = vld [vmem:[%s33014_s2 + $0x88] ss:$20 sps:$4 sm:$0xff]  }
 0x59c   : > { %v23958_v59 = vld [vmem:[%s33014_s2 + $0x308] ss:$20 sps:$4 sm:$0xff]  }
 0x59d   : > { %8687 = vmatpush1.bf16.msra.mxu0 %v23907_v53  ;;  %v23959_v53 = vld [vmem:[%s33014_s2 + $0x1f0] ss:$20 sps:$4 sm:$0xff]  }
 0x59e   : > { %9179 = vmatpush1.bf16.msra.mxu1 %v23910_v32  ;;  %8688 = vmatprep.subr.bf16.mxu0 %v23915_v11  ;;  %v23960_v32 = vld [vmem:[%s33014_s2 + $0x470] ss:$20 sps:$4 sm:$0xff]  }
 0x59f   : > { %9180 = vmatprep.subr.bf16.mxu1 %v23918_v17  ;;  %v23961_v11 = vld [vmem:[%s33014_s2 + $0xb0] ss:$20 sps:$4 sm:$0xff]  }
 0x5a0   : > { %v23962_v17 = vld [vmem:[%s33014_s2 + $0x330] ss:$20 sps:$4 sm:$0xff]  }
 0x5a1   : > { %8689 = vmatpush1.bf16.msra.mxu0 %v23913_v50  ;;  %v23963_v50 = vld [vmem:[%s33014_s2 + $0x218] ss:$20 sps:$4 sm:$0xff]  }
 0x5a2   : > { %9181 = vmatpush1.bf16.msra.mxu1 %v23916_v48  ;;  %8690 = vmatprep.subr.bf16.mxu0 %v23921_v57  ;;  %v23964_v48 = vld [vmem:[%s33014_s2 + $0x498] ss:$20 sps:$4 sm:$0xff]  }
 0x5a3   : > { %9182 = vmatprep.subr.bf16.mxu1 %v23924_v45  ;;  %v23965_v57 = vld [vmem:[%s33014_s2 + $0xd8] ss:$20 sps:$4 sm:$0xff]  }
 0x5a4   : > { %v23966_v45 = vld [vmem:[%s33014_s2 + $0x358] ss:$20 sps:$4 sm:$0xff]  }
 0x5a5   : > { %8691 = vmatpush1.bf16.msra.mxu0 %v23919_v43  ;;  %v23967_v43 = vld [vmem:[%s33014_s2 + $0x240] ss:$20 sps:$4 sm:$0xff]  }
 0x5a6   : > { %9183 = vmatpush1.bf16.msra.mxu1 %v23922_v23  ;;  %8692 = vmatprep.subr.bf16.mxu0 %v23927_v35  ;;  %v23968_v23 = vld [vmem:[%s33014_s2 + $0x4c0] ss:$20 sps:$4 sm:$0xff]  }
 0x5a7   : > { %9184 = vmatprep.subr.bf16.mxu1 %v23930_v55  ;;  %v23969_v35 = vld [vmem:[%s33014_s2 + $0x100] ss:$20 sps:$4 sm:$0xff]  }
 0x5a8   : > { %v23970_v55 = vld [vmem:[%s33014_s2 + $0x380] ss:$20 sps:$4 sm:$0xff]  }
 0x5a9   : > { %8693 = vmatpush1.bf16.msra.mxu0 %v23925_v21  ;;  %v23971_v21 = vld [vmem:[%s33014_s2 + $0x268] ss:$20 sps:$4 sm:$0xff]  }
 0x5aa   : > { %9185 = vmatpush1.bf16.msra.mxu1 %v23928_v2  ;;  %8694 = vmatprep.subr.bf16.mxu0 %v23933_v9  ;;  %v23972_v2 = vld [vmem:[%s33014_s2 + $0x4e8] ss:$20 sps:$4 sm:$0xff]  }
 0x5ab   : > { %9186 = vmatprep.subr.bf16.mxu1 %v23936_v38  ;;  %v23973_v9 = vld [vmem:[%s33014_s2 + $0x128] ss:$20 sps:$4 sm:$0xff]  }
 0x5ac   : > { %v23974_v38 = vld [vmem:[%s33014_s2 + $0x3a8] ss:$20 sps:$4 sm:$0xff]  }
 0x5ad   : > { %8695 = vmatpush1.bf16.msra.mxu0 %v23931_v60  ;;  %v23976_v60 = vld [vmem:[%s33014_s2 + $0x8d0] ss:$20 sps:$4 sm:$0xff]  }
 0x5ae   : > { %9187 = vmatpush1.bf16.msra.mxu1 %v23934_v33  ;;  %8696 = vmatprep.subr.bf16.mxu0 %v23939_v49  ;;  %v23977_v33 = vld [vmem:[%s33014_s2 + $0x510] ss:$20 sps:$4 sm:$0xff]  }
 0x5af   : > { %9188 = vmatprep.subr.bf16.mxu1 %v23942_v40  ;;  %v23978_v49 = vld [vmem:[%s33014_s2 + $0x790] ss:$20 sps:$4 sm:$0xff]   ;;  %v23980_v40 = vld [vmem:[%s33014_s2 + $0x8f8] ss:$20 sps:$4 sm:$0xff]  }
 0x5b1   : > { %8697 = vmatpush1.bf16.msra.mxu0 %v23937_v62  ;;  %v23981_v62 = vld [vmem:[%s33014_s2 + $0x538] ss:$20 sps:$4 sm:$0xff]  }
 0x5b2   : > { %9189 = vmatpush1.bf16.msra.mxu1 %v23940_v54  ;;  %21475 = vmatprep.subr.bf16.mxu0 %v23943_v5  ;;  %v23986_v54 = vld [vmem:[%s33014_s2 + $0x7e0] ss:$20 sps:$4 sm:$0xff]   ;;  %v23988_v5 = vld [vmem:[%s33014_s2 + $0x948] ss:$20 sps:$4 sm:$0xff]  }
 0x5b3   : > { %21497 = vmatprep.subr.bf16.mxu1 %v23944_v28  ;;  %v23989_v28 = vld [vmem:[%s33014_s2 + $0x588] ss:$20 sps:$4 sm:$0xff]  }
 0x5b4   : > { %8715 = vmatmul.mubr.bf16.vlgmr.msra.gmra.mrb[12].mxu0 %v29110_v39 }
 0x5b5   : > { %9207 = vmatmul.mubr.bf16.vlgmr.msra.gmra.mrb[16].mxu1 %v29110_v39  ;;  %21476 = vmatpush3.bf16.msra.mxu0 %v23945_v63  ;;  %v23990_v63 = vld [vmem:[%s33014_s2 + $0x808] ss:$20 sps:$4 sm:$0xff]  }
 0x5b6   : > { %9247 = vmatprep.mubr.bf16.mxu0 %v26707_v56  ;;  %21498 = vmatpush3.bf16.msra.mxu1 %v23946_v51  ;;  %v23953_v56 = vld [vmem:[%s33014_s2 + $0x60] ss:$20 sps:$4 sm:$0xff]   ;;  %v23991_v51 = vld [vmem:[%s33014_s2 + $0x6f0] ss:$20 sps:$4 sm:$0xff]  }
 0x5b7   : > { %9287 = vmatprep.mubr.bf16.mxu1 %v27070_v61  ;;  %21477 = vmatprep.subr.bf16.mxu0 %v23947_v7  ;;  %v23955_v61 = vld [vmem:[%s33014_s2 + $0x1c8] ss:$20 sps:$4 sm:$0xff]   ;;  %v23992_v7 = vld [vmem:[%s33014_s2 + $0x970] ss:$20 sps:$4 sm:$0xff]  }
 0x5b8   : > { %21499 = vmatprep.subr.bf16.mxu1 %v23948_v41  ;;  %v23993_v41 = vld [vmem:[%s33014_s2 + $0x5b0] ss:$20 sps:$4 sm:$0xff]  }
 0x5b9   : > { %21478 = vmatpush3.bf16.msra.mxu0 %v23949_v16  ;;  %v23994_v16 = vld [vmem:[%s33014_s2 + $0x830] ss:$20 sps:$4 sm:$0xff]  }
 0x5ba   : > { %21500 = vmatpush3.bf16.msra.mxu1 %v23950_v36  ;;  %21479 = vmatprep.subr.bf16.mxu0 %v23951_v26  ;;  %v23995_v36 = vld [vmem:[%s33014_s2 + $0x718] ss:$20 sps:$4 sm:$0xff]  }
 0x5bb   : > { %21501 = vmatprep.subr.bf16.mxu1 %v23952_v30  ;;  %v23996_v26 = vld [vmem:[%s33014_s2 + $0x998] ss:$20 sps:$4 sm:$0xff]  }
 0x5bc   : > { %v23997_v30 = vld [vmem:[%s33014_s2 + $0x5d8] ss:$20 sps:$4 sm:$0xff]  }
 0x5bd   : > { %21480 = vmatpush3.bf16.msra.mxu0 %v23953_v56  ;;  %v23998_v56 = vld [vmem:[%s33014_s2 + $0x858] ss:$20 sps:$4 sm:$0xff]  }
 0x5be   : > { %21502 = vmatpush3.bf16.msra.mxu1 %v23954_v1  ;;  %21481 = vmatprep.subr.bf16.mxu0 %v23955_v61  ;;  %v23999_v1 = vld [vmem:[%s33014_s2 + $0x740] ss:$20 sps:$4 sm:$0xff]  }
 0x5bf   : > { %21503 = vmatprep.subr.bf16.mxu1 %v23956_v24  ;;  %v24000_v61 = vld [vmem:[%s33014_s2 + $0x9c0] ss:$20 sps:$4 sm:$0xff]  }
 0x5c0   : > { %v24001_v24 = vld [vmem:[%s33014_s2 + $0x600] ss:$20 sps:$4 sm:$0xff]  }
 0x5c1   : > { %21482 = vmatpush3.bf16.msra.mxu0 %v23957_v44  ;;  %v24002_v44 = vld [vmem:[%s33014_s2 + $0x880] ss:$20 sps:$4 sm:$0xff]  }
 0x5c2   : > { %21504 = vmatpush3.bf16.msra.mxu1 %v23958_v59  ;;  %21483 = vmatprep.subr.bf16.mxu0 %v23959_v53  ;;  %v24003_v59 = vld [vmem:[%s33014_s2 + $0x768] ss:$20 sps:$4 sm:$0xff]  }
 0x5c3   : > { %21505 = vmatprep.subr.bf16.mxu1 %v23960_v32  ;;  %v24004_v53 = vld [vmem:[%s33014_s2 + $0x9e8] ss:$20 sps:$4 sm:$0xff]  }
 0x5c4   : > { %v24005_v32 = vld [vmem:[%s33014_s2 + $0x628] ss:$20 sps:$4 sm:$0xff]  }
 0x5c5   : > { %21484 = vmatpush3.bf16.msra.mxu0 %v23961_v11  ;;  %v24006_v11 = vld [vmem:[%s33014_s2 + $0x8a8] ss:$20 sps:$4 sm:$0xff]  }
 0x5c6   : > { %21506 = vmatpush3.bf16.msra.mxu1 %v23962_v17  ;;  %21485 = vmatprep.subr.bf16.mxu0 %v23963_v50  ;;  %v24007_v17 = vld [vmem:[%s33014_s2 + $0xb50] ss:$20 sps:$4 sm:$0xff]  }
 0x5c7   : > { %21507 = vmatprep.subr.bf16.mxu1 %v23964_v48  ;;  %v24008_v50 = vld [vmem:[%s33014_s2 + $0xdd0] ss:$20 sps:$4 sm:$0xff]  }
 0x5c8   : > { %v24009_v48 = vld [vmem:[%s33014_s2 + $0xa10] ss:$20 sps:$4 sm:$0xff]  }
 0x5c9   : > { %21486 = vmatpush3.bf16.msra.mxu0 %v23965_v57  ;;  %v24010_v57 = vld [vmem:[%s33014_s2 + $0xc90] ss:$20 sps:$4 sm:$0xff]  }
 0x5ca   : > { %21508 = vmatpush3.bf16.msra.mxu1 %v23966_v45  ;;  %21487 = vmatprep.subr.bf16.mxu0 %v23967_v43  ;;  %v24011_v45 = vld [vmem:[%s33014_s2 + $0xb78] ss:$20 sps:$4 sm:$0xff]  }
 0x5cb   : > { %21509 = vmatprep.subr.bf16.mxu1 %v23968_v23  ;;  %v24012_v43 = vld [vmem:[%s33014_s2 + $0xdf8] ss:$20 sps:$4 sm:$0xff]  }
 0x5cc   : > { %v24013_v23 = vld [vmem:[%s33014_s2 + $0xa38] ss:$20 sps:$4 sm:$0xff]  }
 0x5cd   : > { %21488 = vmatpush3.bf16.msra.mxu0 %v23969_v35  ;;  %v24014_v35 = vld [vmem:[%s33014_s2 + $0xcb8] ss:$20 sps:$4 sm:$0xff]  }
 0x5ce   : > { %21510 = vmatpush3.bf16.msra.mxu1 %v23970_v55  ;;  %21489 = vmatprep.subr.bf16.mxu0 %v23971_v21  ;;  %v24018_v55 = vld [vmem:[%s33014_s2 + $0xce0] ss:$20 sps:$4 sm:$0xff]   ;;  %v24020_v21 = vld [vmem:[%s33014_s2 + $0xe48] ss:$20 sps:$4 sm:$0xff]  }
 0x5cf   : > { %21511 = vmatprep.subr.bf16.mxu1 %v23972_v2  ;;  %v24021_v2 = vld [vmem:[%s33014_s2 + $0xa88] ss:$20 sps:$4 sm:$0xff]  }
 0x5d1   : > { %21490 = vmatpush3.bf16.msra.mxu0 %v23973_v9  ;;  %v24022_v9 = vld [vmem:[%s33014_s2 + $0xd08] ss:$20 sps:$4 sm:$0xff]  }
 0x5d2   : > { %21512 = vmatpush3.bf16.msra.mxu1 %v23974_v38  ;;  %21519 = vmatprep.subr.bf16.mxu0 %v23975_v18  ;;  %v24023_v38 = vld [vmem:[%s33014_s2 + $0xbf0] ss:$20 sps:$4 sm:$0xff]  }
 0x5d3   : > { %21541 = vmatprep.subr.bf16.mxu1 %v23976_v60  ;;  %v24024_v18 = vld [vmem:[%s33014_s2 + $0xe70] ss:$20 sps:$4 sm:$0xff]  }
 0x5d4   : > { %9248 = vmatmul.mubr.bf16.vlgmr.msra.gmra.mrb[16].mxu0 %v26709_v13  ;;  %v23983_v13 = vld [vmem:[%s33014_s2 + $0x6a0] ss:$20 sps:$4 sm:$0xff]   ;;  %v24025_v60 = vld [vmem:[%s33014_s2 + $0xab0] ss:$20 sps:$4 sm:$0xff]  }
 0x5d5   : > { %9288 = vmatmul.mubr.bf16.vlgmr.msra.gmra.mrb[20].mxu1 %v27072_v25  ;;  %21520 = vmatpush3.bf16.msra.mxu0 %v23977_v33  ;;  %v23984_v25 = vld [vmem:[%s33014_s2 + $0x920] ss:$20 sps:$4 sm:$0xff]   ;;  %v24026_v33 = vld [vmem:[%s33014_s2 + $0xd30] ss:$20 sps:$4 sm:$0xff]  }
 0x5d6   : > { %9327 = vmatprep.mubr.bf16.mxu0 %v27091_v42  ;;  %21542 = vmatpush3.bf16.msra.mxu1 %v23978_v49  ;;  %v23985_v42 = vld [vmem:[%s33014_s2 + $0x560] ss:$20 sps:$4 sm:$0xff]   ;;  %v24027_v49 = vld [vmem:[%s33014_s2 + $0xc18] ss:$20 sps:$4 sm:$0xff]  }
 0x5d7   : > { %9367 = vmatprep.mubr.bf16.mxu1 %v27301_v10  ;;  %21521 = vmatprep.subr.bf16.mxu0 %v23979_v12  ;;  %v23987_v10 = vld [vmem:[%s33014_s2 + $0x6c8] ss:$20 sps:$4 sm:$0xff]   ;;  %v24028_v12 = vld [vmem:[%s33014_s2 + $0xe98] ss:$20 sps:$4 sm:$0xff]  }
 0x5d8   : > { %21543 = vmatprep.subr.bf16.mxu1 %v23980_v40  ;;  %v24029_v40 = vld [vmem:[%s33014_s2 + $0xad8] ss:$20 sps:$4 sm:$0xff]  }
 0x5d9   : > { %21522 = vmatpush3.bf16.msra.mxu0 %v23981_v62  ;;  %v24030_v62 = vld [vmem:[%s33014_s2 + $0xd58] ss:$20 sps:$4 sm:$0xff]  }
 0x5da   : > { %21544 = vmatpush3.bf16.msra.mxu1 %v23982_v19  ;;  %21523 = vmatprep.subr.bf16.mxu0 %v23983_v13  ;;  %v24031_v19 = vld [vmem:[%s33014_s2 + $0xc40] ss:$20 sps:$4 sm:$0xff]  }
 0x5db   : > { %21545 = vmatprep.subr.bf16.mxu1 %v23984_v25  ;;  %v24032_v13 = vld [vmem:[%s33014_s2 + $0xec0] ss:$20 sps:$4 sm:$0xff]  }
 0x5dc   : > { %v24033_v25 = vld [vmem:[%s33014_s2 + $0xb00] ss:$20 sps:$4 sm:$0xff]  }
 0x5dd   : > { %21524 = vmatpush3.bf16.msra.mxu0 %v23985_v42  ;;  %v24034_v42 = vld [vmem:[%s33014_s2 + $0xd80] ss:$20 sps:$4 sm:$0xff]  }
 0x5de   : > { %21546 = vmatpush3.bf16.msra.mxu1 %v23986_v54  ;;  %21525 = vmatprep.subr.bf16.mxu0 %v23987_v10  ;;  %v24035_v54 = vld [vmem:[%s33014_s2 + $0xc68] ss:$20 sps:$4 sm:$0xff]  }
 0x5df   : > { %21547 = vmatprep.subr.bf16.mxu1 %v23988_v5  ;;  %v24036_v10 = vld [vmem:[%s33014_s2 + $0xee8] ss:$20 sps:$4 sm:$0xff]  }
 0x5e0   : > { %v24037_v5 = vld [vmem:[%s33014_s2 + $0xb28] ss:$20 sps:$4 sm:$0xff]  }
 0x5e1   : > { %21526 = vmatpush3.bf16.msra.mxu0 %v23989_v28  ;;  %v24038_v28 = vld [vmem:[%s33014_s2 + $0xda8] ss:$20 sps:$4 sm:$0xff]  }
 0x5e2   : > { %21548 = vmatpush3.bf16.msra.mxu1 %v23990_v63  ;;  %21527 = vmatprep.subr.bf16.mxu0 %v23991_v51  ;;  %v24039_v63 = vld [vmem:[%s33014_s2 + $0x1050] ss:$20 sps:$4 sm:$0xff]  }
 0x5e3   : > { %21549 = vmatprep.subr.bf16.mxu1 %v23992_v7  ;;  %v24040_v51 = vld [vmem:[%s33014_s2 + $0x12d0] ss:$20 sps:$4 sm:$0xff]  }
 0x5e4   : > { %v24041_v7 = vld [vmem:[%s33014_s2 + $0xf10] ss:$20 sps:$4 sm:$0xff]  }
 0x5e5   : > { %21528 = vmatpush3.bf16.msra.mxu0 %v23993_v41  ;;  %v24042_v41 = vld [vmem:[%s33014_s2 + $0x1190] ss:$20 sps:$4 sm:$0xff]  }
 0x5e6   : > { %21550 = vmatpush3.bf16.msra.mxu1 %v23994_v16  ;;  %21529 = vmatprep.subr.bf16.mxu0 %v23995_v36  ;;  %v24043_v16 = vld [vmem:[%s33014_s2 + $0x1078] ss:$20 sps:$4 sm:$0xff]  }
 0x5e7   : > { %21551 = vmatprep.subr.bf16.mxu1 %v23996_v26  ;;  %v24044_v36 = vld [vmem:[%s33014_s2 + $0x12f8] ss:$20 sps:$4 sm:$0xff]  }
 0x5e8   : > { %v24045_v26 = vld [vmem:[%s33014_s2 + $0xf38] ss:$20 sps:$4 sm:$0xff]  }
 0x5e9   : > { %21530 = vmatpush3.bf16.msra.mxu0 %v23997_v30  ;;  %v24046_v30 = vld [vmem:[%s33014_s2 + $0x11b8] ss:$20 sps:$4 sm:$0xff]  }
 0x5ea   : > { %21552 = vmatpush3.bf16.msra.mxu1 %v23998_v56  ;;  %21531 = vmatprep.subr.bf16.mxu0 %v23999_v1  ;;  %v24050_v56 = vld [vmem:[%s33014_s2 + $0x11e0] ss:$20 sps:$4 sm:$0xff]   ;;  %v24052_v1 = vld [vmem:[%s33014_s2 + $0x1348] ss:$20 sps:$4 sm:$0xff]  }
 0x5eb   : > { %21553 = vmatprep.subr.bf16.mxu1 %v24000_v61  ;;  %v24053_v61 = vld [vmem:[%s33014_s2 + $0xf88] ss:$20 sps:$4 sm:$0xff]  }
 0x5ed   : > { %21532 = vmatpush3.bf16.msra.mxu0 %v24001_v24  ;;  %v24054_v24 = vld [vmem:[%s33014_s2 + $0x1208] ss:$20 sps:$4 sm:$0xff]  }
 0x5ee   : > { %21554 = vmatpush3.bf16.msra.mxu1 %v24002_v44  ;;  %21533 = vmatprep.subr.bf16.mxu0 %v24003_v59  ;;  %v24055_v44 = vld [vmem:[%s33014_s2 + $0x10f0] ss:$20 sps:$4 sm:$0xff]  }
 0x5ef   : > { %21555 = vmatprep.subr.bf16.mxu1 %v24004_v53  ;;  %v24056_v59 = vld [vmem:[%s33014_s2 + $0x1370] ss:$20 sps:$4 sm:$0xff]  }
 0x5f0   : > { %v24057_v53 = vld [vmem:[%s33014_s2 + $0xfb0] ss:$20 sps:$4 sm:$0xff]  }
 0x5f1   : > { %21534 = vmatpush3.bf16.msra.mxu0 %v24005_v32  ;;  %v24058_v32 = vld [vmem:[%s33014_s2 + $0x1230] ss:$20 sps:$4 sm:$0xff]  }
 0x5f2   : > { %21556 = vmatpush3.bf16.msra.mxu1 %v24006_v11  ;;  %21563 = vmatprep.subr.bf16.mxu0 %v24007_v17  ;;  %v24059_v11 = vld [vmem:[%s33014_s2 + $0x1118] ss:$20 sps:$4 sm:$0xff]  }
 0x5f3   : > { %21585 = vmatprep.subr.bf16.mxu1 %v24008_v50  ;;  %v24060_v17 = vld [vmem:[%s33014_s2 + $0x1398] ss:$20 sps:$4 sm:$0xff]  }
 0x5f4   : > { %9328 = vmatmul.mubr.bf16.vlgmr.msra.gmra.mrb[20].mxu0 %v27299_v22  ;;  %v24015_v22 = vld [vmem:[%s33014_s2 + $0xba0] ss:$20 sps:$4 sm:$0xff]   ;;  %v24061_v50 = vld [vmem:[%s33014_s2 + $0xfd8] ss:$20 sps:$4 sm:$0xff]  }
 0x5f5   : > { %9368 = vmatmul.mubr.bf16.vlgmr.msra.gmra.mrb[24].mxu1 %v27508_v0  ;;  %21564 = vmatpush3.bf16.msra.mxu0 %v24009_v48  ;;  %v24016_v0 = vld [vmem:[%s33014_s2 + $0xe20] ss:$20 sps:$4 sm:$0xff]   ;;  %v24062_v48 = vld [vmem:[%s33014_s2 + $0x1258] ss:$20 sps:$4 sm:$0xff]  }
 0x5f6   : > { %9407 = vmatprep.mubr.bf16.mxu0 %v27511_v34  ;;  %21586 = vmatpush3.bf16.msra.mxu1 %v24010_v57  ;;  %v24017_v34 = vld [vmem:[%s33014_s2 + $0xa60] ss:$20 sps:$4 sm:$0xff]  }
 0x5f7   : > { %9447 = vmatprep.mubr.bf16.mxu1 %v27727_v31  ;;  %21565 = vmatprep.subr.bf16.mxu0 %v24011_v45  ;;  %v24019_v31 = vld [vmem:[%s33014_s2 + $0xbc8] ss:$20 sps:$4 sm:$0xff]   ;;  %v24063_v57 = vld [vmem:[%s33014_s2 + $0x1140] ss:$20 sps:$4 sm:$0xff]  }
 0x5f8   : > { %21587 = vmatprep.subr.bf16.mxu1 %v24012_v43  ;;  %v24064_v45 = vld [vmem:[%s33014_s2 + $0x13c0] ss:$20 sps:$4 sm:$0xff]  }
 0x5f9   : > { %21566 = vmatpush3.bf16.msra.mxu0 %v24013_v23  ;;  %v24065_v43 = vld [vmem:[%s33014_s2 + $0x1000] ss:$20 sps:$4 sm:$0xff]  }
 0x5fa   : > { %21588 = vmatpush3.bf16.msra.mxu1 %v24014_v35  ;;  %21567 = vmatprep.subr.bf16.mxu0 %v24015_v22  ;;  %v24066_v23 = vld [vmem:[%s33014_s2 + $0x1280] ss:$20 sps:$4 sm:$0xff]   ;;  %v24067_v35 = vld [vmem:[%s33014_s2 + $0x1168] ss:$20 sps:$4 sm:$0xff]  }
 0x5fb   : > { %21589 = vmatprep.subr.bf16.mxu1 %v24016_v0  ;;  %v24068_v22 = vld [vmem:[%s33014_s2 + $0x13e8] ss:$20 sps:$4 sm:$0xff]  }
 0x5fc   : > { %v24069_v0 = vld [vmem:[%s33014_s2 + $0x1028] ss:$20 sps:$4 sm:$0xff]  }
 0x5fd   : > { %21568 = vmatpush3.bf16.msra.mxu0 %v24017_v34  ;;  %v24070_v34 = vld [vmem:[%s33014_s2 + $0x12a8] ss:$20 sps:$4 sm:$0xff]  }
 0x5fe   : > { %21590 = vmatpush3.bf16.msra.mxu1 %v24018_v55  ;;  %21569 = vmatprep.subr.bf16.mxu0 %v24019_v31  ;;  %v24071_v55 = vld [vmem:[%s33014_s2 + $0x1550] ss:$20 sps:$4 sm:$0xff]  }
 0x5ff   : > { %21591 = vmatprep.subr.bf16.mxu1 %v24020_v21  ;;  %v24072_v31 = vld [vmem:[%s33014_s2 + $0x17d0] ss:$20 sps:$4 sm:$0xff]  }
 0x600   : > { %v24073_v21 = vld [vmem:[%s33014_s2 + $0x1410] ss:$20 sps:$4 sm:$0xff]  }
 0x601   : > { %21570 = vmatpush3.bf16.msra.mxu0 %v24021_v2  ;;  %v24074_v2 = vld [vmem:[%s33014_s2 + $0x1690] ss:$20 sps:$4 sm:$0xff]  }
 0x602   : > { %21592 = vmatpush3.bf16.msra.mxu1 %v24022_v9  ;;  %21571 = vmatprep.subr.bf16.mxu0 %v24023_v38  ;;  %v24075_v9 = vld [vmem:[%s33014_s2 + $0x1578] ss:$20 sps:$4 sm:$0xff]  }
 0x603   : > { %21593 = vmatprep.subr.bf16.mxu1 %v24024_v18  ;;  %v24076_v38 = vld [vmem:[%s33014_s2 + $0x17f8] ss:$20 sps:$4 sm:$0xff]  }
 0x604   : > { %v24077_v18 = vld [vmem:[%s33014_s2 + $0x1438] ss:$20 sps:$4 sm:$0xff]  }
 0x605   : > { %21572 = vmatpush3.bf16.msra.mxu0 %v24025_v60  ;;  %v24078_v60 = vld [vmem:[%s33014_s2 + $0x16b8] ss:$20 sps:$4 sm:$0xff]  }
 0x606   : > { %21594 = vmatpush3.bf16.msra.mxu1 %v24026_v33  ;;  %21573 = vmatprep.subr.bf16.mxu0 %v24027_v49  ;;  %v24082_v33 = vld [vmem:[%s33014_s2 + $0x16e0] ss:$20 sps:$4 sm:$0xff]   ;;  %v24084_v49 = vld [vmem:[%s33014_s2 + $0x1848] ss:$20 sps:$4 sm:$0xff]  }
 0x607   : > { %21595 = vmatprep.subr.bf16.mxu1 %v24028_v12  ;;  %v24085_v12 = vld [vmem:[%s33014_s2 + $0x1488] ss:$20 sps:$4 sm:$0xff]  }
 0x609   : > { %21574 = vmatpush3.bf16.msra.mxu0 %v24029_v40  ;;  %v24086_v40 = vld [vmem:[%s33014_s2 + $0x1708] ss:$20 sps:$4 sm:$0xff]  }
 0x60a   : > { %21596 = vmatpush3.bf16.msra.mxu1 %v24030_v62  ;;  %21575 = vmatprep.subr.bf16.mxu0 %v24031_v19  ;;  %v24087_v62 = vld [vmem:[%s33014_s2 + $0x15f0] ss:$20 sps:$4 sm:$0xff]  }
 0x60b   : > { %21597 = vmatprep.subr.bf16.mxu1 %v24032_v13  ;;  %v24088_v19 = vld [vmem:[%s33014_s2 + $0x1870] ss:$20 sps:$4 sm:$0xff]  }
 0x60c   : > { %v24089_v13 = vld [vmem:[%s33014_s2 + $0x14b0] ss:$20 sps:$4 sm:$0xff]  }
 0x60d   : > { %21576 = vmatpush3.bf16.msra.mxu0 %v24033_v25  ;;  %v24090_v25 = vld [vmem:[%s33014_s2 + $0x1730] ss:$20 sps:$4 sm:$0xff]  }
 0x60e   : > { %21598 = vmatpush3.bf16.msra.mxu1 %v24034_v42  ;;  %21577 = vmatprep.subr.bf16.mxu0 %v24035_v54  ;;  %v24091_v42 = vld [vmem:[%s33014_s2 + $0x1618] ss:$20 sps:$4 sm:$0xff]  }
 0x60f   : > { %21599 = vmatprep.subr.bf16.mxu1 %v24036_v10  ;;  %v24092_v54 = vld [vmem:[%s33014_s2 + $0x1898] ss:$20 sps:$4 sm:$0xff]  }
 0x610   : > { %v24093_v10 = vld [vmem:[%s33014_s2 + $0x14d8] ss:$20 sps:$4 sm:$0xff]  }
 0x611   : > { %21578 = vmatpush3.bf16.msra.mxu0 %v24037_v5  ;;  %v24094_v5 = vld [vmem:[%s33014_s2 + $0x1758] ss:$20 sps:$4 sm:$0xff]  }
 0x612   : > { %21600 = vmatpush3.bf16.msra.mxu1 %v24038_v28  ;;  %21607 = vmatprep.subr.bf16.mxu0 %v24039_v63  ;;  %v24095_v28 = vld [vmem:[%s33014_s2 + $0x1640] ss:$20 sps:$4 sm:$0xff]  }
 0x613   : > { %21629 = vmatprep.subr.bf16.mxu1 %v24040_v51  ;;  %v24096_v63 = vld [vmem:[%s33014_s2 + $0x18c0] ss:$20 sps:$4 sm:$0xff]  }
 0x614   : > { %9408 = vmatmul.mubr.bf16.vlgmr.msra.gmra.mrb[24].mxu0 %v27718_v29  ;;  %v24047_v29 = vld [vmem:[%s33014_s2 + $0x10a0] ss:$20 sps:$4 sm:$0xff]  }
 0x615   : > { %9448 = vmatmul.mubr.bf16.vlgmr.msra.gmra.mrb[28].mxu1 %v27934_v6  ;;  %21608 = vmatpush3.bf16.msra.mxu0 %v24041_v7  ;;  %v24048_v6 = vld [vmem:[%s33014_s2 + $0x1320] ss:$20 sps:$4 sm:$0xff]  }
 0x616   : > { %9487 = vmatprep.mubr.bf16.mxu0 %v27943_v46  ;;  %21630 = vmatpush3.bf16.msra.mxu1 %v24042_v41  ;;  %v24049_v46 = vld [vmem:[%s33014_s2 + $0xf60] ss:$20 sps:$4 sm:$0xff]   ;;  %v24099_v41 = vld [vmem:[%s33014_s2 + $0x1668] ss:$20 sps:$4 sm:$0xff]  }
 0x617   : > { %9527 = vmatprep.mubr.bf16.mxu1 %v28159_v52  ;;  %21609 = vmatprep.subr.bf16.mxu0 %v24043_v16  ;;  %v24051_v52 = vld [vmem:[%s33014_s2 + $0x10c8] ss:$20 sps:$4 sm:$0xff]   ;;  %v24097_v51 = vld [vmem:[%s33014_s2 + $0x1500] ss:$20 sps:$4 sm:$0xff]  }
 0x618   : > { %21631 = vmatprep.subr.bf16.mxu1 %v24044_v36  ;;  %v24098_v7 = vld [vmem:[%s33014_s2 + $0x1780] ss:$20 sps:$4 sm:$0xff]   ;;  %v24100_v16 = vld [vmem:[%s33014_s2 + $0x18e8] ss:$20 sps:$4 sm:$0xff]  }
 0x619   : > { %21610 = vmatpush3.bf16.msra.mxu0 %v24045_v26  ;;  %v24101_v36 = vld [vmem:[%s33014_s2 + $0x1528] ss:$20 sps:$4 sm:$0xff]  }
 0x61a   : > { %21632 = vmatpush3.bf16.msra.mxu1 %v24046_v30  ;;  %21611 = vmatprep.subr.bf16.mxu0 %v24047_v29  ;;  %v24102_v26 = vld [vmem:[%s33014_s2 + $0x17a8] ss:$20 sps:$4 sm:$0xff]   ;;  %v24103_v30 = vld [vmem:[%s33014_s2 + $0x1a50] ss:$20 sps:$4 sm:$0xff]  }
 0x61b   : > { %21633 = vmatprep.subr.bf16.mxu1 %v24048_v6  ;;  %v24104_v29 = vld [vmem:[%s33014_s2 + $0x1910] ss:$20 sps:$4 sm:$0xff]  }
 0x61c   : > { %v24105_v6 = vld [vmem:[%s33014_s2 + $0x1b90] ss:$20 sps:$4 sm:$0xff]  }
 0x61d   : > { %21612 = vmatpush3.bf16.msra.mxu0 %v24049_v46  ;;  %v24106_v46 = vld [vmem:[%s33014_s2 + $0x1a78] ss:$20 sps:$4 sm:$0xff]  }
 0x61e   : > { %21634 = vmatpush3.bf16.msra.mxu1 %v24050_v56  ;;  %21613 = vmatprep.subr.bf16.mxu0 %v24051_v52  ;;  %v24107_v56 = vld [vmem:[%s33014_s2 + $0x1938] ss:$20 sps:$4 sm:$0xff]  }
 0x61f   : > { %21635 = vmatprep.subr.bf16.mxu1 %v24052_v1  ;;  %v24108_v52 = vld [vmem:[%s33014_s2 + $0x1bb8] ss:$20 sps:$4 sm:$0xff]   ;;  %v24109_v1 = vld [vmem:[%s33014_s2 + $0x1aa0] ss:$20 sps:$4 sm:$0xff]  }
 0x621   : > { %21614 = vmatpush3.bf16.msra.mxu0 %v24053_v61  ;;  %v24113_v61 = vld [vmem:[%s33014_s2 + $0x1988] ss:$20 sps:$4 sm:$0xff]  }
 0x622   : > { %21636 = vmatpush3.bf16.msra.mxu1 %v24054_v24  ;;  %21615 = vmatprep.subr.bf16.mxu0 %v24055_v44  ;;  %v24114_v24 = vld [vmem:[%s33014_s2 + $0x1c08] ss:$20 sps:$4 sm:$0xff]   ;;  %v24115_v44 = vld [vmem:[%s33014_s2 + $0x1af0] ss:$20 sps:$4 sm:$0xff]  }
 0x623   : > { %21637 = vmatprep.subr.bf16.mxu1 %v24056_v59  ;;  %v24116_v59 = vld [vmem:[%s33014_s2 + $0x19b0] ss:$20 sps:$4 sm:$0xff]  }
 0x625   : > { %21616 = vmatpush3.bf16.msra.mxu0 %v24057_v53  ;;  %v24117_v53 = vld [vmem:[%s33014_s2 + $0x1c30] ss:$20 sps:$4 sm:$0xff]  }
 0x626   : > { %21638 = vmatpush3.bf16.msra.mxu1 %v24058_v32  ;;  %21617 = vmatprep.subr.bf16.mxu0 %v24059_v11  ;;  %v24118_v32 = vld [vmem:[%s33014_s2 + $0x1b18] ss:$20 sps:$4 sm:$0xff]  }
 0x627   : > { %21639 = vmatprep.subr.bf16.mxu1 %v24060_v17  ;;  %v24119_v11 = vld [vmem:[%s33014_s2 + $0x19d8] ss:$20 sps:$4 sm:$0xff]  }
 0x628   : > { %v24120_v17 = vld [vmem:[%s33014_s2 + $0x1c58] ss:$20 sps:$4 sm:$0xff]  }
 0x629   : > { %21618 = vmatpush3.bf16.msra.mxu0 %v24061_v50  ;;  %v24121_v50 = vld [vmem:[%s33014_s2 + $0x1b40] ss:$20 sps:$4 sm:$0xff]  }
 0x62a   : > { %21640 = vmatpush3.bf16.msra.mxu1 %v24062_v48  ;;  %21619 = vmatprep.subr.bf16.mxu0 %v24063_v57  ;;  %v24122_v48 = vld [vmem:[%s33014_s2 + $0x1a00] ss:$20 sps:$4 sm:$0xff]  }
 0x62b   : > { %21641 = vmatprep.subr.bf16.mxu1 %v24064_v45  ;;  %v24123_v57 = vld [vmem:[%s33014_s2 + $0x1c80] ss:$20 sps:$4 sm:$0xff]   ;;  %v24124_v45 = vld [vmem:[%s33014_s2 + $0x1b68] ss:$20 sps:$4 sm:$0xff]  }
 0x62d   : > { %21620 = vmatpush3.bf16.msra.mxu0 %v24065_v43  ;;  %v24125_v43 = vld [vmem:[%s33014_s2 + $0x1a28] ss:$20 sps:$4 sm:$0xff]  }
 0x62e   : > { %21642 = vmatpush3.bf16.msra.mxu1 %v24066_v23  ;;  %21621 = vmatprep.subr.bf16.mxu0 %v24067_v35  ;;  %v24126_v23 = vld [vmem:[%s33014_s2 + $0x1ca8] ss:$20 sps:$4 sm:$0xff]   ;;  %v24129_v35 = vld [vmem:[%s33015_s3 + $0x4] ss:$12 sps:$4 sm:$0xff]  }
 0x62f   : > { %21643 = vmatprep.subr.bf16.mxu1 %v24068_v22  ;;  %v24130_v22 = vld [vmem:[%s33015_s3 + $0xc8] ss:$12 sps:$4 sm:$0xff]  }
 0x631   : > { %21622 = vmatpush3.bf16.msra.mxu0 %v24069_v0  ;;  %v24127_v0 = vld [vmem:[%s33015_s3] ss:$12 sps:$4 sm:$0xff]  }
 0x632   : > { %21644 = vmatpush3.bf16.msra.mxu1 %v24070_v34  ;;  %21651 = vmatprep.subr.bf16.mxu0 %v24071_v55  ;;  %v24131_v34 = vld [vmem:[%s33015_s3 + $0x8] ss:$12 sps:$4 sm:$0xff]  }
 0x633   : > { %21673 = vmatprep.subr.bf16.mxu1 %v24072_v31  ;;  %v24134_v55 = vld [vmem:[%s33015_s3 + $0x1c] ss:$12 sps:$4 sm:$0xff]   ;;  %v24135_v31 = vld [vmem:[%s33015_s3 + $0xe0] ss:$12 sps:$4 sm:$0xff]  }
 0x634   : > { %9488 = vmatmul.mubr.bf16.vlgmr.msra.gmra.mrb[28].mxu0 %v28150_v20  ;;  %v24079_v20 = vld [vmem:[%s33014_s2 + $0x15a0] ss:$20 sps:$4 sm:$0xff]  }
 0x635   : > { %9528 = vmatmul.mubr.bf16.vlgmr.msra.gmra.mrb[32].mxu1 %v28366_v3  ;;  %21652 = vmatpush3.bf16.msra.mxu0 %v24073_v21  ;;  %v24080_v3 = vld [vmem:[%s33014_s2 + $0x1820] ss:$20 sps:$4 sm:$0xff]   ;;  %v24132_v21 = vld [vmem:[%s33015_s3 + $0x18] ss:$12 sps:$4 sm:$0xff]  }
 0x636   : > { %9567 = vmatprep.mubr.bf16.mxu0 %v28375_v47  ;;  %21674 = vmatpush3.bf16.msra.mxu1 %v24074_v2  ;;  %v24081_v47 = vld [vmem:[%s33014_s2 + $0x1460] ss:$20 sps:$4 sm:$0xff]  }
 0x637   : > { %9607 = vmatprep.mubr.bf16.mxu1 %v28591_v27  ;;  %21653 = vmatprep.subr.bf16.mxu0 %v24075_v9  ;;  %v24083_v27 = vld [vmem:[%s33014_s2 + $0x15c8] ss:$20 sps:$4 sm:$0xff]   ;;  %v24136_v2 = vld [vmem:[%s33015_s3 + $0x20] ss:$12 sps:$4 sm:$0xff]  }
 0x638   : > { %21675 = vmatprep.subr.bf16.mxu1 %v24076_v38  ;;  %v24139_v9 = vld [vmem:[%s33015_s3 + $0x34] ss:$12 sps:$4 sm:$0xff]   ;;  %v24141_v38 = vld [vmem:[%s33015_s3 + $0x38] ss:$12 sps:$4 sm:$0xff]  }
 0x639   : > { %21654 = vmatpush3.bf16.msra.mxu0 %v24077_v18  ;;  %v24144_v18 = vld [vmem:[%s33015_s3 + $0x4c] ss:$12 sps:$4 sm:$0xff]  }
 0x63a   : > { %21676 = vmatpush3.bf16.msra.mxu1 %v24078_v60  ;;  %21655 = vmatprep.subr.bf16.mxu0 %v24079_v20  ;;  %v24145_v60 = vld [vmem:[%s33015_s3 + $0x110] ss:$12 sps:$4 sm:$0xff]   ;;  %v24142_v20 = vld [vmem:[%s33015_s3 + $0x48] ss:$12 sps:$4 sm:$0xff]  }
 0x63b   : > { %21677 = vmatprep.subr.bf16.mxu1 %v24080_v3  ;;  %v24146_v3 = vld [vmem:[%s33015_s3 + $0x50] ss:$12 sps:$4 sm:$0xff]  }
 0x63d   : > { %21656 = vmatpush3.bf16.msra.mxu0 %v24081_v47  ;;  %v24149_v47 = vld [vmem:[%s33015_s3 + $0x64] ss:$12 sps:$4 sm:$0xff]  }
 0x63e   : > { %21678 = vmatpush3.bf16.msra.mxu1 %v24082_v33  ;;  %21657 = vmatprep.subr.bf16.mxu0 %v24083_v27  ;;  %v24150_v33 = vld [vmem:[%s33015_s3 + $0x128] ss:$12 sps:$4 sm:$0xff]   ;;  %v24147_v27 = vld [vmem:[%s33015_s3 + $0x60] ss:$12 sps:$4 sm:$0xff]  }
 0x63f   : > { %21679 = vmatprep.subr.bf16.mxu1 %v24084_v49  ;;  %v24151_v49 = vld [vmem:[%s33015_s3 + $0x68] ss:$12 sps:$4 sm:$0xff]  }
 0x641   : > { %21658 = vmatpush3.bf16.msra.mxu0 %v24085_v12  ;;  %v24154_v12 = vld [vmem:[%s33015_s3 + $0x7c] ss:$12 sps:$4 sm:$0xff]  }
 0x642   : > { %21680 = vmatpush3.bf16.msra.mxu1 %v24086_v40  ;;  %21659 = vmatprep.subr.bf16.mxu0 %v24087_v62  ;;  %v24155_v40 = vld [vmem:[%s33015_s3 + $0x140] ss:$12 sps:$4 sm:$0xff]   ;;  %v24152_v62 = vld [vmem:[%s33015_s3 + $0x78] ss:$12 sps:$4 sm:$0xff]  }
 0x643   : > { %21681 = vmatprep.subr.bf16.mxu1 %v24088_v19  ;;  %v24156_v19 = vld [vmem:[%s33015_s3 + $0x80] ss:$12 sps:$4 sm:$0xff]  }
 0x645   : > { %21660 = vmatpush3.bf16.msra.mxu0 %v24089_v13  ;;  %v24159_v13 = vld [vmem:[%s33015_s3 + $0x94] ss:$12 sps:$4 sm:$0xff]  }
 0x646   : > { %21682 = vmatpush3.bf16.msra.mxu1 %v24090_v25  ;;  %21661 = vmatprep.subr.bf16.mxu0 %v24091_v42 }
 0x647   : > { %21683 = vmatprep.subr.bf16.mxu1 %v24092_v54 }
 0x649   : > { %21662 = vmatpush3.bf16.msra.mxu0 %v24093_v10  ;;  %v24160_v10 = vld [vmem:[%s33015_s3 + $0x158] ss:$12 sps:$4 sm:$0xff]  }
 0x64a   : > { %21684 = vmatpush3.bf16.msra.mxu1 %v24094_v5  ;;  %21663 = vmatprep.subr.bf16.mxu0 %v24095_v28 }
 0x64b   : > { %21685 = vmatprep.subr.bf16.mxu1 %v24096_v63 }
 0x64d   : > { %21664 = vmatpush3.bf16.msra.mxu0 %v24097_v51  ;;  %v24157_v51 = vld [vmem:[%s33015_s3 + $0x90] ss:$12 sps:$4 sm:$0xff]  }
 0x64e   : > { %21686 = vmatpush3.bf16.msra.mxu1 %v24098_v7  ;;  %21665 = vmatprep.subr.bf16.mxu0 %v24099_v41 }
 0x64f   : > { %21687 = vmatprep.subr.bf16.mxu1 %v24100_v16  ;;  %v24161_v16 = vld [vmem:[%s33015_s3 + $0x98] ss:$12 sps:$4 sm:$0xff]  }
 0x651   : > { %21666 = vmatpush3.bf16.msra.mxu0 %v24101_v36  ;;  %v24164_v36 = vld [vmem:[%s33015_s3 + $0xac] ss:$12 sps:$4 sm:$0xff]  }
 0x652   : > { %21688 = vmatpush3.bf16.msra.mxu1 %v24102_v26  ;;  %21695 = vmatprep.subr.bf16.mxu0 %v24103_v30  ;;  %v24165_v30 = vld [vmem:[%s33015_s3 + $0x170] ss:$12 sps:$4 sm:$0xff]  }
 0x653   : > { %22184 = vmatprep.subr.bf16.mxu1 %v25465_v4 }
 0x654   : > { %9568 = vmatmul.mubr.bf16.vlgmr.msra.gmra.mrb[32].mxu0 %v28582_v8  ;;  %v24110_v8 = vld [vmem:[%s33014_s2 + $0x1960] ss:$20 sps:$4 sm:$0xff]  }
 0x655   : > { %9608 = vmatmul.mubr.bf16.vlgmr.msra.gmra.mrb[36].mxu1 %v28798_v15  ;;  %21696 = vmatpush3.bf16.msra.mxu0 %v24104_v29  ;;  %v24111_v15 = vld [vmem:[%s33014_s2 + $0x1be0] ss:$20 sps:$4 sm:$0xff]  }
 0x656   : > { %9647 = vmatprep.mubr.bf16.mxu0 %v28807_v14  ;;  %22185 = vmatpush3.bf16.msra.mxu1 %v24105_v6  ;;  %v24112_v14 = vld [vmem:[%s33014_s2 + $0x1ac8] ss:$20 sps:$4 sm:$0xff]  }
 0x657   : > { %21697 = vmatprep.subr.bf16.mxu0 %v24106_v46  ;;  %22186 = vmatprep.subr.bf16.mxu1 %v25465_v4  ;;  %v24162_v29 = vld [vmem:[%s33015_s3 + $0xa8] ss:$12 sps:$4 sm:$0xff]   ;;  %v24166_v6 = vld [vmem:[%s33015_s3 + $0xb0] ss:$12 sps:$4 sm:$0xff]  }
 0x658   : > { %22200 = vmatprep.mubr.msk.bf16.mxu1 %vm25467_vm0, %v25465_v4  ;;  %v24169_v46 = vld [vmem:[%s33015_s3 + $0xc4] ss:$12 sps:$4 sm:$0xff]  }
 0x659   : > { %21698 = vmatpush3.bf16.msra.mxu0 %v24107_v56  ;;  %v24170_v56 = vld [vmem:[%s33015_s3 + $0x248] ss:$12 sps:$4 sm:$0xff]  }
 0x65a   : > { %22187 = vmatpush3.bf16.msra.mxu1 %v24108_v52  ;;  %21699 = vmatprep.subr.bf16.mxu0 %v24109_v1  ;;  %v24167_v52 = vld [vmem:[%s33015_s3 + $0xc0] ss:$12 sps:$4 sm:$0xff]   ;;  %v24171_v1 = vld [vmem:[%s33015_s3 + $0x188] ss:$12 sps:$4 sm:$0xff]  }
 0x65b   : > { %22188 = vmatprep.subr.bf16.mxu1 %v25465_v4 }
 0x65d   : > { %21700 = vmatpush3.bf16.msra.mxu0 %v24110_v8 }
 0x65e   : > { %22189 = vmatpush3.bf16.msra.mxu1 %v24111_v15  ;;  %21701 = vmatprep.subr.bf16.mxu0 %v24112_v14  ;;  %v24174_v15 = vld [vmem:[%s33015_s3 + $0xdc] ss:$12 sps:$4 sm:$0xff]   ;;  %v24175_v14 = vld [vmem:[%s33015_s3 + $0x260] ss:$12 sps:$4 sm:$0xff]  }
 0x65f   : > { %22190 = vmatprep.subr.bf16.mxu1 %v25465_v4 }
 0x661   : > { %21702 = vmatpush3.bf16.msra.mxu0 %v24113_v61 }
 0x662   : > { %22191 = vmatpush3.bf16.msra.mxu1 %v24114_v24  ;;  %21703 = vmatprep.subr.bf16.mxu0 %v24115_v44  ;;  %v24172_v24 = vld [vmem:[%s33015_s3 + $0xd8] ss:$12 sps:$4 sm:$0xff]   ;;  %v24176_v44 = vld [vmem:[%s33015_s3 + $0x1a0] ss:$12 sps:$4 sm:$0xff]  }
 0x663   : > { %22192 = vmatprep.subr.bf16.mxu1 %v25465_v4 }
 0x665   : > { %21704 = vmatpush3.bf16.msra.mxu0 %v24116_v59  ;;  %v24179_v59 = vld [vmem:[%s33015_s3 + $0xf4] ss:$12 sps:$4 sm:$0xff]  }
 0x666   : > { %22193 = vmatpush3.bf16.msra.mxu1 %v24117_v53  ;;  %21705 = vmatprep.subr.bf16.mxu0 %v24118_v32  ;;  %v24180_v53 = vld [vmem:[%s33015_s3 + $0x278] ss:$12 sps:$4 sm:$0xff]   ;;  %v24177_v32 = vld [vmem:[%s33015_s3 + $0xf0] ss:$12 sps:$4 sm:$0xff]  }
 0x667   : > { %22194 = vmatprep.subr.bf16.mxu1 %v25465_v4 }
 0x669   : > { %21706 = vmatpush3.bf16.msra.mxu0 %v24119_v11  ;;  %v24181_v11 = vld [vmem:[%s33015_s3 + $0x1b8] ss:$12 sps:$4 sm:$0xff]  }
 0x66a   : > { %22195 = vmatpush3.bf16.msra.mxu1 %v24120_v17  ;;  %21707 = vmatprep.subr.bf16.mxu0 %v24121_v50  ;;  %v24184_v17 = vld [vmem:[%s33015_s3 + $0x10c] ss:$12 sps:$4 sm:$0xff]   ;;  %v24185_v50 = vld [vmem:[%s33015_s3 + $0x290] ss:$12 sps:$4 sm:$0xff]  }
 0x66b   : > { %22196 = vmatprep.subr.bf16.mxu1 %v25465_v4 }
 0x66d   : > { %21708 = vmatpush3.bf16.msra.mxu0 %v24122_v48  ;;  %v24182_v48 = vld [vmem:[%s33015_s3 + $0x108] ss:$12 sps:$4 sm:$0xff]  }
 0x66e   : > { %22197 = vmatpush3.bf16.msra.mxu1 %v24123_v57  ;;  %21709 = vmatprep.subr.bf16.mxu0 %v24124_v45  ;;  %v24186_v57 = vld [vmem:[%s33015_s3 + $0x1d0] ss:$12 sps:$4 sm:$0xff]  }
 0x66f   : > { %22198 = vmatprep.subr.bf16.mxu1 %v25465_v4  ;;  %v24189_v45 = vld [vmem:[%s33015_s3 + $0x124] ss:$12 sps:$4 sm:$0xff]  }
 0x671   : > { %21710 = vmatpush3.bf16.msra.mxu0 %v24125_v43  ;;  %v24190_v43 = vld [vmem:[%s33015_s3 + $0x2a8] ss:$12 sps:$4 sm:$0xff]  }
 0x672   : > { %22199 = vmatpush3.bf16.msra.mxu1 %v24126_v23  ;;  %10485 = vmatprep.subr.bf16.mxu0 %v24129_v35  ;;  %v24187_v23 = vld [vmem:[%s33015_s3 + $0x120] ss:$12 sps:$4 sm:$0xff]   ;;  %v24191_v35 = vld [vmem:[%s33015_s3 + $0x1e8] ss:$12 sps:$4 sm:$0xff]  }
 0x673   : > { %21726 = vmatprep.subr.bf16.mxu1 %v24130_v22  ;;  %v24194_v22 = vld [vmem:[%s33015_s3 + $0x13c] ss:$12 sps:$4 sm:$0xff]  }
 0x674   : > { %9648 = vmatmul.mubr.bf16.vlgmr.msra.gmra.mrb[36].mxu0 %v29004_v58  ;;  %v24140_v58 = vld [vmem:[%s33015_s3 + $0xf8] ss:$12 sps:$4 sm:$0xff]  }
 0x675   : > { %22201 = vmatmul.mubr.bf16.vlgmr.msra.gmra.mrb[40].mxu1 %v29110_v39  ;;  %10486 = vmatpush1.bf16.msra.mxu0 %v24127_v0  ;;  %v24137_v39 = vld [vmem:[%s33015_s3 + $0x30] ss:$12 sps:$4 sm:$0xff]   ;;  %v24195_v0 = vld [vmem:[%s33015_s3 + $0x2c0] ss:$12 sps:$4 sm:$0xff]  }
 0x676   : > { %21727 = vmatpush3.bf16.msra.mxu1 %v24131_v34  ;;  %10487 = vmatprep.subr.bf16.mxu0 %v24134_v55  ;;  %v24192_v34 = vld [vmem:[%s33015_s3 + $0x138] ss:$12 sps:$4 sm:$0xff]   ;;  %v24196_v55 = vld [vmem:[%s33015_s3 + $0x200] ss:$12 sps:$4 sm:$0xff]  }
 0x677   : > { %21728 = vmatprep.subr.bf16.mxu1 %v24135_v31  ;;  %v24199_v31 = vld [vmem:[%s33015_s3 + $0x154] ss:$12 sps:$4 sm:$0xff]  }
 0x679   : > { %10488 = vmatpush1.bf16.msra.mxu0 %v24132_v21 }
 0x67a   : > { %21729 = vmatpush3.bf16.msra.mxu1 %v24136_v2  ;;  %10489 = vmatprep.subr.bf16.mxu0 %v24139_v9  ;;  %v24200_v2 = vld [vmem:[%s33015_s3 + $0x2d8] ss:$12 sps:$4 sm:$0xff]  }
 0x67b   : > { %21730 = vmatprep.subr.bf16.mxu1 %v24140_v58 }
 0x67d   : > { %10490 = vmatpush1.bf16.msra.mxu0 %v24137_v39 }
 0x67e   : > { %21731 = vmatpush3.bf16.msra.mxu1 %v24141_v38  ;;  %10491 = vmatprep.subr.bf16.mxu0 %v24144_v18 }
 0x67f   : > { %21732 = vmatprep.subr.bf16.mxu1 %v24145_v60  ;;  %v24197_v60 = vld [vmem:[%s33015_s3 + $0x150] ss:$12 sps:$4 sm:$0xff]  }
 0x681   : > { %10492 = vmatpush1.bf16.msra.mxu0 %v24142_v20 }
 0x682   : > { %21733 = vmatpush3.bf16.msra.mxu1 %v24146_v3  ;;  %10493 = vmatprep.subr.bf16.mxu0 %v24149_v47 }
 0x683   : > { %21734 = vmatprep.subr.bf16.mxu1 %v24150_v33  ;;  %v24201_v33 = vld [vmem:[%s33015_s3 + $0x218] ss:$12 sps:$4 sm:$0xff]  }
 0x685   : > { %10494 = vmatpush1.bf16.msra.mxu0 %v24147_v27  ;;  %v24204_v27 = vld [vmem:[%s33015_s3 + $0x16c] ss:$12 sps:$4 sm:$0xff]  }
 0x686   : > { %21735 = vmatpush3.bf16.msra.mxu1 %v24151_v49  ;;  %10495 = vmatprep.subr.bf16.mxu0 %v24154_v12  ;;  %v24205_v12 = vld [vmem:[%s33015_s3 + $0x2f0] ss:$12 sps:$4 sm:$0xff]  }
 0x687   : > { %v8716_v25 = vpop.f32.mrb[12].mxu0  ;;  %21736 = vmatprep.subr.bf16.mxu1 %v24155_v40 }
 0x688   : > { %v29765_v42 = vpop.f32.mrb[16].mxu1  ;;  %v8718_v54 = vpop.f32.mrb[13].mxu0  ;;  %v29804_v8 = vpack.c.bf16 %v8716_v25, %v8716_v25  ;;  %v24207_v25 = vld [vmem:[%s33015_s3 + $0x180] ss:$12 sps:$4 sm:$0xff]  }
 0x689   : > { %v29770_v5 = vpack.c.bf16 %v8718_v54, %v8718_v54  ;;  %v9210_v28 = vpop.f32.mrb[17].mxu1  ;;  %v8720_v63 = vpop.f32.mrb[14].mxu0  ;;  %10496 = vmatpush1.bf16.msra.mxu0 %v24152_v62  ;;  %v24202_v62 = vld [vmem:[%s33015_s3 + $0x168] ss:$12 sps:$4 sm:$0xff]  }
 0x68a   : > { %v9212_v7 = vpop.f32.mrb[18].mxu1  ;;  %21737 = vmatpush3.bf16.msra.mxu1 %v24156_v19  ;;  %v8721_v41 = vpop.f32.mrb[15].mxu0  ;;  %10497 = vmatprep.subr.bf16.mxu0 %v24159_v13  ;;  %v29812_v61 = vpack.c.bf16 %v9210_v28, %v9210_v28  ;;  %v24206_v19 = vld [vmem:[%s33015_s3 + $0x230] ss:$12 sps:$4 sm:$0xff]   ;;  %v24258_v28 = vld [vmem:[%s33015_s3 + $0x308] ss:$12 sps:$4 sm:$0xff]  }
 0x68b   : > { %v9213_v26 = vpop.f32.mrb[19].mxu1  ;;  %10517 = vmatprep.mubr.bf16.mxu0 %v29770_v5  ;;  %10640 = vmatprep.mubr.bf16.mxu1 %v29770_v5  ;;  %v24209_v13 = vld [vmem:[%s33015_s3 + $0x184] ss:$12 sps:$4 sm:$0xff]   ;;  %v24212_v54 = vld [vmem:[%s33015_s3 + $0x19c] ss:$12 sps:$4 sm:$0xff]  }
 0x68c   : > { %21738 = vmatprep.subr.bf16.mxu1 %v24160_v10  ;;  %v29907_v10 = vpack.c.bf16 %v29765_v42, %v29765_v42  ;;  %v24210_v63 = vld [vmem:[%s33015_s3 + $0x198] ss:$12 sps:$4 sm:$0xff]   ;;  %v24215_v42 = vld [vmem:[%s33015_s3 + $0x1b4] ss:$12 sps:$4 sm:$0xff]   ;;  %v24213_v7 = vld [vmem:[%s33015_s3 + $0x1b0] ss:$12 sps:$4 sm:$0xff]  }
 0x68d   : > { %10498 = vmatpush1.bf16.msra.mxu0 %v24157_v51  ;;  %v24262_v51 = vld [vmem:[%s33015_s3 + $0x320] ss:$12 sps:$4 sm:$0xff]   ;;  %v24221_v26 = vld [vmem:[%s33015_s3 + $0x1e4] ss:$12 sps:$4 sm:$0xff]  }
 0x68e   : > { %21739 = vmatpush3.bf16.msra.mxu1 %v24161_v16  ;;  %10499 = vmatprep.subr.bf16.mxu0 %v24164_v36  ;;  %v24218_v41 = vld [vmem:[%s33015_s3 + $0x1cc] ss:$12 sps:$4 sm:$0xff]   ;;  %v24216_v36 = vld [vmem:[%s33015_s3 + $0x1c8] ss:$12 sps:$4 sm:$0xff]  }
 0x68f   : > { %21740 = vmatprep.subr.bf16.mxu1 %v24165_v30  ;;  %v24266_v16 = vld [vmem:[%s33015_s3 + $0x338] ss:$12 sps:$4 sm:$0xff]   ;;  %v24270_v30 = vld [vmem:[%s33015_s3 + $0x350] ss:$12 sps:$4 sm:$0xff]  }
 0x691   : > { %10500 = vmatpush1.bf16.msra.mxu0 %v24162_v29  ;;  %v24219_v29 = vld [vmem:[%s33015_s3 + $0x1e0] ss:$12 sps:$4 sm:$0xff]  }
 0x692   : > { %21741 = vmatpush3.bf16.msra.mxu1 %v24166_v6  ;;  %10501 = vmatprep.subr.bf16.mxu0 %v24169_v46  ;;  %v24224_v6 = vld [vmem:[%s33015_s3 + $0x1fc] ss:$12 sps:$4 sm:$0xff]  }
 0x693   : > { %21748 = vmatprep.subr.bf16.mxu1 %v24170_v56  ;;  %v24274_v46 = vld [vmem:[%s33015_s3 + $0x368] ss:$12 sps:$4 sm:$0xff]   ;;  %v24222_v56 = vld [vmem:[%s33015_s3 + $0x1f8] ss:$12 sps:$4 sm:$0xff]  }
 0x695   : > { %10641 = vmatmul.mubr.bf16.vlgmr.msra.gmra.mrb[44].mxu1 %v29804_v8  ;;  %10502 = vmatpush1.bf16.msra.mxu0 %v24167_v52  ;;  %v24227_v52 = vld [vmem:[%s33015_s3 + $0x214] ss:$12 sps:$4 sm:$0xff]  }
 0x696   : > { %21749 = vmatpush3.bf16.msra.mxu1 %v24171_v1  ;;  %10680 = vmatprep.mubr.bf16.mxu1 %v29812_v61 }
 0x697   : > { %10503 = vmatprep.subr.bf16.mxu0 %v24174_v15  ;;  %21750 = vmatprep.subr.bf16.mxu1 %v24175_v14 }
 0x699   : > { %10504 = vmatpush1.bf16.msra.mxu0 %v24172_v24 }
 0x69a   : > { %21751 = vmatpush3.bf16.msra.mxu1 %v24176_v44  ;;  %10505 = vmatprep.subr.bf16.mxu0 %v24179_v59 }
 0x69b   : > { %21752 = vmatprep.subr.bf16.mxu1 %v24180_v53  ;;  %v24225_v53 = vld [vmem:[%s33015_s3 + $0x210] ss:$12 sps:$4 sm:$0xff]  }
 0x69d   : > { %10506 = vmatpush1.bf16.msra.mxu0 %v24177_v32 }
 0x69e   : > { %21753 = vmatpush3.bf16.msra.mxu1 %v24181_v11  ;;  %10507 = vmatprep.subr.bf16.mxu0 %v24184_v17 }
 0x69f   : > { %21754 = vmatprep.subr.bf16.mxu1 %v24185_v50  ;;  %v24230_v50 = vld [vmem:[%s33015_s3 + $0x22c] ss:$12 sps:$4 sm:$0xff]  }
 0x6a1   : > { %10508 = vmatpush1.bf16.msra.mxu0 %v24182_v48 }
 0x6a2   : > { %21755 = vmatpush3.bf16.msra.mxu1 %v24186_v57  ;;  %10509 = vmatprep.subr.bf16.mxu0 %v24189_v45  ;;  %v24278_v45 = vld [vmem:[%s33015_s3 + $0x380] ss:$12 sps:$4 sm:$0xff]  }
 0x6a3   : > { %21756 = vmatprep.subr.bf16.mxu1 %v24190_v43 }
 0x6a5   : > { %10510 = vmatpush1.bf16.msra.mxu0 %v24187_v23  ;;  %v24228_v23 = vld [vmem:[%s33015_s3 + $0x228] ss:$12 sps:$4 sm:$0xff]  }
 0x6a6   : > { %21757 = vmatpush3.bf16.msra.mxu1 %v24191_v35  ;;  %10511 = vmatprep.subr.bf16.mxu0 %v24194_v22  ;;  %v24233_v35 = vld [vmem:[%s33015_s3 + $0x244] ss:$12 sps:$4 sm:$0xff]  }
 0x6a7   : > { %v21491_v21 = vpop.f32.mrb[16].mxu0  ;;  %21758 = vmatprep.subr.bf16.mxu1 %v24195_v0  ;;  %v24282_v22 = vld [vmem:[%s33015_s3 + $0x398] ss:$12 sps:$4 sm:$0xff]  }
 0x6a8   : > { %v21513_v9 = vpop.f32.mrb[20].mxu1  ;;  %v21492_v58 = vpop.f32.mrb[17].mxu0  ;;  %v24285_v0 = vld [vmem:[%s33015_s3 + $0x3ac] ss:$12 sps:$4 sm:$0xff]  }
 0x6a9   : > { %v21493_v39 = vadd.f32 %v21492_v58, %v21491_v21  ;;  %v21514_v38 = vpop.f32.mrb[21].mxu1  ;;  %v21494_v18 = vpop.f32.mrb[18].mxu0  ;;  %10512 = vmatpush1.bf16.msra.mxu0 %v24192_v34  ;;  %v24231_v34 = vld [vmem:[%s33015_s3 + $0x240] ss:$12 sps:$4 sm:$0xff]   ;;  %v24240_v58 = vld [vmem:[%s33015_s3 + $0x288] ss:$12 sps:$4 sm:$0xff]  }
 0x6aa   : > { %v21515_v20 = vadd.f32 %v21514_v38, %v21513_v9  ;;  %v21516_v3 = vpop.f32.mrb[22].mxu1  ;;  %21759 = vmatpush3.bf16.msra.mxu1 %v24196_v55  ;;  %v21495_v47 = vpop.f32.mrb[19].mxu0  ;;  %10513 = vmatprep.subr.bf16.mxu0 %v24199_v31  ;;  %v24236_v55 = vld [vmem:[%s33015_s3 + $0x25c] ss:$12 sps:$4 sm:$0xff]   ;;  %v24234_v31 = vld [vmem:[%s33015_s3 + $0x258] ss:$12 sps:$4 sm:$0xff]  }
 0x6ab   : > { %v21517_v49 = vpop.f32.mrb[23].mxu1  ;;  %21760 = vmatprep.subr.bf16.mxu1 %v24200_v2  ;;  %v24239_v21 = vld [vmem:[%s33015_s3 + $0x274] ss:$12 sps:$4 sm:$0xff]   ;;  %v24237_v2 = vld [vmem:[%s33015_s3 + $0x270] ss:$12 sps:$4 sm:$0xff]  }
 0x6ac   : > { %v29888_v40 = vadd.f32 %v21515_v20, %v21493_v39  ;;  %v24242_v9 = vld [vmem:[%s33015_s3 + $0x28c] ss:$12 sps:$4 sm:$0xff]   ;;  %v24245_v39 = vld [vmem:[%s33015_s3 + $0x2a4] ss:$12 sps:$4 sm:$0xff]   ;;  %v24248_v18 = vld [vmem:[%s33015_s3 + $0x2bc] ss:$12 sps:$4 sm:$0xff]  }
 0x6ad   : > { %10514 = vmatpush1.bf16.msra.mxu0 %v24197_v60  ;;  %v24243_v38 = vld [vmem:[%s33015_s3 + $0x2a0] ss:$12 sps:$4 sm:$0xff]   ;;  %v24246_v60 = vld [vmem:[%s33015_s3 + $0x2b8] ss:$12 sps:$4 sm:$0xff]  }
 0x6ae   : > { %21761 = vmatpush3.bf16.msra.mxu1 %v24201_v33  ;;  %10515 = vmatprep.subr.bf16.mxu0 %v24204_v27  ;;  %v24251_v20 = vld [vmem:[%s33015_s3 + $0x2d4] ss:$12 sps:$4 sm:$0xff]  }
 0x6af   : > { %21762 = vmatprep.subr.bf16.mxu1 %v24205_v12 }
 0x6b1   : > { %10516 = vmatpush1.bf16.msra.mxu0 %v24202_v62 }
 0x6b2   : > { %21763 = vmatpush3.bf16.msra.mxu1 %v24206_v19  ;;  %10526 = vmatprep.subr.bf16.mxu0 %v24209_v13 }
 0x6b3   : > { %22204 = vmatprep.subr.bf16.mxu1 %v25465_v4 }
 0x6b4   : > { %10518 = vmatmul.mubr.bf16.vlgmr.msra.gmra.mrb[40].mxu0 %v29804_v8 }
 0x6b5   : > { %10681 = vmatmul.mubr.bf16.vlgmr.msra.gmra.mrb[48].mxu1 %v29907_v10  ;;  %10527 = vmatpush1.bf16.msra.mxu0 %v24207_v25  ;;  %v24254_v25 = vld [vmem:[%s33015_s3 + $0x2ec] ss:$12 sps:$4 sm:$0xff]  }
 0x6b6   : > { %10558 = vmatprep.mubr.bf16.mxu0 %v29812_v61  ;;  %10528 = vmatprep.subr.bf16.mxu0 %v24212_v54 }
 0x6b7   : > { %22205 = vmatpush3.bf16.msra.mxu1 %v24258_v28  ;;  %22218 = vmatprep.mubr.msk.bf16.mxu1 %vm25467_vm0, %v25465_v4 }
 0x6b8   : > { %22206 = vmatprep.subr.bf16.mxu1 %v25465_v4 }
 0x6b9   : > { %10529 = vmatpush1.bf16.msra.mxu0 %v24210_v63 }
 0x6ba   : > { %10530 = vmatprep.subr.bf16.mxu0 %v24215_v42  ;;  %v24252_v42 = vld [vmem:[%s33015_s3 + $0x2e8] ss:$12 sps:$4 sm:$0xff]  }
 0x6bb   : > { %22207 = vmatpush3.bf16.msra.mxu1 %v24262_v51  ;;  %v24257_v51 = vld [vmem:[%s33015_s3 + $0x304] ss:$12 sps:$4 sm:$0xff]  }
 0x6bc   : > { %22208 = vmatprep.subr.bf16.mxu1 %v25465_v4 }
 0x6bd   : > { %10531 = vmatpush1.bf16.msra.mxu0 %v24213_v7  ;;  %v24255_v7 = vld [vmem:[%s33015_s3 + $0x300] ss:$12 sps:$4 sm:$0xff]  }
 0x6be   : > { %10532 = vmatprep.subr.bf16.mxu0 %v24218_v41  ;;  %v24261_v41 = vld [vmem:[%s33015_s3 + $0x31c] ss:$12 sps:$4 sm:$0xff]  }
 0x6bf   : > { %22209 = vmatpush3.bf16.msra.mxu1 %v24266_v16  ;;  %v24259_v16 = vld [vmem:[%s33015_s3 + $0x318] ss:$12 sps:$4 sm:$0xff]  }
 0x6c0   : > { %22210 = vmatprep.subr.bf16.mxu1 %v25465_v4 }
 0x6c1   : > { %10533 = vmatpush1.bf16.msra.mxu0 %v24216_v36  ;;  %v24265_v36 = vld [vmem:[%s33015_s3 + $0x334] ss:$12 sps:$4 sm:$0xff]  }
 0x6c2   : > { %10534 = vmatprep.subr.bf16.mxu0 %v24221_v26  ;;  %v24263_v26 = vld [vmem:[%s33015_s3 + $0x330] ss:$12 sps:$4 sm:$0xff]  }
 0x6c3   : > { %22211 = vmatpush3.bf16.msra.mxu1 %v24270_v30  ;;  %v24269_v30 = vld [vmem:[%s33015_s3 + $0x34c] ss:$12 sps:$4 sm:$0xff]  }
 0x6c4   : > { %22212 = vmatprep.subr.bf16.mxu1 %v25465_v4 }
 0x6c5   : > { %10535 = vmatpush1.bf16.msra.mxu0 %v24219_v29  ;;  %v24267_v29 = vld [vmem:[%s33015_s3 + $0x348] ss:$12 sps:$4 sm:$0xff]  }
 0x6c6   : > { %10536 = vmatprep.subr.bf16.mxu0 %v24224_v6  ;;  %v24273_v6 = vld [vmem:[%s33015_s3 + $0x364] ss:$12 sps:$4 sm:$0xff]  }
 0x6c7   : > { %v21535_v1 = vpop.f32.mrb[20].mxu0  ;;  %22213 = vmatpush3.bf16.msra.mxu1 %v24274_v46  ;;  %v24271_v46 = vld [vmem:[%s33015_s3 + $0x360] ss:$12 sps:$4 sm:$0xff]  }
 0x6c8   : > { %v21557_v15 = vpop.f32.mrb[24].mxu1  ;;  %v21536_v14 = vpop.f32.mrb[21].mxu0  ;;  %22214 = vmatprep.subr.bf16.mxu1 %v25465_v4 }
 0x6c9   : > { %v21537_v24 = vadd.f32 %v21536_v14, %v21535_v1  ;;  %v21558_v44 = vpop.f32.mrb[25].mxu1  ;;  %v21538_v59 = vpop.f32.mrb[22].mxu0  ;;  %10537 = vmatpush1.bf16.msra.mxu0 %v24222_v56  ;;  %v24277_v56 = vld [vmem:[%s33015_s3 + $0x37c] ss:$12 sps:$4 sm:$0xff]   ;;  %v24281_v1 = vld [vmem:[%s33015_s3 + $0x394] ss:$12 sps:$4 sm:$0xff]  }
 0x6ca   : > { %v21559_v32 = vadd.f32 %v21558_v44, %v21557_v15  ;;  %v21560_v11 = vpop.f32.mrb[26].mxu1  ;;  %v21539_v17 = vpop.f32.mrb[23].mxu0  ;;  %10538 = vmatprep.subr.bf16.mxu0 %v24227_v52  ;;  %v24275_v52 = vld [vmem:[%s33015_s3 + $0x378] ss:$12 sps:$4 sm:$0xff]  }
 0x6cb   : > { %v9330_v48 = vadd.f32 %v21537_v24, %v29888_v40  ;;  %v21561_v57 = vpop.f32.mrb[27].mxu1  ;;  %22215 = vmatpush3.bf16.msra.mxu1 %v24278_v45  ;;  %v24249_v40 = vld [vmem:[%s33015_s3 + $0x2d0] ss:$12 sps:$4 sm:$0xff]  }
 0x6cc   : > { %22216 = vmatprep.subr.bf16.mxu1 %v25465_v4 }
 0x6cd   : > { %v9370_v43 = vadd.f32 %v21559_v32, %v9330_v48  ;;  %10539 = vmatpush1.bf16.msra.mxu0 %v24225_v53  ;;  %v24279_v32 = vld [vmem:[%s33015_s3 + $0x390] ss:$12 sps:$4 sm:$0xff]  }
 0x6ce   : > { %10540 = vmatprep.subr.bf16.mxu0 %v24230_v50  ;;  %v24286_v48 = vld [vmem:[%s33015_s3 + $0x470] ss:$12 sps:$4 sm:$0xff]  }
 0x6cf   : > { %22217 = vmatpush3.bf16.msra.mxu1 %v24282_v22 }
 0x6d0   : > { %11558 = vmatprep.subr.bf16.mxu1 %v24285_v0 }
 0x6d1   : > { %10541 = vmatpush1.bf16.msra.mxu0 %v24228_v23 }
 0x6d2   : > { %10542 = vmatprep.subr.bf16.mxu0 %v24233_v35 }
 0x6d5   : > { %10543 = vmatpush1.bf16.msra.mxu0 %v24231_v34 }
 0x6d6   : > { %10544 = vmatprep.subr.bf16.mxu0 %v24236_v55 }
 0x6d9   : > { %10545 = vmatpush1.bf16.msra.mxu0 %v24234_v31 }
 0x6da   : > { %10546 = vmatprep.subr.bf16.mxu0 %v24239_v21 }
 0x6dd   : > { %10547 = vmatpush1.bf16.msra.mxu0 %v24237_v2 }
 0x6de   : > { %10548 = vmatprep.subr.bf16.mxu0 %v24242_v9 }
 0x6e1   : > { %10549 = vmatpush1.bf16.msra.mxu0 %v24240_v58 }
 0x6e2   : > { %10550 = vmatprep.subr.bf16.mxu0 %v24245_v39 }
 0x6e5   : > { %10551 = vmatpush1.bf16.msra.mxu0 %v24243_v38 }
 0x6e6   : > { %10552 = vmatprep.subr.bf16.mxu0 %v24248_v18 }
 0x6e7   : > { %v21579_v3 = vpop.f32.mrb[24].mxu0 }
 0x6e8   : > { %v21601_v47 = vpop.f32.mrb[28].mxu1  ;;  %v21580_v33 = vpop.f32.mrb[25].mxu0 }
 0x6e9   : > { %v21581_v27 = vadd.f32 %v21580_v33, %v21579_v3  ;;  %v21602_v49 = vpop.f32.mrb[29].mxu1  ;;  %v21582_v12 = vpop.f32.mrb[26].mxu0  ;;  %10553 = vmatpush1.bf16.msra.mxu0 %v24246_v60 }
 0x6ea   : > { %v21603_v62 = vadd.f32 %v21602_v49, %v21601_v47  ;;  %v21604_v19 = vpop.f32.mrb[30].mxu1  ;;  %v21583_v13 = vpop.f32.mrb[27].mxu0  ;;  %10554 = vmatprep.subr.bf16.mxu0 %v24251_v20 }
 0x6eb   : > { %v9410_v54 = vadd.f32 %v21581_v27, %v9370_v43  ;;  %v21605_v28 = vpop.f32.mrb[31].mxu1  ;;  %v24287_v19 = vld [vmem:[%s33015_s3 + $0x3b0] ss:$12 sps:$4 sm:$0xff]  }
 0x6ec   : > { %v30099_v28 = vshrl.u32 %v29770_v5, 16 }
 0x6ed   : > { %v9450_v63 = vadd.f32 %v21603_v62, %v9410_v54  ;;  %10555 = vmatpush1.bf16.msra.mxu0 %v24249_v40  ;;  %v24283_v62 = vld [vmem:[%s33015_s3 + $0x3a8] ss:$12 sps:$4 sm:$0xff]  }
 0x6ee   : > { %10556 = vmatprep.subr.bf16.mxu0 %v24254_v25  ;;  %v24290_v25 = vld [vmem:[%s33015_s3 + $0x3c4] ss:$12 sps:$4 sm:$0xff]   ;;  %v24291_v54 = vld [vmem:[%s33015_s3 + $0x488] ss:$12 sps:$4 sm:$0xff]  }
 0x6f1   : > { %10557 = vmatpush1.bf16.msra.mxu0 %v24252_v42  ;;  %v24292_v42 = vld [vmem:[%s33015_s3 + $0x3c8] ss:$12 sps:$4 sm:$0xff]  }
 0x6f2   : > { %10567 = vmatprep.subr.bf16.mxu0 %v24257_v51  ;;  %v24295_v51 = vld [vmem:[%s33015_s3 + $0x3dc] ss:$12 sps:$4 sm:$0xff]  }
 0x6f4   : > { %10559 = vmatmul.mubr.bf16.vlgmr.msra.gmra.mrb[40].mxu0 %v29907_v10 }
 0x6f5   : > { %10568 = vmatpush1.bf16.msra.mxu0 %v24255_v7  ;;  %10599 = vmatprep.mubr.bf16.mxu0 %v25466_v37  ;;  %v24296_v7 = vld [vmem:[%s33015_s3 + $0x4a0] ss:$12 sps:$4 sm:$0xff]  }
 0x6f6   : > { %10569 = vmatprep.subr.bf16.mxu0 %v24261_v41  ;;  %v24293_v41 = vld [vmem:[%s33015_s3 + $0x3d8] ss:$12 sps:$4 sm:$0xff]  }
 0x6f9   : > { %10570 = vmatpush1.bf16.msra.mxu0 %v24259_v16  ;;  %v24297_v16 = vld [vmem:[%s33015_s3 + $0x3e0] ss:$12 sps:$4 sm:$0xff]  }
 0x6fa   : > { %10571 = vmatprep.subr.bf16.mxu0 %v24265_v36  ;;  %v24300_v36 = vld [vmem:[%s33015_s3 + $0x3f4] ss:$12 sps:$4 sm:$0xff]  }
 0x6fd   : > { %10572 = vmatpush1.bf16.msra.mxu0 %v24263_v26  ;;  %v24301_v26 = vld [vmem:[%s33015_s3 + $0x4b8] ss:$12 sps:$4 sm:$0xff]  }
 0x6fe   : > { %10573 = vmatprep.subr.bf16.mxu0 %v24269_v30  ;;  %v24298_v30 = vld [vmem:[%s33015_s3 + $0x3f0] ss:$12 sps:$4 sm:$0xff]  }
 0x701   : > { %10574 = vmatpush1.bf16.msra.mxu0 %v24267_v29  ;;  %v24302_v29 = vld [vmem:[%s33015_s3 + $0x3f8] ss:$12 sps:$4 sm:$0xff]  }
 0x702   : > { %10575 = vmatprep.subr.bf16.mxu0 %v24273_v6  ;;  %v24305_v6 = vld [vmem:[%s33015_s3 + $0x40c] ss:$12 sps:$4 sm:$0xff]  }
 0x705   : > { %10576 = vmatpush1.bf16.msra.mxu0 %v24271_v46  ;;  %v24306_v46 = vld [vmem:[%s33015_s3 + $0x4d0] ss:$12 sps:$4 sm:$0xff]  }
 0x706   : > { %10577 = vmatprep.subr.bf16.mxu0 %v24277_v56  ;;  %v24303_v56 = vld [vmem:[%s33015_s3 + $0x408] ss:$12 sps:$4 sm:$0xff]  }
 0x707   : > { %v21623_v15 = vpop.f32.mrb[28].mxu0 }
 0x708   : > { %v21645_v14 = vpop.f32.mrb[32].mxu1  ;;  %v21624_v24 = vpop.f32.mrb[29].mxu0 }
 0x709   : > { %v21625_v44 = vadd.f32 %v21624_v24, %v21623_v15  ;;  %v21646_v59 = vpop.f32.mrb[33].mxu1  ;;  %v21626_v53 = vpop.f32.mrb[30].mxu0  ;;  %10578 = vmatpush1.bf16.msra.mxu0 %v24275_v52  ;;  %v24307_v52 = vld [vmem:[%s33015_s3 + $0x410] ss:$12 sps:$4 sm:$0xff]   ;;  %v24311_v15 = vld [vmem:[%s33015_s3 + $0x4e8] ss:$12 sps:$4 sm:$0xff]  }
 0x70a   : > { %v21647_v11 = vadd.f32 %v21646_v59, %v21645_v14  ;;  %v21648_v17 = vpop.f32.mrb[34].mxu1  ;;  %v21627_v50 = vpop.f32.mrb[31].mxu0  ;;  %10579 = vmatprep.subr.bf16.mxu0 %v24281_v1  ;;  %v24310_v1 = vld [vmem:[%s33015_s3 + $0x424] ss:$12 sps:$4 sm:$0xff]   ;;  %v24308_v14 = vld [vmem:[%s33015_s3 + $0x420] ss:$12 sps:$4 sm:$0xff]  }
 0x70b   : > { %v9490_v57 = vadd.f32 %v21625_v44, %v9450_v63  ;;  %v21649_v45 = vpop.f32.mrb[35].mxu1  ;;  %v24288_v63 = vld [vmem:[%s33015_s3 + $0x3c0] ss:$12 sps:$4 sm:$0xff]   ;;  %v24312_v24 = vld [vmem:[%s33015_s3 + $0x428] ss:$12 sps:$4 sm:$0xff]  }
 0x70c   : > { %v24315_v44 = vld [vmem:[%s33015_s3 + $0x43c] ss:$12 sps:$4 sm:$0xff]   ;;  %v24316_v59 = vld [vmem:[%s33015_s3 + $0x500] ss:$12 sps:$4 sm:$0xff]   ;;  %v24313_v53 = vld [vmem:[%s33015_s3 + $0x438] ss:$12 sps:$4 sm:$0xff]  }
 0x70d   : > { %v9530_v43 = vadd.f32 %v21647_v11, %v9490_v57  ;;  %10580 = vmatpush1.bf16.msra.mxu0 %v24279_v32  ;;  %v24317_v32 = vld [vmem:[%s33015_s3 + $0x440] ss:$12 sps:$4 sm:$0xff]   ;;  %v24321_v17 = vld [vmem:[%s33015_s3 + $0x518] ss:$12 sps:$4 sm:$0xff]  }
 0x70e   : > { %21778 = vmatprep.subr.bf16.mxu0 %v24286_v48  ;;  %v24320_v11 = vld [vmem:[%s33015_s3 + $0x454] ss:$12 sps:$4 sm:$0xff]  }
 0x727   : > { %v21667_v23 = vpop.f32.mrb[32].mxu0 }
 0x728   : > { %v21689_v35 = vpop.f32.mrb[36].mxu1  ;;  %v21668_v22 = vpop.f32.mrb[33].mxu0 }
 0x729   : > { %v21669_v0 = vadd.f32 %v21668_v22, %v21667_v23  ;;  %v21690_v34 = vpop.f32.mrb[37].mxu1  ;;  %v21670_v55 = vpop.f32.mrb[34].mxu0  ;;  %v24322_v23 = vld [vmem:[%s33015_s3 + $0x458] ss:$12 sps:$4 sm:$0xff]  }
 0x72a   : > { %v21691_v31 = vadd.f32 %v21690_v34, %v21689_v35  ;;  %v21692_v21 = vpop.f32.mrb[38].mxu1  ;;  %v21671_v2 = vpop.f32.mrb[35].mxu0  ;;  %v24325_v22 = vld [vmem:[%s33015_s3 + $0x46c] ss:$12 sps:$4 sm:$0xff]   ;;  %v24323_v34 = vld [vmem:[%s33015_s3 + $0x468] ss:$12 sps:$4 sm:$0xff]  }
 0x72b   : > { %v9570_v9 = vadd.f32 %v21669_v0, %v9530_v43  ;;  %v21693_v58 = vpop.f32.mrb[39].mxu1  ;;  %v24318_v43 = vld [vmem:[%s33015_s3 + $0x450] ss:$12 sps:$4 sm:$0xff]   ;;  %v24331_v2 = vld [vmem:[%s33015_s3 + $0x608] ss:$12 sps:$4 sm:$0xff]  }
 0x72c   : > { %v24326_v0 = vld [vmem:[%s33015_s3 + $0x5f0] ss:$12 sps:$4 sm:$0xff]   ;;  %v24328_v58 = vld [vmem:[%s33015_s3 + $0x480] ss:$12 sps:$4 sm:$0xff]  }
 0x72d   : > { %v9610_v39 = vadd.f32 %v21691_v31, %v9570_v9  ;;  %v24327_v55 = vld [vmem:[%s33015_s3 + $0x530] ss:$12 sps:$4 sm:$0xff]   ;;  %v30196_v31 = vshrl.u32 %v29804_v8, 16  ;;  %v30206_v9 = vshrl.u32 %v29812_v61, 16 }
 0x72e   : > { %v24330_v21 = vld [vmem:[%s33015_s3 + $0x484] ss:$12 sps:$4 sm:$0xff]  }
 0x747   : > { %v21711_v38 = vpop.f32.mrb[36].mxu0 }
 0x748   : > { %v9689_v18 = vpop.f32.mrb[40].mxu1  ;;  %v21712_v60 = vpop.f32.mrb[37].mxu0 }
 0x749   : > { %v21713_v20 = vadd.f32 %v21712_v60, %v21711_v38  ;;  %v22202_v3 = vpop.f32.mrb[41].mxu1  ;;  %v21714_v47 = vpop.f32.mrb[38].mxu0  ;;  %v24335_v38 = vld [vmem:[%s33015_s3 + $0x49c] ss:$12 sps:$4 sm:$0xff]   ;;  %v24333_v60 = vld [vmem:[%s33015_s3 + $0x498] ss:$12 sps:$4 sm:$0xff]  }
 0x74a   : > { %v9692_v33 = vpop.f32.mrb[42].mxu1  ;;  %v21715_v27 = vpop.f32.mrb[39].mxu0  ;;  %v24340_v3 = vld [vmem:[%s33015_s3 + $0x4b4] ss:$12 sps:$4 sm:$0xff]   ;;  %v24341_v47 = vld [vmem:[%s33015_s3 + $0x638] ss:$12 sps:$4 sm:$0xff]  }
 0x74b   : > { %v9650_v49 = vadd.f32 %v21713_v20, %v9610_v39  ;;  %v22203_v12 = vpop.f32.mrb[43].mxu1  ;;  %v24332_v39 = vld [vmem:[%s33015_s3 + $0x548] ss:$12 sps:$4 sm:$0xff]   ;;  %v24337_v20 = vld [vmem:[%s33015_s3 + $0x560] ss:$12 sps:$4 sm:$0xff]  }
 0x74c   : > { %v24338_v33 = vld [vmem:[%s33015_s3 + $0x4b0] ss:$12 sps:$4 sm:$0xff]   ;;  %v24342_v27 = vld [vmem:[%s33015_s3 + $0x578] ss:$12 sps:$4 sm:$0xff]  }
 0x74d   : > { %v9690_v40 = vadd.f32 %v9689_v18, %v9650_v49  ;;  %v24336_v18 = vld [vmem:[%s33015_s3 + $0x620] ss:$12 sps:$4 sm:$0xff]   ;;  %v24346_v12 = vld [vmem:[%s33015_s3 + $0x650] ss:$12 sps:$4 sm:$0xff]  }
 0x74e   : > { %v24345_v49 = vld [vmem:[%s33015_s3 + $0x4cc] ss:$12 sps:$4 sm:$0xff]  }
 0x74f   : > { %v30086_v13 = vpack.c.bf16 %v9690_v40, %v9690_v40  ;;  %v24343_v40 = vld [vmem:[%s33015_s3 + $0x4c8] ss:$12 sps:$4 sm:$0xff]  }
 0x751   : > { %19543 = vmatmul.mubr.msk.bf16.vlgmr.msra.gmra.mrb[40].mxu0 %vm10481_vm2, %v30086_v13  ;;  %22219 = vmatmul.mubr.msk.bf16.vlgmr.msra.gmra.mrb[52].mxu1 %vm10481_vm2, %v30086_v13 }
 0x752   : > { %11559 = vmatpush1.bf16.msra.mxu1 %v24283_v62  ;;  %21779 = vmatpush3.bf16.msra.mxu0 %v24287_v19  ;;  %v24347_v62 = vld [vmem:[%s33015_s3 + $0x590] ss:$12 sps:$4 sm:$0xff]  }
 0x753   : > { %11590 = vmatprep.mubr.bf16.mxu1 %v30099_v28  ;;  %11713 = vmatprep.mubr.bf16.mxu0 %v30099_v28  ;;  %v24350_v19 = vld [vmem:[%s33015_s3 + $0x4e4] ss:$12 sps:$4 sm:$0xff]  }
 0x754   : > { %11560 = vmatprep.subr.bf16.mxu1 %v24290_v25  ;;  %21780 = vmatprep.subr.bf16.mxu0 %v24291_v54  ;;  %v24351_v25 = vld [vmem:[%s33015_s3 + $0x668] ss:$12 sps:$4 sm:$0xff]   ;;  %v24348_v54 = vld [vmem:[%s33015_s3 + $0x4e0] ss:$12 sps:$4 sm:$0xff]  }
 0x756   : > { %11561 = vmatpush1.bf16.msra.mxu1 %v24288_v63  ;;  %21781 = vmatpush3.bf16.msra.mxu0 %v24292_v42  ;;  %v24352_v63 = vld [vmem:[%s33015_s3 + $0x5a8] ss:$12 sps:$4 sm:$0xff]  }
 0x757   : > { %11562 = vmatprep.subr.bf16.mxu1 %v24295_v51  ;;  %21782 = vmatprep.subr.bf16.mxu0 %v24296_v7  ;;  %v24355_v42 = vld [vmem:[%s33015_s3 + $0x4fc] ss:$12 sps:$4 sm:$0xff]   ;;  %v24356_v51 = vld [vmem:[%s33015_s3 + $0x680] ss:$12 sps:$4 sm:$0xff]   ;;  %v24353_v7 = vld [vmem:[%s33015_s3 + $0x4f8] ss:$12 sps:$4 sm:$0xff]  }
 0x75a   : > { %11563 = vmatpush1.bf16.msra.mxu1 %v24293_v41  ;;  %21783 = vmatpush3.bf16.msra.mxu0 %v24297_v16  ;;  %v24357_v41 = vld [vmem:[%s33015_s3 + $0x5c0] ss:$12 sps:$4 sm:$0xff]  }
 0x75b   : > { %11564 = vmatprep.subr.bf16.mxu1 %v24300_v36  ;;  %21784 = vmatprep.subr.bf16.mxu0 %v24301_v26  ;;  %v24360_v16 = vld [vmem:[%s33015_s3 + $0x514] ss:$12 sps:$4 sm:$0xff]   ;;  %v24361_v36 = vld [vmem:[%s33015_s3 + $0x698] ss:$12 sps:$4 sm:$0xff]  }
 0x75e   : > { %11565 = vmatpush1.bf16.msra.mxu1 %v24298_v30  ;;  %21785 = vmatpush3.bf16.msra.mxu0 %v24302_v29 }
 0x75f   : > { %11566 = vmatprep.subr.bf16.mxu1 %v24305_v6  ;;  %21786 = vmatprep.subr.bf16.mxu0 %v24306_v46  ;;  %v24358_v46 = vld [vmem:[%s33015_s3 + $0x510] ss:$12 sps:$4 sm:$0xff]  }
 0x762   : > { %11567 = vmatpush1.bf16.msra.mxu1 %v24303_v56  ;;  %21787 = vmatpush3.bf16.msra.mxu0 %v24307_v52  ;;  %v24362_v56 = vld [vmem:[%s33015_s3 + $0x5d8] ss:$12 sps:$4 sm:$0xff]  }
 0x763   : > { %11568 = vmatprep.subr.bf16.mxu1 %v24310_v1  ;;  %21788 = vmatprep.subr.bf16.mxu0 %v24311_v15  ;;  %v24365_v1 = vld [vmem:[%s33015_s3 + $0x52c] ss:$12 sps:$4 sm:$0xff]  }
 0x766   : > { %11569 = vmatpush1.bf16.msra.mxu1 %v24308_v14  ;;  %21789 = vmatpush3.bf16.msra.mxu0 %v24312_v24  ;;  %v24363_v14 = vld [vmem:[%s33015_s3 + $0x528] ss:$12 sps:$4 sm:$0xff]   ;;  %v30297_v24 = vshrl.u32 %v29907_v10, 16 }
 0x767   : > { %11570 = vmatprep.subr.bf16.mxu1 %v24315_v44  ;;  %21790 = vmatprep.subr.bf16.mxu0 %v24316_v59  ;;  %v24366_v44 = vld [vmem:[%s33015_s3 + $0x6b0] ss:$12 sps:$4 sm:$0xff]  }
 0x768   : > { %v21742_v50 = vpop.f32.mrb[44].mxu1  ;;  %v24369_v59 = vld [vmem:[%s33015_s3 + $0x544] ss:$12 sps:$4 sm:$0xff]  }
 0x769   : > { %v21743_v48 = vpop.f32.mrb[45].mxu1 }
 0x76a   : > { %v30175_v57 = vadd.f32 %v21743_v48, %v21742_v50  ;;  %v21745_v45 = vpop.f32.mrb[46].mxu1  ;;  %11571 = vmatpush1.bf16.msra.mxu1 %v24313_v53  ;;  %21791 = vmatpush3.bf16.msra.mxu0 %v24317_v32  ;;  %v24367_v53 = vld [vmem:[%s33015_s3 + $0x540] ss:$12 sps:$4 sm:$0xff]   ;;  %v24370_v32 = vld [vmem:[%s33015_s3 + $0x6c8] ss:$12 sps:$4 sm:$0xff]  }
 0x76b   : > { %v21746_v35 = vpop.f32.mrb[47].mxu1  ;;  %11572 = vmatprep.subr.bf16.mxu1 %v24320_v11  ;;  %21792 = vmatprep.subr.bf16.mxu0 %v24321_v17  ;;  %v24373_v11 = vld [vmem:[%s33015_s3 + $0x55c] ss:$12 sps:$4 sm:$0xff]   ;;  %v24371_v17 = vld [vmem:[%s33015_s3 + $0x558] ss:$12 sps:$4 sm:$0xff]  }
 0x76c   : > { %v24374_v50 = vld [vmem:[%s33015_s3 + $0x6e0] ss:$12 sps:$4 sm:$0xff]   ;;  %v24378_v45 = vld [vmem:[%s33015_s3 + $0x6f8] ss:$12 sps:$4 sm:$0xff]   ;;  %v24382_v35 = vld [vmem:[%s33015_s3 + $0x710] ss:$12 sps:$4 sm:$0xff]  }
 0x76d   : > { %v24377_v48 = vld [vmem:[%s33015_s3 + $0x574] ss:$12 sps:$4 sm:$0xff]  }
 0x76e   : > { %11573 = vmatpush1.bf16.msra.mxu1 %v24318_v43  ;;  %21793 = vmatpush3.bf16.msra.mxu0 %v24322_v23  ;;  %v24381_v43 = vld [vmem:[%s33015_s3 + $0x58c] ss:$12 sps:$4 sm:$0xff]   ;;  %v24379_v23 = vld [vmem:[%s33015_s3 + $0x588] ss:$12 sps:$4 sm:$0xff]  }
 0x76f   : > { %11574 = vmatprep.subr.bf16.mxu1 %v24325_v22  ;;  %21800 = vmatprep.subr.bf16.mxu0 %v24326_v0  ;;  %v24385_v22 = vld [vmem:[%s33015_s3 + $0x5a4] ss:$12 sps:$4 sm:$0xff]   ;;  %v24383_v0 = vld [vmem:[%s33015_s3 + $0x5a0] ss:$12 sps:$4 sm:$0xff]  }
 0x771   : > { %11714 = vmatmul.mubr.bf16.vlgmr.msra.gmra.mrb[44].mxu0 %v30196_v31 }
 0x772   : > { %11575 = vmatpush1.bf16.msra.mxu1 %v24323_v34  ;;  %21801 = vmatpush3.bf16.msra.mxu0 %v24327_v55  ;;  %v24386_v34 = vld [vmem:[%s33015_s3 + $0x728] ss:$12 sps:$4 sm:$0xff]  }
 0x773   : > { %11753 = vmatprep.mubr.bf16.mxu0 %v30206_v9  ;;  %11576 = vmatprep.subr.bf16.mxu1 %v24330_v21  ;;  %v24389_v55 = vld [vmem:[%s33015_s3 + $0x5bc] ss:$12 sps:$4 sm:$0xff]   ;;  %v24387_v21 = vld [vmem:[%s33015_s3 + $0x5b8] ss:$12 sps:$4 sm:$0xff]  }
 0x774   : > { %21802 = vmatprep.subr.bf16.mxu0 %v24331_v2  ;;  %v24390_v2 = vld [vmem:[%s33015_s3 + $0x740] ss:$12 sps:$4 sm:$0xff]  }
 0x776   : > { %11577 = vmatpush1.bf16.msra.mxu1 %v24328_v58  ;;  %21803 = vmatpush3.bf16.msra.mxu0 %v24332_v39  ;;  %v24393_v58 = vld [vmem:[%s33015_s3 + $0x5d4] ss:$12 sps:$4 sm:$0xff]  }
 0x777   : > { %11578 = vmatprep.subr.bf16.mxu1 %v24335_v38  ;;  %21804 = vmatprep.subr.bf16.mxu0 %v24336_v18  ;;  %v24396_v39 = vld [vmem:[%s33015_s3 + $0x754] ss:$12 sps:$4 sm:$0xff]   ;;  %v24391_v38 = vld [vmem:[%s33015_s3 + $0x5d0] ss:$12 sps:$4 sm:$0xff]  }
 0x778   : > { %v24394_v18 = vld [vmem:[%s33015_s3 + $0x750] ss:$12 sps:$4 sm:$0xff]  }
 0x77a   : > { %11579 = vmatpush1.bf16.msra.mxu1 %v24333_v60  ;;  %21805 = vmatpush3.bf16.msra.mxu0 %v24337_v20  ;;  %v30381_v60 = vshrl.u32 %v30086_v13, 16  ;;  %v24399_v20 = vld [vmem:[%s33015_s3 + $0x5ec] ss:$12 sps:$4 sm:$0xff]  }
 0x77b   : > { %11580 = vmatprep.subr.bf16.mxu1 %v24340_v3  ;;  %21806 = vmatprep.subr.bf16.mxu0 %v24341_v47  ;;  %v24402_v3 = vld [vmem:[%s33015_s3 + $0x76c] ss:$12 sps:$4 sm:$0xff]   ;;  %v11992_v47 = vrot.slane %v29770_v5, 1 }
 0x77e   : > { %11581 = vmatpush1.bf16.msra.mxu1 %v24338_v33  ;;  %21807 = vmatpush3.bf16.msra.mxu0 %v24342_v27  ;;  %v24397_v33 = vld [vmem:[%s33015_s3 + $0x5e8] ss:$12 sps:$4 sm:$0xff]  }
 0x77f   : > { %11582 = vmatprep.subr.bf16.mxu1 %v24345_v49  ;;  %21808 = vmatprep.subr.bf16.mxu0 %v24346_v12  ;;  %v24400_v27 = vld [vmem:[%s33015_s3 + $0x768] ss:$12 sps:$4 sm:$0xff]   ;;  %v24405_v49 = vld [vmem:[%s33015_s3 + $0x604] ss:$12 sps:$4 sm:$0xff]  }
 0x780   : > { %v24408_v12 = vld [vmem:[%s33015_s3 + $0x784] ss:$12 sps:$4 sm:$0xff]  }
 0x782   : > { %11583 = vmatpush1.bf16.msra.mxu1 %v24343_v40  ;;  %21809 = vmatpush3.bf16.msra.mxu0 %v24347_v62  ;;  %v24403_v40 = vld [vmem:[%s33015_s3 + $0x600] ss:$12 sps:$4 sm:$0xff]  }
 0x783   : > { %11584 = vmatprep.subr.bf16.mxu1 %v24350_v19  ;;  %21810 = vmatprep.subr.bf16.mxu0 %v24351_v25  ;;  %v24406_v62 = vld [vmem:[%s33015_s3 + $0x780] ss:$12 sps:$4 sm:$0xff]   ;;  %v24411_v19 = vld [vmem:[%s33015_s3 + $0x61c] ss:$12 sps:$4 sm:$0xff]  }
 0x784   : > { %v24414_v25 = vld [vmem:[%s33015_s3 + $0x79c] ss:$12 sps:$4 sm:$0xff]  }
 0x786   : > { %11585 = vmatpush1.bf16.msra.mxu1 %v24348_v54  ;;  %21811 = vmatpush3.bf16.msra.mxu0 %v24352_v63  ;;  %v24409_v54 = vld [vmem:[%s33015_s3 + $0x618] ss:$12 sps:$4 sm:$0xff]  }
 0x787   : > { %11586 = vmatprep.subr.bf16.mxu1 %v24355_v42  ;;  %21812 = vmatprep.subr.bf16.mxu0 %v24356_v51  ;;  %v24412_v63 = vld [vmem:[%s33015_s3 + $0x798] ss:$12 sps:$4 sm:$0xff]   ;;  %v24417_v42 = vld [vmem:[%s33015_s3 + $0x634] ss:$12 sps:$4 sm:$0xff]  }
 0x788   : > { %v21764_v26 = vpop.f32.mrb[48].mxu1  ;;  %v24420_v51 = vld [vmem:[%s33015_s3 + $0x7b4] ss:$12 sps:$4 sm:$0xff]  }
 0x789   : > { %v21765_v30 = vpop.f32.mrb[49].mxu1 }
 0x78a   : > { %v21766_v29 = vadd.f32 %v21765_v30, %v21764_v26  ;;  %v21767_v6 = vpop.f32.mrb[50].mxu1  ;;  %11587 = vmatpush1.bf16.msra.mxu1 %v24353_v7  ;;  %21813 = vmatpush3.bf16.msra.mxu0 %v24357_v41  ;;  %v24415_v7 = vld [vmem:[%s33015_s3 + $0x630] ss:$12 sps:$4 sm:$0xff]   ;;  %v24421_v26 = vld [vmem:[%s33015_s3 + $0x648] ss:$12 sps:$4 sm:$0xff]  }
 0x78b   : > { %v21768_v52 = vpop.f32.mrb[51].mxu1  ;;  %11588 = vmatprep.subr.bf16.mxu1 %v24360_v16  ;;  %21814 = vmatprep.subr.bf16.mxu0 %v24361_v36  ;;  %v24418_v41 = vld [vmem:[%s33015_s3 + $0x7b0] ss:$12 sps:$4 sm:$0xff]   ;;  %v24423_v16 = vld [vmem:[%s33015_s3 + $0x64c] ss:$12 sps:$4 sm:$0xff]  }
 0x78c   : > { %v30291_v15 = vadd.f32 %v21766_v29, %v30175_v57  ;;  %v24375_v57 = vld [vmem:[%s33015_s3 + $0x570] ss:$12 sps:$4 sm:$0xff]   ;;  %v24426_v36 = vld [vmem:[%s33015_s3 + $0x7cc] ss:$12 sps:$4 sm:$0xff]   ;;  %v24424_v30 = vld [vmem:[%s33015_s3 + $0x7c8] ss:$12 sps:$4 sm:$0xff]  }
 0x78d   : > { %v24429_v29 = vld [vmem:[%s33015_s3 + $0x664] ss:$12 sps:$4 sm:$0xff]   ;;  %v24435_v52 = vld [vmem:[%s33015_s3 + $0x67c] ss:$12 sps:$4 sm:$0xff]  }
 0x78e   : > { %11589 = vmatpush1.bf16.msra.mxu1 %v24358_v46  ;;  %21815 = vmatpush3.bf16.msra.mxu0 %v24362_v56  ;;  %v24432_v6 = vld [vmem:[%s33015_s3 + $0x7e4] ss:$12 sps:$4 sm:$0xff]   ;;  %v24427_v46 = vld [vmem:[%s33015_s3 + $0x660] ss:$12 sps:$4 sm:$0xff]  }
 0x78f   : > { %11599 = vmatprep.subr.bf16.mxu1 %v24365_v1  ;;  %22222 = vmatprep.subr.bf16.mxu0 %v25465_v4  ;;  %v24430_v56 = vld [vmem:[%s33015_s3 + $0x7e0] ss:$12 sps:$4 sm:$0xff]   ;;  %v24438_v1 = vld [vmem:[%s33015_s3 + $0x7fc] ss:$12 sps:$4 sm:$0xff]  }
 0x791   : > { %11591 = vmatmul.mubr.bf16.vlgmr.msra.gmra.mrb[56].mxu1 %v30196_v31  ;;  %11754 = vmatmul.mubr.bf16.vlgmr.msra.gmra.mrb[48].mxu0 %v30297_v24 }
 0x792   : > { %11600 = vmatpush1.bf16.msra.mxu1 %v24363_v14  ;;  %11631 = vmatprep.mubr.bf16.mxu1 %v30206_v9  ;;  %v24433_v14 = vld [vmem:[%s33015_s3 + $0x678] ss:$12 sps:$4 sm:$0xff]  }
 0x793   : > { %22223 = vmatpush3.bf16.msra.mxu0 %v24366_v44  ;;  %11601 = vmatprep.subr.bf16.mxu1 %v24369_v59  ;;  %v24436_v44 = vld [vmem:[%s33015_s3 + $0x7f8] ss:$12 sps:$4 sm:$0xff]   ;;  %v24441_v59 = vld [vmem:[%s33015_s3 + $0x694] ss:$12 sps:$4 sm:$0xff]  }
 0x794   : > { %22224 = vmatprep.subr.bf16.mxu0 %v25465_v4  ;;  %22236 = vmatprep.mubr.msk.bf16.mxu0 %vm25467_vm0, %v25465_v4 }
 0x796   : > { %11602 = vmatpush1.bf16.msra.mxu1 %v24367_v53  ;;  %v24444_v53 = vld [vmem:[%s33015_s3 + $0x814] ss:$12 sps:$4 sm:$0xff]  }
 0x797   : > { %22225 = vmatpush3.bf16.msra.mxu0 %v24370_v32  ;;  %11603 = vmatprep.subr.bf16.mxu1 %v24373_v11  ;;  %v24439_v32 = vld [vmem:[%s33015_s3 + $0x690] ss:$12 sps:$4 sm:$0xff]  }
 0x798   : > { %22226 = vmatprep.subr.bf16.mxu0 %v25465_v4  ;;  %v24442_v11 = vld [vmem:[%s33015_s3 + $0x810] ss:$12 sps:$4 sm:$0xff]  }
 0x79a   : > { %11604 = vmatpush1.bf16.msra.mxu1 %v24371_v17  ;;  %v24447_v17 = vld [vmem:[%s33015_s3 + $0x6ac] ss:$12 sps:$4 sm:$0xff]  }
 0x79b   : > { %22227 = vmatpush3.bf16.msra.mxu0 %v24374_v50  ;;  %11605 = vmatprep.subr.bf16.mxu1 %v24377_v48  ;;  %v24450_v50 = vld [vmem:[%s33015_s3 + $0x82c] ss:$12 sps:$4 sm:$0xff]   ;;  %v24445_v48 = vld [vmem:[%s33015_s3 + $0x6a8] ss:$12 sps:$4 sm:$0xff]  }
 0x79c   : > { %22228 = vmatprep.subr.bf16.mxu0 %v25465_v4 }
 0x79e   : > { %11606 = vmatpush1.bf16.msra.mxu1 %v24375_v57  ;;  %v24448_v57 = vld [vmem:[%s33015_s3 + $0x828] ss:$12 sps:$4 sm:$0xff]  }
 0x79f   : > { %22229 = vmatpush3.bf16.msra.mxu0 %v24378_v45  ;;  %11607 = vmatprep.subr.bf16.mxu1 %v24381_v43  ;;  %v24453_v45 = vld [vmem:[%s33015_s3 + $0x6c4] ss:$12 sps:$4 sm:$0xff]  }
 0x7a0   : > { %22230 = vmatprep.subr.bf16.mxu0 %v25465_v4  ;;  %v24456_v43 = vld [vmem:[%s33015_s3 + $0x844] ss:$12 sps:$4 sm:$0xff]  }
 0x7a2   : > { %11608 = vmatpush1.bf16.msra.mxu1 %v24379_v23  ;;  %v24451_v23 = vld [vmem:[%s33015_s3 + $0x6c0] ss:$12 sps:$4 sm:$0xff]  }
 0x7a3   : > { %22231 = vmatpush3.bf16.msra.mxu0 %v24382_v35  ;;  %11609 = vmatprep.subr.bf16.mxu1 %v24385_v22  ;;  %v24454_v35 = vld [vmem:[%s33015_s3 + $0x840] ss:$12 sps:$4 sm:$0xff]   ;;  %v24459_v22 = vld [vmem:[%s33015_s3 + $0x6dc] ss:$12 sps:$4 sm:$0xff]  }
 0x7a4   : > { %22232 = vmatprep.subr.bf16.mxu0 %v25465_v4 }
 0x7a6   : > { %11610 = vmatpush1.bf16.msra.mxu1 %v24383_v0  ;;  %v24462_v0 = vld [vmem:[%s33015_s3 + $0x85c] ss:$12 sps:$4 sm:$0xff]  }
 0x7a7   : > { %22233 = vmatpush3.bf16.msra.mxu0 %v24386_v34  ;;  %11611 = vmatprep.subr.bf16.mxu1 %v24389_v55  ;;  %v24457_v34 = vld [vmem:[%s33015_s3 + $0x6d8] ss:$12 sps:$4 sm:$0xff]  }
 0x7a8   : > { %22234 = vmatprep.subr.bf16.mxu0 %v25465_v4  ;;  %v24460_v55 = vld [vmem:[%s33015_s3 + $0x858] ss:$12 sps:$4 sm:$0xff]  }
 0x7aa   : > { %11612 = vmatpush1.bf16.msra.mxu1 %v24387_v21  ;;  %v24465_v21 = vld [vmem:[%s33015_s3 + $0x6f4] ss:$12 sps:$4 sm:$0xff]  }
 0x7ab   : > { %22235 = vmatpush3.bf16.msra.mxu0 %v24390_v2  ;;  %11613 = vmatprep.subr.bf16.mxu1 %v24393_v58  ;;  %v24468_v2 = vld [vmem:[%s33015_s3 + $0x874] ss:$12 sps:$4 sm:$0xff]   ;;  %v24463_v58 = vld [vmem:[%s33015_s3 + $0x6f0] ss:$12 sps:$4 sm:$0xff]  }
 0x7ac   : > { %12627 = vmatprep.subr.bf16.mxu0 %v24396_v39  ;;  %v24466_v39 = vld [vmem:[%s33015_s3 + $0x870] ss:$12 sps:$4 sm:$0xff]  }
 0x7ae   : > { %22237 = vmatmul.mubr.msk.bf16.vlgmr.msra.gmra.mrb[52].mxu0 %vm10481_vm2, %v30381_v60  ;;  %11614 = vmatpush1.bf16.msra.mxu1 %v24391_v38  ;;  %v24471_v38 = vld [vmem:[%s33015_s3 + $0x70c] ss:$12 sps:$4 sm:$0xff]  }
 0x7af   : > { %12628 = vmatpush1.bf16.msra.mxu0 %v24394_v18  ;;  %12659 = vmatprep.mubr.bf16.mxu0 %v11992_v47  ;;  %v24474_v18 = vld [vmem:[%s33015_s3 + $0x88c] ss:$12 sps:$4 sm:$0xff]  }
 0x7b0   : > { %11615 = vmatprep.subr.bf16.mxu1 %v24399_v20  ;;  %12629 = vmatprep.subr.bf16.mxu0 %v24402_v3  ;;  %v24469_v20 = vld [vmem:[%s33015_s3 + $0x708] ss:$12 sps:$4 sm:$0xff]  }
 0x7b1   : > { %v24472_v3 = vld [vmem:[%s33015_s3 + $0x888] ss:$12 sps:$4 sm:$0xff]  }
 0x7b2   : > { %11616 = vmatpush1.bf16.msra.mxu1 %v24397_v33  ;;  %v24477_v33 = vld [vmem:[%s33015_s3 + $0x724] ss:$12 sps:$4 sm:$0xff]  }
 0x7b3   : > { %12630 = vmatpush1.bf16.msra.mxu0 %v24400_v27  ;;  %11617 = vmatprep.subr.bf16.mxu1 %v24405_v49  ;;  %v24480_v27 = vld [vmem:[%s33015_s3 + $0x8a4] ss:$12 sps:$4 sm:$0xff]   ;;  %v24475_v49 = vld [vmem:[%s33015_s3 + $0x720] ss:$12 sps:$4 sm:$0xff]  }
 0x7b4   : > { %12631 = vmatprep.subr.bf16.mxu0 %v24408_v12  ;;  %v24478_v12 = vld [vmem:[%s33015_s3 + $0x8a0] ss:$12 sps:$4 sm:$0xff]  }
 0x7b6   : > { %11618 = vmatpush1.bf16.msra.mxu1 %v24403_v40  ;;  %v24483_v40 = vld [vmem:[%s33015_s3 + $0x73c] ss:$12 sps:$4 sm:$0xff]  }
 0x7b7   : > { %12632 = vmatpush1.bf16.msra.mxu0 %v24406_v62  ;;  %11619 = vmatprep.subr.bf16.mxu1 %v24411_v19  ;;  %v24486_v62 = vld [vmem:[%s33015_s3 + $0x8bc] ss:$12 sps:$4 sm:$0xff]   ;;  %v24481_v19 = vld [vmem:[%s33015_s3 + $0x738] ss:$12 sps:$4 sm:$0xff]  }
 0x7b8   : > { %12633 = vmatprep.subr.bf16.mxu0 %v24414_v25  ;;  %v24484_v25 = vld [vmem:[%s33015_s3 + $0x8b8] ss:$12 sps:$4 sm:$0xff]  }
 0x7ba   : > { %11620 = vmatpush1.bf16.msra.mxu1 %v24409_v54  ;;  %v24490_v54 = vld [vmem:[%s33015_s3 + $0x818] ss:$12 sps:$4 sm:$0xff]  }
 0x7bb   : > { %12634 = vmatpush1.bf16.msra.mxu0 %v24412_v63  ;;  %11621 = vmatprep.subr.bf16.mxu1 %v24417_v42  ;;  %v24489_v63 = vld [vmem:[%s33015_s3 + $0x8d4] ss:$12 sps:$4 sm:$0xff]   ;;  %v24491_v42 = vld [vmem:[%s33015_s3 + $0x758] ss:$12 sps:$4 sm:$0xff]  }
 0x7bc   : > { %12635 = vmatprep.subr.bf16.mxu0 %v24420_v51  ;;  %v24487_v51 = vld [vmem:[%s33015_s3 + $0x8d0] ss:$12 sps:$4 sm:$0xff]  }
 0x7be   : > { %11622 = vmatpush1.bf16.msra.mxu1 %v24415_v7  ;;  %v11991_v7 = vrot.slane %v29804_v8, 1 }
 0x7bf   : > { %12636 = vmatpush1.bf16.msra.mxu0 %v24418_v41  ;;  %11623 = vmatprep.subr.bf16.mxu1 %v24423_v16  ;;  %v24494_v41 = vld [vmem:[%s33015_s3 + $0x8ec] ss:$12 sps:$4 sm:$0xff]   ;;  %v11994_v16 = vrot.slane %v29812_v61, 1 }
 0x7c0   : > { %12637 = vmatprep.subr.bf16.mxu0 %v24426_v36  ;;  %v24495_v36 = vld [vmem:[%s33015_s3 + $0x830] ss:$12 sps:$4 sm:$0xff]  }
 0x7c2   : > { %11624 = vmatpush1.bf16.msra.mxu1 %v24421_v26  ;;  %v24496_v26 = vld [vmem:[%s33015_s3 + $0x770] ss:$12 sps:$4 sm:$0xff]  }
 0x7c3   : > { %12638 = vmatpush1.bf16.msra.mxu0 %v24424_v30  ;;  %11625 = vmatprep.subr.bf16.mxu1 %v24429_v29  ;;  %v24492_v30 = vld [vmem:[%s33015_s3 + $0x8e8] ss:$12 sps:$4 sm:$0xff]  }
 0x7c4   : > { %12639 = vmatprep.subr.bf16.mxu0 %v24432_v6  ;;  %v24500_v29 = vld [vmem:[%s33015_s3 + $0x848] ss:$12 sps:$4 sm:$0xff]   ;;  %v24499_v6 = vld [vmem:[%s33015_s3 + $0x904] ss:$12 sps:$4 sm:$0xff]  }
 0x7c6   : > { %11626 = vmatpush1.bf16.msra.mxu1 %v24427_v46  ;;  %v24501_v46 = vld [vmem:[%s33015_s3 + $0x788] ss:$12 sps:$4 sm:$0xff]  }
 0x7c7   : > { %12640 = vmatpush1.bf16.msra.mxu0 %v24430_v56  ;;  %11627 = vmatprep.subr.bf16.mxu1 %v24435_v52  ;;  %v24497_v56 = vld [vmem:[%s33015_s3 + $0x900] ss:$12 sps:$4 sm:$0xff]   ;;  %v24504_v52 = vld [vmem:[%s33015_s3 + $0x91c] ss:$12 sps:$4 sm:$0xff]  }
 0x7c8   : > { %12641 = vmatprep.subr.bf16.mxu0 %v24438_v1  ;;  %v24506_v1 = vld [vmem:[%s33015_s3 + $0x7a0] ss:$12 sps:$4 sm:$0xff]  }
 0x7ca   : > { %11628 = vmatpush1.bf16.msra.mxu1 %v24433_v14  ;;  %v24502_v14 = vld [vmem:[%s33015_s3 + $0x918] ss:$12 sps:$4 sm:$0xff]  }
 0x7cb   : > { %12642 = vmatpush1.bf16.msra.mxu0 %v24436_v44  ;;  %11629 = vmatprep.subr.bf16.mxu1 %v24441_v59  ;;  %v24510_v44 = vld [vmem:[%s33015_s3 + $0x878] ss:$12 sps:$4 sm:$0xff]   ;;  %v24509_v59 = vld [vmem:[%s33015_s3 + $0x934] ss:$12 sps:$4 sm:$0xff]  }
 0x7cc   : > { %12643 = vmatprep.subr.bf16.mxu0 %v24444_v53  ;;  %v24511_v53 = vld [vmem:[%s33015_s3 + $0x7b8] ss:$12 sps:$4 sm:$0xff]  }
 0x7ce   : > { %11630 = vmatpush1.bf16.msra.mxu1 %v24439_v32  ;;  %v24507_v32 = vld [vmem:[%s33015_s3 + $0x930] ss:$12 sps:$4 sm:$0xff]  }
 0x7cf   : > { %12644 = vmatpush1.bf16.msra.mxu0 %v24442_v11  ;;  %11640 = vmatprep.subr.bf16.mxu1 %v24447_v17  ;;  %v24515_v11 = vld [vmem:[%s33015_s3 + $0x890] ss:$12 sps:$4 sm:$0xff]   ;;  %v24514_v17 = vld [vmem:[%s33015_s3 + $0x94c] ss:$12 sps:$4 sm:$0xff]  }
 0x7d0   : > { %12645 = vmatprep.subr.bf16.mxu0 %v24450_v50  ;;  %v24516_v50 = vld [vmem:[%s33015_s3 + $0x7d0] ss:$12 sps:$4 sm:$0xff]  }
 0x7d1   : > { %11632 = vmatmul.mubr.bf16.vlgmr.msra.gmra.mrb[56].mxu1 %v30297_v24 }
 0x7d2   : > { %11641 = vmatpush1.bf16.msra.mxu1 %v24445_v48  ;;  %11672 = vmatprep.mubr.bf16.mxu1 %v25466_v37  ;;  %v24512_v48 = vld [vmem:[%s33015_s3 + $0x948] ss:$12 sps:$4 sm:$0xff]  }
 0x7d3   : > { %12646 = vmatpush1.bf16.msra.mxu0 %v24448_v57  ;;  %11642 = vmatprep.subr.bf16.mxu1 %v24453_v45  ;;  %v24520_v57 = vld [vmem:[%s33015_s3 + $0x8a8] ss:$12 sps:$4 sm:$0xff]   ;;  %v24519_v45 = vld [vmem:[%s33015_s3 + $0x964] ss:$12 sps:$4 sm:$0xff]  }
 0x7d4   : > { %12647 = vmatprep.subr.bf16.mxu0 %v24456_v43  ;;  %v24521_v43 = vld [vmem:[%s33015_s3 + $0x7e8] ss:$12 sps:$4 sm:$0xff]  }
 0x7d6   : > { %11643 = vmatpush1.bf16.msra.mxu1 %v24451_v23  ;;  %v24517_v23 = vld [vmem:[%s33015_s3 + $0x960] ss:$12 sps:$4 sm:$0xff]  }
 0x7d7   : > { %12648 = vmatpush1.bf16.msra.mxu0 %v24454_v35  ;;  %11644 = vmatprep.subr.bf16.mxu1 %v24459_v22  ;;  %v24525_v35 = vld [vmem:[%s33015_s3 + $0x8c0] ss:$12 sps:$4 sm:$0xff]   ;;  %v24524_v22 = vld [vmem:[%s33015_s3 + $0x97c] ss:$12 sps:$4 sm:$0xff]  }
 0x7d8   : > { %12649 = vmatprep.subr.bf16.mxu0 %v24462_v0  ;;  %v24526_v0 = vld [vmem:[%s33015_s3 + $0x800] ss:$12 sps:$4 sm:$0xff]  }
 0x7da   : > { %11645 = vmatpush1.bf16.msra.mxu1 %v24457_v34  ;;  %v24522_v34 = vld [vmem:[%s33015_s3 + $0x978] ss:$12 sps:$4 sm:$0xff]  }
 0x7db   : > { %12650 = vmatpush1.bf16.msra.mxu0 %v24460_v55  ;;  %11646 = vmatprep.subr.bf16.mxu1 %v24465_v21  ;;  %v24530_v55 = vld [vmem:[%s33015_s3 + $0x998] ss:$12 sps:$4 sm:$0xff]   ;;  %v24529_v21 = vld [vmem:[%s33015_s3 + $0x994] ss:$12 sps:$4 sm:$0xff]  }
 0x7dc   : > { %12651 = vmatprep.subr.bf16.mxu0 %v24468_v2  ;;  %v24531_v2 = vld [vmem:[%s33015_s3 + $0x8d8] ss:$12 sps:$4 sm:$0xff]  }
 0x7de   : > { %11647 = vmatpush1.bf16.msra.mxu1 %v24463_v58  ;;  %v24527_v58 = vld [vmem:[%s33015_s3 + $0x990] ss:$12 sps:$4 sm:$0xff]  }
 0x7df   : > { %12652 = vmatpush1.bf16.msra.mxu0 %v24466_v39  ;;  %11648 = vmatprep.subr.bf16.mxu1 %v24471_v38  ;;  %v24535_v39 = vld [vmem:[%s33015_s3 + $0x9b0] ss:$12 sps:$4 sm:$0xff]   ;;  %v24534_v38 = vld [vmem:[%s33015_s3 + $0x9ac] ss:$12 sps:$4 sm:$0xff]  }
 0x7e0   : > { %12653 = vmatprep.subr.bf16.mxu0 %v24474_v18  ;;  %v24536_v18 = vld [vmem:[%s33015_s3 + $0x8f0] ss:$12 sps:$4 sm:$0xff]  }
 0x7e2   : > { %11649 = vmatpush1.bf16.msra.mxu1 %v24469_v20  ;;  %v24532_v20 = vld [vmem:[%s33015_s3 + $0x9a8] ss:$12 sps:$4 sm:$0xff]  }
 0x7e3   : > { %12654 = vmatpush1.bf16.msra.mxu0 %v24472_v3  ;;  %11650 = vmatprep.subr.bf16.mxu1 %v24477_v33  ;;  %v24540_v3 = vld [vmem:[%s33015_s3 + $0x9c8] ss:$12 sps:$4 sm:$0xff]   ;;  %v24539_v33 = vld [vmem:[%s33015_s3 + $0x9c4] ss:$12 sps:$4 sm:$0xff]  }
 0x7e4   : > { %12655 = vmatprep.subr.bf16.mxu0 %v24480_v27  ;;  %v24541_v27 = vld [vmem:[%s33015_s3 + $0x908] ss:$12 sps:$4 sm:$0xff]  }
 0x7e6   : > { %11651 = vmatpush1.bf16.msra.mxu1 %v24475_v49  ;;  %v24537_v49 = vld [vmem:[%s33015_s3 + $0x9c0] ss:$12 sps:$4 sm:$0xff]  }
 0x7e7   : > { %12656 = vmatpush1.bf16.msra.mxu0 %v24478_v12  ;;  %11652 = vmatprep.subr.bf16.mxu1 %v24483_v40  ;;  %v24545_v12 = vld [vmem:[%s33015_s3 + $0x9e0] ss:$12 sps:$4 sm:$0xff]   ;;  %v24544_v40 = vld [vmem:[%s33015_s3 + $0x9dc] ss:$12 sps:$4 sm:$0xff]  }
 0x7e8   : > { %12657 = vmatprep.subr.bf16.mxu0 %v24486_v62  ;;  %v24546_v62 = vld [vmem:[%s33015_s3 + $0x920] ss:$12 sps:$4 sm:$0xff]  }
 0x7ea   : > { %11653 = vmatpush1.bf16.msra.mxu1 %v24481_v19  ;;  %v24542_v19 = vld [vmem:[%s33015_s3 + $0x9d8] ss:$12 sps:$4 sm:$0xff]  }
 0x7eb   : > { %12658 = vmatpush1.bf16.msra.mxu0 %v24484_v25  ;;  %21830 = vmatprep.subr.bf16.mxu1 %v24490_v54  ;;  %v24550_v25 = vld [vmem:[%s33015_s3 + $0x9f8] ss:$12 sps:$4 sm:$0xff]   ;;  %v24549_v54 = vld [vmem:[%s33015_s3 + $0x9f4] ss:$12 sps:$4 sm:$0xff]  }
 0x7ec   : > { %12668 = vmatprep.subr.bf16.mxu0 %v24489_v63  ;;  %v24551_v63 = vld [vmem:[%s33015_s3 + $0x938] ss:$12 sps:$4 sm:$0xff]  }
 0x7ed   : > { %19818 = vmatmul.mubr.msk.bf16.vlgmr.msra.gmra.mrb[56].mxu1 %vm10481_vm2, %v30381_v60 }
 0x7ee   : > { %12660 = vmatmul.mubr.bf16.vlgmr.msra.gmra.mrb[56].mxu0 %v11991_v7  ;;  %21831 = vmatpush3.bf16.msra.mxu1 %v24491_v42  ;;  %v24547_v42 = vld [vmem:[%s33015_s3 + $0x9f0] ss:$12 sps:$4 sm:$0xff]  }
 0x7ef   : > { %12669 = vmatpush1.bf16.msra.mxu0 %v24487_v51  ;;  %12700 = vmatprep.mubr.bf16.mxu0 %v11994_v16  ;;  %v24555_v51 = vld [vmem:[%s33015_s3 + $0xa10] ss:$12 sps:$4 sm:$0xff]  }
 0x7f0   : > { %12782 = vmatprep.mubr.bf16.mxu1 %v11992_v47  ;;  %12670 = vmatprep.subr.bf16.mxu0 %v24494_v41  ;;  %v24505_v47 = vld [vmem:[%s33015_s3 + $0x860] ss:$12 sps:$4 sm:$0xff]  }
 0x7f1   : > { %21832 = vmatprep.subr.bf16.mxu1 %v24495_v36  ;;  %v24554_v36 = vld [vmem:[%s33015_s3 + $0xa0c] ss:$12 sps:$4 sm:$0xff]  }
 0x7f2   : > { %21833 = vmatpush3.bf16.msra.mxu1 %v24496_v26  ;;  %v24556_v26 = vld [vmem:[%s33015_s3 + $0x950] ss:$12 sps:$4 sm:$0xff]  }
 0x7f3   : > { %12671 = vmatpush1.bf16.msra.mxu0 %v24492_v30  ;;  %21834 = vmatprep.subr.bf16.mxu1 %v24500_v29  ;;  %v24552_v30 = vld [vmem:[%s33015_s3 + $0xa08] ss:$12 sps:$4 sm:$0xff]  }
 0x7f4   : > { %12672 = vmatprep.subr.bf16.mxu0 %v24499_v6 }
 0x7f6   : > { %21835 = vmatpush3.bf16.msra.mxu1 %v24501_v46  ;;  %v24560_v46 = vld [vmem:[%s33015_s3 + $0xa28] ss:$12 sps:$4 sm:$0xff]  }
 0x7f7   : > { %12673 = vmatpush1.bf16.msra.mxu0 %v24497_v56  ;;  %21836 = vmatprep.subr.bf16.mxu1 %v24505_v47  ;;  %v24559_v56 = vld [vmem:[%s33015_s3 + $0xa24] ss:$12 sps:$4 sm:$0xff]   ;;  %v24561_v47 = vld [vmem:[%s33015_s3 + $0x968] ss:$12 sps:$4 sm:$0xff]  }
 0x7f8   : > { %12674 = vmatprep.subr.bf16.mxu0 %v24504_v52 }
 0x7fa   : > { %21837 = vmatpush3.bf16.msra.mxu1 %v24506_v1  ;;  %v24557_v1 = vld [vmem:[%s33015_s3 + $0xa20] ss:$12 sps:$4 sm:$0xff]  }
 0x7fb   : > { %12675 = vmatpush1.bf16.msra.mxu0 %v24502_v14  ;;  %21838 = vmatprep.subr.bf16.mxu1 %v24510_v44  ;;  %v24565_v14 = vld [vmem:[%s33015_s3 + $0xa40] ss:$12 sps:$4 sm:$0xff]  }
 0x7fc   : > { %12676 = vmatprep.subr.bf16.mxu0 %v24509_v59 }
 0x7fe   : > { %21839 = vmatpush3.bf16.msra.mxu1 %v24511_v53  ;;  %v24564_v53 = vld [vmem:[%s33015_s3 + $0xa3c] ss:$12 sps:$4 sm:$0xff]  }
 0x7ff   : > { %12677 = vmatpush1.bf16.msra.mxu0 %v24507_v32  ;;  %21840 = vmatprep.subr.bf16.mxu1 %v24515_v11 }
 0x800   : > { %12678 = vmatprep.subr.bf16.mxu0 %v24514_v17 }
 0x802   : > { %21841 = vmatpush3.bf16.msra.mxu1 %v24516_v50 }
 0x803   : > { %12679 = vmatpush1.bf16.msra.mxu0 %v24512_v48  ;;  %21842 = vmatprep.subr.bf16.mxu1 %v24520_v57 }
 0x804   : > { %12680 = vmatprep.subr.bf16.mxu0 %v24519_v45  ;;  %v24566_v45 = vld [vmem:[%s33015_s3 + $0x980] ss:$12 sps:$4 sm:$0xff]  }
 0x806   : > { %21843 = vmatpush3.bf16.msra.mxu1 %v24521_v43 }
 0x807   : > { %12681 = vmatpush1.bf16.msra.mxu0 %v24517_v23  ;;  %21844 = vmatprep.subr.bf16.mxu1 %v24525_v35 }
 0x808   : > { %12682 = vmatprep.subr.bf16.mxu0 %v24524_v22  ;;  %v24562_v22 = vld [vmem:[%s33015_s3 + $0xa38] ss:$12 sps:$4 sm:$0xff]  }
 0x80a   : > { %21845 = vmatpush3.bf16.msra.mxu1 %v24526_v0  ;;  %v24569_v0 = vld [vmem:[%s33015_s3 + $0xa54] ss:$12 sps:$4 sm:$0xff]  }
 0x80b   : > { %12683 = vmatpush1.bf16.msra.mxu0 %v24522_v34  ;;  %21852 = vmatprep.subr.bf16.mxu1 %v24530_v55  ;;  %v24570_v55 = vld [vmem:[%s33015_s3 + $0xa58] ss:$12 sps:$4 sm:$0xff]  }
 0x80c   : > { %12684 = vmatprep.subr.bf16.mxu0 %v24529_v21  ;;  %v11993_v21 = vrot.slane %v29907_v10, 1 }
 0x80d   : > { %12783 = vmatmul.mubr.bf16.vlgmr.msra.gmra.mrb[60].mxu1 %v11991_v7  ;;  %v25468_v7 = vmov 1966171168  }
 0x80e   : > { %21853 = vmatpush3.bf16.msra.mxu1 %v24531_v2  ;;  %12822 = vmatprep.mubr.bf16.mxu1 %v11994_v16  ;;  %v10733_v41 = vunpack.c.l.s4 %v25468_v7  ;;  %v10735_v16 = vlaneseq  ;;  %v24567_v2 = vld [vmem:[%s33015_s3 + $0xa50] ss:$12 sps:$4 sm:$0xff]  }
 0x80f   : > { %12685 = vmatpush1.bf16.msra.mxu0 %v24527_v58  ;;  %21854 = vmatprep.subr.bf16.mxu1 %v24535_v39  ;;  %v24573_v58 = vld [vmem:[%s33015_s3 + $0xa6c] ss:$12 sps:$4 sm:$0xff]   ;;  %v24574_v39 = vld [vmem:[%s33015_s3 + $0xa70] ss:$12 sps:$4 sm:$0xff]  }
 0x810   : > { %12686 = vmatprep.subr.bf16.mxu0 %v24534_v38  ;;  %v10734_v29 = vunpack.c.0.s8 %v10733_v41  ;;  %v30752_v6 = vshrl.u32 %v10735_v16, 7  ;;  %v24571_v38 = vld [vmem:[%s33015_s3 + $0xa68] ss:$12 sps:$4 sm:$0xff]   ;;  %v24598_v16 = vld [vmem:[%s33015_s3 + $0xbc0] ss:$12 sps:$4 sm:$0xff]  }
 0x811   : > { %v24597_v7 = vld [vmem:[%s33015_s3 + $0xafc] ss:$12 sps:$4 sm:$0xff]  }
 0x812   : > { %21855 = vmatpush3.bf16.msra.mxu1 %v24536_v18  ;;  %v30764_v52 = vsub.s32 %v10734_v29, %v30752_v6  ;;  %v24577_v18 = vld [vmem:[%s33015_s3 + $0xa84] ss:$12 sps:$4 sm:$0xff]  }
 0x813   : > { %12687 = vmatpush1.bf16.msra.mxu0 %v24532_v20  ;;  %21856 = vmatprep.subr.bf16.mxu1 %v24540_v3  ;;  %v24578_v20 = vld [vmem:[%s33015_s3 + $0xa88] ss:$12 sps:$4 sm:$0xff]   ;;  %v24575_v3 = vld [vmem:[%s33015_s3 + $0xa80] ss:$12 sps:$4 sm:$0xff]   ;;  %v24595_v29 = vld [vmem:[%s33015_s3 + $0xaf8] ss:$12 sps:$4 sm:$0xff]  }
 0x814   : > { %12688 = vmatprep.subr.bf16.mxu0 %v24539_v33  ;;  %v24581_v33 = vld [vmem:[%s33015_s3 + $0xa9c] ss:$12 sps:$4 sm:$0xff]  }
 0x816   : > { %21857 = vmatpush3.bf16.msra.mxu1 %v24541_v27  ;;  %v24582_v27 = vld [vmem:[%s33015_s3 + $0xaa0] ss:$12 sps:$4 sm:$0xff]  }
 0x817   : > { %12689 = vmatpush1.bf16.msra.mxu0 %v24537_v49  ;;  %21858 = vmatprep.subr.bf16.mxu1 %v24545_v12  ;;  %v24579_v49 = vld [vmem:[%s33015_s3 + $0xa98] ss:$12 sps:$4 sm:$0xff]   ;;  %v24585_v12 = vld [vmem:[%s33015_s3 + $0xab4] ss:$12 sps:$4 sm:$0xff]  }
 0x818   : > { %12690 = vmatprep.subr.bf16.mxu0 %v24544_v40  ;;  %v24586_v40 = vld [vmem:[%s33015_s3 + $0xab8] ss:$12 sps:$4 sm:$0xff]  }
 0x81a   : > { %21859 = vmatpush3.bf16.msra.mxu1 %v24546_v62  ;;  %v24583_v62 = vld [vmem:[%s33015_s3 + $0xab0] ss:$12 sps:$4 sm:$0xff]  }
 0x81b   : > { %12691 = vmatpush1.bf16.msra.mxu0 %v24542_v19  ;;  %21860 = vmatprep.subr.bf16.mxu1 %v24550_v25  ;;  %v24589_v19 = vld [vmem:[%s33015_s3 + $0xacc] ss:$12 sps:$4 sm:$0xff]   ;;  %v24590_v25 = vld [vmem:[%s33015_s3 + $0xad0] ss:$12 sps:$4 sm:$0xff]  }
 0x81c   : > { %12692 = vmatprep.subr.bf16.mxu0 %v24549_v54  ;;  %v24587_v54 = vld [vmem:[%s33015_s3 + $0xac8] ss:$12 sps:$4 sm:$0xff]  }
 0x81e   : > { %21861 = vmatpush3.bf16.msra.mxu1 %v24551_v63  ;;  %v24593_v63 = vld [vmem:[%s33015_s3 + $0xae4] ss:$12 sps:$4 sm:$0xff]  }
 0x81f   : > { %12693 = vmatpush1.bf16.msra.mxu0 %v24547_v42  ;;  %21862 = vmatprep.subr.bf16.mxu1 %v24555_v51  ;;  %v24594_v42 = vld [vmem:[%s33015_s3 + $0xae8] ss:$12 sps:$4 sm:$0xff]   ;;  %v24591_v51 = vld [vmem:[%s33015_s3 + $0xae0] ss:$12 sps:$4 sm:$0xff]  }
 0x820   : > { %12694 = vmatprep.subr.bf16.mxu0 %v24554_v36 }
 0x822   : > { %21863 = vmatpush3.bf16.msra.mxu1 %v24556_v26 }
 0x823   : > { %12695 = vmatpush1.bf16.msra.mxu0 %v24552_v30  ;;  %21864 = vmatprep.subr.bf16.mxu1 %v24560_v46 }
 0x824   : > { %v10601_v44 = vpop.f32.mrb[40].mxu0  ;;  %v10722_v59 = vpop.f32.mrb[52].mxu1  ;;  %12696 = vmatprep.subr.bf16.mxu0 %v24559_v56  ;;  %v11995_v56 = vrot.slane %v30086_v13, 1 }
 0x825   : > { %v10723_v32 = vadd.f32 %v10722_v59, %v30291_v15  ;;  %v10603_v11 = vpop.f32.mrb[41].mxu0  ;;  %v22220_v17 = vpop.f32.mrb[53].mxu1  ;;  %v24600_v59 = vld [vmem:[%s33015_s3 + $0xb10] ss:$12 sps:$4 sm:$0xff]  }
 0x826   : > { %v10731_v50 = vcombine.low %v10601_v44, %v10603_v11  ;;  %21865 = vmatpush3.bf16.msra.mxu1 %v24561_v47  ;;  %v10605_v48 = vpop.f32.mrb[42].mxu0  ;;  %v10725_v57 = vpop.f32.mrb[54].mxu1  ;;  %v24599_v47 = vld [vmem:[%s33015_s3 + $0xb00] ss:$12 sps:$4 sm:$0xff]   ;;  %v24603_v44 = vld [vmem:[%s33015_s3 + $0xbd8] ss:$12 sps:$4 sm:$0xff]  }
 0x827   : > { %v10745_v43 = vrot.slane %v10723_v32, %v30764_v52  ;;  %12697 = vmatpush1.bf16.msra.mxu0 %v24557_v1  ;;  %v10606_v23 = vpop.f32.mrb[43].mxu0  ;;  %v22221_v35 = vpop.f32.mrb[55].mxu1  ;;  %21866 = vmatprep.subr.bf16.mxu1 %v24565_v14  ;;  %v24602_v1 = vld [vmem:[%s33015_s3 + $0xb14] ss:$12 sps:$4 sm:$0xff]   ;;  %v13056_v14 = vrot.slane %v30099_v28, 1 }
 0x828   : > { %v10738_v15 = vrot.slane %v10731_v50, %v30764_v52  ;;  %12698 = vmatprep.subr.bf16.mxu0 %v24564_v53  ;;  %v24604_v53 = vld [vmem:[%s33015_s3 + $0xb18] ss:$12 sps:$4 sm:$0xff]   ;;  %v24608_v11 = vld [vmem:[%s33015_s3 + $0xbf0] ss:$12 sps:$4 sm:$0xff]   ;;  %v24605_v17 = vld [vmem:[%s33015_s3 + $0xb28] ss:$12 sps:$4 sm:$0xff]  }
 0x829   : > { %v24607_v32 = vld [vmem:[%s33015_s3 + $0xb2c] ss:$12 sps:$4 sm:$0xff]   ;;  %v24609_v50 = vld [vmem:[%s33015_s3 + $0xb30] ss:$12 sps:$4 sm:$0xff]   ;;  %v24613_v57 = vld [vmem:[%s33015_s3 + $0xc08] ss:$12 sps:$4 sm:$0xff]  }
 0x82a   : > { %v30787_v34 = vcombine.low %v10738_v15, %v10745_v43  ;;  %21867 = vmatpush3.bf16.msra.mxu1 %v24566_v45  ;;  %v24612_v48 = vld [vmem:[%s33015_s3 + $0xb44] ss:$12 sps:$4 sm:$0xff]   ;;  %v24610_v45 = vld [vmem:[%s33015_s3 + $0xb40] ss:$12 sps:$4 sm:$0xff]   ;;  %v24614_v43 = vld [vmem:[%s33015_s3 + $0xb48] ss:$12 sps:$4 sm:$0xff]  }
 0x82b   : > { %12699 = vmatpush1.bf16.msra.mxu0 %v24562_v22  ;;  %22240 = vmatprep.subr.bf16.mxu1 %v25465_v4  ;;  %v24617_v23 = vld [vmem:[%s33015_s3 + $0xb5c] ss:$12 sps:$4 sm:$0xff]   ;;  %v24618_v35 = vld [vmem:[%s33015_s3 + $0xc20] ss:$12 sps:$4 sm:$0xff]   ;;  %v24615_v22 = vld [vmem:[%s33015_s3 + $0xb58] ss:$12 sps:$4 sm:$0xff]  }
 0x82c   : > { %12709 = vmatprep.subr.bf16.mxu0 %v24569_v0  ;;  %v24619_v15 = vld [vmem:[%s33015_s3 + $0xb60] ss:$12 sps:$4 sm:$0xff]  }
 0x82d   : > { %12823 = vmatmul.mubr.bf16.vlgmr.msra.gmra.mrb[64].mxu1 %v11993_v21  ;;  %v24622_v0 = vld [vmem:[%s33015_s3 + $0xb74] ss:$12 sps:$4 sm:$0xff]  }
 0x82e   : > { %12701 = vmatmul.mubr.bf16.vlgmr.msra.gmra.mrb[56].mxu0 %v11993_v21  ;;  %22241 = vmatpush3.bf16.msra.mxu1 %v24570_v55  ;;  %v24623_v55 = vld [vmem:[%s33015_s3 + $0xc38] ss:$12 sps:$4 sm:$0xff]   ;;  %v24620_v21 = vld [vmem:[%s33015_s3 + $0xb70] ss:$12 sps:$4 sm:$0xff]  }
 0x82f   : > { %12710 = vmatpush1.bf16.msra.mxu0 %v24567_v2  ;;  %22242 = vmatprep.subr.bf16.mxu1 %v25465_v4  ;;  %v24624_v2 = vld [vmem:[%s33015_s3 + $0xb78] ss:$12 sps:$4 sm:$0xff]  }
 0x830   : > { %12711 = vmatprep.subr.bf16.mxu0 %v24573_v58  ;;  %12741 = vmatprep.mubr.bf16.mxu0 %v25466_v37  ;;  %v24627_v58 = vld [vmem:[%s33015_s3 + $0xb8c] ss:$12 sps:$4 sm:$0xff]  }
 0x831   : > { %22254 = vmatprep.mubr.msk.bf16.mxu1 %vm25467_vm0, %v25465_v4 }
 0x832   : > { %22243 = vmatpush3.bf16.msra.mxu1 %v24574_v39  ;;  %v24628_v39 = vld [vmem:[%s33015_s3 + $0xc50] ss:$12 sps:$4 sm:$0xff]  }
 0x833   : > { %12712 = vmatpush1.bf16.msra.mxu0 %v24571_v38  ;;  %22244 = vmatprep.subr.bf16.mxu1 %v25465_v4  ;;  %v24625_v38 = vld [vmem:[%s33015_s3 + $0xb88] ss:$12 sps:$4 sm:$0xff]  }
 0x834   : > { %12713 = vmatprep.subr.bf16.mxu0 %v24577_v18  ;;  %v24629_v18 = vld [vmem:[%s33015_s3 + $0xb90] ss:$12 sps:$4 sm:$0xff]  }
 0x836   : > { %22245 = vmatpush3.bf16.msra.mxu1 %v24578_v20  ;;  %v24632_v20 = vld [vmem:[%s33015_s3 + $0xba4] ss:$12 sps:$4 sm:$0xff]  }
 0x837   : > { %12714 = vmatpush1.bf16.msra.mxu0 %v24575_v3  ;;  %22246 = vmatprep.subr.bf16.mxu1 %v25465_v4  ;;  %v24633_v3 = vld [vmem:[%s33015_s3 + $0xc68] ss:$12 sps:$4 sm:$0xff]  }
 0x838   : > { %12715 = vmatprep.subr.bf16.mxu0 %v24581_v33  ;;  %v24630_v33 = vld [vmem:[%s33015_s3 + $0xba0] ss:$12 sps:$4 sm:$0xff]  }
 0x83a   : > { %22247 = vmatpush3.bf16.msra.mxu1 %v24582_v27  ;;  %v24634_v27 = vld [vmem:[%s33015_s3 + $0xba8] ss:$12 sps:$4 sm:$0xff]  }
 0x83b   : > { %12716 = vmatpush1.bf16.msra.mxu0 %v24579_v49  ;;  %22248 = vmatprep.subr.bf16.mxu1 %v25465_v4  ;;  %v24637_v49 = vld [vmem:[%s33015_s3 + $0xbbc] ss:$12 sps:$4 sm:$0xff]  }
 0x83c   : > { %12717 = vmatprep.subr.bf16.mxu0 %v24585_v12 }
 0x83e   : > { %22249 = vmatpush3.bf16.msra.mxu1 %v24586_v40  ;;  %v24638_v40 = vld [vmem:[%s33015_s3 + $0xd40] ss:$12 sps:$4 sm:$0xff]  }
 0x83f   : > { %12718 = vmatpush1.bf16.msra.mxu0 %v24583_v62  ;;  %22250 = vmatprep.subr.bf16.mxu1 %v25465_v4 }
 0x840   : > { %12719 = vmatprep.subr.bf16.mxu0 %v24589_v19 }
 0x842   : > { %22251 = vmatpush3.bf16.msra.mxu1 %v24590_v25 }
 0x843   : > { %12720 = vmatpush1.bf16.msra.mxu0 %v24587_v54  ;;  %22252 = vmatprep.subr.bf16.mxu1 %v25465_v4  ;;  %v24635_v54 = vld [vmem:[%s33015_s3 + $0xbb8] ss:$12 sps:$4 sm:$0xff]  }
 0x844   : > { %v21794_v41 = vpop.f32.mrb[44].mxu0  ;;  %12721 = vmatprep.subr.bf16.mxu0 %v24593_v63 }
 0x845   : > { %v21795_v36 = vpop.f32.mrb[45].mxu0 }
 0x846   : > { %v30866_v26 = vadd.f32 %v21795_v36, %v21794_v41  ;;  %v21797_v30 = vpop.f32.mrb[46].mxu0  ;;  %22253 = vmatpush3.bf16.msra.mxu1 %v24594_v42  ;;  %v24639_v42 = vld [vmem:[%s33015_s3 + $0xc80] ss:$12 sps:$4 sm:$0xff]   ;;  %v24643_v41 = vld [vmem:[%s33015_s3 + $0xd58] ss:$12 sps:$4 sm:$0xff]   ;;  %v13058_v36 = vrot.slane %v30206_v9, 1 }
 0x847   : > { %12722 = vmatpush1.bf16.msra.mxu0 %v24591_v51  ;;  %v21798_v46 = vpop.f32.mrb[47].mxu0  ;;  %13691 = vmatprep.subr.bf16.mxu1 %v24597_v7  ;;  %v13055_v51 = vrot.slane %v30196_v31, 1  ;;  %v24642_v7 = vld [vmem:[%s33015_s3 + $0xbd4] ss:$12 sps:$4 sm:$0xff]   ;;  %v24640_v30 = vld [vmem:[%s33015_s3 + $0xbd0] ss:$12 sps:$4 sm:$0xff]  }
 0x848   : > { %21882 = vmatprep.subr.bf16.mxu0 %v24598_v16  ;;  %v24648_v46 = vld [vmem:[%s33015_s3 + $0xd70] ss:$12 sps:$4 sm:$0xff]  }
 0x849   : > { %22255 = vmatmul.mubr.msk.bf16.vlgmr.msra.gmra.mrb[68].mxu1 %vm10481_vm2, %v11995_v56 }
 0x84a   : > { %20093 = vmatmul.mubr.msk.bf16.vlgmr.msra.gmra.mrb[56].mxu0 %vm10481_vm2, %v11995_v56  ;;  %13692 = vmatpush1.bf16.msra.mxu1 %v24595_v29  ;;  %v24644_v29 = vld [vmem:[%s33015_s3 + $0xc98] ss:$12 sps:$4 sm:$0xff]   ;;  %v24645_v56 = vld [vmem:[%s33015_s3 + $0xbe8] ss:$12 sps:$4 sm:$0xff]  }
 0x84b   : > { %13723 = vmatprep.mubr.bf16.mxu1 %v13056_v14  ;;  %21883 = vmatpush3.bf16.msra.mxu0 %v24599_v47  ;;  %v24649_v47 = vld [vmem:[%s33015_s3 + $0xcb0] ss:$12 sps:$4 sm:$0xff]  }
 0x84c   : > { %13846 = vmatprep.mubr.bf16.mxu0 %v13056_v14  ;;  %13693 = vmatprep.subr.bf16.mxu1 %v24602_v1  ;;  %v24652_v1 = vld [vmem:[%s33015_s3 + $0xc04] ss:$12 sps:$4 sm:$0xff]   ;;  %v24653_v14 = vld [vmem:[%s33015_s3 + $0xd88] ss:$12 sps:$4 sm:$0xff]  }
 0x84d   : > { %21884 = vmatprep.subr.bf16.mxu0 %v24603_v44  ;;  %v24650_v44 = vld [vmem:[%s33015_s3 + $0xc00] ss:$12 sps:$4 sm:$0xff]  }
 0x84e   : > { %13694 = vmatpush1.bf16.msra.mxu1 %v24600_v59  ;;  %v24654_v59 = vld [vmem:[%s33015_s3 + $0xcc8] ss:$12 sps:$4 sm:$0xff]  }
 0x84f   : > { %21885 = vmatpush3.bf16.msra.mxu0 %v24604_v53  ;;  %13695 = vmatprep.subr.bf16.mxu1 %v24607_v32  ;;  %v24657_v53 = vld [vmem:[%s33015_s3 + $0xc1c] ss:$12 sps:$4 sm:$0xff]   ;;  %v24658_v32 = vld [vmem:[%s33015_s3 + $0xda0] ss:$12 sps:$4 sm:$0xff]  }
 0x850   : > { %21886 = vmatprep.subr.bf16.mxu0 %v24608_v11  ;;  %v24655_v11 = vld [vmem:[%s33015_s3 + $0xc18] ss:$12 sps:$4 sm:$0xff]  }
 0x852   : > { %13696 = vmatpush1.bf16.msra.mxu1 %v24605_v17  ;;  %v24659_v17 = vld [vmem:[%s33015_s3 + $0xce0] ss:$12 sps:$4 sm:$0xff]  }
 0x853   : > { %21887 = vmatpush3.bf16.msra.mxu0 %v24609_v50  ;;  %13697 = vmatprep.subr.bf16.mxu1 %v24612_v48  ;;  %v24662_v50 = vld [vmem:[%s33015_s3 + $0xc34] ss:$12 sps:$4 sm:$0xff]   ;;  %v24663_v48 = vld [vmem:[%s33015_s3 + $0xdb8] ss:$12 sps:$4 sm:$0xff]  }
 0x854   : > { %21888 = vmatprep.subr.bf16.mxu0 %v24613_v57  ;;  %v24660_v57 = vld [vmem:[%s33015_s3 + $0xc30] ss:$12 sps:$4 sm:$0xff]  }
 0x856   : > { %13698 = vmatpush1.bf16.msra.mxu1 %v24610_v45  ;;  %v24664_v45 = vld [vmem:[%s33015_s3 + $0xcf8] ss:$12 sps:$4 sm:$0xff]  }
 0x857   : > { %21889 = vmatpush3.bf16.msra.mxu0 %v24614_v43  ;;  %13699 = vmatprep.subr.bf16.mxu1 %v24617_v23  ;;  %v24667_v43 = vld [vmem:[%s33015_s3 + $0xc4c] ss:$12 sps:$4 sm:$0xff]   ;;  %v24668_v23 = vld [vmem:[%s33015_s3 + $0xdd0] ss:$12 sps:$4 sm:$0xff]  }
 0x858   : > { %21890 = vmatprep.subr.bf16.mxu0 %v24618_v35  ;;  %v24665_v35 = vld [vmem:[%s33015_s3 + $0xc48] ss:$12 sps:$4 sm:$0xff]  }
 0x85a   : > { %13700 = vmatpush1.bf16.msra.mxu1 %v24615_v22  ;;  %v24669_v22 = vld [vmem:[%s33015_s3 + $0xd10] ss:$12 sps:$4 sm:$0xff]  }
 0x85b   : > { %21891 = vmatpush3.bf16.msra.mxu0 %v24619_v15  ;;  %13701 = vmatprep.subr.bf16.mxu1 %v24622_v0  ;;  %v24672_v15 = vld [vmem:[%s33015_s3 + $0xc64] ss:$12 sps:$4 sm:$0xff]   ;;  %v24673_v0 = vld [vmem:[%s33015_s3 + $0xde8] ss:$12 sps:$4 sm:$0xff]  }
 0x85c   : > { %21892 = vmatprep.subr.bf16.mxu0 %v24623_v55 }
 0x85e   : > { %13702 = vmatpush1.bf16.msra.mxu1 %v24620_v21 }
 0x85f   : > { %21893 = vmatpush3.bf16.msra.mxu0 %v24624_v2  ;;  %13703 = vmatprep.subr.bf16.mxu1 %v24627_v58  ;;  %v24670_v58 = vld [vmem:[%s33015_s3 + $0xc60] ss:$12 sps:$4 sm:$0xff]  }
 0x860   : > { %21894 = vmatprep.subr.bf16.mxu0 %v24628_v39 }
 0x862   : > { %13704 = vmatpush1.bf16.msra.mxu1 %v24625_v38  ;;  %v24674_v38 = vld [vmem:[%s33015_s3 + $0xd28] ss:$12 sps:$4 sm:$0xff]  }
 0x863   : > { %21895 = vmatpush3.bf16.msra.mxu0 %v24629_v18  ;;  %13705 = vmatprep.subr.bf16.mxu1 %v24632_v20  ;;  %v24677_v18 = vld [vmem:[%s33015_s3 + $0xc7c] ss:$12 sps:$4 sm:$0xff]  }
 0x864   : > { %v21816_v12 = vpop.f32.mrb[48].mxu0  ;;  %21896 = vmatprep.subr.bf16.mxu0 %v24633_v3  ;;  %v24675_v3 = vld [vmem:[%s33015_s3 + $0xc78] ss:$12 sps:$4 sm:$0xff]  }
 0x865   : > { %v21817_v62 = vpop.f32.mrb[49].mxu0 }
 0x866   : > { %v21818_v19 = vadd.f32 %v21817_v62, %v21816_v12  ;;  %v21819_v25 = vpop.f32.mrb[50].mxu0  ;;  %13706 = vmatpush1.bf16.msra.mxu1 %v24630_v33  ;;  %v24678_v33 = vld [vmem:[%s33015_s3 + $0xe00] ss:$12 sps:$4 sm:$0xff]   ;;  %v24679_v12 = vld [vmem:[%s33015_s3 + $0xc90] ss:$12 sps:$4 sm:$0xff]  }
 0x867   : > { %21897 = vmatpush3.bf16.msra.mxu0 %v24634_v27  ;;  %v21820_v63 = vpop.f32.mrb[51].mxu0  ;;  %13707 = vmatprep.subr.bf16.mxu1 %v24637_v49  ;;  %v13057_v27 = vrot.slane %v30297_v24, 1  ;;  %v24681_v49 = vld [vmem:[%s33015_s3 + $0xc94] ss:$12 sps:$4 sm:$0xff]   ;;  %v24685_v62 = vld [vmem:[%s33015_s3 + $0xcac] ss:$12 sps:$4 sm:$0xff]  }
 0x868   : > { %21904 = vmatprep.subr.bf16.mxu0 %v24638_v40  ;;  %v11756_v16 = vadd.f32 %v21818_v19, %v30866_v26  ;;  %v24647_v26 = vld [vmem:[%s33015_s3 + $0xbec] ss:$12 sps:$4 sm:$0xff]   ;;  %v24683_v19 = vld [vmem:[%s33015_s3 + $0xca8] ss:$12 sps:$4 sm:$0xff]   ;;  %v24686_v25 = vld [vmem:[%s33015_s3 + $0xe30] ss:$12 sps:$4 sm:$0xff]  }
 0x869   : > { %v24682_v40 = vld [vmem:[%s33015_s3 + $0xe18] ss:$12 sps:$4 sm:$0xff]   ;;  %v24687_v63 = vld [vmem:[%s33015_s3 + $0xcc0] ss:$12 sps:$4 sm:$0xff]  }
 0x86a   : > { %13847 = vmatmul.mubr.bf16.vlgmr.msra.gmra.mrb[60].mxu0 %v13055_v51  ;;  %13708 = vmatpush1.bf16.msra.mxu1 %v24635_v54  ;;  %v24689_v54 = vld [vmem:[%s33015_s3 + $0xcc4] ss:$12 sps:$4 sm:$0xff]  }
 0x86b   : > { %21905 = vmatpush3.bf16.msra.mxu0 %v24639_v42  ;;  %13886 = vmatprep.mubr.bf16.mxu0 %v13058_v36  ;;  %v24690_v42 = vld [vmem:[%s33015_s3 + $0xe48] ss:$12 sps:$4 sm:$0xff]  }
 0x86c   : > { %13709 = vmatprep.subr.bf16.mxu1 %v24642_v7  ;;  %21906 = vmatprep.subr.bf16.mxu0 %v24643_v41  ;;  %v24691_v7 = vld [vmem:[%s33015_s3 + $0xcd8] ss:$12 sps:$4 sm:$0xff]   ;;  %v24694_v41 = vld [vmem:[%s33015_s3 + $0xe60] ss:$12 sps:$4 sm:$0xff]  }
 0x86e   : > { %13710 = vmatpush1.bf16.msra.mxu1 %v24640_v30  ;;  %v24698_v30 = vld [vmem:[%s33015_s3 + $0xe78] ss:$12 sps:$4 sm:$0xff]  }
 0x86f   : > { %21907 = vmatpush3.bf16.msra.mxu0 %v24644_v29  ;;  %13711 = vmatprep.subr.bf16.mxu1 %v24647_v26  ;;  %v24701_v29 = vld [vmem:[%s33015_s3 + $0xd0c] ss:$12 sps:$4 sm:$0xff]   ;;  %v24699_v26 = vld [vmem:[%s33015_s3 + $0xd08] ss:$12 sps:$4 sm:$0xff]  }
 0x870   : > { %21908 = vmatprep.subr.bf16.mxu0 %v24648_v46  ;;  %v24702_v46 = vld [vmem:[%s33015_s3 + $0xe90] ss:$12 sps:$4 sm:$0xff]  }
 0x872   : > { %13712 = vmatpush1.bf16.msra.mxu1 %v24645_v56  ;;  %v24705_v56 = vld [vmem:[%s33015_s3 + $0xd24] ss:$12 sps:$4 sm:$0xff]  }
 0x873   : > { %21909 = vmatpush3.bf16.msra.mxu0 %v24649_v47  ;;  %13713 = vmatprep.subr.bf16.mxu1 %v24652_v1  ;;  %v24708_v47 = vld [vmem:[%s33015_s3 + $0xea4] ss:$12 sps:$4 sm:$0xff]   ;;  %v24703_v1 = vld [vmem:[%s33015_s3 + $0xd20] ss:$12 sps:$4 sm:$0xff]  }
 0x874   : > { %21910 = vmatprep.subr.bf16.mxu0 %v24653_v14  ;;  %v24706_v14 = vld [vmem:[%s33015_s3 + $0xea0] ss:$12 sps:$4 sm:$0xff]  }
 0x876   : > { %13714 = vmatpush1.bf16.msra.mxu1 %v24650_v44  ;;  %v13059_v44 = vrot.slane %v30381_v60, 1 }
 0x877   : > { %21911 = vmatpush3.bf16.msra.mxu0 %v24654_v59  ;;  %13715 = vmatprep.subr.bf16.mxu1 %v24657_v53  ;;  %v24711_v59 = vld [vmem:[%s33015_s3 + $0xd3c] ss:$12 sps:$4 sm:$0xff]  }
 0x878   : > { %21912 = vmatprep.subr.bf16.mxu0 %v24658_v32  ;;  %v24714_v53 = vld [vmem:[%s33015_s3 + $0xebc] ss:$12 sps:$4 sm:$0xff]   ;;  %v14120_v32 = vrot.slane %v29770_v5, 2 }
 0x87a   : > { %13716 = vmatpush1.bf16.msra.mxu1 %v24655_v11  ;;  %v24709_v11 = vld [vmem:[%s33015_s3 + $0xd38] ss:$12 sps:$4 sm:$0xff]  }
 0x87b   : > { %21913 = vmatpush3.bf16.msra.mxu0 %v24659_v17  ;;  %13717 = vmatprep.subr.bf16.mxu1 %v24662_v50  ;;  %v24712_v17 = vld [vmem:[%s33015_s3 + $0xeb8] ss:$12 sps:$4 sm:$0xff]   ;;  %v24717_v50 = vld [vmem:[%s33015_s3 + $0xd54] ss:$12 sps:$4 sm:$0xff]  }
 0x87c   : > { %21914 = vmatprep.subr.bf16.mxu0 %v24663_v48  ;;  %v24720_v48 = vld [vmem:[%s33015_s3 + $0xed4] ss:$12 sps:$4 sm:$0xff]  }
 0x87e   : > { %13718 = vmatpush1.bf16.msra.mxu1 %v24660_v57  ;;  %v24715_v57 = vld [vmem:[%s33015_s3 + $0xd50] ss:$12 sps:$4 sm:$0xff]  }
 0x87f   : > { %21915 = vmatpush3.bf16.msra.mxu0 %v24664_v45  ;;  %13719 = vmatprep.subr.bf16.mxu1 %v24667_v43  ;;  %v24718_v45 = vld [vmem:[%s33015_s3 + $0xed0] ss:$12 sps:$4 sm:$0xff]   ;;  %v24723_v43 = vld [vmem:[%s33015_s3 + $0xd6c] ss:$12 sps:$4 sm:$0xff]  }
 0x880   : > { %21916 = vmatprep.subr.bf16.mxu0 %v24668_v23  ;;  %v24726_v23 = vld [vmem:[%s33015_s3 + $0xeec] ss:$12 sps:$4 sm:$0xff]  }
 0x881   : > { %v11795_v55 = vpop.f32.mrb[52].mxu0 }
 0x882   : > { %v31059_v21 = vadd.f32 %v11795_v55, %v11756_v16  ;;  %v22238_v2 = vpop.f32.mrb[53].mxu0  ;;  %13720 = vmatpush1.bf16.msra.mxu1 %v24665_v35  ;;  %v24697_v16 = vld [vmem:[%s33015_s3 + $0xcf4] ss:$12 sps:$4 sm:$0xff]  }
 0x883   : > { %v11798_v39 = vpop.f32.mrb[54].mxu0  ;;  %21917 = vmatpush3.bf16.msra.mxu0 %v24669_v22  ;;  %13721 = vmatprep.subr.bf16.mxu1 %v24672_v15  ;;  %v24721_v35 = vld [vmem:[%s33015_s3 + $0xd68] ss:$12 sps:$4 sm:$0xff]   ;;  %v24729_v15 = vld [vmem:[%s33015_s3 + $0xd84] ss:$12 sps:$4 sm:$0xff]  }
 0x884   : > { %v22239_v20 = vpop.f32.mrb[55].mxu0  ;;  %21918 = vmatprep.subr.bf16.mxu0 %v24673_v0  ;;  %v24724_v22 = vld [vmem:[%s33015_s3 + $0xee8] ss:$12 sps:$4 sm:$0xff]   ;;  %v24732_v0 = vld [vmem:[%s33015_s3 + $0xf04] ss:$12 sps:$4 sm:$0xff]  }
 0x885   : > { %v24727_v55 = vld [vmem:[%s33015_s3 + $0xd80] ss:$12 sps:$4 sm:$0xff]   ;;  %v24738_v39 = vld [vmem:[%s33015_s3 + $0xf1c] ss:$12 sps:$4 sm:$0xff]  }
 0x886   : > { %13722 = vmatpush1.bf16.msra.mxu1 %v24670_v58  ;;  %v24730_v2 = vld [vmem:[%s33015_s3 + $0xf00] ss:$12 sps:$4 sm:$0xff]   ;;  %v24735_v58 = vld [vmem:[%s33015_s3 + $0xd9c] ss:$12 sps:$4 sm:$0xff]  }
 0x887   : > { %21919 = vmatpush3.bf16.msra.mxu0 %v24674_v38  ;;  %13732 = vmatprep.subr.bf16.mxu1 %v24677_v18  ;;  %v24733_v38 = vld [vmem:[%s33015_s3 + $0xd98] ss:$12 sps:$4 sm:$0xff]   ;;  %v24741_v20 = vld [vmem:[%s33015_s3 + $0xdb4] ss:$12 sps:$4 sm:$0xff]  }
 0x888   : > { %22258 = vmatprep.subr.bf16.mxu0 %v25465_v4  ;;  %v24736_v18 = vld [vmem:[%s33015_s3 + $0xf18] ss:$12 sps:$4 sm:$0xff]  }
 0x889   : > { %13724 = vmatmul.mubr.bf16.vlgmr.msra.gmra.mrb[72].mxu1 %v13055_v51  ;;  %v24693_v51 = vld [vmem:[%s33015_s3 + $0xcdc] ss:$12 sps:$4 sm:$0xff]  }
 0x88a   : > { %13887 = vmatmul.mubr.bf16.vlgmr.msra.gmra.mrb[64].mxu0 %v13057_v27  ;;  %13733 = vmatpush1.bf16.msra.mxu1 %v24675_v3  ;;  %v24744_v3 = vld [vmem:[%s33015_s3 + $0xf34] ss:$12 sps:$4 sm:$0xff]  }
 0x88b   : > { %13764 = vmatprep.mubr.bf16.mxu1 %v13058_v36  ;;  %22259 = vmatpush3.bf16.msra.mxu0 %v24678_v33  ;;  %v24695_v36 = vld [vmem:[%s33015_s3 + $0xcf0] ss:$12 sps:$4 sm:$0xff]  }
 0x88c   : > { %13734 = vmatprep.subr.bf16.mxu1 %v24681_v49  ;;  %22260 = vmatprep.subr.bf16.mxu0 %v25465_v4  ;;  %v24739_v33 = vld [vmem:[%s33015_s3 + $0xdb0] ss:$12 sps:$4 sm:$0xff]  }
 0x88d   : > { %22272 = vmatprep.mubr.msk.bf16.mxu0 %vm25467_vm0, %v25465_v4  ;;  %v24742_v49 = vld [vmem:[%s33015_s3 + $0xf30] ss:$12 sps:$4 sm:$0xff]  }
 0x88e   : > { %13735 = vmatpush1.bf16.msra.mxu1 %v24679_v12  ;;  %v24747_v12 = vld [vmem:[%s33015_s3 + $0xdcc] ss:$12 sps:$4 sm:$0xff]  }
 0x88f   : > { %22261 = vmatpush3.bf16.msra.mxu0 %v24682_v40  ;;  %13736 = vmatprep.subr.bf16.mxu1 %v24685_v62  ;;  %v24750_v40 = vld [vmem:[%s33015_s3 + $0xf4c] ss:$12 sps:$4 sm:$0xff]   ;;  %v24745_v62 = vld [vmem:[%s33015_s3 + $0xdc8] ss:$12 sps:$4 sm:$0xff]  }
 0x890   : > { %22262 = vmatprep.subr.bf16.mxu0 %v25465_v4 }
 0x892   : > { %13737 = vmatpush1.bf16.msra.mxu1 %v24683_v19  ;;  %v24748_v19 = vld [vmem:[%s33015_s3 + $0xf48] ss:$12 sps:$4 sm:$0xff]  }
 0x893   : > { %22263 = vmatpush3.bf16.msra.mxu0 %v24686_v25  ;;  %13738 = vmatprep.subr.bf16.mxu1 %v24689_v54  ;;  %v24753_v25 = vld [vmem:[%s33015_s3 + $0xde4] ss:$12 sps:$4 sm:$0xff]  }
 0x894   : > { %22264 = vmatprep.subr.bf16.mxu0 %v25465_v4 }
 0x896   : > { %13739 = vmatpush1.bf16.msra.mxu1 %v24687_v63  ;;  %v24756_v63 = vld [vmem:[%s33015_s3 + $0xf64] ss:$12 sps:$4 sm:$0xff]  }
 0x897   : > { %22265 = vmatpush3.bf16.msra.mxu0 %v24690_v42  ;;  %13740 = vmatprep.subr.bf16.mxu1 %v24693_v51 }
 0x898   : > { %22266 = vmatprep.subr.bf16.mxu0 %v25465_v4 }
 0x89a   : > { %13741 = vmatpush1.bf16.msra.mxu1 %v24691_v7 }
 0x89b   : > { %22267 = vmatpush3.bf16.msra.mxu0 %v24694_v41  ;;  %13742 = vmatprep.subr.bf16.mxu1 %v24697_v16  ;;  %v24751_v41 = vld [vmem:[%s33015_s3 + $0xde0] ss:$12 sps:$4 sm:$0xff]  }
 0x89c   : > { %22268 = vmatprep.subr.bf16.mxu0 %v25465_v4 }
 0x89e   : > { %13743 = vmatpush1.bf16.msra.mxu1 %v24695_v36  ;;  %v24754_v36 = vld [vmem:[%s33015_s3 + $0xf60] ss:$12 sps:$4 sm:$0xff]  }
 0x89f   : > { %22269 = vmatpush3.bf16.msra.mxu0 %v24698_v30  ;;  %13744 = vmatprep.subr.bf16.mxu1 %v24701_v29  ;;  %v24759_v30 = vld [vmem:[%s33015_s3 + $0xdfc] ss:$12 sps:$4 sm:$0xff]   ;;  %v10753_v29 = vrot.slane %v30787_v34, %v30764_v52  ;;  %v24757_v34 = vld [vmem:[%s33015_s3 + $0xdf8] ss:$12 sps:$4 sm:$0xff]  }
 0x8a0   : > { %22270 = vmatprep.subr.bf16.mxu0 %v25465_v4 }
 0x8a2   : > { %13745 = vmatpush1.bf16.msra.mxu1 %v24699_v26  ;;  %v11818_v26 = vrot.slane %v31059_v21, %v30764_v52  ;;  %v24760_v21 = vld [vmem:[%s33015_s3 + $0xf78] ss:$12 sps:$4 sm:$0xff]  }
 0x8a3   : > { %22271 = vmatpush3.bf16.msra.mxu0 %v24702_v46  ;;  %13746 = vmatprep.subr.bf16.mxu1 %v24705_v56  ;;  %v24762_v56 = vld [vmem:[%s33015_s3 + $0xf7c] ss:$12 sps:$4 sm:$0xff]  }
 0x8a4   : > { %14755 = vmatprep.subr.bf16.mxu0 %v24708_v47  ;;  %v9700_v47 = vld [vmem:[%s33016_s4] sm:$0x7] }
 0x8a6   : > { %22273 = vmatmul.mubr.msk.bf16.vlgmr.msra.gmra.mrb[68].mxu0 %vm10481_vm2, %v13059_v44  ;;  %13747 = vmatpush1.bf16.msra.mxu1 %v24703_v1 }
 0x8a7   : > { %14756 = vmatpush1.bf16.msra.mxu0 %v24706_v14  ;;  %14787 = vmatprep.mubr.bf16.mxu0 %v14120_v32  ;;  %v24765_v14 = vld [vmem:[%s33015_s3 + $0xe14] ss:$12 sps:$4 sm:$0xff]  }
 0x8a8   : > { %13748 = vmatprep.subr.bf16.mxu1 %v24711_v59  ;;  %14757 = vmatprep.subr.bf16.mxu0 %v24714_v53  ;;  %v10755_v59 = vadd.f32 %v10753_v29, %v9700_v47  ;;  %v24808_v29 = vld [vmem:[%s33015_s3 + $0xec0] ss:$12 sps:$4 sm:$0xff]   ;;  %v24809_v47 = vld [vmem:[%s33015_s3 + $0x1050] ss:$12 sps:$4 sm:$0xff]  }
 0x8aa   : > { %13749 = vmatpush1.bf16.msra.mxu1 %v24709_v11  ;;  %v24768_v11 = vld [vmem:[%s33015_s3 + $0xf94] ss:$12 sps:$4 sm:$0xff]  }
 0x8ab   : > { %14758 = vmatpush1.bf16.msra.mxu0 %v24712_v17  ;;  %13750 = vmatprep.subr.bf16.mxu1 %v24717_v50  ;;  %v24763_v50 = vld [vmem:[%s33015_s3 + $0xe10] ss:$12 sps:$4 sm:$0xff]  }
 0x8ac   : > { %14759 = vmatprep.subr.bf16.mxu0 %v24720_v48  ;;  %v24766_v48 = vld [vmem:[%s33015_s3 + $0xf90] ss:$12 sps:$4 sm:$0xff]  }
 0x8ae   : > { %13751 = vmatpush1.bf16.msra.mxu1 %v24715_v57  ;;  %v24771_v57 = vld [vmem:[%s33015_s3 + $0xe2c] ss:$12 sps:$4 sm:$0xff]  }
 0x8af   : > { %14760 = vmatpush1.bf16.msra.mxu0 %v24718_v45  ;;  %13752 = vmatprep.subr.bf16.mxu1 %v24723_v43  ;;  %v24769_v45 = vld [vmem:[%s33015_s3 + $0xe28] ss:$12 sps:$4 sm:$0xff]  }
 0x8b0   : > { %14761 = vmatprep.subr.bf16.mxu0 %v24726_v23  ;;  %v24772_v43 = vld [vmem:[%s33015_s3 + $0xfa8] ss:$12 sps:$4 sm:$0xff]   ;;  %v24777_v23 = vld [vmem:[%s33015_s3 + $0xe44] ss:$12 sps:$4 sm:$0xff]  }
 0x8b2   : > { %13753 = vmatpush1.bf16.msra.mxu1 %v24721_v35  ;;  %v24780_v35 = vld [vmem:[%s33015_s3 + $0xfc4] ss:$12 sps:$4 sm:$0xff]  }
 0x8b3   : > { %14762 = vmatpush1.bf16.msra.mxu0 %v24724_v22  ;;  %13754 = vmatprep.subr.bf16.mxu1 %v24729_v15  ;;  %v24775_v22 = vld [vmem:[%s33015_s3 + $0xe40] ss:$12 sps:$4 sm:$0xff]  }
 0x8b4   : > { %14763 = vmatprep.subr.bf16.mxu0 %v24732_v0  ;;  %v24778_v15 = vld [vmem:[%s33015_s3 + $0xfc0] ss:$12 sps:$4 sm:$0xff]   ;;  %v24783_v0 = vld [vmem:[%s33015_s3 + $0xe5c] ss:$12 sps:$4 sm:$0xff]  }
 0x8b6   : > { %13755 = vmatpush1.bf16.msra.mxu1 %v24727_v55  ;;  %v24786_v55 = vld [vmem:[%s33015_s3 + $0xfdc] ss:$12 sps:$4 sm:$0xff]  }
 0x8b7   : > { %14764 = vmatpush1.bf16.msra.mxu0 %v24730_v2  ;;  %13756 = vmatprep.subr.bf16.mxu1 %v24735_v58  ;;  %v24781_v2 = vld [vmem:[%s33015_s3 + $0xe58] ss:$12 sps:$4 sm:$0xff]  }
 0x8b8   : > { %14765 = vmatprep.subr.bf16.mxu0 %v24738_v39  ;;  %v24784_v58 = vld [vmem:[%s33015_s3 + $0xfd8] ss:$12 sps:$4 sm:$0xff]   ;;  %v24789_v39 = vld [vmem:[%s33015_s3 + $0xe74] ss:$12 sps:$4 sm:$0xff]  }
 0x8ba   : > { %13757 = vmatpush1.bf16.msra.mxu1 %v24733_v38  ;;  %v24792_v38 = vld [vmem:[%s33015_s3 + $0xff4] ss:$12 sps:$4 sm:$0xff]  }
 0x8bb   : > { %14766 = vmatpush1.bf16.msra.mxu0 %v24736_v18  ;;  %13758 = vmatprep.subr.bf16.mxu1 %v24741_v20  ;;  %v24787_v18 = vld [vmem:[%s33015_s3 + $0xe70] ss:$12 sps:$4 sm:$0xff]  }
 0x8bc   : > { %14767 = vmatprep.subr.bf16.mxu0 %v24744_v3  ;;  %v24790_v20 = vld [vmem:[%s33015_s3 + $0xff0] ss:$12 sps:$4 sm:$0xff]   ;;  %v24795_v3 = vld [vmem:[%s33015_s3 + $0xe8c] ss:$12 sps:$4 sm:$0xff]  }
 0x8be   : > { %13759 = vmatpush1.bf16.msra.mxu1 %v24739_v33  ;;  %v24798_v33 = vld [vmem:[%s33015_s3 + $0x100c] ss:$12 sps:$4 sm:$0xff]  }
 0x8bf   : > { %14768 = vmatpush1.bf16.msra.mxu0 %v24742_v49  ;;  %13760 = vmatprep.subr.bf16.mxu1 %v24747_v12  ;;  %v24793_v49 = vld [vmem:[%s33015_s3 + $0xe88] ss:$12 sps:$4 sm:$0xff]  }
 0x8c0   : > { %v11674_v54 = vpop.f32.mrb[56].mxu1  ;;  %14769 = vmatprep.subr.bf16.mxu0 %v24750_v40  ;;  %v24796_v12 = vld [vmem:[%s33015_s3 + $0x1008] ss:$12 sps:$4 sm:$0xff]  }
 0x8c1   : > { %v11676_v42 = vpop.f32.mrb[57].mxu1  ;;  %v24802_v40 = vld [vmem:[%s33015_s3 + $0xf68] ss:$12 sps:$4 sm:$0xff]  }
 0x8c2   : > { %v11804_v51 = vcombine.low %v11674_v54, %v11676_v42  ;;  %v11678_v7 = vpop.f32.mrb[58].mxu1  ;;  %13761 = vmatpush1.bf16.msra.mxu1 %v24745_v62  ;;  %v24803_v42 = vld [vmem:[%s33015_s3 + $0xea8] ss:$12 sps:$4 sm:$0xff]  }
 0x8c3   : > { %14770 = vmatpush1.bf16.msra.mxu0 %v24748_v19  ;;  %v11679_v16 = vpop.f32.mrb[59].mxu1  ;;  %13762 = vmatprep.subr.bf16.mxu1 %v24753_v25  ;;  %v24801_v19 = vld [vmem:[%s33015_s3 + $0x1024] ss:$12 sps:$4 sm:$0xff]   ;;  %v24799_v7 = vld [vmem:[%s33015_s3 + $0x1020] ss:$12 sps:$4 sm:$0xff]  }
 0x8c4   : > { %v11811_v46 = vrot.slane %v11804_v51, %v30764_v52  ;;  %14771 = vmatprep.subr.bf16.mxu0 %v24756_v63  ;;  %v24806_v16 = vld [vmem:[%s33015_s3 + $0x103c] ss:$12 sps:$4 sm:$0xff]  }
 0x8c6   : > { %v11819_v1 = vcombine.low %v11811_v46, %v11818_v26  ;;  %13763 = vmatpush1.bf16.msra.mxu1 %v24751_v41  ;;  %v14119_v41 = vrot.slane %v29804_v8, 2  ;;  %v24812_v26 = vld [vmem:[%s33015_s3 + $0xf98] ss:$12 sps:$4 sm:$0xff]   ;;  %v24811_v46 = vld [vmem:[%s33015_s3 + $0x1054] ss:$12 sps:$4 sm:$0xff]  }
 0x8c7   : > { %14772 = vmatpush1.bf16.msra.mxu0 %v24754_v36  ;;  %13773 = vmatprep.subr.bf16.mxu1 %v24759_v30  ;;  %v14122_v36 = vrot.slane %v29812_v61, 2  ;;  %v24807_v30 = vld [vmem:[%s33015_s3 + $0xf80] ss:$12 sps:$4 sm:$0xff]  }
 0x8c8   : > { %v11826_v53 = vrot.slane %v11819_v1, %v30764_v52  ;;  %14773 = vmatprep.subr.bf16.mxu0 %v24762_v56  ;;  %v24813_v56 = vld [vmem:[%s33015_s3 + $0xed8] ss:$12 sps:$4 sm:$0xff]  }
 0x8c9   : > { %13765 = vmatmul.mubr.bf16.vlgmr.msra.gmra.mrb[72].mxu1 %v13057_v27  ;;  %v24774_v27 = vld [vmem:[%s33015_s3 + $0xfac] ss:$12 sps:$4 sm:$0xff]  }
 0x8ca   : > { %v31290_v17 = vadd.f32 %v11826_v53, %v10755_v59  ;;  %13774 = vmatpush1.bf16.msra.mxu1 %v24757_v34  ;;  %13805 = vmatprep.mubr.bf16.mxu1 %v25466_v37  ;;  %v24816_v1 = vld [vmem:[%s33015_s3 + $0x106c] ss:$12 sps:$4 sm:$0xff]   ;;  %v24818_v34 = vld [vmem:[%s33015_s3 + $0xef0] ss:$12 sps:$4 sm:$0xff]   ;;  %v24823_v53 = vld [vmem:[%s33015_s3 + $0xf08] ss:$12 sps:$4 sm:$0xff]  }
 0x8cb   : > { %14774 = vmatpush1.bf16.msra.mxu0 %v24760_v21  ;;  %13775 = vmatprep.subr.bf16.mxu1 %v24765_v14  ;;  %v24814_v21 = vld [vmem:[%s33015_s3 + $0x1068] ss:$12 sps:$4 sm:$0xff]   ;;  %v24821_v59 = vld [vmem:[%s33015_s3 + $0x1084] ss:$12 sps:$4 sm:$0xff]  }
 0x8cc   : > { %14775 = vmatprep.subr.bf16.mxu0 %v24768_v11  ;;  %v24822_v14 = vld [vmem:[%s33015_s3 + $0xfc8] ss:$12 sps:$4 sm:$0xff]   ;;  %v24819_v11 = vld [vmem:[%s33015_s3 + $0x1080] ss:$12 sps:$4 sm:$0xff]  }
 0x8ce   : > { %13776 = vmatpush1.bf16.msra.mxu1 %v24763_v50  ;;  %v24827_v50 = vld [vmem:[%s33015_s3 + $0xfe0] ss:$12 sps:$4 sm:$0xff]  }
 0x8cf   : > { %14776 = vmatpush1.bf16.msra.mxu0 %v24766_v48  ;;  %13777 = vmatprep.subr.bf16.mxu1 %v24771_v57  ;;  %v24826_v48 = vld [vmem:[%s33015_s3 + $0x109c] ss:$12 sps:$4 sm:$0xff]   ;;  %v24828_v57 = vld [vmem:[%s33015_s3 + $0xf20] ss:$12 sps:$4 sm:$0xff]  }
 0x8d0   : > { %14777 = vmatprep.subr.bf16.mxu0 %v24774_v27  ;;  %v24824_v27 = vld [vmem:[%s33015_s3 + $0x1098] ss:$12 sps:$4 sm:$0xff]  }
 0x8d2   : > { %13778 = vmatpush1.bf16.msra.mxu1 %v24769_v45  ;;  %v24832_v45 = vld [vmem:[%s33015_s3 + $0xff8] ss:$12 sps:$4 sm:$0xff]  }
 0x8d3   : > { %14778 = vmatpush1.bf16.msra.mxu0 %v24772_v43  ;;  %13779 = vmatprep.subr.bf16.mxu1 %v24777_v23  ;;  %v24831_v43 = vld [vmem:[%s33015_s3 + $0x10b4] ss:$12 sps:$4 sm:$0xff]   ;;  %v24833_v23 = vld [vmem:[%s33015_s3 + $0xf38] ss:$12 sps:$4 sm:$0xff]  }
 0x8d4   : > { %14779 = vmatprep.subr.bf16.mxu0 %v24780_v35  ;;  %v24829_v35 = vld [vmem:[%s33015_s3 + $0x10b0] ss:$12 sps:$4 sm:$0xff]  }
 0x8d6   : > { %13780 = vmatpush1.bf16.msra.mxu1 %v24775_v22  ;;  %v24837_v22 = vld [vmem:[%s33015_s3 + $0x1010] ss:$12 sps:$4 sm:$0xff]  }
 0x8d7   : > { %14780 = vmatpush1.bf16.msra.mxu0 %v24778_v15  ;;  %13781 = vmatprep.subr.bf16.mxu1 %v24783_v0  ;;  %v24836_v15 = vld [vmem:[%s33015_s3 + $0x10cc] ss:$12 sps:$4 sm:$0xff]   ;;  %v24838_v0 = vld [vmem:[%s33015_s3 + $0xf50] ss:$12 sps:$4 sm:$0xff]  }
 0x8d8   : > { %14781 = vmatprep.subr.bf16.mxu0 %v24786_v55  ;;  %v24834_v55 = vld [vmem:[%s33015_s3 + $0x10c8] ss:$12 sps:$4 sm:$0xff]  }
 0x8da   : > { %13782 = vmatpush1.bf16.msra.mxu1 %v24781_v2  ;;  %v24842_v2 = vld [vmem:[%s33015_s3 + $0x10e8] ss:$12 sps:$4 sm:$0xff]  }
 0x8db   : > { %14782 = vmatpush1.bf16.msra.mxu0 %v24784_v58  ;;  %13783 = vmatprep.subr.bf16.mxu1 %v24789_v39  ;;  %v24841_v39 = vld [vmem:[%s33015_s3 + $0x10e4] ss:$12 sps:$4 sm:$0xff]  }
 0x8dc   : > { %14783 = vmatprep.subr.bf16.mxu0 %v24792_v38 }
 0x8de   : > { %13784 = vmatpush1.bf16.msra.mxu1 %v24787_v18 }
 0x8df   : > { %14784 = vmatpush1.bf16.msra.mxu0 %v24790_v20  ;;  %13785 = vmatprep.subr.bf16.mxu1 %v24795_v3  ;;  %v24843_v3 = vld [vmem:[%s33015_s3 + $0x1028] ss:$12 sps:$4 sm:$0xff]  }
 0x8e0   : > { %v21846_v62 = vpop.f32.mrb[60].mxu1  ;;  %14785 = vmatprep.subr.bf16.mxu0 %v24798_v33 }
 0x8e1   : > { %v21847_v25 = vpop.f32.mrb[61].mxu1 }
 0x8e2   : > { %v31365_v54 = vadd.f32 %v21847_v25, %v21846_v62  ;;  %v21849_v63 = vpop.f32.mrb[62].mxu1  ;;  %13786 = vmatpush1.bf16.msra.mxu1 %v24793_v49  ;;  %v24839_v49 = vld [vmem:[%s33015_s3 + $0x10e0] ss:$12 sps:$4 sm:$0xff]   ;;  %v24844_v25 = vld [vmem:[%s33015_s3 + $0x10f8] ss:$12 sps:$4 sm:$0xff]  }
 0x8e3   : > { %14786 = vmatpush1.bf16.msra.mxu0 %v24796_v12  ;;  %v21850_v51 = vpop.f32.mrb[63].mxu1  ;;  %21934 = vmatprep.subr.bf16.mxu1 %v24802_v40  ;;  %v24847_v12 = vld [vmem:[%s33015_s3 + $0x1100] ss:$12 sps:$4 sm:$0xff]   ;;  %v24846_v40 = vld [vmem:[%s33015_s3 + $0x10fc] ss:$12 sps:$4 sm:$0xff]  }
 0x8e4   : > { %14796 = vmatprep.subr.bf16.mxu0 %v24801_v19  ;;  %v24848_v19 = vld [vmem:[%s33015_s3 + $0x1040] ss:$12 sps:$4 sm:$0xff]   ;;  %v24849_v51 = vld [vmem:[%s33015_s3 + $0x1110] ss:$12 sps:$4 sm:$0xff]  }
 0x8e5   : > { %20368 = vmatmul.mubr.msk.bf16.vlgmr.msra.gmra.mrb[72].mxu1 %vm10481_vm2, %v13059_v44  ;;  %v24804_v44 = vld [vmem:[%s33015_s3 + $0x1038] ss:$12 sps:$4 sm:$0xff]   ;;  %v24851_v63 = vld [vmem:[%s33015_s3 + $0x1114] ss:$12 sps:$4 sm:$0xff]  }
 0x8e6   : > { %14788 = vmatmul.mubr.bf16.vlgmr.msra.gmra.mrb[72].mxu0 %v14119_v41  ;;  %21935 = vmatpush3.bf16.msra.mxu1 %v24803_v42  ;;  %v24853_v42 = vld [vmem:[%s33015_s3 + $0x1058] ss:$12 sps:$4 sm:$0xff]  }
 0x8e7   : > { %14797 = vmatpush1.bf16.msra.mxu0 %v24799_v7  ;;  %14828 = vmatprep.mubr.bf16.mxu0 %v14122_v36  ;;  %v24857_v7 = vld [vmem:[%s33015_s3 + $0x1130] ss:$12 sps:$4 sm:$0xff]  }
 0x8e8   : > { %14910 = vmatprep.mubr.bf16.mxu1 %v14120_v32  ;;  %14798 = vmatprep.subr.bf16.mxu0 %v24806_v16  ;;  %v24817_v32 = vld [vmem:[%s33015_s3 + $0xfb0] ss:$12 sps:$4 sm:$0xff]  }
 0x8e9   : > { %21936 = vmatprep.subr.bf16.mxu1 %v24807_v30  ;;  %v24858_v16 = vld [vmem:[%s33015_s3 + $0x1070] ss:$12 sps:$4 sm:$0xff]   ;;  %v24862_v30 = vld [vmem:[%s33015_s3 + $0x1148] ss:$12 sps:$4 sm:$0xff]  }
 0x8ea   : > { %21937 = vmatpush3.bf16.msra.mxu1 %v24808_v29  ;;  %v24861_v29 = vld [vmem:[%s33015_s3 + $0x1144] ss:$12 sps:$4 sm:$0xff]  }
 0x8eb   : > { %14799 = vmatpush1.bf16.msra.mxu0 %v24804_v44  ;;  %21938 = vmatprep.subr.bf16.mxu1 %v24812_v26  ;;  %v24863_v44 = vld [vmem:[%s33015_s3 + $0x1088] ss:$12 sps:$4 sm:$0xff]   ;;  %v24859_v26 = vld [vmem:[%s33015_s3 + $0x1140] ss:$12 sps:$4 sm:$0xff]  }
 0x8ec   : > { %14800 = vmatprep.subr.bf16.mxu0 %v24811_v46  ;;  %v24867_v46 = vld [vmem:[%s33015_s3 + $0x1160] ss:$12 sps:$4 sm:$0xff]  }
 0x8ee   : > { %21939 = vmatpush3.bf16.msra.mxu1 %v24813_v56  ;;  %v24866_v56 = vld [vmem:[%s33015_s3 + $0x115c] ss:$12 sps:$4 sm:$0xff]  }
 0x8ef   : > { %14801 = vmatpush1.bf16.msra.mxu0 %v24809_v47  ;;  %21940 = vmatprep.subr.bf16.mxu1 %v24817_v32  ;;  %v24868_v47 = vld [vmem:[%s33015_s3 + $0x10a0] ss:$12 sps:$4 sm:$0xff]   ;;  %v24864_v32 = vld [vmem:[%s33015_s3 + $0x1158] ss:$12 sps:$4 sm:$0xff]  }
 0x8f0   : > { %14802 = vmatprep.subr.bf16.mxu0 %v24816_v1  ;;  %v24872_v1 = vld [vmem:[%s33015_s3 + $0x1178] ss:$12 sps:$4 sm:$0xff]  }
 0x8f2   : > { %21941 = vmatpush3.bf16.msra.mxu1 %v24818_v34  ;;  %v24871_v34 = vld [vmem:[%s33015_s3 + $0x1174] ss:$12 sps:$4 sm:$0xff]  }
 0x8f3   : > { %14803 = vmatpush1.bf16.msra.mxu0 %v24814_v21  ;;  %21942 = vmatprep.subr.bf16.mxu1 %v24822_v14  ;;  %v24873_v21 = vld [vmem:[%s33015_s3 + $0x10b8] ss:$12 sps:$4 sm:$0xff]   ;;  %v24869_v14 = vld [vmem:[%s33015_s3 + $0x1170] ss:$12 sps:$4 sm:$0xff]  }
 0x8f4   : > { %14804 = vmatprep.subr.bf16.mxu0 %v24821_v59  ;;  %v24877_v59 = vld [vmem:[%s33015_s3 + $0x1190] ss:$12 sps:$4 sm:$0xff]  }
 0x8f6   : > { %21943 = vmatpush3.bf16.msra.mxu1 %v24823_v53 }
 0x8f7   : > { %14805 = vmatpush1.bf16.msra.mxu0 %v24819_v11  ;;  %21944 = vmatprep.subr.bf16.mxu1 %v24827_v50  ;;  %v24876_v11 = vld [vmem:[%s33015_s3 + $0x118c] ss:$12 sps:$4 sm:$0xff]  }
 0x8f8   : > { %14806 = vmatprep.subr.bf16.mxu0 %v24826_v48 }
 0x8fa   : > { %21945 = vmatpush3.bf16.msra.mxu1 %v24828_v57 }
 0x8fb   : > { %14807 = vmatpush1.bf16.msra.mxu0 %v24824_v27  ;;  %21946 = vmatprep.subr.bf16.mxu1 %v24832_v45 }
 0x8fc   : > { %14808 = vmatprep.subr.bf16.mxu0 %v24831_v43  ;;  %v24878_v43 = vld [vmem:[%s33015_s3 + $0x10d0] ss:$12 sps:$4 sm:$0xff]  }
 0x8fe   : > { %21947 = vmatpush3.bf16.msra.mxu1 %v24833_v23 }
 0x8ff   : > { %14809 = vmatpush1.bf16.msra.mxu0 %v24829_v35  ;;  %21948 = vmatprep.subr.bf16.mxu1 %v24837_v22 }
 0x900   : > { %v21868_v58 = vpop.f32.mrb[64].mxu1  ;;  %14810 = vmatprep.subr.bf16.mxu0 %v24836_v15 }
 0x901   : > { %v21869_v38 = vpop.f32.mrb[65].mxu1 }
 0x902   : > { %v21870_v18 = vadd.f32 %v21869_v38, %v21868_v58  ;;  %v21871_v20 = vpop.f32.mrb[66].mxu1  ;;  %21949 = vmatpush3.bf16.msra.mxu1 %v24838_v0  ;;  %v24874_v0 = vld [vmem:[%s33015_s3 + $0x1188] ss:$12 sps:$4 sm:$0xff]  }
 0x903   : > { %14811 = vmatpush1.bf16.msra.mxu0 %v24834_v55  ;;  %v21872_v33 = vpop.f32.mrb[67].mxu1  ;;  %21956 = vmatprep.subr.bf16.mxu1 %v24842_v2  ;;  %v24881_v2 = vld [vmem:[%s33015_s3 + $0x11a4] ss:$12 sps:$4 sm:$0xff]   ;;  %v24879_v20 = vld [vmem:[%s33015_s3 + $0x11a0] ss:$12 sps:$4 sm:$0xff]  }
 0x904   : > { %14812 = vmatprep.subr.bf16.mxu0 %v24841_v39  ;;  %v12825_v62 = vadd.f32 %v21870_v18, %v31365_v54  ;;  %v24852_v54 = vld [vmem:[%s33015_s3 + $0x1118] ss:$12 sps:$4 sm:$0xff]   ;;  %v24882_v39 = vld [vmem:[%s33015_s3 + $0x11a8] ss:$12 sps:$4 sm:$0xff]   ;;  %v14121_v18 = vrot.slane %v29907_v10, 2 }
 0x905   : > { %14911 = vmatmul.mubr.bf16.vlgmr.msra.gmra.mrb[76].mxu1 %v14119_v41  ;;  %v24856_v41 = vld [vmem:[%s33015_s3 + $0x112c] ss:$12 sps:$4 sm:$0xff]  }
 0x906   : > { %21957 = vmatpush3.bf16.msra.mxu1 %v24843_v3  ;;  %14950 = vmatprep.mubr.bf16.mxu1 %v14122_v36  ;;  %v24854_v36 = vld [vmem:[%s33015_s3 + $0x1128] ss:$12 sps:$4 sm:$0xff]  }
 0x907   : > { %14813 = vmatpush1.bf16.msra.mxu0 %v24839_v49  ;;  %21958 = vmatprep.subr.bf16.mxu1 %v24847_v12  ;;  %v24885_v3 = vld [vmem:[%s33015_s3 + $0x11bc] ss:$12 sps:$4 sm:$0xff]   ;;  %v24886_v49 = vld [vmem:[%s33015_s3 + $0x11c0] ss:$12 sps:$4 sm:$0xff]  }
 0x908   : > { %14814 = vmatprep.subr.bf16.mxu0 %v24846_v40  ;;  %v24883_v40 = vld [vmem:[%s33015_s3 + $0x11b8] ss:$12 sps:$4 sm:$0xff]  }
 0x90a   : > { %21959 = vmatpush3.bf16.msra.mxu1 %v24848_v19  ;;  %v24887_v19 = vld [vmem:[%s33015_s3 + $0x11d0] ss:$12 sps:$4 sm:$0xff]  }
 0x90b   : > { %14815 = vmatpush1.bf16.msra.mxu0 %v24844_v25  ;;  %21960 = vmatprep.subr.bf16.mxu1 %v24852_v54  ;;  %v24893_v25 = vld [vmem:[%s33015_s3 + $0x11ec] ss:$12 sps:$4 sm:$0xff]   ;;  %v24894_v54 = vld [vmem:[%s33015_s3 + $0x11f0] ss:$12 sps:$4 sm:$0xff]  }
 0x90c   : > { %14816 = vmatprep.subr.bf16.mxu0 %v24851_v63  ;;  %v24891_v63 = vld [vmem:[%s33015_s3 + $0x11e8] ss:$12 sps:$4 sm:$0xff]  }
 0x90e   : > { %21961 = vmatpush3.bf16.msra.mxu1 %v24853_v42  ;;  %v24897_v42 = vld [vmem:[%s33015_s3 + $0x1204] ss:$12 sps:$4 sm:$0xff]  }
 0x90f   : > { %14817 = vmatpush1.bf16.msra.mxu0 %v24849_v51  ;;  %21962 = vmatprep.subr.bf16.mxu1 %v24857_v7  ;;  %v24898_v51 = vld [vmem:[%s33015_s3 + $0x1208] ss:$12 sps:$4 sm:$0xff]   ;;  %v24895_v7 = vld [vmem:[%s33015_s3 + $0x1200] ss:$12 sps:$4 sm:$0xff]  }
 0x910   : > { %14818 = vmatprep.subr.bf16.mxu0 %v24856_v41  ;;  %v24901_v41 = vld [vmem:[%s33015_s3 + $0x121c] ss:$12 sps:$4 sm:$0xff]  }
 0x912   : > { %21963 = vmatpush3.bf16.msra.mxu1 %v24858_v16  ;;  %v24902_v16 = vld [vmem:[%s33015_s3 + $0x1220] ss:$12 sps:$4 sm:$0xff]  }
 0x913   : > { %14819 = vmatpush1.bf16.msra.mxu0 %v24854_v36  ;;  %21964 = vmatprep.subr.bf16.mxu1 %v24862_v30  ;;  %v24899_v36 = vld [vmem:[%s33015_s3 + $0x1218] ss:$12 sps:$4 sm:$0xff]   ;;  %v24905_v30 = vld [vmem:[%s33015_s3 + $0x1234] ss:$12 sps:$4 sm:$0xff]  }
 0x914   : > { %14820 = vmatprep.subr.bf16.mxu0 %v24861_v29  ;;  %v24906_v29 = vld [vmem:[%s33015_s3 + $0x1238] ss:$12 sps:$4 sm:$0xff]  }
 0x916   : > { %21965 = vmatpush3.bf16.msra.mxu1 %v24863_v44  ;;  %v24903_v44 = vld [vmem:[%s33015_s3 + $0x1230] ss:$12 sps:$4 sm:$0xff]  }
 0x917   : > { %14821 = vmatpush1.bf16.msra.mxu0 %v24859_v26  ;;  %21966 = vmatprep.subr.bf16.mxu1 %v24867_v46  ;;  %v24909_v26 = vld [vmem:[%s33015_s3 + $0x124c] ss:$12 sps:$4 sm:$0xff]   ;;  %v24910_v46 = vld [vmem:[%s33015_s3 + $0x1310] ss:$12 sps:$4 sm:$0xff]  }
 0x918   : > { %14822 = vmatprep.subr.bf16.mxu0 %v24866_v56 }
 0x91a   : > { %21967 = vmatpush3.bf16.msra.mxu1 %v24868_v47 }
 0x91b   : > { %14823 = vmatpush1.bf16.msra.mxu0 %v24864_v32  ;;  %21968 = vmatprep.subr.bf16.mxu1 %v24872_v1  ;;  %v24907_v32 = vld [vmem:[%s33015_s3 + $0x1248] ss:$12 sps:$4 sm:$0xff]  }
 0x91c   : > { %v12864_v53 = vpop.f32.mrb[68].mxu1  ;;  %14824 = vmatprep.subr.bf16.mxu0 %v24871_v34 }
 0x91d   : > { %v12743_v50 = vpop.f32.mrb[56].mxu0  ;;  %v12865_v48 = vadd.f32 %v12864_v53, %v12825_v62  ;;  %v22256_v57 = vpop.f32.mrb[69].mxu1  ;;  %v24889_v62 = vld [vmem:[%s33015_s3 + $0x11d4] ss:$12 sps:$4 sm:$0xff]   ;;  %v24914_v53 = vld [vmem:[%s33015_s3 + $0x1264] ss:$12 sps:$4 sm:$0xff]  }
 0x91e   : > { %v12745_v27 = vpop.f32.mrb[57].mxu0  ;;  %v12867_v45 = vpop.f32.mrb[70].mxu1  ;;  %21969 = vmatpush3.bf16.msra.mxu1 %v24873_v21  ;;  %v14123_v21 = vrot.slane %v30086_v13, 2  ;;  %v24916_v57 = vld [vmem:[%s33015_s3 + $0x1268] ss:$12 sps:$4 sm:$0xff]  }
 0x91f   : > { %v12887_v23 = vrot.slane %v12865_v48, %v30764_v52  ;;  %v12873_v35 = vcombine.low %v12743_v50, %v12745_v27  ;;  %v12747_v22 = vpop.f32.mrb[58].mxu0  ;;  %14825 = vmatpush1.bf16.msra.mxu0 %v24869_v14  ;;  %v22257_v15 = vpop.f32.mrb[71].mxu1  ;;  %21970 = vmatprep.subr.bf16.mxu1 %v24877_v59  ;;  %v24911_v14 = vld [vmem:[%s33015_s3 + $0x1250] ss:$12 sps:$4 sm:$0xff]   ;;  %v24915_v50 = vld [vmem:[%s33015_s3 + $0x1328] ss:$12 sps:$4 sm:$0xff]  }
 0x920   : > { %v12748_v55 = vpop.f32.mrb[59].mxu0  ;;  %14826 = vmatprep.subr.bf16.mxu0 %v24876_v11  ;;  %v15184_v11 = vrot.slane %v30099_v28, 2  ;;  %v24912_v48 = vld [vmem:[%s33015_s3 + $0x1260] ss:$12 sps:$4 sm:$0xff]   ;;  %v24919_v27 = vld [vmem:[%s33015_s3 + $0x127c] ss:$12 sps:$4 sm:$0xff]  }
 0x921   : > { %v12880_v58 = vrot.slane %v12873_v35, %v30764_v52  ;;  %v24920_v45 = vld [vmem:[%s33015_s3 + $0x1340] ss:$12 sps:$4 sm:$0xff]   ;;  %v24925_v22 = vld [vmem:[%s33015_s3 + $0x1358] ss:$12 sps:$4 sm:$0xff]   ;;  %v24922_v15 = vld [vmem:[%s33015_s3 + $0x1290] ss:$12 sps:$4 sm:$0xff]  }
 0x922   : > { %21971 = vmatpush3.bf16.msra.mxu1 %v24878_v43  ;;  %v24917_v43 = vld [vmem:[%s33015_s3 + $0x1278] ss:$12 sps:$4 sm:$0xff]   ;;  %v24924_v35 = vld [vmem:[%s33015_s3 + $0x1294] ss:$12 sps:$4 sm:$0xff]  }
 0x923   : > { %v12888_v38 = vcombine.low %v12880_v58, %v12887_v23  ;;  %14827 = vmatpush1.bf16.msra.mxu0 %v24874_v0  ;;  %22276 = vmatprep.subr.bf16.mxu1 %v25465_v4  ;;  %v24921_v23 = vld [vmem:[%s33015_s3 + $0x1280] ss:$12 sps:$4 sm:$0xff]   ;;  %v24926_v0 = vld [vmem:[%s33015_s3 + $0x1298] ss:$12 sps:$4 sm:$0xff]   ;;  %v24927_v58 = vld [vmem:[%s33015_s3 + $0x12a8] ss:$12 sps:$4 sm:$0xff]  }
 0x924   : > { %14837 = vmatprep.subr.bf16.mxu0 %v24881_v2  ;;  %v24929_v55 = vld [vmem:[%s33015_s3 + $0x12ac] ss:$12 sps:$4 sm:$0xff]   ;;  %v24930_v2 = vld [vmem:[%s33015_s3 + $0x1370] ss:$12 sps:$4 sm:$0xff]  }
 0x925   : > { %v12895_v33 = vrot.slane %v12888_v38, %v30764_v52  ;;  %14951 = vmatmul.mubr.bf16.vlgmr.msra.gmra.mrb[80].mxu1 %v14121_v18  ;;  %v24934_v38 = vld [vmem:[%s33015_s3 + $0x12c4] ss:$12 sps:$4 sm:$0xff]  }
 0x926   : > { %14829 = vmatmul.mubr.bf16.vlgmr.msra.gmra.mrb[72].mxu0 %v14121_v18  ;;  %22277 = vmatpush3.bf16.msra.mxu1 %v24882_v39  ;;  %v24931_v39 = vld [vmem:[%s33015_s3 + $0x12b0] ss:$12 sps:$4 sm:$0xff]   ;;  %v24935_v18 = vld [vmem:[%s33015_s3 + $0x1388] ss:$12 sps:$4 sm:$0xff]  }
 0x927   : > { %v31590_v12 = vadd.f32 %v12895_v33, %v31290_v17  ;;  %14838 = vmatpush1.bf16.msra.mxu0 %v24879_v20  ;;  %22278 = vmatprep.subr.bf16.mxu1 %v25465_v4  ;;  %v24890_v17 = vld [vmem:[%s33015_s3 + $0x11d8] ss:$12 sps:$4 sm:$0xff]   ;;  %v24932_v20 = vld [vmem:[%s33015_s3 + $0x12c0] ss:$12 sps:$4 sm:$0xff]   ;;  %v24939_v33 = vld [vmem:[%s33015_s3 + $0x12dc] ss:$12 sps:$4 sm:$0xff]  }
 0x928   : > { %14839 = vmatprep.subr.bf16.mxu0 %v24885_v3  ;;  %14869 = vmatprep.mubr.bf16.mxu0 %v25466_v37  ;;  %v24936_v3 = vld [vmem:[%s33015_s3 + $0x12c8] ss:$12 sps:$4 sm:$0xff]  }
 0x929   : > { %22290 = vmatprep.mubr.msk.bf16.mxu1 %vm25467_vm0, %v25465_v4 }
 0x92a   : > { %22279 = vmatpush3.bf16.msra.mxu1 %v24886_v49  ;;  %v24940_v49 = vld [vmem:[%s33015_s3 + $0x13a0] ss:$12 sps:$4 sm:$0xff]  }
 0x92b   : > { %14840 = vmatpush1.bf16.msra.mxu0 %v24883_v40  ;;  %22280 = vmatprep.subr.bf16.mxu1 %v25465_v4  ;;  %v24937_v40 = vld [vmem:[%s33015_s3 + $0x12d8] ss:$12 sps:$4 sm:$0xff]  }
 0x92c   : > { %14841 = vmatprep.subr.bf16.mxu0 %v24889_v62  ;;  %v24941_v62 = vld [vmem:[%s33015_s3 + $0x12e0] ss:$12 sps:$4 sm:$0xff]  }
 0x92e   : > { %22281 = vmatpush3.bf16.msra.mxu1 %v24890_v17  ;;  %v24944_v17 = vld [vmem:[%s33015_s3 + $0x12f4] ss:$12 sps:$4 sm:$0xff]  }
 0x92f   : > { %14842 = vmatpush1.bf16.msra.mxu0 %v24887_v19  ;;  %22282 = vmatprep.subr.bf16.mxu1 %v25465_v4  ;;  %v24945_v19 = vld [vmem:[%s33015_s3 + $0x13b8] ss:$12 sps:$4 sm:$0xff]  }
 0x930   : > { %14843 = vmatprep.subr.bf16.mxu0 %v24893_v25  ;;  %v24942_v25 = vld [vmem:[%s33015_s3 + $0x12f0] ss:$12 sps:$4 sm:$0xff]  }
 0x932   : > { %22283 = vmatpush3.bf16.msra.mxu1 %v24894_v54  ;;  %v24946_v54 = vld [vmem:[%s33015_s3 + $0x12f8] ss:$12 sps:$4 sm:$0xff]  }
 0x933   : > { %14844 = vmatpush1.bf16.msra.mxu0 %v24891_v63  ;;  %22284 = vmatprep.subr.bf16.mxu1 %v25465_v4  ;;  %v24949_v63 = vld [vmem:[%s33015_s3 + $0x130c] ss:$12 sps:$4 sm:$0xff]  }
 0x934   : > { %14845 = vmatprep.subr.bf16.mxu0 %v24897_v42  ;;  %v24950_v42 = vld [vmem:[%s33015_s3 + $0x1490] ss:$12 sps:$4 sm:$0xff]  }
 0x936   : > { %22285 = vmatpush3.bf16.msra.mxu1 %v24898_v51 }
 0x937   : > { %14846 = vmatpush1.bf16.msra.mxu0 %v24895_v7  ;;  %22286 = vmatprep.subr.bf16.mxu1 %v25465_v4 }
 0x938   : > { %14847 = vmatprep.subr.bf16.mxu0 %v24901_v41  ;;  %v24947_v41 = vld [vmem:[%s33015_s3 + $0x1308] ss:$12 sps:$4 sm:$0xff]  }
 0x93a   : > { %22287 = vmatpush3.bf16.msra.mxu1 %v24902_v16 }
 0x93b   : > { %14848 = vmatpush1.bf16.msra.mxu0 %v24899_v36  ;;  %22288 = vmatprep.subr.bf16.mxu1 %v25465_v4 }
 0x93c   : > { %14849 = vmatprep.subr.bf16.mxu0 %v24905_v30  ;;  %v24951_v30 = vld [vmem:[%s33015_s3 + $0x13d0] ss:$12 sps:$4 sm:$0xff]  }
 0x93d   : > { %v21898_v56 = vpop.f32.mrb[60].mxu0 }
 0x93e   : > { %v21899_v47 = vpop.f32.mrb[61].mxu0  ;;  %22289 = vmatpush3.bf16.msra.mxu1 %v24906_v29 }
 0x93f   : > { %v31658_v1 = vadd.f32 %v21899_v47, %v21898_v56  ;;  %v21901_v34 = vpop.f32.mrb[62].mxu0  ;;  %14850 = vmatpush1.bf16.msra.mxu0 %v24903_v44  ;;  %15819 = vmatprep.subr.bf16.mxu1 %v24909_v26  ;;  %v15183_v44 = vrot.slane %v30196_v31, 2  ;;  %v24954_v26 = vld [vmem:[%s33015_s3 + $0x1324] ss:$12 sps:$4 sm:$0xff]   ;;  %v15186_v56 = vrot.slane %v30206_v9, 2 }
 0x940   : > { %v21902_v59 = vpop.f32.mrb[63].mxu0  ;;  %21986 = vmatprep.subr.bf16.mxu0 %v24910_v46  ;;  %v24955_v46 = vld [vmem:[%s33015_s3 + $0x14a8] ss:$12 sps:$4 sm:$0xff]  }
 0x941   : > { %22291 = vmatmul.mubr.msk.bf16.vlgmr.msra.gmra.mrb[84].mxu1 %vm10481_vm2, %v14123_v21  ;;  %v24956_v34 = vld [vmem:[%s33015_s3 + $0x13e8] ss:$12 sps:$4 sm:$0xff]   ;;  %v24961_v59 = vld [vmem:[%s33015_s3 + $0x1400] ss:$12 sps:$4 sm:$0xff]  }
 0x942   : > { %20643 = vmatmul.mubr.msk.bf16.vlgmr.msra.gmra.mrb[72].mxu0 %vm10481_vm2, %v14123_v21  ;;  %15820 = vmatpush1.bf16.msra.mxu1 %v24907_v32  ;;  %v24952_v32 = vld [vmem:[%s33015_s3 + $0x1320] ss:$12 sps:$4 sm:$0xff]  }
 0x943   : > { %15851 = vmatprep.mubr.bf16.mxu1 %v15184_v11  ;;  %21987 = vmatpush3.bf16.msra.mxu0 %v24911_v14  ;;  %v24960_v21 = vld [vmem:[%s33015_s3 + $0x14c0] ss:$12 sps:$4 sm:$0xff]   ;;  %v24957_v14 = vld [vmem:[%s33015_s3 + $0x1338] ss:$12 sps:$4 sm:$0xff]  }
 0x944   : > { %15974 = vmatprep.mubr.bf16.mxu0 %v15184_v11  ;;  %15821 = vmatprep.subr.bf16.mxu1 %v24914_v53  ;;  %v24964_v53 = vld [vmem:[%s33015_s3 + $0x1354] ss:$12 sps:$4 sm:$0xff]   ;;  %v24965_v11 = vld [vmem:[%s33015_s3 + $0x14d8] ss:$12 sps:$4 sm:$0xff]  }
 0x945   : > { %21988 = vmatprep.subr.bf16.mxu0 %v24915_v50  ;;  %v24962_v50 = vld [vmem:[%s33015_s3 + $0x1350] ss:$12 sps:$4 sm:$0xff]  }
 0x946   : > { %15822 = vmatpush1.bf16.msra.mxu1 %v24912_v48  ;;  %v24966_v48 = vld [vmem:[%s33015_s3 + $0x1418] ss:$12 sps:$4 sm:$0xff]  }
 0x947   : > { %21989 = vmatpush3.bf16.msra.mxu0 %v24916_v57  ;;  %15823 = vmatprep.subr.bf16.mxu1 %v24919_v27  ;;  %v24969_v57 = vld [vmem:[%s33015_s3 + $0x136c] ss:$12 sps:$4 sm:$0xff]   ;;  %v24970_v27 = vld [vmem:[%s33015_s3 + $0x14f0] ss:$12 sps:$4 sm:$0xff]  }
 0x948   : > { %21990 = vmatprep.subr.bf16.mxu0 %v24920_v45  ;;  %v24967_v45 = vld [vmem:[%s33015_s3 + $0x1368] ss:$12 sps:$4 sm:$0xff]  }
 0x94a   : > { %15824 = vmatpush1.bf16.msra.mxu1 %v24917_v43  ;;  %v24971_v43 = vld [vmem:[%s33015_s3 + $0x1430] ss:$12 sps:$4 sm:$0xff]  }
 0x94b   : > { %21991 = vmatpush3.bf16.msra.mxu0 %v24921_v23  ;;  %15825 = vmatprep.subr.bf16.mxu1 %v24924_v35  ;;  %v24974_v23 = vld [vmem:[%s33015_s3 + $0x1384] ss:$12 sps:$4 sm:$0xff]   ;;  %v24975_v35 = vld [vmem:[%s33015_s3 + $0x1508] ss:$12 sps:$4 sm:$0xff]  }
 0x94c   : > { %21992 = vmatprep.subr.bf16.mxu0 %v24925_v22  ;;  %v24972_v22 = vld [vmem:[%s33015_s3 + $0x1380] ss:$12 sps:$4 sm:$0xff]  }
 0x94e   : > { %15826 = vmatpush1.bf16.msra.mxu1 %v24922_v15  ;;  %v24976_v15 = vld [vmem:[%s33015_s3 + $0x1448] ss:$12 sps:$4 sm:$0xff]  }
 0x94f   : > { %21993 = vmatpush3.bf16.msra.mxu0 %v24926_v0  ;;  %15827 = vmatprep.subr.bf16.mxu1 %v24929_v55  ;;  %v24979_v0 = vld [vmem:[%s33015_s3 + $0x139c] ss:$12 sps:$4 sm:$0xff]   ;;  %v24980_v55 = vld [vmem:[%s33015_s3 + $0x1520] ss:$12 sps:$4 sm:$0xff]  }
 0x950   : > { %21994 = vmatprep.subr.bf16.mxu0 %v24930_v2  ;;  %v24977_v2 = vld [vmem:[%s33015_s3 + $0x1398] ss:$12 sps:$4 sm:$0xff]  }
 0x952   : > { %15828 = vmatpush1.bf16.msra.mxu1 %v24927_v58  ;;  %v24981_v58 = vld [vmem:[%s33015_s3 + $0x1460] ss:$12 sps:$4 sm:$0xff]  }
 0x953   : > { %21995 = vmatpush3.bf16.msra.mxu0 %v24931_v39  ;;  %15829 = vmatprep.subr.bf16.mxu1 %v24934_v38  ;;  %v24984_v39 = vld [vmem:[%s33015_s3 + $0x13b4] ss:$12 sps:$4 sm:$0xff]   ;;  %v24985_v38 = vld [vmem:[%s33015_s3 + $0x1538] ss:$12 sps:$4 sm:$0xff]  }
 0x954   : > { %21996 = vmatprep.subr.bf16.mxu0 %v24935_v18 }
 0x956   : > { %15830 = vmatpush1.bf16.msra.mxu1 %v24932_v20 }
 0x957   : > { %21997 = vmatpush3.bf16.msra.mxu0 %v24936_v3  ;;  %15831 = vmatprep.subr.bf16.mxu1 %v24939_v33  ;;  %v24982_v33 = vld [vmem:[%s33015_s3 + $0x13b0] ss:$12 sps:$4 sm:$0xff]  }
 0x958   : > { %21998 = vmatprep.subr.bf16.mxu0 %v24940_v49 }
 0x95a   : > { %15832 = vmatpush1.bf16.msra.mxu1 %v24937_v40  ;;  %v24986_v40 = vld [vmem:[%s33015_s3 + $0x1478] ss:$12 sps:$4 sm:$0xff]  }
 0x95b   : > { %21999 = vmatpush3.bf16.msra.mxu0 %v24941_v62  ;;  %15833 = vmatprep.subr.bf16.mxu1 %v24944_v17  ;;  %v24989_v62 = vld [vmem:[%s33015_s3 + $0x13cc] ss:$12 sps:$4 sm:$0xff]  }
 0x95c   : > { %22000 = vmatprep.subr.bf16.mxu0 %v24945_v19  ;;  %v24987_v19 = vld [vmem:[%s33015_s3 + $0x13c8] ss:$12 sps:$4 sm:$0xff]  }
 0x95d   : > { %v21920_v51 = vpop.f32.mrb[64].mxu0 }
 0x95e   : > { %v21921_v7 = vpop.f32.mrb[65].mxu0  ;;  %15834 = vmatpush1.bf16.msra.mxu1 %v24942_v25  ;;  %v24990_v25 = vld [vmem:[%s33015_s3 + $0x1550] ss:$12 sps:$4 sm:$0xff]  }
 0x95f   : > { %v21922_v16 = vadd.f32 %v21921_v7, %v21920_v51  ;;  %v21923_v36 = vpop.f32.mrb[66].mxu0  ;;  %22001 = vmatpush3.bf16.msra.mxu0 %v24946_v54  ;;  %15835 = vmatprep.subr.bf16.mxu1 %v24949_v63  ;;  %v15185_v54 = vrot.slane %v30297_v24, 2  ;;  %v24993_v63 = vld [vmem:[%s33015_s3 + $0x13e4] ss:$12 sps:$4 sm:$0xff]   ;;  %v24994_v51 = vld [vmem:[%s33015_s3 + $0x1568] ss:$12 sps:$4 sm:$0xff]  }
 0x960   : > { %v21924_v29 = vpop.f32.mrb[67].mxu0  ;;  %22008 = vmatprep.subr.bf16.mxu0 %v24950_v42  ;;  %v24991_v42 = vld [vmem:[%s33015_s3 + $0x13e0] ss:$12 sps:$4 sm:$0xff]   ;;  %v24997_v7 = vld [vmem:[%s33015_s3 + $0x13fc] ss:$12 sps:$4 sm:$0xff]  }
 0x961   : > { %v13889_v47 = vadd.f32 %v21922_v16, %v31658_v1  ;;  %v24959_v1 = vld [vmem:[%s33015_s3 + $0x133c] ss:$12 sps:$4 sm:$0xff]   ;;  %v24998_v16 = vld [vmem:[%s33015_s3 + $0x1580] ss:$12 sps:$4 sm:$0xff]   ;;  %v25002_v29 = vld [vmem:[%s33015_s3 + $0x1598] ss:$12 sps:$4 sm:$0xff]  }
 0x962   : > { %15975 = vmatmul.mubr.bf16.vlgmr.msra.gmra.mrb[76].mxu0 %v15183_v44  ;;  %15836 = vmatpush1.bf16.msra.mxu1 %v24947_v41  ;;  %v24995_v41 = vld [vmem:[%s33015_s3 + $0x13f8] ss:$12 sps:$4 sm:$0xff]   ;;  %v25001_v36 = vld [vmem:[%s33015_s3 + $0x1414] ss:$12 sps:$4 sm:$0xff]  }
 0x963   : > { %22009 = vmatpush3.bf16.msra.mxu0 %v24951_v30  ;;  %16014 = vmatprep.mubr.bf16.mxu0 %v15186_v56  ;;  %v24999_v30 = vld [vmem:[%s33015_s3 + $0x1410] ss:$12 sps:$4 sm:$0xff]  }
 0x964   : > { %15837 = vmatprep.subr.bf16.mxu1 %v24954_v26  ;;  %22010 = vmatprep.subr.bf16.mxu0 %v24955_v46  ;;  %v25003_v26 = vld [vmem:[%s33015_s3 + $0x1428] ss:$12 sps:$4 sm:$0xff]   ;;  %v25006_v46 = vld [vmem:[%s33015_s3 + $0x15b0] ss:$12 sps:$4 sm:$0xff]  }
 0x966   : > { %15838 = vmatpush1.bf16.msra.mxu1 %v24952_v32  ;;  %v25010_v32 = vld [vmem:[%s33015_s3 + $0x15c8] ss:$12 sps:$4 sm:$0xff]  }
 0x967   : > { %22011 = vmatpush3.bf16.msra.mxu0 %v24956_v34  ;;  %15839 = vmatprep.subr.bf16.mxu1 %v24959_v1  ;;  %v25013_v34 = vld [vmem:[%s33015_s3 + $0x145c] ss:$12 sps:$4 sm:$0xff]   ;;  %v25011_v1 = vld [vmem:[%s33015_s3 + $0x1458] ss:$12 sps:$4 sm:$0xff]  }
 0x968   : > { %22012 = vmatprep.subr.bf16.mxu0 %v24960_v21  ;;  %v25014_v21 = vld [vmem:[%s33015_s3 + $0x15e0] ss:$12 sps:$4 sm:$0xff]  }
 0x96a   : > { %15840 = vmatpush1.bf16.msra.mxu1 %v24957_v14  ;;  %v25017_v14 = vld [vmem:[%s33015_s3 + $0x1474] ss:$12 sps:$4 sm:$0xff]  }
 0x96b   : > { %22013 = vmatpush3.bf16.msra.mxu0 %v24961_v59  ;;  %15841 = vmatprep.subr.bf16.mxu1 %v24964_v53  ;;  %v25020_v59 = vld [vmem:[%s33015_s3 + $0x15f4] ss:$12 sps:$4 sm:$0xff]   ;;  %v25015_v53 = vld [vmem:[%s33015_s3 + $0x1470] ss:$12 sps:$4 sm:$0xff]  }
 0x96c   : > { %22014 = vmatprep.subr.bf16.mxu0 %v24965_v11  ;;  %v25018_v11 = vld [vmem:[%s33015_s3 + $0x15f0] ss:$12 sps:$4 sm:$0xff]  }
 0x96e   : > { %15842 = vmatpush1.bf16.msra.mxu1 %v24962_v50  ;;  %v15187_v50 = vrot.slane %v30381_v60, 2 }
 0x96f   : > { %22015 = vmatpush3.bf16.msra.mxu0 %v24966_v48  ;;  %15843 = vmatprep.subr.bf16.mxu1 %v24969_v57  ;;  %v25023_v48 = vld [vmem:[%s33015_s3 + $0x148c] ss:$12 sps:$4 sm:$0xff]  }
 0x970   : > { %22016 = vmatprep.subr.bf16.mxu0 %v24970_v27  ;;  %v25026_v57 = vld [vmem:[%s33015_s3 + $0x160c] ss:$12 sps:$4 sm:$0xff]   ;;  %v16248_v27 = vrot.slane %v29770_v5, 3 }
 0x971   : > { %v25129_v5 = vld [vmem:[%s33015_s3 + $0x1700] ss:$12 sps:$4 sm:$0xff]  }
 0x972   : > { %15844 = vmatpush1.bf16.msra.mxu1 %v24967_v45  ;;  %v25021_v45 = vld [vmem:[%s33015_s3 + $0x1488] ss:$12 sps:$4 sm:$0xff]  }
 0x973   : > { %22017 = vmatpush3.bf16.msra.mxu0 %v24971_v43  ;;  %15845 = vmatprep.subr.bf16.mxu1 %v24974_v23  ;;  %v25024_v43 = vld [vmem:[%s33015_s3 + $0x1608] ss:$12 sps:$4 sm:$0xff]   ;;  %v25029_v23 = vld [vmem:[%s33015_s3 + $0x14a4] ss:$12 sps:$4 sm:$0xff]  }
 0x974   : > { %22018 = vmatprep.subr.bf16.mxu0 %v24975_v35  ;;  %v25032_v35 = vld [vmem:[%s33015_s3 + $0x1624] ss:$12 sps:$4 sm:$0xff]  }
 0x976   : > { %15846 = vmatpush1.bf16.msra.mxu1 %v24972_v22  ;;  %v25027_v22 = vld [vmem:[%s33015_s3 + $0x14a0] ss:$12 sps:$4 sm:$0xff]  }
 0x977   : > { %22019 = vmatpush3.bf16.msra.mxu0 %v24976_v15  ;;  %15847 = vmatprep.subr.bf16.mxu1 %v24979_v0  ;;  %v25030_v15 = vld [vmem:[%s33015_s3 + $0x1620] ss:$12 sps:$4 sm:$0xff]   ;;  %v25035_v0 = vld [vmem:[%s33015_s3 + $0x14bc] ss:$12 sps:$4 sm:$0xff]  }
 0x978   : > { %22020 = vmatprep.subr.bf16.mxu0 %v24980_v55  ;;  %v25038_v55 = vld [vmem:[%s33015_s3 + $0x163c] ss:$12 sps:$4 sm:$0xff]  }
 0x979   : > { %v13928_v18 = vpop.f32.mrb[68].mxu0 }
 0x97a   : > { %v31848_v20 = vadd.f32 %v13928_v18, %v13889_v47  ;;  %v22274_v3 = vpop.f32.mrb[69].mxu0  ;;  %15848 = vmatpush1.bf16.msra.mxu1 %v24977_v2  ;;  %v25007_v47 = vld [vmem:[%s33015_s3 + $0x1440] ss:$12 sps:$4 sm:$0xff]   ;;  %v25033_v2 = vld [vmem:[%s33015_s3 + $0x14b8] ss:$12 sps:$4 sm:$0xff]  }
 0x97b   : > { %v13931_v49 = vpop.f32.mrb[70].mxu0  ;;  %22021 = vmatpush3.bf16.msra.mxu0 %v24981_v58  ;;  %15849 = vmatprep.subr.bf16.mxu1 %v24984_v39  ;;  %v25036_v58 = vld [vmem:[%s33015_s3 + $0x1638] ss:$12 sps:$4 sm:$0xff]   ;;  %v25041_v39 = vld [vmem:[%s33015_s3 + $0x14d4] ss:$12 sps:$4 sm:$0xff]  }
 0x97c   : > { %v22275_v17 = vpop.f32.mrb[71].mxu0  ;;  %22022 = vmatprep.subr.bf16.mxu0 %v24985_v38  ;;  %v25044_v38 = vld [vmem:[%s33015_s3 + $0x1654] ss:$12 sps:$4 sm:$0xff]   ;;  %v25039_v18 = vld [vmem:[%s33015_s3 + $0x14d0] ss:$12 sps:$4 sm:$0xff]  }
 0x97d   : > { %v25042_v3 = vld [vmem:[%s33015_s3 + $0x1650] ss:$12 sps:$4 sm:$0xff]   ;;  %v25050_v49 = vld [vmem:[%s33015_s3 + $0x166c] ss:$12 sps:$4 sm:$0xff]  }
 0x97e   : > { %15850 = vmatpush1.bf16.msra.mxu1 %v24982_v33  ;;  %v25047_v33 = vld [vmem:[%s33015_s3 + $0x14ec] ss:$12 sps:$4 sm:$0xff]   ;;  %v25053_v17 = vld [vmem:[%s33015_s3 + $0x1504] ss:$12 sps:$4 sm:$0xff]  }
 0x97f   : > { %22023 = vmatpush3.bf16.msra.mxu0 %v24986_v40  ;;  %15860 = vmatprep.subr.bf16.mxu1 %v24989_v62  ;;  %v25045_v40 = vld [vmem:[%s33015_s3 + $0x14e8] ss:$12 sps:$4 sm:$0xff]  }
 0x980   : > { %22294 = vmatprep.subr.bf16.mxu0 %v25465_v4  ;;  %v25048_v62 = vld [vmem:[%s33015_s3 + $0x1668] ss:$12 sps:$4 sm:$0xff]  }
 0x981   : > { %15852 = vmatmul.mubr.bf16.vlgmr.msra.gmra.mrb[88].mxu1 %v15183_v44  ;;  %v25005_v44 = vld [vmem:[%s33015_s3 + $0x142c] ss:$12 sps:$4 sm:$0xff]  }
 0x982   : > { %16015 = vmatmul.mubr.bf16.vlgmr.msra.gmra.mrb[80].mxu0 %v15185_v54  ;;  %15861 = vmatpush1.bf16.msra.mxu1 %v24987_v19  ;;  %v25056_v19 = vld [vmem:[%s33015_s3 + $0x1684] ss:$12 sps:$4 sm:$0xff]  }
 0x983   : > { %15892 = vmatprep.mubr.bf16.mxu1 %v15186_v56  ;;  %22295 = vmatpush3.bf16.msra.mxu0 %v24990_v25  ;;  %v25009_v56 = vld [vmem:[%s33015_s3 + $0x1444] ss:$12 sps:$4 sm:$0xff]   ;;  %v25051_v25 = vld [vmem:[%s33015_s3 + $0x1500] ss:$12 sps:$4 sm:$0xff]  }
 0x984   : > { %15862 = vmatprep.subr.bf16.mxu1 %v24993_v63  ;;  %22296 = vmatprep.subr.bf16.mxu0 %v25465_v4  ;;  %v25054_v63 = vld [vmem:[%s33015_s3 + $0x1680] ss:$12 sps:$4 sm:$0xff]  }
 0x985   : > { %22308 = vmatprep.mubr.msk.bf16.mxu0 %vm25467_vm0, %v25465_v4 }
 0x986   : > { %15863 = vmatpush1.bf16.msra.mxu1 %v24991_v42  ;;  %v25059_v42 = vld [vmem:[%s33015_s3 + $0x151c] ss:$12 sps:$4 sm:$0xff]  }
 0x987   : > { %22297 = vmatpush3.bf16.msra.mxu0 %v24994_v51  ;;  %15864 = vmatprep.subr.bf16.mxu1 %v24997_v7  ;;  %v25062_v51 = vld [vmem:[%s33015_s3 + $0x169c] ss:$12 sps:$4 sm:$0xff]   ;;  %v25057_v7 = vld [vmem:[%s33015_s3 + $0x1518] ss:$12 sps:$4 sm:$0xff]  }
 0x988   : > { %22298 = vmatprep.subr.bf16.mxu0 %v25465_v4 }
 0x98a   : > { %15865 = vmatpush1.bf16.msra.mxu1 %v24995_v41  ;;  %v25060_v41 = vld [vmem:[%s33015_s3 + $0x1698] ss:$12 sps:$4 sm:$0xff]  }
 0x98b   : > { %22299 = vmatpush3.bf16.msra.mxu0 %v24998_v16  ;;  %15866 = vmatprep.subr.bf16.mxu1 %v25001_v36  ;;  %v25065_v16 = vld [vmem:[%s33015_s3 + $0x1534] ss:$12 sps:$4 sm:$0xff]  }
 0x98c   : > { %22300 = vmatprep.subr.bf16.mxu0 %v25465_v4 }
 0x98e   : > { %15867 = vmatpush1.bf16.msra.mxu1 %v24999_v30  ;;  %v25068_v30 = vld [vmem:[%s33015_s3 + $0x16b4] ss:$12 sps:$4 sm:$0xff]  }
 0x98f   : > { %22301 = vmatpush3.bf16.msra.mxu0 %v25002_v29  ;;  %15868 = vmatprep.subr.bf16.mxu1 %v25005_v44 }
 0x990   : > { %22302 = vmatprep.subr.bf16.mxu0 %v25465_v4 }
 0x992   : > { %15869 = vmatpush1.bf16.msra.mxu1 %v25003_v26 }
 0x993   : > { %22303 = vmatpush3.bf16.msra.mxu0 %v25006_v46  ;;  %15870 = vmatprep.subr.bf16.mxu1 %v25009_v56  ;;  %v25063_v46 = vld [vmem:[%s33015_s3 + $0x1530] ss:$12 sps:$4 sm:$0xff]  }
 0x994   : > { %22304 = vmatprep.subr.bf16.mxu0 %v25465_v4 }
 0x996   : > { %15871 = vmatpush1.bf16.msra.mxu1 %v25007_v47  ;;  %v25066_v47 = vld [vmem:[%s33015_s3 + $0x16b0] ss:$12 sps:$4 sm:$0xff]  }
 0x997   : > { %22305 = vmatpush3.bf16.msra.mxu0 %v25010_v32  ;;  %15872 = vmatprep.subr.bf16.mxu1 %v25013_v34  ;;  %v25071_v32 = vld [vmem:[%s33015_s3 + $0x154c] ss:$12 sps:$4 sm:$0xff]   ;;  %v13951_v34 = vrot.slane %v31848_v20, %v30764_v52  ;;  %v25077_v20 = vld [vmem:[%s33015_s3 + $0x1564] ss:$12 sps:$4 sm:$0xff]  }
 0x998   : > { %22306 = vmatprep.subr.bf16.mxu0 %v25465_v4 }
 0x99a   : > { %15873 = vmatpush1.bf16.msra.mxu1 %v25011_v1 }
 0x99b   : > { %22307 = vmatpush3.bf16.msra.mxu0 %v25014_v21  ;;  %15874 = vmatprep.subr.bf16.mxu1 %v25017_v14  ;;  %v25074_v21 = vld [vmem:[%s33015_s3 + $0x16cc] ss:$12 sps:$4 sm:$0xff]  }
 0x99c   : > { %16883 = vmatprep.subr.bf16.mxu0 %v25020_v59  ;;  %v25069_v59 = vld [vmem:[%s33015_s3 + $0x1548] ss:$12 sps:$4 sm:$0xff]  }
 0x99e   : > { %22309 = vmatmul.mubr.msk.bf16.vlgmr.msra.gmra.mrb[84].mxu0 %vm10481_vm2, %v15187_v50  ;;  %15875 = vmatpush1.bf16.msra.mxu1 %v25015_v53  ;;  %v25072_v53 = vld [vmem:[%s33015_s3 + $0x16c8] ss:$12 sps:$4 sm:$0xff]  }
 0x99f   : > { %16884 = vmatpush1.bf16.msra.mxu0 %v25018_v11  ;;  %16915 = vmatprep.mubr.bf16.mxu0 %v16248_v27 }
 0x9a0   : > { %15876 = vmatprep.subr.bf16.mxu1 %v25023_v48  ;;  %16885 = vmatprep.subr.bf16.mxu0 %v25026_v57  ;;  %v25080_v48 = vld [vmem:[%s33015_s3 + $0x16e4] ss:$12 sps:$4 sm:$0xff]  }
 0x9a2   : > { %15877 = vmatpush1.bf16.msra.mxu1 %v25021_v45  ;;  %v25075_v45 = vld [vmem:[%s33015_s3 + $0x1560] ss:$12 sps:$4 sm:$0xff]  }
 0x9a3   : > { %16886 = vmatpush1.bf16.msra.mxu0 %v25024_v43  ;;  %15878 = vmatprep.subr.bf16.mxu1 %v25029_v23  ;;  %v25078_v43 = vld [vmem:[%s33015_s3 + $0x16e0] ss:$12 sps:$4 sm:$0xff]   ;;  %v25081_v23 = vld [vmem:[%s33015_s3 + $0x1578] ss:$12 sps:$4 sm:$0xff]  }
 0x9a4   : > { %16887 = vmatprep.subr.bf16.mxu0 %v25032_v35  ;;  %v25084_v35 = vld [vmem:[%s33015_s3 + $0x16f8] ss:$12 sps:$4 sm:$0xff]  }
 0x9a6   : > { %15879 = vmatpush1.bf16.msra.mxu1 %v25027_v22  ;;  %v25089_v22 = vld [vmem:[%s33015_s3 + $0x1594] ss:$12 sps:$4 sm:$0xff]  }
 0x9a7   : > { %16888 = vmatpush1.bf16.msra.mxu0 %v25030_v15  ;;  %15880 = vmatprep.subr.bf16.mxu1 %v25035_v0  ;;  %v25092_v15 = vld [vmem:[%s33015_s3 + $0x1714] ss:$12 sps:$4 sm:$0xff]   ;;  %v25087_v0 = vld [vmem:[%s33015_s3 + $0x1590] ss:$12 sps:$4 sm:$0xff]  }
 0x9a8   : > { %16889 = vmatprep.subr.bf16.mxu0 %v25038_v55  ;;  %v25090_v55 = vld [vmem:[%s33015_s3 + $0x1710] ss:$12 sps:$4 sm:$0xff]  }
 0x9aa   : > { %15881 = vmatpush1.bf16.msra.mxu1 %v25033_v2  ;;  %v25095_v2 = vld [vmem:[%s33015_s3 + $0x15ac] ss:$12 sps:$4 sm:$0xff]  }
 0x9ab   : > { %16890 = vmatpush1.bf16.msra.mxu0 %v25036_v58  ;;  %15882 = vmatprep.subr.bf16.mxu1 %v25041_v39  ;;  %v25098_v58 = vld [vmem:[%s33015_s3 + $0x172c] ss:$12 sps:$4 sm:$0xff]   ;;  %v25093_v39 = vld [vmem:[%s33015_s3 + $0x15a8] ss:$12 sps:$4 sm:$0xff]  }
 0x9ac   : > { %16891 = vmatprep.subr.bf16.mxu0 %v25044_v38  ;;  %v25096_v38 = vld [vmem:[%s33015_s3 + $0x1728] ss:$12 sps:$4 sm:$0xff]  }
 0x9ae   : > { %15883 = vmatpush1.bf16.msra.mxu1 %v25039_v18  ;;  %v25101_v18 = vld [vmem:[%s33015_s3 + $0x15c4] ss:$12 sps:$4 sm:$0xff]  }
 0x9af   : > { %16892 = vmatpush1.bf16.msra.mxu0 %v25042_v3  ;;  %15884 = vmatprep.subr.bf16.mxu1 %v25047_v33  ;;  %v25104_v3 = vld [vmem:[%s33015_s3 + $0x1744] ss:$12 sps:$4 sm:$0xff]   ;;  %v25099_v33 = vld [vmem:[%s33015_s3 + $0x15c0] ss:$12 sps:$4 sm:$0xff]  }
 0x9b0   : > { %16893 = vmatprep.subr.bf16.mxu0 %v25050_v49  ;;  %v25102_v49 = vld [vmem:[%s33015_s3 + $0x1740] ss:$12 sps:$4 sm:$0xff]  }
 0x9b2   : > { %15885 = vmatpush1.bf16.msra.mxu1 %v25045_v40  ;;  %v25107_v40 = vld [vmem:[%s33015_s3 + $0x15dc] ss:$12 sps:$4 sm:$0xff]  }
 0x9b3   : > { %16894 = vmatpush1.bf16.msra.mxu0 %v25048_v62  ;;  %15886 = vmatprep.subr.bf16.mxu1 %v25053_v17  ;;  %v25110_v62 = vld [vmem:[%s33015_s3 + $0x175c] ss:$12 sps:$4 sm:$0xff]   ;;  %v25105_v17 = vld [vmem:[%s33015_s3 + $0x15d8] ss:$12 sps:$4 sm:$0xff]  }
 0x9b4   : > { %16895 = vmatprep.subr.bf16.mxu0 %v25056_v19  ;;  %v25108_v19 = vld [vmem:[%s33015_s3 + $0x1758] ss:$12 sps:$4 sm:$0xff]  }
 0x9b6   : > { %15887 = vmatpush1.bf16.msra.mxu1 %v25051_v25  ;;  %v25114_v25 = vld [vmem:[%s33015_s3 + $0x16b8] ss:$12 sps:$4 sm:$0xff]  }
 0x9b7   : > { %16896 = vmatpush1.bf16.msra.mxu0 %v25054_v63  ;;  %15888 = vmatprep.subr.bf16.mxu1 %v25059_v42  ;;  %v25113_v42 = vld [vmem:[%s33015_s3 + $0x1774] ss:$12 sps:$4 sm:$0xff]  }
 0x9b8   : > { %v13807_v36 = vpop.f32.mrb[72].mxu1  ;;  %16897 = vmatprep.subr.bf16.mxu0 %v25062_v51 }
 0x9b9   : > { %v13809_v29 = vpop.f32.mrb[73].mxu1 }
 0x9ba   : > { %v13937_v44 = vcombine.low %v13807_v36, %v13809_v29  ;;  %v13811_v26 = vpop.f32.mrb[74].mxu1  ;;  %15889 = vmatpush1.bf16.msra.mxu1 %v25057_v7  ;;  %v16247_v29 = vrot.slane %v29804_v8, 3  ;;  %v25163_v8 = vld [vmem:[%s33015_s3 + $0x1864] ss:$12 sps:$4 sm:$0xff]  }
 0x9bb   : > { %16898 = vmatpush1.bf16.msra.mxu0 %v25060_v41  ;;  %v13812_v56 = vpop.f32.mrb[75].mxu1  ;;  %15890 = vmatprep.subr.bf16.mxu1 %v25065_v16  ;;  %v25115_v16 = vld [vmem:[%s33015_s3 + $0x15f8] ss:$12 sps:$4 sm:$0xff]   ;;  %v16250_v26 = vrot.slane %v29812_v61, 3  ;;  %v25165_v61 = vld [vmem:[%s33015_s3 + $0x17a8] ss:$12 sps:$4 sm:$0xff]  }
 0x9bc   : > { %v13944_v1 = vrot.slane %v13937_v44, %v30764_v52  ;;  %16899 = vmatprep.subr.bf16.mxu0 %v25068_v30  ;;  %v25111_v30 = vld [vmem:[%s33015_s3 + $0x1770] ss:$12 sps:$4 sm:$0xff]   ;;  %v25118_v44 = vld [vmem:[%s33015_s3 + $0x178c] ss:$12 sps:$4 sm:$0xff]  }
 0x9bd   : > { %v25120_v56 = vld [vmem:[%s33015_s3 + $0x1610] ss:$12 sps:$4 sm:$0xff]  }
 0x9be   : > { %v13952_v14 = vcombine.low %v13944_v1, %v13951_v34  ;;  %15891 = vmatpush1.bf16.msra.mxu1 %v25063_v46  ;;  %v25119_v46 = vld [vmem:[%s33015_s3 + $0x16d0] ss:$12 sps:$4 sm:$0xff]   ;;  %v25125_v34 = vld [vmem:[%s33015_s3 + $0x1628] ss:$12 sps:$4 sm:$0xff]   ;;  %v25121_v1 = vld [vmem:[%s33015_s3 + $0x17a0] ss:$12 sps:$4 sm:$0xff]  }
 0x9bf   : > { %16900 = vmatpush1.bf16.msra.mxu0 %v25066_v47  ;;  %15901 = vmatprep.subr.bf16.mxu1 %v25071_v32  ;;  %v25124_v47 = vld [vmem:[%s33015_s3 + $0x16e8] ss:$12 sps:$4 sm:$0xff]   ;;  %v25123_v32 = vld [vmem:[%s33015_s3 + $0x17a4] ss:$12 sps:$4 sm:$0xff]  }
 0x9c0   : > { %v13959_v11 = vrot.slane %v13952_v14, %v30764_v52  ;;  %16901 = vmatprep.subr.bf16.mxu0 %v25074_v21  ;;  %v25130_v21 = vld [vmem:[%s33015_s3 + $0x1640] ss:$12 sps:$4 sm:$0xff]   ;;  %v25126_v14 = vld [vmem:[%s33015_s3 + $0x17b8] ss:$12 sps:$4 sm:$0xff]  }
 0x9c1   : > { %15893 = vmatmul.mubr.bf16.vlgmr.msra.gmra.mrb[88].mxu1 %v15185_v54  ;;  %v25083_v54 = vld [vmem:[%s33015_s3 + $0x157c] ss:$12 sps:$4 sm:$0xff]  }
 0x9c2   : > { %v32075_v57 = vadd.f32 %v13959_v11, %v31590_v12  ;;  %15902 = vmatpush1.bf16.msra.mxu1 %v25069_v59  ;;  %15933 = vmatprep.mubr.bf16.mxu1 %v25466_v37  ;;  %v25086_v12 = vld [vmem:[%s33015_s3 + $0x16fc] ss:$12 sps:$4 sm:$0xff]   ;;  %v25134_v59 = vld [vmem:[%s33015_s3 + $0x1718] ss:$12 sps:$4 sm:$0xff]  }
 0x9c3   : > { %16902 = vmatpush1.bf16.msra.mxu0 %v25072_v53  ;;  %15903 = vmatprep.subr.bf16.mxu1 %v25077_v20  ;;  %v25133_v53 = vld [vmem:[%s33015_s3 + $0x17d4] ss:$12 sps:$4 sm:$0xff]   ;;  %v25135_v20 = vld [vmem:[%s33015_s3 + $0x1658] ss:$12 sps:$4 sm:$0xff]   ;;  %v25131_v11 = vld [vmem:[%s33015_s3 + $0x17d0] ss:$12 sps:$4 sm:$0xff]  }
 0x9c4   : > { %16903 = vmatprep.subr.bf16.mxu0 %v25080_v48  ;;  %v25139_v48 = vld [vmem:[%s33015_s3 + $0x1730] ss:$12 sps:$4 sm:$0xff]  }
 0x9c6   : > { %15904 = vmatpush1.bf16.msra.mxu1 %v25075_v45  ;;  %v25138_v45 = vld [vmem:[%s33015_s3 + $0x17ec] ss:$12 sps:$4 sm:$0xff]  }
 0x9c7   : > { %16904 = vmatpush1.bf16.msra.mxu0 %v25078_v43  ;;  %15905 = vmatprep.subr.bf16.mxu1 %v25083_v54  ;;  %v25140_v43 = vld [vmem:[%s33015_s3 + $0x1670] ss:$12 sps:$4 sm:$0xff]   ;;  %v25136_v54 = vld [vmem:[%s33015_s3 + $0x17e8] ss:$12 sps:$4 sm:$0xff]  }
 0x9c8   : > { %16905 = vmatprep.subr.bf16.mxu0 %v25086_v12  ;;  %v25144_v12 = vld [vmem:[%s33015_s3 + $0x1748] ss:$12 sps:$4 sm:$0xff]  }
 0x9ca   : > { %15906 = vmatpush1.bf16.msra.mxu1 %v25081_v23  ;;  %v25143_v23 = vld [vmem:[%s33015_s3 + $0x1804] ss:$12 sps:$4 sm:$0xff]  }
 0x9cb   : > { %16906 = vmatpush1.bf16.msra.mxu0 %v25084_v35  ;;  %15907 = vmatprep.subr.bf16.mxu1 %v25089_v22  ;;  %v25145_v35 = vld [vmem:[%s33015_s3 + $0x1688] ss:$12 sps:$4 sm:$0xff]   ;;  %v25141_v22 = vld [vmem:[%s33015_s3 + $0x1800] ss:$12 sps:$4 sm:$0xff]  }
 0x9cc   : > { %16907 = vmatprep.subr.bf16.mxu0 %v25092_v15  ;;  %v25149_v15 = vld [vmem:[%s33015_s3 + $0x1760] ss:$12 sps:$4 sm:$0xff]  }
 0x9ce   : > { %15908 = vmatpush1.bf16.msra.mxu1 %v25087_v0  ;;  %v25148_v0 = vld [vmem:[%s33015_s3 + $0x181c] ss:$12 sps:$4 sm:$0xff]  }
 0x9cf   : > { %16908 = vmatpush1.bf16.msra.mxu0 %v25090_v55  ;;  %15909 = vmatprep.subr.bf16.mxu1 %v25095_v2  ;;  %v25150_v55 = vld [vmem:[%s33015_s3 + $0x16a0] ss:$12 sps:$4 sm:$0xff]   ;;  %v25146_v2 = vld [vmem:[%s33015_s3 + $0x1818] ss:$12 sps:$4 sm:$0xff]  }
 0x9d0   : > { %16909 = vmatprep.subr.bf16.mxu0 %v25098_v58  ;;  %v25154_v58 = vld [vmem:[%s33015_s3 + $0x1838] ss:$12 sps:$4 sm:$0xff]  }
 0x9d2   : > { %15910 = vmatpush1.bf16.msra.mxu1 %v25093_v39 }
 0x9d3   : > { %16910 = vmatpush1.bf16.msra.mxu0 %v25096_v38  ;;  %15911 = vmatprep.subr.bf16.mxu1 %v25101_v18  ;;  %v25153_v38 = vld [vmem:[%s33015_s3 + $0x1834] ss:$12 sps:$4 sm:$0xff]  }
 0x9d4   : > { %16911 = vmatprep.subr.bf16.mxu0 %v25104_v3 }
 0x9d6   : > { %15912 = vmatpush1.bf16.msra.mxu1 %v25099_v33 }
 0x9d7   : > { %16912 = vmatpush1.bf16.msra.mxu0 %v25102_v49  ;;  %15913 = vmatprep.subr.bf16.mxu1 %v25107_v40  ;;  %v25155_v49 = vld [vmem:[%s33015_s3 + $0x1778] ss:$12 sps:$4 sm:$0xff]  }
 0x9d8   : > { %v21950_v63 = vpop.f32.mrb[76].mxu1  ;;  %16913 = vmatprep.subr.bf16.mxu0 %v25110_v62  ;;  %v25151_v62 = vld [vmem:[%s33015_s3 + $0x1830] ss:$12 sps:$4 sm:$0xff]  }
 0x9d9   : > { %v21951_v51 = vpop.f32.mrb[77].mxu1 }
 0x9da   : > { %v32150_v7 = vadd.f32 %v21951_v51, %v21950_v63  ;;  %v21953_v41 = vpop.f32.mrb[78].mxu1  ;;  %15914 = vmatpush1.bf16.msra.mxu1 %v25105_v17  ;;  %v25159_v17 = vld [vmem:[%s33015_s3 + $0x1850] ss:$12 sps:$4 sm:$0xff]   ;;  %v25164_v51 = vld [vmem:[%s33015_s3 + $0x1868] ss:$12 sps:$4 sm:$0xff]  }
 0x9db   : > { %16914 = vmatpush1.bf16.msra.mxu0 %v25108_v19  ;;  %v21954_v36 = vpop.f32.mrb[79].mxu1  ;;  %22038 = vmatprep.subr.bf16.mxu1 %v25114_v25  ;;  %v25158_v19 = vld [vmem:[%s33015_s3 + $0x184c] ss:$12 sps:$4 sm:$0xff]   ;;  %v25160_v63 = vld [vmem:[%s33015_s3 + $0x1790] ss:$12 sps:$4 sm:$0xff]  }
 0x9dc   : > { %16924 = vmatprep.subr.bf16.mxu0 %v25113_v42  ;;  %v25156_v42 = vld [vmem:[%s33015_s3 + $0x1848] ss:$12 sps:$4 sm:$0xff]   ;;  %v25169_v41 = vld [vmem:[%s33015_s3 + $0x1880] ss:$12 sps:$4 sm:$0xff]  }
 0x9dd   : > { %20918 = vmatmul.mubr.msk.bf16.vlgmr.msra.gmra.mrb[88].mxu1 %vm10481_vm2, %v15187_v50  ;;  %v25116_v50 = vld [vmem:[%s33015_s3 + $0x1788] ss:$12 sps:$4 sm:$0xff]   ;;  %v25170_v36 = vld [vmem:[%s33015_s3 + $0x17c0] ss:$12 sps:$4 sm:$0xff]  }
 0x9de   : > { %16916 = vmatmul.mubr.bf16.vlgmr.msra.gmra.mrb[88].mxu0 %v16247_v29  ;;  %22039 = vmatpush3.bf16.msra.mxu1 %v25115_v16  ;;  %v25168_v16 = vld [vmem:[%s33015_s3 + $0x187c] ss:$12 sps:$4 sm:$0xff]  }
 0x9df   : > { %16925 = vmatpush1.bf16.msra.mxu0 %v25111_v30  ;;  %16956 = vmatprep.mubr.bf16.mxu0 %v16250_v26  ;;  %v25166_v30 = vld [vmem:[%s33015_s3 + $0x1878] ss:$12 sps:$4 sm:$0xff]  }
 0x9e0   : > { %17038 = vmatprep.mubr.bf16.mxu1 %v16248_v27  ;;  %16926 = vmatprep.subr.bf16.mxu0 %v25118_v44  ;;  %v25128_v27 = vld [vmem:[%s33015_s3 + $0x17bc] ss:$12 sps:$4 sm:$0xff]   ;;  %v25173_v44 = vld [vmem:[%s33015_s3 + $0x1894] ss:$12 sps:$4 sm:$0xff]  }
 0x9e1   : > { %22040 = vmatprep.subr.bf16.mxu1 %v25119_v46  ;;  %v25171_v46 = vld [vmem:[%s33015_s3 + $0x1890] ss:$12 sps:$4 sm:$0xff]  }
 0x9e2   : > { %22041 = vmatpush3.bf16.msra.mxu1 %v25120_v56  ;;  %v25179_v56 = vld [vmem:[%s33015_s3 + $0x18b0] ss:$12 sps:$4 sm:$0xff]  }
 0x9e3   : > { %16927 = vmatpush1.bf16.msra.mxu0 %v25116_v50  ;;  %22042 = vmatprep.subr.bf16.mxu1 %v25124_v47  ;;  %v25178_v50 = vld [vmem:[%s33015_s3 + $0x18ac] ss:$12 sps:$4 sm:$0xff]   ;;  %v25180_v47 = vld [vmem:[%s33015_s3 + $0x17f0] ss:$12 sps:$4 sm:$0xff]  }
 0x9e4   : > { %16928 = vmatprep.subr.bf16.mxu0 %v25123_v32  ;;  %v25176_v32 = vld [vmem:[%s33015_s3 + $0x18a8] ss:$12 sps:$4 sm:$0xff]  }
 0x9e6   : > { %22043 = vmatpush3.bf16.msra.mxu1 %v25125_v34  ;;  %v25184_v34 = vld [vmem:[%s33015_s3 + $0x18c8] ss:$12 sps:$4 sm:$0xff]  }
 0x9e7   : > { %16929 = vmatpush1.bf16.msra.mxu0 %v25121_v1  ;;  %22044 = vmatprep.subr.bf16.mxu1 %v25129_v5  ;;  %v25183_v1 = vld [vmem:[%s33015_s3 + $0x18c4] ss:$12 sps:$4 sm:$0xff]   ;;  %v25185_v5 = vld [vmem:[%s33015_s3 + $0x1808] ss:$12 sps:$4 sm:$0xff]  }
 0x9e8   : > { %16930 = vmatprep.subr.bf16.mxu0 %v25128_v27  ;;  %v25181_v27 = vld [vmem:[%s33015_s3 + $0x18c0] ss:$12 sps:$4 sm:$0xff]  }
 0x9ea   : > { %22045 = vmatpush3.bf16.msra.mxu1 %v25130_v21  ;;  %v25189_v21 = vld [vmem:[%s33015_s3 + $0x18e0] ss:$12 sps:$4 sm:$0xff]  }
 0x9eb   : > { %16931 = vmatpush1.bf16.msra.mxu0 %v25126_v14  ;;  %22046 = vmatprep.subr.bf16.mxu1 %v25134_v59  ;;  %v25188_v59 = vld [vmem:[%s33015_s3 + $0x18dc] ss:$12 sps:$4 sm:$0xff]  }
 0x9ec   : > { %16932 = vmatprep.subr.bf16.mxu0 %v25133_v53 }
 0x9ee   : > { %22047 = vmatpush3.bf16.msra.mxu1 %v25135_v20 }
 0x9ef   : > { %16933 = vmatpush1.bf16.msra.mxu0 %v25131_v11  ;;  %22048 = vmatprep.subr.bf16.mxu1 %v25139_v48 }
 0x9f0   : > { %16934 = vmatprep.subr.bf16.mxu0 %v25138_v45 }
 0x9f2   : > { %22049 = vmatpush3.bf16.msra.mxu1 %v25140_v43  ;;  %v25190_v43 = vld [vmem:[%s33015_s3 + $0x1820] ss:$12 sps:$4 sm:$0xff]  }
 0x9f3   : > { %16935 = vmatpush1.bf16.msra.mxu0 %v25136_v54  ;;  %22050 = vmatprep.subr.bf16.mxu1 %v25144_v12 }
 0x9f4   : > { %16936 = vmatprep.subr.bf16.mxu0 %v25143_v23 }
 0x9f6   : > { %22051 = vmatpush3.bf16.msra.mxu1 %v25145_v35 }
 0x9f7   : > { %16937 = vmatpush1.bf16.msra.mxu0 %v25141_v22  ;;  %22052 = vmatprep.subr.bf16.mxu1 %v25149_v15  ;;  %v25186_v22 = vld [vmem:[%s33015_s3 + $0x18d8] ss:$12 sps:$4 sm:$0xff]  }
 0x9f8   : > { %v21972_v39 = vpop.f32.mrb[80].mxu1  ;;  %16938 = vmatprep.subr.bf16.mxu0 %v25148_v0  ;;  %v25193_v0 = vld [vmem:[%s33015_s3 + $0x18f4] ss:$12 sps:$4 sm:$0xff]  }
 0x9f9   : > { %v21973_v18 = vpop.f32.mrb[81].mxu1 }
 0x9fa   : > { %v21974_v3 = vadd.f32 %v21973_v18, %v21972_v39  ;;  %v21975_v33 = vpop.f32.mrb[82].mxu1  ;;  %22053 = vmatpush3.bf16.msra.mxu1 %v25150_v55  ;;  %v16249_v39 = vrot.slane %v29907_v10, 3  ;;  %v25197_v18 = vld [vmem:[%s33015_s3 + $0x190c] ss:$12 sps:$4 sm:$0xff]   ;;  %v25198_v10 = vld [vmem:[%s33015_s3 + $0x1910] ss:$12 sps:$4 sm:$0xff]  }
 0x9fb   : > { %16939 = vmatpush1.bf16.msra.mxu0 %v25146_v2  ;;  %v21976_v40 = vpop.f32.mrb[83].mxu1  ;;  %22060 = vmatprep.subr.bf16.mxu1 %v25154_v58  ;;  %v25194_v2 = vld [vmem:[%s33015_s3 + $0x18f8] ss:$12 sps:$4 sm:$0xff]  }
 0x9fc   : > { %16940 = vmatprep.subr.bf16.mxu0 %v25153_v38  ;;  %v14953_v25 = vadd.f32 %v21974_v3, %v32150_v7  ;;  %v25161_v7 = vld [vmem:[%s33015_s3 + $0x1860] ss:$12 sps:$4 sm:$0xff]   ;;  %v25191_v38 = vld [vmem:[%s33015_s3 + $0x18f0] ss:$12 sps:$4 sm:$0xff]  }
 0x9fd   : > { %17039 = vmatmul.mubr.bf16.vlgmr.msra.gmra.mrb[92].mxu1 %v16247_v29  ;;  %v25174_v29 = vld [vmem:[%s33015_s3 + $0x1898] ss:$12 sps:$4 sm:$0xff]  }
 0x9fe   : > { %22061 = vmatpush3.bf16.msra.mxu1 %v25155_v49  ;;  %17078 = vmatprep.mubr.bf16.mxu1 %v16250_v26  ;;  %v25175_v26 = vld [vmem:[%s33015_s3 + $0x17d8] ss:$12 sps:$4 sm:$0xff]   ;;  %v25195_v49 = vld [vmem:[%s33015_s3 + $0x1908] ss:$12 sps:$4 sm:$0xff]  }
 0x9ff   : > { %16941 = vmatpush1.bf16.msra.mxu0 %v25151_v62  ;;  %22062 = vmatprep.subr.bf16.mxu1 %v25159_v17  ;;  %v25201_v40 = vld [vmem:[%s33015_s3 + $0x1924] ss:$12 sps:$4 sm:$0xff]   ;;  %v25199_v62 = vld [vmem:[%s33015_s3 + $0x1920] ss:$12 sps:$4 sm:$0xff]   ;;  %v25205_v17 = vld [vmem:[%s33015_s3 + $0x193c] ss:$12 sps:$4 sm:$0xff]  }
 0xa00   : > { %16942 = vmatprep.subr.bf16.mxu0 %v25158_v19  ;;  %v25206_v19 = vld [vmem:[%s33015_s3 + $0x1940] ss:$12 sps:$4 sm:$0xff]  }
 0xa02   : > { %22063 = vmatpush3.bf16.msra.mxu1 %v25160_v63  ;;  %v25209_v63 = vld [vmem:[%s33015_s3 + $0x1954] ss:$12 sps:$4 sm:$0xff]  }
 0xa03   : > { %16943 = vmatpush1.bf16.msra.mxu0 %v25156_v42  ;;  %22064 = vmatprep.subr.bf16.mxu1 %v25164_v51  ;;  %v25210_v42 = vld [vmem:[%s33015_s3 + $0x1958] ss:$12 sps:$4 sm:$0xff]   ;;  %v25207_v51 = vld [vmem:[%s33015_s3 + $0x1950] ss:$12 sps:$4 sm:$0xff]  }
 0xa04   : > { %16944 = vmatprep.subr.bf16.mxu0 %v25163_v8  ;;  %v25213_v8 = vld [vmem:[%s33015_s3 + $0x196c] ss:$12 sps:$4 sm:$0xff]  }
 0xa06   : > { %22065 = vmatpush3.bf16.msra.mxu1 %v25165_v61  ;;  %v25214_v61 = vld [vmem:[%s33015_s3 + $0x1970] ss:$12 sps:$4 sm:$0xff]  }
 0xa07   : > { %16945 = vmatpush1.bf16.msra.mxu0 %v25161_v7  ;;  %22066 = vmatprep.subr.bf16.mxu1 %v25169_v41  ;;  %v25211_v7 = vld [vmem:[%s33015_s3 + $0x1968] ss:$12 sps:$4 sm:$0xff]   ;;  %v25217_v41 = vld [vmem:[%s33015_s3 + $0x1984] ss:$12 sps:$4 sm:$0xff]  }
 0xa08   : > { %16946 = vmatprep.subr.bf16.mxu0 %v25168_v16  ;;  %v25218_v16 = vld [vmem:[%s33015_s3 + $0x1988] ss:$12 sps:$4 sm:$0xff]  }
 0xa0a   : > { %22067 = vmatpush3.bf16.msra.mxu1 %v25170_v36  ;;  %v25215_v36 = vld [vmem:[%s33015_s3 + $0x1980] ss:$12 sps:$4 sm:$0xff]  }
 0xa0b   : > { %16947 = vmatpush1.bf16.msra.mxu0 %v25166_v30  ;;  %22068 = vmatprep.subr.bf16.mxu1 %v25174_v29  ;;  %v25221_v30 = vld [vmem:[%s33015_s3 + $0x199c] ss:$12 sps:$4 sm:$0xff]   ;;  %v25222_v29 = vld [vmem:[%s33015_s3 + $0x1a60] ss:$12 sps:$4 sm:$0xff]  }
 0xa0c   : > { %16948 = vmatprep.subr.bf16.mxu0 %v25173_v44 }
 0xa0e   : > { %22069 = vmatpush3.bf16.msra.mxu1 %v25175_v26 }
 0xa0f   : > { %16949 = vmatpush1.bf16.msra.mxu0 %v25171_v46  ;;  %22070 = vmatprep.subr.bf16.mxu1 %v25179_v56  ;;  %v25219_v46 = vld [vmem:[%s33015_s3 + $0x1998] ss:$12 sps:$4 sm:$0xff]  }
 0xa10   : > { %16950 = vmatprep.subr.bf16.mxu0 %v25178_v50 }
 0xa12   : > { %22071 = vmatpush3.bf16.msra.mxu1 %v25180_v47  ;;  %v16251_v47 = vrot.slane %v30086_v13, 3  ;;  %v25224_v13 = vld [vmem:[%s33015_s3 + $0x19b0] ss:$12 sps:$4 sm:$0xff]  }
 0xa13   : > { %16951 = vmatpush1.bf16.msra.mxu0 %v25176_v32  ;;  %22072 = vmatprep.subr.bf16.mxu1 %v25184_v34  ;;  %v25223_v32 = vld [vmem:[%s33015_s3 + $0x19a0] ss:$12 sps:$4 sm:$0xff]  }
 0xa14   : > { %v14992_v14 = vpop.f32.mrb[84].mxu1  ;;  %16952 = vmatprep.subr.bf16.mxu0 %v25183_v1  ;;  %v25226_v1 = vld [vmem:[%s33015_s3 + $0x19b4] ss:$12 sps:$4 sm:$0xff]  }
 0xa15   : > { %v14871_v53 = vpop.f32.mrb[72].mxu0  ;;  %v14993_v20 = vadd.f32 %v14992_v14, %v14953_v25  ;;  %v22292_v11 = vpop.f32.mrb[85].mxu1  ;;  %v25203_v25 = vld [vmem:[%s33015_s3 + $0x1938] ss:$12 sps:$4 sm:$0xff]   ;;  %v25232_v14 = vld [vmem:[%s33015_s3 + $0x1a90] ss:$12 sps:$4 sm:$0xff]  }
 0xa16   : > { %v14873_v48 = vpop.f32.mrb[73].mxu0  ;;  %v14995_v45 = vpop.f32.mrb[86].mxu1  ;;  %22073 = vmatpush3.bf16.msra.mxu1 %v25185_v5  ;;  %v17312_v5 = vrot.slane %v30099_v28, 3  ;;  %v25231_v28 = vld [vmem:[%s33015_s3 + $0x19cc] ss:$12 sps:$4 sm:$0xff]  }
 0xa17   : > { %v15015_v54 = vrot.slane %v14993_v20, %v30764_v52  ;;  %v15001_v12 = vcombine.low %v14871_v53, %v14873_v48  ;;  %v14875_v23 = vpop.f32.mrb[74].mxu0  ;;  %16953 = vmatpush1.bf16.msra.mxu0 %v25181_v27  ;;  %v22293_v35 = vpop.f32.mrb[87].mxu1  ;;  %22074 = vmatprep.subr.bf16.mxu1 %v25189_v21  ;;  %v25227_v27 = vld [vmem:[%s33015_s3 + $0x1a78] ss:$12 sps:$4 sm:$0xff]   ;;  %v25233_v53 = vld [vmem:[%s33015_s3 + $0x19d0] ss:$12 sps:$4 sm:$0xff]  }
 0xa18   : > { %v14876_v15 = vpop.f32.mrb[75].mxu0  ;;  %16954 = vmatprep.subr.bf16.mxu0 %v25188_v59  ;;  %v25228_v21 = vld [vmem:[%s33015_s3 + $0x19b8] ss:$12 sps:$4 sm:$0xff]   ;;  %v25229_v59 = vld [vmem:[%s33015_s3 + $0x19c8] ss:$12 sps:$4 sm:$0xff]  }
 0xa19   : > { %v15008_v55 = vrot.slane %v15001_v12, %v30764_v52  ;;  %v25236_v20 = vld [vmem:[%s33015_s3 + $0x19e4] ss:$12 sps:$4 sm:$0xff]   ;;  %v25237_v11 = vld [vmem:[%s33015_s3 + $0x1aa8] ss:$12 sps:$4 sm:$0xff]   ;;  %v25234_v48 = vld [vmem:[%s33015_s3 + $0x19e0] ss:$12 sps:$4 sm:$0xff]  }
 0xa1a   : > { %22075 = vmatpush3.bf16.msra.mxu1 %v25190_v43  ;;  %v25238_v45 = vld [vmem:[%s33015_s3 + $0x19e8] ss:$12 sps:$4 sm:$0xff]   ;;  %v25239_v12 = vld [vmem:[%s33015_s3 + $0x19f8] ss:$12 sps:$4 sm:$0xff]   ;;  %v25243_v23 = vld [vmem:[%s33015_s3 + $0x1a00] ss:$12 sps:$4 sm:$0xff]  }
 0xa1b   : > { %v15016_v58 = vcombine.low %v15008_v55, %v15015_v54  ;;  %16955 = vmatpush1.bf16.msra.mxu0 %v25186_v22  ;;  %22312 = vmatprep.subr.bf16.mxu1 %v25465_v4  ;;  %v25241_v43 = vld [vmem:[%s33015_s3 + $0x19fc] ss:$12 sps:$4 sm:$0xff]   ;;  %v25242_v54 = vld [vmem:[%s33015_s3 + $0x1ac0] ss:$12 sps:$4 sm:$0xff]   ;;  %v25247_v22 = vld [vmem:[%s33015_s3 + $0x1ad8] ss:$12 sps:$4 sm:$0xff]  }
 0xa1c   : > { %16965 = vmatprep.subr.bf16.mxu0 %v25193_v0  ;;  %v25246_v35 = vld [vmem:[%s33015_s3 + $0x1a14] ss:$12 sps:$4 sm:$0xff]   ;;  %v25244_v15 = vld [vmem:[%s33015_s3 + $0x1a10] ss:$12 sps:$4 sm:$0xff]   ;;  %v25248_v0 = vld [vmem:[%s33015_s3 + $0x1a18] ss:$12 sps:$4 sm:$0xff]  }
 0xa1d   : > { %v15023_v3 = vrot.slane %v15016_v58, %v30764_v52  ;;  %17079 = vmatmul.mubr.bf16.vlgmr.msra.gmra.mrb[96].mxu1 %v16249_v39  ;;  %v25251_v55 = vld [vmem:[%s33015_s3 + $0x1a2c] ss:$12 sps:$4 sm:$0xff]   ;;  %v25249_v58 = vld [vmem:[%s33015_s3 + $0x1a28] ss:$12 sps:$4 sm:$0xff]  }
 0xa1e   : > { %16957 = vmatmul.mubr.bf16.vlgmr.msra.gmra.mrb[88].mxu0 %v16249_v39  ;;  %22313 = vmatpush3.bf16.msra.mxu1 %v25194_v2  ;;  %v25252_v2 = vld [vmem:[%s33015_s3 + $0x1af0] ss:$12 sps:$4 sm:$0xff]  }
 0xa1f   : > { %v32375_v33 = vadd.f32 %v15023_v3, %v32075_v57  ;;  %16966 = vmatpush1.bf16.msra.mxu0 %v25191_v38  ;;  %22314 = vmatprep.subr.bf16.mxu1 %v25465_v4  ;;  %v25202_v57 = vld [vmem:[%s33015_s3 + $0x1928] ss:$12 sps:$4 sm:$0xff]   ;;  %v25253_v39 = vld [vmem:[%s33015_s3 + $0x1a30] ss:$12 sps:$4 sm:$0xff]   ;;  %v25254_v3 = vld [vmem:[%s33015_s3 + $0x1a40] ss:$12 sps:$4 sm:$0xff]  }
 0xa20   : > { %16967 = vmatprep.subr.bf16.mxu0 %v25197_v18  ;;  %16997 = vmatprep.mubr.bf16.mxu0 %v25466_v37  ;;  %v25256_v38 = vld [vmem:[%s33015_s3 + $0x1a44] ss:$12 sps:$4 sm:$0xff]   ;;  %v25257_v18 = vld [vmem:[%s33015_s3 + $0x1b08] ss:$12 sps:$4 sm:$0xff]  }
 0xa21   : > { %22326 = vmatprep.mubr.msk.bf16.mxu1 %vm25467_vm0, %v25465_v4 }
 0xa22   : > { %22315 = vmatpush3.bf16.msra.mxu1 %v25198_v10  ;;  %v25258_v10 = vld [vmem:[%s33015_s3 + $0x1a48] ss:$12 sps:$4 sm:$0xff]  }
 0xa23   : > { %16968 = vmatpush1.bf16.msra.mxu0 %v25195_v49  ;;  %22316 = vmatprep.subr.bf16.mxu1 %v25465_v4  ;;  %v25261_v49 = vld [vmem:[%s33015_s3 + $0x1a5c] ss:$12 sps:$4 sm:$0xff]  }
 0xa24   : > { %16969 = vmatprep.subr.bf16.mxu0 %v25201_v40  ;;  %v25262_v40 = vld [vmem:[%s33015_s3 + $0x1be0] ss:$12 sps:$4 sm:$0xff]  }
 0xa26   : > { %22317 = vmatpush3.bf16.msra.mxu1 %v25202_v57 }
 0xa27   : > { %16970 = vmatpush1.bf16.msra.mxu0 %v25199_v62  ;;  %22318 = vmatprep.subr.bf16.mxu1 %v25465_v4 }
 0xa28   : > { %16971 = vmatprep.subr.bf16.mxu0 %v25205_v17  ;;  %v25259_v17 = vld [vmem:[%s33015_s3 + $0x1a58] ss:$12 sps:$4 sm:$0xff]  }
 0xa2a   : > { %22319 = vmatpush3.bf16.msra.mxu1 %v25206_v19 }
 0xa2b   : > { %16972 = vmatpush1.bf16.msra.mxu0 %v25203_v25  ;;  %22320 = vmatprep.subr.bf16.mxu1 %v25465_v4 }
 0xa2c   : > { %16973 = vmatprep.subr.bf16.mxu0 %v25209_v63  ;;  %v25263_v63 = vld [vmem:[%s33015_s3 + $0x1b20] ss:$12 sps:$4 sm:$0xff]  }
 0xa2e   : > { %22321 = vmatpush3.bf16.msra.mxu1 %v25210_v42 }
 0xa2f   : > { %16974 = vmatpush1.bf16.msra.mxu0 %v25207_v51  ;;  %22322 = vmatprep.subr.bf16.mxu1 %v25465_v4  ;;  %v17311_v51 = vrot.slane %v30196_v31, 3  ;;  %v25309_v31 = vld [vmem:[%s33015_s3 + $0x1b4c] ss:$12 sps:$4 sm:$0xff]  }
 0xa30   : > { %16975 = vmatprep.subr.bf16.mxu0 %v25213_v8  ;;  %v25266_v8 = vld [vmem:[%s33015_s3 + $0x1a74] ss:$12 sps:$4 sm:$0xff]  }
 0xa32   : > { %22323 = vmatpush3.bf16.msra.mxu1 %v25214_v61  ;;  %v25267_v61 = vld [vmem:[%s33015_s3 + $0x1bf8] ss:$12 sps:$4 sm:$0xff]  }
 0xa33   : > { %16976 = vmatpush1.bf16.msra.mxu0 %v25211_v7  ;;  %22324 = vmatprep.subr.bf16.mxu1 %v25465_v4  ;;  %v17314_v7 = vrot.slane %v30206_v9, 3  ;;  %v25307_v9 = vld [vmem:[%s33015_s3 + $0x1b48] ss:$12 sps:$4 sm:$0xff]  }
 0xa34   : > { %16977 = vmatprep.subr.bf16.mxu0 %v25217_v41 }
 0xa35   : > { %v22002_v44 = vpop.f32.mrb[76].mxu0 }
 0xa36   : > { %v22003_v26 = vpop.f32.mrb[77].mxu0  ;;  %22325 = vmatpush3.bf16.msra.mxu1 %v25218_v16  ;;  %v25264_v16 = vld [vmem:[%s33015_s3 + $0x1a70] ss:$12 sps:$4 sm:$0xff]  }
 0xa37   : > { %v32443_v56 = vadd.f32 %v22003_v26, %v22002_v44  ;;  %v22005_v50 = vpop.f32.mrb[78].mxu0  ;;  %16978 = vmatpush1.bf16.msra.mxu0 %v25215_v36  ;;  %17947 = vmatprep.subr.bf16.mxu1 %v25221_v30  ;;  %v25268_v36 = vld [vmem:[%s33015_s3 + $0x1b38] ss:$12 sps:$4 sm:$0xff]   ;;  %v25269_v44 = vld [vmem:[%s33015_s3 + $0x1a88] ss:$12 sps:$4 sm:$0xff]  }
 0xa38   : > { %v22006_v34 = vpop.f32.mrb[79].mxu0  ;;  %22090 = vmatprep.subr.bf16.mxu0 %v25222_v29  ;;  %v25271_v30 = vld [vmem:[%s33015_s3 + $0x1a8c] ss:$12 sps:$4 sm:$0xff]   ;;  %v25272_v29 = vld [vmem:[%s33015_s3 + $0x1c10] ss:$12 sps:$4 sm:$0xff]  }
 0xa39   : > { %22327 = vmatmul.mubr.msk.bf16.vlgmr.msra.gmra.mrb[100].mxu1 %vm10481_vm2, %v16251_v47  ;;  %v25273_v26 = vld [vmem:[%s33015_s3 + $0x1b50] ss:$12 sps:$4 sm:$0xff]   ;;  %v25274_v50 = vld [vmem:[%s33015_s3 + $0x1aa0] ss:$12 sps:$4 sm:$0xff]  }
 0xa3a   : > { %21193 = vmatmul.mubr.msk.bf16.vlgmr.msra.gmra.mrb[88].mxu0 %vm10481_vm2, %v16251_v47  ;;  %17948 = vmatpush1.bf16.msra.mxu1 %v25219_v46  ;;  %v25276_v46 = vld [vmem:[%s33015_s3 + $0x1aa4] ss:$12 sps:$4 sm:$0xff]   ;;  %v25278_v47 = vld [vmem:[%s33015_s3 + $0x1b68] ss:$12 sps:$4 sm:$0xff]   ;;  %v25282_v34 = vld [vmem:[%s33015_s3 + $0x1c40] ss:$12 sps:$4 sm:$0xff]  }
 0xa3b   : > { %17979 = vmatprep.mubr.bf16.mxu1 %v17312_v5  ;;  %22091 = vmatpush3.bf16.msra.mxu0 %v25223_v32  ;;  %v25281_v32 = vld [vmem:[%s33015_s3 + $0x1abc] ss:$12 sps:$4 sm:$0xff]  }
 0xa3c   : > { %18102 = vmatprep.mubr.bf16.mxu0 %v17312_v5  ;;  %17949 = vmatprep.subr.bf16.mxu1 %v25226_v1  ;;  %v25279_v1 = vld [vmem:[%s33015_s3 + $0x1ab8] ss:$12 sps:$4 sm:$0xff]   ;;  %v25283_v5 = vld [vmem:[%s33015_s3 + $0x1b80] ss:$12 sps:$4 sm:$0xff]  }
 0xa3d   : > { %22092 = vmatprep.subr.bf16.mxu0 %v25227_v27  ;;  %v25286_v27 = vld [vmem:[%s33015_s3 + $0x1ad4] ss:$12 sps:$4 sm:$0xff]  }
 0xa3e   : > { %17950 = vmatpush1.bf16.msra.mxu1 %v25224_v13  ;;  %v25287_v13 = vld [vmem:[%s33015_s3 + $0x1c58] ss:$12 sps:$4 sm:$0xff]  }
 0xa3f   : > { %22093 = vmatpush3.bf16.msra.mxu0 %v25228_v21  ;;  %17951 = vmatprep.subr.bf16.mxu1 %v25231_v28  ;;  %v25284_v21 = vld [vmem:[%s33015_s3 + $0x1ad0] ss:$12 sps:$4 sm:$0xff]   ;;  %v25288_v28 = vld [vmem:[%s33015_s3 + $0x1b98] ss:$12 sps:$4 sm:$0xff]  }
 0xa40   : > { %22094 = vmatprep.subr.bf16.mxu0 %v25232_v14  ;;  %v25291_v14 = vld [vmem:[%s33015_s3 + $0x1aec] ss:$12 sps:$4 sm:$0xff]  }
 0xa42   : > { %17952 = vmatpush1.bf16.msra.mxu1 %v25229_v59  ;;  %v25292_v59 = vld [vmem:[%s33015_s3 + $0x1c70] ss:$12 sps:$4 sm:$0xff]  }
 0xa43   : > { %22095 = vmatpush3.bf16.msra.mxu0 %v25233_v53  ;;  %17953 = vmatprep.subr.bf16.mxu1 %v25236_v20  ;;  %v25289_v53 = vld [vmem:[%s33015_s3 + $0x1ae8] ss:$12 sps:$4 sm:$0xff]   ;;  %v25293_v20 = vld [vmem:[%s33015_s3 + $0x1bb0] ss:$12 sps:$4 sm:$0xff]  }
 0xa44   : > { %22096 = vmatprep.subr.bf16.mxu0 %v25237_v11  ;;  %v25296_v11 = vld [vmem:[%s33015_s3 + $0x1b04] ss:$12 sps:$4 sm:$0xff]  }
 0xa46   : > { %17954 = vmatpush1.bf16.msra.mxu1 %v25234_v48  ;;  %v25297_v48 = vld [vmem:[%s33015_s3 + $0x1c88] ss:$12 sps:$4 sm:$0xff]  }
 0xa47   : > { %22097 = vmatpush3.bf16.msra.mxu0 %v25238_v45  ;;  %17955 = vmatprep.subr.bf16.mxu1 %v25241_v43 }
 0xa48   : > { %22098 = vmatprep.subr.bf16.mxu0 %v25242_v54 }
 0xa4a   : > { %17956 = vmatpush1.bf16.msra.mxu1 %v25239_v12  ;;  %v25294_v12 = vld [vmem:[%s33015_s3 + $0x1b00] ss:$12 sps:$4 sm:$0xff]  }
 0xa4b   : > { %22099 = vmatpush3.bf16.msra.mxu0 %v25243_v23  ;;  %17957 = vmatprep.subr.bf16.mxu1 %v25246_v35  ;;  %v25298_v35 = vld [vmem:[%s33015_s3 + $0x1bc8] ss:$12 sps:$4 sm:$0xff]  }
 0xa4c   : > { %22100 = vmatprep.subr.bf16.mxu0 %v25247_v22  ;;  %v25301_v22 = vld [vmem:[%s33015_s3 + $0x1b1c] ss:$12 sps:$4 sm:$0xff]  }
 0xa4e   : > { %17958 = vmatpush1.bf16.msra.mxu1 %v25244_v15 }
 0xa4f   : > { %22101 = vmatpush3.bf16.msra.mxu0 %v25248_v0  ;;  %17959 = vmatprep.subr.bf16.mxu1 %v25251_v55  ;;  %v25299_v0 = vld [vmem:[%s33015_s3 + $0x1b18] ss:$12 sps:$4 sm:$0xff]   ;;  %v25302_v55 = vld [vmem:[%s33015_s3 + $0x1ca0] ss:$12 sps:$4 sm:$0xff]  }
 0xa50   : > { %22102 = vmatprep.subr.bf16.mxu0 %v25252_v2  ;;  %v17313_v2 = vrot.slane %v30297_v24, 3  ;;  %v25360_v24 = vld [vmem:[%s33015_s3 + $0x1cc8] ss:$12 sps:$4 sm:$0xff]  }
 0xa52   : > { %17960 = vmatpush1.bf16.msra.mxu1 %v25249_v58  ;;  %v25305_v58 = vld [vmem:[%s33015_s3 + $0x1b34] ss:$12 sps:$4 sm:$0xff]  }
 0xa53   : > { %22103 = vmatpush3.bf16.msra.mxu0 %v25253_v39  ;;  %17961 = vmatprep.subr.bf16.mxu1 %v25256_v38  ;;  %v25303_v39 = vld [vmem:[%s33015_s3 + $0x1b30] ss:$12 sps:$4 sm:$0xff]   ;;  %v25306_v38 = vld [vmem:[%s33015_s3 + $0x1cb8] ss:$12 sps:$4 sm:$0xff]  }
 0xa54   : > { %22104 = vmatprep.subr.bf16.mxu0 %v25257_v18  ;;  %v25310_v18 = vld [vmem:[%s33015_s3 + $0x1cd0] ss:$12 sps:$4 sm:$0xff]  }
 0xa55   : > { %v22024_v57 = vpop.f32.mrb[80].mxu0 }
 0xa56   : > { %v22025_v62 = vpop.f32.mrb[81].mxu0  ;;  %17962 = vmatpush1.bf16.msra.mxu1 %v25254_v3  ;;  %v25313_v3 = vld [vmem:[%s33015_s3 + $0x1b64] ss:$12 sps:$4 sm:$0xff]  }
 0xa57   : > { %v22026_v19 = vadd.f32 %v22025_v62, %v22024_v57  ;;  %v22027_v25 = vpop.f32.mrb[82].mxu0  ;;  %22105 = vmatpush3.bf16.msra.mxu0 %v25258_v10  ;;  %17963 = vmatprep.subr.bf16.mxu1 %v25261_v49  ;;  %v25311_v10 = vld [vmem:[%s33015_s3 + $0x1b60] ss:$12 sps:$4 sm:$0xff]   ;;  %v25314_v49 = vld [vmem:[%s33015_s3 + $0x1ce8] ss:$12 sps:$4 sm:$0xff]  }
 0xa58   : > { %v22028_v42 = vpop.f32.mrb[83].mxu0  ;;  %22112 = vmatprep.subr.bf16.mxu0 %v25262_v40  ;;  %v25317_v40 = vld [vmem:[%s33015_s3 + $0x1b7c] ss:$12 sps:$4 sm:$0xff]   ;;  %v25315_v57 = vld [vmem:[%s33015_s3 + $0x1b78] ss:$12 sps:$4 sm:$0xff]  }
 0xa59   : > { %v16017_v41 = vadd.f32 %v22026_v19, %v32443_v56  ;;  %v25277_v56 = vld [vmem:[%s33015_s3 + $0x1c28] ss:$12 sps:$4 sm:$0xff]   ;;  %v25318_v62 = vld [vmem:[%s33015_s3 + $0x1d00] ss:$12 sps:$4 sm:$0xff]   ;;  %v25319_v19 = vld [vmem:[%s33015_s3 + $0x1b90] ss:$12 sps:$4 sm:$0xff]  }
 0xa5a   : > { %18103 = vmatmul.mubr.bf16.vlgmr.msra.gmra.mrb[92].mxu0 %v17311_v51  ;;  %17964 = vmatpush1.bf16.msra.mxu1 %v25259_v17  ;;  %v25321_v17 = vld [vmem:[%s33015_s3 + $0x1b94] ss:$12 sps:$4 sm:$0xff]   ;;  %v25322_v25 = vld [vmem:[%s33015_s3 + $0x1d18] ss:$12 sps:$4 sm:$0xff]  }
 0xa5b   : > { %22113 = vmatpush3.bf16.msra.mxu0 %v25263_v63  ;;  %18142 = vmatprep.mubr.bf16.mxu0 %v17314_v7  ;;  %v25325_v63 = vld [vmem:[%s33015_s3 + $0x1bac] ss:$12 sps:$4 sm:$0xff]   ;;  %v25323_v42 = vld [vmem:[%s33015_s3 + $0x1ba8] ss:$12 sps:$4 sm:$0xff]  }
 0xa5c   : > { %17965 = vmatprep.subr.bf16.mxu1 %v25266_v8  ;;  %22114 = vmatprep.subr.bf16.mxu0 %v25267_v61  ;;  %v25329_v8 = vld [vmem:[%s33015_s3 + $0x1bc4] ss:$12 sps:$4 sm:$0xff]   ;;  %v25327_v61 = vld [vmem:[%s33015_s3 + $0x1bc0] ss:$12 sps:$4 sm:$0xff]  }
 0xa5e   : > { %17966 = vmatpush1.bf16.msra.mxu1 %v25264_v16  ;;  %v25330_v16 = vld [vmem:[%s33015_s3 + $0x1bd8] ss:$12 sps:$4 sm:$0xff]  }
 0xa5f   : > { %22115 = vmatpush3.bf16.msra.mxu0 %v25268_v36  ;;  %17967 = vmatprep.subr.bf16.mxu1 %v25271_v30  ;;  %v25335_v36 = vld [vmem:[%s33015_s3 + $0x1bf4] ss:$12 sps:$4 sm:$0xff]   ;;  %v25333_v30 = vld [vmem:[%s33015_s3 + $0x1bf0] ss:$12 sps:$4 sm:$0xff]  }
 0xa60   : > { %22116 = vmatprep.subr.bf16.mxu0 %v25272_v29  ;;  %v25338_v29 = vld [vmem:[%s33015_s3 + $0x1c0c] ss:$12 sps:$4 sm:$0xff]  }
 0xa62   : > { %17968 = vmatpush1.bf16.msra.mxu1 %v25269_v44  ;;  %v25336_v44 = vld [vmem:[%s33015_s3 + $0x1c08] ss:$12 sps:$4 sm:$0xff]  }
 0xa63   : > { %22117 = vmatpush3.bf16.msra.mxu0 %v25273_v26  ;;  %17969 = vmatprep.subr.bf16.mxu1 %v25276_v46  ;;  %v25341_v26 = vld [vmem:[%s33015_s3 + $0x1c24] ss:$12 sps:$4 sm:$0xff]   ;;  %v25339_v46 = vld [vmem:[%s33015_s3 + $0x1c20] ss:$12 sps:$4 sm:$0xff]  }
 0xa64   : > { %22118 = vmatprep.subr.bf16.mxu0 %v25277_v56  ;;  %v25344_v56 = vld [vmem:[%s33015_s3 + $0x1c3c] ss:$12 sps:$4 sm:$0xff]  }
 0xa66   : > { %17970 = vmatpush1.bf16.msra.mxu1 %v25274_v50  ;;  %v25342_v50 = vld [vmem:[%s33015_s3 + $0x1c38] ss:$12 sps:$4 sm:$0xff]  }
 0xa67   : > { %22119 = vmatpush3.bf16.msra.mxu0 %v25278_v47  ;;  %17971 = vmatprep.subr.bf16.mxu1 %v25281_v32  ;;  %v25347_v47 = vld [vmem:[%s33015_s3 + $0x1c54] ss:$12 sps:$4 sm:$0xff]   ;;  %v25345_v32 = vld [vmem:[%s33015_s3 + $0x1c50] ss:$12 sps:$4 sm:$0xff]  }
 0xa68   : > { %22120 = vmatprep.subr.bf16.mxu0 %v25282_v34  ;;  %v25350_v34 = vld [vmem:[%s33015_s3 + $0x1c6c] ss:$12 sps:$4 sm:$0xff]  }
 0xa6a   : > { %17972 = vmatpush1.bf16.msra.mxu1 %v25279_v1  ;;  %v25348_v1 = vld [vmem:[%s33015_s3 + $0x1c68] ss:$12 sps:$4 sm:$0xff]  }
 0xa6b   : > { %22121 = vmatpush3.bf16.msra.mxu0 %v25283_v5  ;;  %17973 = vmatprep.subr.bf16.mxu1 %v25286_v27  ;;  %v25353_v5 = vld [vmem:[%s33015_s3 + $0x1c84] ss:$12 sps:$4 sm:$0xff]  }
 0xa6c   : > { %22122 = vmatprep.subr.bf16.mxu0 %v25287_v13 }
 0xa6e   : > { %17974 = vmatpush1.bf16.msra.mxu1 %v25284_v21 }
 0xa6f   : > { %22123 = vmatpush3.bf16.msra.mxu0 %v25288_v28  ;;  %17975 = vmatprep.subr.bf16.mxu1 %v25291_v14  ;;  %v25351_v14 = vld [vmem:[%s33015_s3 + $0x1c80] ss:$12 sps:$4 sm:$0xff]  }
 0xa70   : > { %22124 = vmatprep.subr.bf16.mxu0 %v25292_v59 }
 0xa71   : > { %v16056_v45 = vpop.f32.mrb[84].mxu0 }
 0xa72   : > { %v32633_v43 = vadd.f32 %v16056_v45, %v16017_v41  ;;  %v22310_v54 = vpop.f32.mrb[85].mxu0  ;;  %17976 = vmatpush1.bf16.msra.mxu1 %v25289_v53  ;;  %v17315_v41 = vrot.slane %v30381_v60, 3  ;;  %v25356_v53 = vld [vmem:[%s33015_s3 + $0x1c9c] ss:$12 sps:$4 sm:$0xff]   ;;  %v25354_v45 = vld [vmem:[%s33015_s3 + $0x1c98] ss:$12 sps:$4 sm:$0xff]  }
 0xa73   : > { %v16059_v23 = vpop.f32.mrb[86].mxu0  ;;  %22125 = vmatpush3.bf16.msra.mxu0 %v25293_v20  ;;  %17977 = vmatprep.subr.bf16.mxu1 %v25296_v11  ;;  %v25359_v54 = vld [vmem:[%s33015_s3 + $0x1cb4] ss:$12 sps:$4 sm:$0xff]   ;;  %v18220_v60 = vld [vmem:[%s33017_s5 + $0x8] sm:$0xff] }
 0xa74   : > { %v22311_v15 = vpop.f32.mrb[87].mxu0  ;;  %22126 = vmatprep.subr.bf16.mxu0 %v25297_v48  ;;  %v16079_v20 = vrot.slane %v32633_v43, %v30764_v52  ;;  %v25357_v23 = vld [vmem:[%s33015_s3 + $0x1cb0] ss:$12 sps:$4 sm:$0xff]  }
 0xa75   : > { %v25366_v15 = vld [vmem:[%s33015_s3 + $0x1cf8] ss:$12 sps:$4 sm:$0xff]  }
 0xa76   : > { %17978 = vmatpush1.bf16.msra.mxu1 %v25294_v12 }
 0xa77   : > { %22127 = vmatpush3.bf16.msra.mxu0 %v25298_v35  ;;  %17988 = vmatprep.subr.bf16.mxu1 %v25301_v22  ;;  %v25362_v35 = vld [vmem:[%s33015_s3 + $0x1ccc] ss:$12 sps:$4 sm:$0xff]   ;;  %v25368_v22 = vld [vmem:[%s33015_s3 + $0x1cfc] ss:$12 sps:$4 sm:$0xff]  }
 0xa78   : > { %22330 = vmatprep.subr.bf16.mxu0 %v25465_v4 }
 0xa79   : > { %17980 = vmatmul.mubr.bf16.vlgmr.msra.gmra.mrb[104].mxu1 %v17311_v51  ;;  %v25326_v51 = vld [vmem:[%s33015_s3 + $0x1d30] ss:$12 sps:$4 sm:$0xff]  }
 0xa7a   : > { %18143 = vmatmul.mubr.bf16.vlgmr.msra.gmra.mrb[96].mxu0 %v17313_v2  ;;  %17989 = vmatpush1.bf16.msra.mxu1 %v25299_v0  ;;  %v25371_v0 = vld [vmem:[%s33015_s3 + $0x1d14] ss:$12 sps:$4 sm:$0xff]  }
 0xa7b   : > { %18020 = vmatprep.mubr.bf16.mxu1 %v17314_v7  ;;  %22331 = vmatpush3.bf16.msra.mxu0 %v25302_v55  ;;  %v25332_v7 = vld [vmem:[%s33015_s3 + $0x1bdc] ss:$12 sps:$4 sm:$0xff]  }
 0xa7c   : > { %17990 = vmatprep.subr.bf16.mxu1 %v25305_v58  ;;  %22332 = vmatprep.subr.bf16.mxu0 %v25465_v4  ;;  %v25369_v55 = vld [vmem:[%s33015_s3 + $0x1d10] ss:$12 sps:$4 sm:$0xff]   ;;  %v25372_v58 = vld [vmem:[%s33015_s3 + $0x1d28] ss:$12 sps:$4 sm:$0xff]  }
 0xa7d   : > { %22344 = vmatprep.mubr.msk.bf16.mxu0 %vm25467_vm0, %v25465_v4 }
 0xa7e   : > { %17991 = vmatpush1.bf16.msra.mxu1 %v25303_v39 }
 0xa7f   : > { %22333 = vmatpush3.bf16.msra.mxu0 %v25306_v38  ;;  %17992 = vmatprep.subr.bf16.mxu1 %v25309_v31 }
 0xa80   : > { %22334 = vmatprep.subr.bf16.mxu0 %v25465_v4 }
 0xa82   : > { %17993 = vmatpush1.bf16.msra.mxu1 %v25307_v9 }
 0xa83   : > { %22335 = vmatpush3.bf16.msra.mxu0 %v25310_v18  ;;  %17994 = vmatprep.subr.bf16.mxu1 %v25313_v3  ;;  %v18235_v3 = vld [vmem:[%s33017_s5 + $0x80] sm:$0xff] }
 0xa84   : > { %22336 = vmatprep.subr.bf16.mxu0 %v25465_v4 }
 0xa86   : > { %17995 = vmatpush1.bf16.msra.mxu1 %v25311_v10  ;;  %v18236_v10 = vld [vmem:[%s33017_s5 + $0x88] sm:$0xff] }
 0xa87   : > { %22337 = vmatpush3.bf16.msra.mxu0 %v25314_v49  ;;  %17996 = vmatprep.subr.bf16.mxu1 %v25317_v40  ;;  %v18219_v49 = vld [vmem:[%s33017_s5] sm:$0xff]  ;;  %v22459_v40 = vpack.c.bf16 %v18236_v10, %v18235_v3  ;;  %v18230_v3 = vld [vmem:[%s33017_s5 + $0x58] sm:$0xff]  ;;  %v25469_v10 = vmov 0.0|0.0  }
 0xa88   : > { %22338 = vmatprep.subr.bf16.mxu0 %v25465_v4 }
 0xa8a   : > { %17997 = vmatpush1.bf16.msra.mxu1 %v25315_v57  ;;  %v18238_v57 = vld [vmem:[%s33017_s5 + $0x98] sm:$0xff] }
 0xa8b   : > { %22339 = vmatpush3.bf16.msra.mxu0 %v25318_v62  ;;  %17998 = vmatprep.subr.bf16.mxu1 %v25321_v17  ;;  %v22461_v62 = vpack.c.bf16 %v18220_v60, %v18219_v49  ;;  %v18247_v60 = vld [vmem:[%s33017_s5 + $0xe0] sm:$0xff] }
 0xa8c   : > { %22340 = vmatprep.subr.bf16.mxu0 %v25465_v4 }
 0xa8e   : > { %17999 = vmatpush1.bf16.msra.mxu1 %v25319_v19  ;;  %v18221_v19 = vld [vmem:[%s33017_s5 + $0x10] sm:$0xff] }
 0xa8f   : > { %22341 = vmatpush3.bf16.msra.mxu0 %v25322_v25  ;;  %18000 = vmatprep.subr.bf16.mxu1 %v25325_v63  ;;  %v18222_v25 = vld [vmem:[%s33017_s5 + $0x18] sm:$0xff]  ;;  %v18239_v63 = vld [vmem:[%s33017_s5 + $0xa0] sm:$0xff] }
 0xa90   : > { %22342 = vmatprep.subr.bf16.mxu0 %v25465_v4 }
 0xa92   : > { %18001 = vmatpush1.bf16.msra.mxu1 %v25323_v42  ;;  %v18240_v42 = vld [vmem:[%s33017_s5 + $0xa8] sm:$0xff] }
 0xa93   : > { %22343 = vmatpush3.bf16.msra.mxu0 %v25326_v51  ;;  %18002 = vmatprep.subr.bf16.mxu1 %v25329_v8  ;;  %v22465_v8 = vpack.c.bf16 %v18222_v25, %v18221_v19  ;;  %v18231_v19 = vld [vmem:[%s33017_s5 + $0x60] sm:$0xff]  ;;  %v18232_v25 = vld [vmem:[%s33017_s5 + $0x68] sm:$0xff] }
 0xa94   : > { %22460 = vmatprep.subr.bf16.mxu0 %v22459_v40 }
 0xa96   : > { %22345 = vmatmul.mubr.msk.bf16.vlgmr.msra.gmra.mrb[100].mxu0 %vm10481_vm2, %v17315_v41  ;;  %18003 = vmatpush1.bf16.msra.mxu1 %v25327_v61 }
 0xa97   : > { %18004 = vmatprep.subr.bf16.mxu1 %v25332_v7  ;;  %22462 = vmatpush3.bf16.msra.mxu0 %v22461_v62  ;;  %v22467_v7 = vpack.c.bf16 %v18240_v42, %v18239_v63  ;;  %v22485_v42 = vpack.c.bf16 %v18232_v25, %v18231_v19 }
 0xa9a   : > { %18005 = vmatpush1.bf16.msra.mxu1 %v25330_v16  ;;  %v18224_v16 = vld [vmem:[%s33017_s5 + $0x28] sm:$0xff] }
 0xa9b   : > { %18006 = vmatprep.subr.bf16.mxu1 %v25335_v36 }
 0xa9e   : > { %18007 = vmatpush1.bf16.msra.mxu1 %v25333_v30 }
 0xa9f   : > { %18008 = vmatprep.subr.bf16.mxu1 %v25338_v29  ;;  %v18241_v29 = vld [vmem:[%s33017_s5 + $0xb0] sm:$0xff] }
 0xaa2   : > { %18009 = vmatpush1.bf16.msra.mxu1 %v25336_v44  ;;  %v18242_v44 = vld [vmem:[%s33017_s5 + $0xb8] sm:$0xff] }
 0xaa3   : > { %18010 = vmatprep.subr.bf16.mxu1 %v25341_v26 }
 0xaa6   : > { %18011 = vmatpush1.bf16.msra.mxu1 %v25339_v46 }
 0xaa7   : > { %18012 = vmatprep.subr.bf16.mxu1 %v25344_v56 }
 0xaaa   : > { %18013 = vmatpush1.bf16.msra.mxu1 %v25342_v50  ;;  %v22471_v50 = vpack.c.bf16 %v18242_v44, %v18241_v29 }
 0xaab   : > { %18014 = vmatprep.subr.bf16.mxu1 %v25347_v47  ;;  %v18225_v47 = vld [vmem:[%s33017_s5 + $0x30] sm:$0xff] }
 0xaae   : > { %18015 = vmatpush1.bf16.msra.mxu1 %v25345_v32  ;;  %v18226_v32 = vld [vmem:[%s33017_s5 + $0x38] sm:$0xff] }
 0xaaf   : > { %18016 = vmatprep.subr.bf16.mxu1 %v25350_v34  ;;  %v22473_v34 = vpack.c.bf16 %v18226_v32, %v18225_v47 }
 0xab0   : > { %v15935_v27 = vpop.f32.mrb[88].mxu1 }
 0xab1   : > { %v15937_v13 = vpop.f32.mrb[89].mxu1 }
 0xab2   : > { %v16065_v21 = vcombine.low %v15935_v27, %v15937_v13  ;;  %v15939_v28 = vpop.f32.mrb[90].mxu1  ;;  %18017 = vmatpush1.bf16.msra.mxu1 %v25348_v1 }
 0xab3   : > { %v15940_v59 = vpop.f32.mrb[91].mxu1  ;;  %18018 = vmatprep.subr.bf16.mxu1 %v25353_v5 }
 0xab4   : > { %v16072_v11 = vrot.slane %v16065_v21, %v30764_v52 }
 0xab6   : > { %v16080_v48 = vcombine.low %v16072_v11, %v16079_v20  ;;  %18019 = vmatpush1.bf16.msra.mxu1 %v25351_v14 }
 0xab7   : > { %18029 = vmatprep.subr.bf16.mxu1 %v25356_v53 }
 0xab8   : > { %v16087_v12 = vrot.slane %v16080_v48, %v30764_v52 }
 0xab9   : > { %18021 = vmatmul.mubr.bf16.vlgmr.msra.gmra.mrb[104].mxu1 %v17313_v2  ;;  %v25374_v2 = vld [vmem:[%s33015_s3 + $0x1d2c] ss:$12 sps:$4 sm:$0xff]  }
 0xaba   : > { %v32794_v43 = vadd.f32 %v16087_v12, %v32375_v33  ;;  %18030 = vmatpush1.bf16.msra.mxu1 %v25354_v45  ;;  %18061 = vmatprep.mubr.bf16.mxu1 %v25466_v37  ;;  %v25365_v33 = vld [vmem:[%s33015_s3 + $0x1ce4] ss:$12 sps:$4 sm:$0xff]   ;;  %v25363_v37 = vld [vmem:[%s33015_s3 + $0x1ce0] ss:$12 sps:$4 sm:$0xff]  }
 0xabb   : > { %18031 = vmatprep.subr.bf16.mxu1 %v25359_v54 }
 0xabe   : > { %18032 = vmatpush1.bf16.msra.mxu1 %v25357_v23  ;;  %v18243_v23 = vld [vmem:[%s33017_s5 + $0xc0] sm:$0xff] }
 0xabf   : > { %18033 = vmatprep.subr.bf16.mxu1 %v25362_v35  ;;  %v18244_v35 = vld [vmem:[%s33017_s5 + $0xc8] sm:$0xff] }
 0xac2   : > { %18034 = vmatpush1.bf16.msra.mxu1 %v25360_v24  ;;  %v22475_v24 = vpack.c.bf16 %v18244_v35, %v18243_v23  ;;  %v18269_v23 = vsub.s32 2, %v30752_v6  ;;  %v18261_v35 = vsub.s32 0, %v30752_v6 }
 0xac3   : > { %18035 = vmatprep.subr.bf16.mxu1 %v25365_v33  ;;  %v18227_v33 = vld [vmem:[%s33017_s5 + $0x40] sm:$0xff] }
 0xac6   : > { %18036 = vmatpush1.bf16.msra.mxu1 %v25363_v37  ;;  %v18228_v37 = vld [vmem:[%s33017_s5 + $0x48] sm:$0xff] }
 0xac7   : > { %18037 = vmatprep.subr.bf16.mxu1 %v25368_v22 }
 0xaca   : > { %18038 = vmatpush1.bf16.msra.mxu1 %v25366_v15 }
 0xacb   : > { %18039 = vmatprep.subr.bf16.mxu1 %v25371_v0 }
 0xace   : > { %18040 = vmatpush1.bf16.msra.mxu1 %v25369_v55 }
 0xacf   : > { %18041 = vmatprep.subr.bf16.mxu1 %v25374_v2  ;;  %v18245_v2 = vld [vmem:[%s33017_s5 + $0xd0] sm:$0xff] }
 0xad0   : > { %v22054_v39 = vpop.f32.mrb[92].mxu1 }
 0xad1   : > { %v22055_v38 = vpop.f32.mrb[93].mxu1 }
 0xad2   : > { %v22056_v31 = vadd.f32 %v22055_v38, %v22054_v39  ;;  %v22057_v9 = vpop.f32.mrb[94].mxu1  ;;  %18042 = vmatpush1.bf16.msra.mxu1 %v25372_v58  ;;  %v18246_v58 = vld [vmem:[%s33017_s5 + $0xd8] sm:$0xff]  ;;  %v18251_v39 = vld [vmem:[%s33017_s5 + $0x100] sm:$0xff] }
 0xad3   : > { %v22058_v18 = vpop.f32.mrb[95].mxu1  ;;  %v18252_v9 = vld [vmem:[%s33017_s5 + $0x108] sm:$0xff]  ;;  %22491 = vmatprep.subr.bf16.mxu1 %v25469_v10 }
 0xad4   : > { %v18229_v18 = vld [vmem:[%s33017_s5 + $0x50] sm:$0xff]  ;;  %v22492_v49 = vpack.c.bf16 %v18252_v9, %v18251_v39 }
 0xad5   : > { %21468 = vmatmul.mubr.msk.bf16.vlgmr.msra.gmra.mrb[104].mxu1 %vm10481_vm2, %v17315_v41  ;;  %v18223_v41 = vld [vmem:[%s33017_s5 + $0x20] sm:$0xff]  ;;  %v22481_v40 = vpack.c.bf16 %v18230_v3, %v18229_v18 }
 0xad6   : > { %22360 = vmatprep.mubr.msk.f32.mxu1 %vm25467_vm0, %v25465_v4  ;;  %v18237_v4 = vld [vmem:[%s33017_s5 + $0x90] sm:$0xff]  ;;  %v22469_v56 = vpack.c.bf16 %v18224_v16, %v18223_v41  ;;  %22493 = vmatpush3.bf16.msra.mxu1 %v22492_v49  ;;  %v18256_v41 = vld [vmem:[%s33017_s5 + $0x128] sm:$0xf] }
 0xad7   : > { %v22463_v17 = vpack.c.bf16 %v18238_v57, %v18237_v4  ;;  %v18248_v4 = vld [vmem:[%s33017_s5 + $0xe8] sm:$0xff]  ;;  %v18253_v57 = vld [vmem:[%s33017_s5 + $0x110] sm:$0xff]  ;;  %22494 = vmatprep.subr.bf16.mxu1 %v25469_v10 }
 0xad8   : > { %v22483_v62 = vpack.c.bf16 %v18248_v4, %v18247_v60  ;;  %v18233_v16 = vld [vmem:[%s33017_s5 + $0x70] sm:$0xff] }
 0xad9   : > { %22464 = vmatprep.subr.bf16.mxu0 %v22463_v17  ;;  %v18254_v17 = vld [vmem:[%s33017_s5 + $0x118] sm:$0xff] }
 0xada   : > { %22466 = vmatpush3.bf16.msra.mxu0 %v22465_v8  ;;  %v22495_v63 = vpack.c.bf16 %v18254_v17, %v18253_v57  ;;  %v18250_v8 = vld [vmem:[%s33017_s5 + $0xf8] sm:$0xff] }
 0xadb   : > { %22468 = vmatprep.subr.bf16.mxu0 %v22467_v7 }
 0xadc   : > { %22496 = vmatpush3.bf16.msra.mxu1 %v22495_v63 }
 0xadd   : > { %22497 = vmatprep.subr.bf16.mxu1 %v25469_v10 }
 0xade   : > { %22470 = vmatpush3.bf16.msra.mxu0 %v22469_v56 }
 0xadf   : > { %22472 = vmatprep.subr.bf16.mxu0 %v22471_v50 }
 0xae2   : > { %22474 = vmatpush3.bf16.msra.mxu0 %v22473_v34 }
 0xae3   : > { %22476 = vmatprep.subr.bf16.mxu0 %v22475_v24 }
 0xaf0   : > { %v22076_v51 = vpop.f32.mrb[96].mxu1 }
 0xaf1   : > { %v22077_v61 = vpop.f32.mrb[97].mxu1 }
 0xaf2   : > { %v22078_v36 = vadd.f32 %v22077_v61, %v22076_v51  ;;  %v22079_v30 = vpop.f32.mrb[98].mxu1  ;;  %v18249_v51 = vld [vmem:[%s33017_s5 + $0xf0] sm:$0xff]  ;;  %v18255_v61 = vld [vmem:[%s33017_s5 + $0x120] sm:$0xff] }
 0xaf3   : > { %v22080_v26 = vpop.f32.mrb[99].mxu1  ;;  %v22487_v7 = vpack.c.bf16 %v18250_v8, %v18249_v51  ;;  %v22498_v30 = vpack.c.bf16 %v18256_v41, %v18255_v61 }
 0xaf4   : > { %v17081_v46 = vadd.f32 %v22078_v36, %v22056_v31  ;;  %v22479_v31 = vpack.c.bf16 %v18246_v58, %v18245_v2  ;;  %v18234_v36 = vld [vmem:[%s33017_s5 + $0x78] sm:$0xff] }
 0xaf5   : > { %v22489_v29 = vpack.c.bf16 %v18234_v36, %v18233_v16  ;;  %22500 = vmatpush3.bf16.msk.msra.mxu1 %vm22499_vm13, %v22498_v30 }
 0xb0c   : > { %v17120_v1 = vpop.f32.mrb[100].mxu1 }
 0xb0d   : > { %v16999_v5 = vpop.f32.mrb[88].mxu0  ;;  %v17121_v27 = vadd.f32 %v17120_v1, %v17081_v46  ;;  %v22328_v13 = vpop.f32.mrb[101].mxu1 }
 0xb0e   : > { %v17001_v21 = vpop.f32.mrb[89].mxu0  ;;  %v17123_v28 = vpop.f32.mrb[102].mxu1 }
 0xb0f   : > { %v17143_v14 = vrot.slane %v17121_v27, %v30764_v52  ;;  %v17129_v59 = vcombine.low %v16999_v5, %v17001_v21  ;;  %v17003_v53 = vpop.f32.mrb[90].mxu0  ;;  %v22329_v20 = vpop.f32.mrb[103].mxu1 }
 0xb10   : > { %v17004_v11 = vpop.f32.mrb[91].mxu0 }
 0xb11   : > { %v17136_v48 = vrot.slane %v17129_v59, %v30764_v52 }
 0xb13   : > { %v17144_v45 = vcombine.low %v17136_v48, %v17143_v14 }
 0xb15   : > { %v17151_v54 = vrot.slane %v17144_v45, %v30764_v52 }
 0xb17   : > { %v32887_v12 = vadd.f32 %v17151_v54, %v32794_v43  ;;  %v22477_v43 = vpack.c.bf16 %v18228_v37, %v18227_v33  ;;  %v18265_v54 = vsub.s32 1, %v30752_v6 }
 0xb19   : > { %22478 = vmatpush3.bf16.msra.mxu0 %v22477_v43 }
 0xb1a   : > { %22480 = vmatprep.subr.bf16.mxu0 %v22479_v31 }
 0xb1d   : > { %22482 = vmatpush3.bf16.msra.mxu0 %v22481_v40 }
 0xb1e   : > { %22484 = vmatprep.subr.bf16.mxu0 %v22483_v62 }
 0xb21   : > { %22486 = vmatpush3.bf16.msra.mxu0 %v22485_v42 }
 0xb22   : > { %22488 = vmatprep.subr.bf16.mxu0 %v22487_v7 }
 0xb25   : > { %22490 = vmatpush3.bf16.msra.mxu0 %v22489_v29 }
 0xb2d   : > { %v22106_v22 = vpop.f32.mrb[92].mxu0 }
 0xb2e   : > { %v22107_v15 = vpop.f32.mrb[93].mxu0 }
 0xb2f   : > { %v22108_v0 = vadd.f32 %v22107_v15, %v22106_v22  ;;  %v22109_v55 = vpop.f32.mrb[94].mxu0 }
 0xb30   : > { %v22110_v38 = vpop.f32.mrb[95].mxu0 }
 0xb4d   : > { %v22128_v44 = vpop.f32.mrb[96].mxu0 }
 0xb4e   : > { %v22129_v26 = vpop.f32.mrb[97].mxu0 }
 0xb4f   : > { %v22130_v46 = vadd.f32 %v22129_v26, %v22128_v44  ;;  %v22131_v56 = vpop.f32.mrb[98].mxu0 }
 0xb50   : > { %v22132_v50 = vpop.f32.mrb[99].mxu0 }
 0xb51   : > { %v18145_v47 = vadd.f32 %v22130_v46, %v22108_v0 }
 0xb69   : > { %v18184_v32 = vpop.f32.mrb[100].mxu0 }
 0xb6a   : > { %v18185_v34 = vadd.f32 %v18184_v32, %v18145_v47  ;;  %v22346_v1 = vpop.f32.mrb[101].mxu0 }
 0xb6b   : > { %v18187_v5 = vpop.f32.mrb[102].mxu0 }
 0xb6c   : > { %v22347_v27 = vpop.f32.mrb[103].mxu0  ;;  %v18207_v53 = vrot.slane %v18185_v34, %v30764_v52 }
 0xba8   : > { %v18063_v13 = vpop.f32.mrb[104].mxu1 }
 0xba9   : > { %v18065_v21 = vpop.f32.mrb[105].mxu1 }
 0xbaa   : > { %v18193_v28 = vcombine.low %v18063_v13, %v18065_v21  ;;  %v18067_v14 = vpop.f32.mrb[106].mxu1 }
 0xbab   : > { %v18068_v59 = vpop.f32.mrb[107].mxu1 }
 0xbac   : > { %v18200_v20 = vrot.slane %v18193_v28, %v30764_v52 }
 0xbae   : > { %v18208_v11 = vcombine.low %v18200_v20, %v18207_v53 }
 0xbb0   : > { %v18215_v48 = vrot.slane %v18208_v11, %v30764_v52 }
 0xbb2   : > { %v18217_v45 = vadd.f32 %v18215_v48, %v32887_v12  ;;  %v18257_v12 = vld [vmem:[%s33018_s6] sm:$0x1] }
 0xbb4   : > { %v18218_v24 = vmax.f32 %v18217_v45, 0.0 }
 0xbb6   : > { %v18266_v33 = vrot.slane %v18218_v24, %v18265_v54  ;;  %v18270_v37 = vrot.slane %v18218_v24, %v18269_v23  ;;  %v18262_v22 = vrot.slane %v18218_v24, %v18261_v35 }
 0xbb8   : > { %18344 = vmatprep.mubr.f32.mxu0 %v18266_v33  ;;  %22361 = vmatmul.mubr.msk.f32.vlgmr.msra.gmra.mrb[14].mxu1 %vm18273_vm15, %v18270_v37 }
 0xbb9   : > { %18345 = vmatmul.mubr.f32.vlgmr.msra.gmra.mrb[10].mxu0 %v18262_v22 }
 0xc8b   : > { %v18416_v43 = vpop.f32.mrb[14].mxu1 }
 0xc8c   : > { %v22174_v52 = vpop.f32.mrb[10].mxu0  ;;  %v22362_v15 = vpop.f32.mrb[15].mxu1 }
 0xc8d   : > { %v22175_v0 = vpop.f32.mrb[11].mxu0 }
 0xc8e   : > { %v22176_v6 = vadd.f32 %v22175_v0, %v22174_v52 }
 0xc90   : > { %v18347_v55 = vadd.f32 %v22176_v6, %v18257_v12 }
 0xc92   : > { %v18417_v2 = vadd.f32 %v18416_v43, %v18347_v55 }
 0xc94   : > { %18421 = vst.msk [vmem:[%s268_s20] sm:$0x1] %vm18420_vm6, %v18417_v2 }
 0xc95   : > { %25389 = shalt.err (!%p25386_p3)
}
 0xc96   : > { %s25390_s15 = scalar_lea.hbm %s32970_s23, 16  ;;  %s25394_s9 = scalar_lea.hbm %s33019_s7, 32 }
 0xc97   : > { %p25391_p4 = scmp.ne.s32.totalorder %s32970_s23, %s25390_s15  ;;  %p25395_p9 = scmp.lt.u32.totalorder %s32970_s23, %s33019_s7 }
 0xc98   : > { %p25396_p10 = scmp.lt.u32.totalorder %s25394_s9, %s25390_s15  ;;  %p25398_p12 = scmp.lt.u32.totalorder %s25390_s15, %s32970_s23 }
 0xc99   : > { %p25392_p7 = pnand %p25391_p4, %p25550_p5 }
 0xc9a   : > { %p25397_p11 = por %p25396_p10, %p25395_p9 }
 0xc9b   : > { %p25393_p8 = pneg %p25392_p7 }
 0xc9c   : > { %p25399_p13 = por %p25398_p12, %p25397_p11 }
 0xc9e   : > { %p25400_p0 = pnand %p25399_p13, %p25393_p8 }
 0xca0   : > { %25403 = shalt.err (!%p25400_p0)
}
 0xca1   : > { %22654 = dma.vmem_to_hbm [thread:$0]  (%p25550_p5), %s32972_s21, 16, %s32970_s23, %s18423_s29  }
 0xca2 PF: > { %p22660_p1 = scmp.ge.s32.totalorder %s25438_s27, 2  ;;  %s18447_s19 = sand.u32 1, %s25426_s24  }
 0xca3   : > { %s18448_s20 = scalar_lea.sflag [#allocation4], %s18447_s19 }
 0xca4   : > { %p22657_p2 = pnand %p22660_p1, %p25554_p6 }
 0xca6   : > { %25421 = dma.done.wait (!%p22657_p2), %s18448_s20, 16  }
 0xca7   : > { %25423 = vsyncadd (!%p22657_p2), %s18448_s20, 4294967280  ;;  %s33139_s16 = sld [smem:[#allocation6_spill]]  ;;  %p17_p3 = scmp.ge.s32.totalorder %s25537_s30, 4  }
 0xca8   : > { %s33140_s24 = smov %s25430_s25  ;;  %s33141_s25 = smov %s25434_s26 }
 0xca9   : > { %s33143_s27 = smov %s25537_s30  ;;  %19 = sbr.rel (!%p17_p3) target bundleno = 5 (0x5), region = 164 }
 0xcad   : > { %s33142_s26 = smov %s33139_s16 }
 0xcb0   :  { %18452 = vsyncpa [#allocation4], 1 }
 0xcb1   :  { %18454 = vsyncpa [#allocation4 + $0x1], 1 }

</bundles_post_ra>
